<compile_context>
chip_gen: v7x
topology: tpu7x:2x2x1
jax: 0.10.0
libtpu: 0.0.40
codegen_flags: <defaults>
</compile_context>

<pallas_src>
import functools

import jax
import jax.numpy as jnp
from jax.experimental import pallas as pl
from jax.experimental.pallas import tpu as pltpu

EPS = 1e-5
EXPANSION = 1  # BasicBlock


# ----------------------------------------------------------------------------
# Small helpers
# ----------------------------------------------------------------------------
def _round_up(x, m):
    return ((x + m - 1) // m) * m


def _pick_tile(dim, candidates):
    """Largest candidate tile that evenly divides `dim` (dim pre-padded)."""
    for t in candidates:
        if dim % t == 0:
            return t
    return dim


def _pad2(x, rows, cols):
    r, c = x.shape
    if r == rows and c == cols:
        return x
    return jnp.pad(x, ((0, rows - r), (0, cols - c)))


# ----------------------------------------------------------------------------
# Pallas kernels
# ----------------------------------------------------------------------------
def _mm_bn_act_kernel(a_ref, b_ref, s_ref, c_ref, o_ref, acc_ref, *, relu):
    @pl.when(pl.program_id(2) == 0)
    def _():
        acc_ref[...] = jnp.zeros_like(acc_ref)

    acc_ref[...] += jnp.dot(a_ref[...], b_ref[...],
                            preferred_element_type=jnp.float32)

    @pl.when(pl.program_id(2) == pl.num_programs(2) - 1)
    def _():
        acc = acc_ref[...] * s_ref[...] + c_ref[...]
        if relu:
            acc = jnp.maximum(acc, 0.0)
        o_ref[...] = acc.astype(o_ref.dtype)


def _mm_bn_res_act_kernel(a_ref, b_ref, s_ref, c_ref, r_ref, o_ref, acc_ref,
                          *, relu):
    @pl.when(pl.program_id(2) == 0)
    def _():
        acc_ref[...] = jnp.zeros_like(acc_ref)

    acc_ref[...] += jnp.dot(a_ref[...], b_ref[...],
                            preferred_element_type=jnp.float32)

    @pl.when(pl.program_id(2) == pl.num_programs(2) - 1)
    def _():
        acc = (acc_ref[...] * s_ref[...] + c_ref[...]
               + r_ref[...].astype(jnp.float32))
        if relu:
            acc = jnp.maximum(acc, 0.0)
        o_ref[...] = acc.astype(o_ref.dtype)


def _avgpool_fc_kernel(x_ref, w_ref, b_ref, o_ref):
    # x: (Np, H*W, C) bf16 -> mean over spatial -> (Np, C) -> FC -> (Np, NCp)
    pooled = jnp.mean(x_ref[...].astype(jnp.float32), axis=1)
    acc = jnp.dot(pooled.astype(jnp.bfloat16), w_ref[...],
                  preferred_element_type=jnp.float32)
    o_ref[...] = acc + b_ref[...]


# ----------------------------------------------------------------------------
# Tiled matmul + fused BN / residual / ReLU
# ----------------------------------------------------------------------------
def matmul_bn_act(a, b, scale, bias, residual=None, relu=True,
                  out_dtype=jnp.bfloat16):
    """A[M,K] @ B[K,N] with fused per-column scale/bias, residual add, ReLU.

    bf16 MXU operands, f32 accumulation, tiled 3D grid with K as the
    (sequential) reduction axis.  M/N/K are zero-padded to tile multiples so
    all vreg loads/stores are unmasked; the result is sliced back to [M, N].
    """
    M, K = a.shape
    K2, N = b.shape
    assert K == K2

    tm = _pick_tile(_round_up(M, 8), (256, 128, 64, 32, 16, 8))
    tn = _pick_tile(_round_up(N, 128), (256, 128))
    tk = _pick_tile(_round_up(K, 128), (512, 384, 256, 128))
    Mp, Np, Kp = _round_up(M, tm), _round_up(N, tn), _round_up(K, tk)

    a_p = _pad2(a.astype(jnp.bfloat16), Mp, Kp)
    b_p = _pad2(b.astype(jnp.bfloat16), Kp, Np)
    s_p = _pad2(scale.reshape(1, N).astype(jnp.float32), 1, Np)
    c_p = _pad2(bias.reshape(1, N).astype(jnp.float32), 1, Np)

    args = [a_p, b_p, s_p, c_p]
    in_specs = [
        pl.BlockSpec((tm, tk), lambda i, j, k: (i, k)),
        pl.BlockSpec((tk, tn), lambda i, j, k: (k, j)),
        pl.BlockSpec((1, tn), lambda i, j, k: (0, j)),
        pl.BlockSpec((1, tn), lambda i, j, k: (0, j)),
    ]
    if residual is None:
        kernel = functools.partial(_mm_bn_act_kernel, relu=relu)
    else:
        # Residual stays bf16; its block index is constant over k, so it is
        # DMA'd once per (i, j) output tile and only read in the K-epilogue.
        args.append(_pad2(residual.astype(jnp.bfloat16), Mp, Np))
        in_specs.append(pl.BlockSpec((tm, tn), lambda i, j, k: (i, j)))
        kernel = functools.partial(_mm_bn_res_act_kernel, relu=relu)

    out = pl.pallas_call(
        kernel,
        grid=(Mp // tm, Np // tn, Kp // tk),
        in_specs=in_specs,
        out_specs=pl.BlockSpec((tm, tn), lambda i, j, k: (i, j)),
        out_shape=jax.ShapeDtypeStruct((Mp, Np), out_dtype),
        scratch_shapes=[pltpu.VMEM((tm, tn), jnp.float32)],
        compiler_params=pltpu.CompilerParams(
            dimension_semantics=("parallel", "parallel", "arbitrary"),
            vmem_limit_bytes=32 * 1024 * 1024),
    )(*args)
    if (Mp, Np) != (M, N):
        out = out[:M, :N]
    return out


def avgpool_fc(x, fc_w, fc_b):
    """Fused global average pool + Linear.  x: (N, H, W, C) bf16 -> (N, classes)."""
    n, h, w, c = x.shape
    num_classes = fc_w.shape[0]
    n_pad = _round_up(max(n, 8), 8)
    nc_pad = _round_up(num_classes, 128)   # lane-dense output, slice afterwards

    xr = x.reshape(n, h * w, c).astype(jnp.bfloat16)
    xr = jnp.pad(xr, ((0, n_pad - n), (0, 0), (0, 0)))
    wm = _pad2(fc_w.T.astype(jnp.bfloat16), c, nc_pad)                 # (C, NCp)
    bm = _pad2(fc_b.reshape(1, num_classes).astype(jnp.float32), 1, nc_pad)

    out = pl.pallas_call(
        _avgpool_fc_kernel,
        grid=(1,),
        in_specs=[
            pl.BlockSpec((n_pad, h * w, c), lambda i: (0, 0, 0)),
            pl.BlockSpec((c, nc_pad), lambda i: (0, 0)),
            pl.BlockSpec((1, nc_pad), lambda i: (0, 0)),
        ],
        out_specs=pl.BlockSpec((n_pad, nc_pad), lambda i: (0, 0)),
        out_shape=jax.ShapeDtypeStruct((n_pad, nc_pad), jnp.float32),
    )(xr, wm, bm)
    return out[:n, :num_classes]


# ----------------------------------------------------------------------------
# Glue: im2col + conv/bn/relu wrapper
# ----------------------------------------------------------------------------
def im2col(x, kh, kw, stride, pad):
    """x: NHWC (bf16) -> patches [N*Ho*Wo, kh*kw*Cin] (K ordered kh, kw, cin)."""
    n, h, w, c = x.shape
    xp = jnp.pad(x, ((0, 0), (pad, pad), (pad, pad), (0, 0)))
    ho = (h + 2 * pad - kh) // stride + 1
    wo = (w + 2 * pad - kw) // stride + 1
    cols = []
    for i in range(kh):
        for j in range(kw):
            cols.append(xp[:, i:i + stride * ho:stride, j:j + stride * wo:stride, :])
    patches = jnp.concatenate(cols, axis=-1)  # (N, Ho, Wo, kh*kw*C) bf16
    return patches.reshape(n * ho * wo, kh * kw * c), (n, ho, wo)


def conv_bn(x, w, conv_bias, bn, stride, pad, relu, residual=None):
    """Conv2d (torch weight (Cout,Cin,KH,KW)) + folded BN + optional res/ReLU."""
    cout, cin, kh, kw = w.shape
    patches, (n, ho, wo) = im2col(x.astype(jnp.bfloat16), kh, kw, stride, pad)
    wm = jnp.transpose(w, (2, 3, 1, 0)).reshape(kh * kw * cin, cout)
    gamma, beta, mean, var = bn
    scale = gamma / jnp.sqrt(var + EPS)
    bias = beta - mean * scale
    if conv_bias is not None:
        bias = bias + conv_bias * scale
    res = None if residual is None else residual.reshape(n * ho * wo, cout)
    out = matmul_bn_act(patches, wm, scale, bias, residual=res, relu=relu)
    return out.reshape(n, ho, wo, cout)


# ----------------------------------------------------------------------------
# Deterministic parameter init (synthetic; matches torch module shapes)
# ----------------------------------------------------------------------------
def init_conv(key, cout, cin, kh, kw, bias=False):
    k1, k2 = jax.random.split(key)
    w = jax.random.normal(k1, (cout, cin, kh, kw), jnp.float32) * 0.05
    b = jax.random.normal(k2, (cout,), jnp.float32) * 0.05 if bias else None
    return w, b


def init_bn(key, c):
    k1, k2, k3, k4 = jax.random.split(key, 4)
    gamma = 1.0 + 0.1 * jax.random.normal(k1, (c,), jnp.float32)
    beta = 0.1 * jax.random.normal(k2, (c,), jnp.float32)
    mean = 0.1 * jax.random.normal(k3, (c,), jnp.float32)
    var = jnp.abs(jax.random.normal(k4, (c,), jnp.float32)) + 0.5
    return (gamma, beta, mean, var)


def init_basic_block(key, inplanes, planes, stride):
    keys = jax.random.split(key, 6)
    p = {"stride": stride}
    p["conv1"], _ = init_conv(keys[0], planes, inplanes, 3, 3)
    p["bn1"] = init_bn(keys[1], planes)
    p["conv2"], _ = init_conv(keys[2], planes, planes, 3, 3)
    p["bn2"] = init_bn(keys[3], planes)
    if stride != 1 or inplanes != planes * EXPANSION:
        p["down_conv"], _ = init_conv(keys[4], planes * EXPANSION, inplanes, 1, 1)
        p["down_bn"] = init_bn(keys[5], planes * EXPANSION)
    return p


def init_resnet(key, num_blocks, num_classes=2):
    params = {}
    keys = jax.random.split(key, 5)
    params["conv1_w"], params["conv1_b"] = init_conv(keys[0], 64, 3, 7, 7, bias=True)
    params["bn1"] = init_bn(keys[1], 64)
    inplanes = 64
    layer_keys = jax.random.split(keys[2], 4)
    for li, (planes, stride, nb) in enumerate(
            zip([64, 128, 256, 512], [1, 2, 2, 2], num_blocks)):
        blocks = []
        bkeys = jax.random.split(layer_keys[li], nb)
        for bi in range(nb):
            s = stride if bi == 0 else 1
            blocks.append(init_basic_block(bkeys[bi], inplanes, planes, s))
            inplanes = planes * EXPANSION
        params["layer%d" % (li + 1)] = blocks
    params["fc_w"] = jax.random.normal(keys[3], (num_classes, 512 * EXPANSION),
                                       jnp.float32) * 0.05
    params["fc_b"] = jax.random.normal(keys[4], (num_classes,), jnp.float32) * 0.05
    return params


# ----------------------------------------------------------------------------
# Forward pass (mirrors ResNet.forward with BasicBlock)
# ----------------------------------------------------------------------------
def basic_block_forward(x, p):
    identity = x
    if "down_conv" in p:
        identity = conv_bn(x, p["down_conv"], None, p["down_bn"],
                           stride=p["stride"], pad=0, relu=False)
    out = conv_bn(x, p["conv1"], None, p["bn1"],
                  stride=p["stride"], pad=1, relu=True)
    # out = relu(bn2(conv2(out)) + identity), residual+relu fused in the kernel
    out = conv_bn(out, p["conv2"], None, p["bn2"],
                  stride=1, pad=1, relu=True, residual=identity)
    return out


def resnet_forward(params, x_nchw):
    x = jnp.transpose(x_nchw, (0, 2, 3, 1)).astype(jnp.bfloat16)  # NCHW -> NHWC bf16
    out = conv_bn(x, params["conv1_w"], params["conv1_b"], params["bn1"],
                  stride=2, pad=3, relu=True)
    for li in range(4):
        for blk in params["layer%d" % (li + 1)]:
            out = basic_block_forward(out, blk)
    # Fused global average pool + final Linear (lane-dense padded output).
    out = avgpool_fc(out, params["fc_w"], params["fc_b"])
    return out                                              # (N, num_classes) f32


if __name__ == "__main__":
    key = jax.random.PRNGKey(0)
    pkey, xkey = jax.random.split(key)
    # ResNet(BasicBlock, num_blocks=[1, 1, 1, 1], num_classes=2)
    params = init_resnet(pkey, num_blocks=[1, 1, 1, 1], num_classes=2)
    x = jax.random.normal(xkey, (2, 3, 32, 32), jnp.float32)  # NCHW, like torch

    fwd = jax.jit(lambda inp: resnet_forward(params, inp))
    y = jax.block_until_ready(fwd(x))

    assert y.shape == (2, 2), y.shape
    assert bool(jnp.all(jnp.isfinite(y)))
    print("KERNEL_OK")
</pallas_src>

<mosaic_0001>
module attributes {stable_mosaic.version = 11 : i64} {
  func.func @_mm_bn_act_kernel(%arg0: i32, %arg1: i32, %arg2: i32, %arg3: memref<256x256xbf16, #tpu.memory_space<vmem>>, %arg4: memref<256x128xbf16, #tpu.memory_space<vmem>>, %arg5: memref<1x128xf32, #tpu.memory_space<vmem>>, %arg6: memref<1x128xf32, #tpu.memory_space<vmem>>, %arg7: memref<256x128xbf16, #tpu.memory_space<vmem>>, %arg8: memref<256x128xf32, #tpu.memory_space<vmem>>) attributes {dimension_semantics = [#tpu.dimension_semantics<parallel>, #tpu.dimension_semantics<parallel>, #tpu.dimension_semantics<arbitrary>], iteration_bounds = array<i64: 2, 1, 1>, scalar_prefetch = 0 : i64, scratch_operands = 1 : i64, tpu.core_type = #tpu.core_type<tc>, window_params = [{transform_indices = @transform_0, window_bounds = array<i64: 256, 256>}, {transform_indices = @transform_1, window_bounds = array<i64: 256, 128>}, {transform_indices = @transform_2, window_bounds = array<i64: 1, 128>}, {transform_indices = @transform_3, window_bounds = array<i64: 1, 128>}, {transform_indices = @transform_4, window_bounds = array<i64: 256, 128>}]} {
    %c0_i32 = arith.constant 0 : i32
    %0 = arith.cmpi eq, %arg2, %c0_i32 : i32
    %1 = arith.extui %0 : i1 to i32
    %c0_i32_0 = arith.constant 0 : i32
    %2 = arith.cmpi ne, %1, %c0_i32_0 : i32
    scf.if %2 {
      %cst_10 = arith.constant 0.000000e+00 : f32
      %12 = vector.broadcast %cst_10 : f32 to vector<256x128xf32>
      %c0_11 = arith.constant 0 : index
      %c0_12 = arith.constant 0 : index
      %13 = vector.load %arg8[%c0_11, %c0_12] : memref<256x128xf32, #tpu.memory_space<vmem>>, vector<256x128xf32>
      tpu.vector_store %arg8[%c0_11, %c0_12], %12 {strides = array<i32>} : memref<256x128xf32, #tpu.memory_space<vmem>>, vector<256x128xf32>,
    } else {
    }
    %c0 = arith.constant 0 : index
    %c0_1 = arith.constant 0 : index
    %3 = vector.load %arg8[%c0, %c0_1] : memref<256x128xf32, #tpu.memory_space<vmem>>, vector<256x128xf32>
    %c0_2 = arith.constant 0 : index
    %c0_3 = arith.constant 0 : index
    %4 = vector.load %arg3[%c0_2, %c0_3] : memref<256x256xbf16, #tpu.memory_space<vmem>>, vector<256x256xbf16>
    %c0_4 = arith.constant 0 : index
    %c0_5 = arith.constant 0 : index
    %5 = vector.load %arg4[%c0_4, %c0_5] : memref<256x128xbf16, #tpu.memory_space<vmem>>, vector<256x128xbf16>
    %cst = arith.constant dense<0.000000e+00> : vector<256x128xf32>
    %6 = tpu.matmul %4, %5, %cst {dimension_numbers = #tpu.dot_dimension_numbers<[1], [0], [0], [1], [0, 0, 1, 1], [], []>} : vector<256x256xbf16>, vector<256x128xbf16>, vector<256x128xf32> -> vector<256x128xf32>
    %7 = arith.addf %3, %6 : vector<256x128xf32>
    %c0_6 = arith.constant 0 : index
    %c0_7 = arith.constant 0 : index
    %8 = vector.load %arg8[%c0_6, %c0_7] : memref<256x128xf32, #tpu.memory_space<vmem>>, vector<256x128xf32>
    tpu.vector_store %arg8[%c0_6, %c0_7], %7 {strides = array<i32>} : memref<256x128xf32, #tpu.memory_space<vmem>>, vector<256x128xf32>,
    %c0_i32_8 = arith.constant 0 : i32
    %9 = arith.cmpi eq, %arg2, %c0_i32_8 : i32
    %10 = arith.extui %9 : i1 to i32
    %c0_i32_9 = arith.constant 0 : i32
    %11 = arith.cmpi ne, %10, %c0_i32_9 : i32
    scf.if %11 {
      %c0_10 = arith.constant 0 : index
      %c0_11 = arith.constant 0 : index
      %12 = vector.load %arg8[%c0_10, %c0_11] : memref<256x128xf32, #tpu.memory_space<vmem>>, vector<256x128xf32>
      %c0_12 = arith.constant 0 : index
      %c0_13 = arith.constant 0 : index
      %13 = vector.load %arg5[%c0_12, %c0_13] : memref<1x128xf32, #tpu.memory_space<vmem>>, vector<1x128xf32>
      %14 = vector.broadcast %13 : vector<1x128xf32> to vector<256x128xf32>
      %15 = arith.mulf %12, %14 : vector<256x128xf32>
      %c0_14 = arith.constant 0 : index
      %c0_15 = arith.constant 0 : index
      %16 = vector.load %arg6[%c0_14, %c0_15] : memref<1x128xf32, #tpu.memory_space<vmem>>, vector<1x128xf32>
      %17 = vector.broadcast %16 : vector<1x128xf32> to vector<256x128xf32>
      %18 = arith.addf %15, %17 : vector<256x128xf32>
      %cst_16 = arith.constant 0.000000e+00 : f32
      %19 = vector.broadcast %cst_16 : f32 to vector<256x128xf32>
      %20 = arith.maximumf %18, %19 : vector<256x128xf32>
      %21 = arith.truncf %20 : vector<256x128xf32> to vector<256x128xbf16>
      %c0_17 = arith.constant 0 : index
      %c0_18 = arith.constant 0 : index
      %22 = vector.load %arg7[%c0_17, %c0_18] : memref<256x128xbf16, #tpu.memory_space<vmem>>, vector<256x128xbf16>
      tpu.vector_store %arg7[%c0_17, %c0_18], %21 {strides = array<i32>} : memref<256x128xbf16, #tpu.memory_space<vmem>>, vector<256x128xbf16>,
    } else {
    }
    return
  }
  func.func @transform_0(%arg0: i32, %arg1: i32, %arg2: i32) -> (i32, i32) {
    %c0_i32 = arith.constant 0 : i32
    return %arg0, %arg2 : i32, i32
  }
  func.func @transform_1(%arg0: i32, %arg1: i32, %arg2: i32) -> (i32, i32) {
    %c0_i32 = arith.constant 0 : i32
    return %arg2, %arg1 : i32, i32
  }
  func.func @transform_2(%arg0: i32, %arg1: i32, %arg2: i32) -> (i32, i32) {
    %c0_i32 = arith.constant 0 : i32
    %c0_i32_0 = arith.constant 0 : i32
    return %c0_i32, %arg1 : i32, i32
  }
  func.func @transform_3(%arg0: i32, %arg1: i32, %arg2: i32) -> (i32, i32) {
    %c0_i32 = arith.constant 0 : i32
    %c0_i32_0 = arith.constant 0 : i32
    return %c0_i32, %arg1 : i32, i32
  }
  func.func @transform_4(%arg0: i32, %arg1: i32, %arg2: i32) -> (i32, i32) {
    %c0_i32 = arith.constant 0 : i32
    return %arg0, %arg1 : i32, i32
  }
}

module attributes {stable_mosaic.version = 11 : i64} {
  func.func @_mm_bn_act_kernel(%arg0: i32, %arg1: i32, %arg2: i32, %arg3: memref<256x128xbf16, #tpu.memory_space<vmem>>, %arg4: memref<128x128xbf16, #tpu.memory_space<vmem>>, %arg5: memref<1x128xf32, #tpu.memory_space<vmem>>, %arg6: memref<1x128xf32, #tpu.memory_space<vmem>>, %arg7: memref<256x128xbf16, #tpu.memory_space<vmem>>, %arg8: memref<256x128xf32, #tpu.memory_space<vmem>>) attributes {dimension_semantics = [#tpu.dimension_semantics<parallel>, #tpu.dimension_semantics<parallel>, #tpu.dimension_semantics<arbitrary>], iteration_bounds = array<i64: 2, 1, 5>, scalar_prefetch = 0 : i64, scratch_operands = 1 : i64, tpu.core_type = #tpu.core_type<tc>, window_params = [{transform_indices = @transform_0, window_bounds = array<i64: 256, 128>}, {transform_indices = @transform_1, window_bounds = array<i64: 128, 128>}, {transform_indices = @transform_2, window_bounds = array<i64: 1, 128>}, {transform_indices = @transform_3, window_bounds = array<i64: 1, 128>}, {transform_indices = @transform_4, window_bounds = array<i64: 256, 128>}]} {
    %c0_i32 = arith.constant 0 : i32
    %0 = arith.cmpi eq, %arg2, %c0_i32 : i32
    %1 = arith.extui %0 : i1 to i32
    %c0_i32_0 = arith.constant 0 : i32
    %2 = arith.cmpi ne, %1, %c0_i32_0 : i32
    scf.if %2 {
      %cst_9 = arith.constant 0.000000e+00 : f32
      %12 = vector.broadcast %cst_9 : f32 to vector<256x128xf32>
      %c0_10 = arith.constant 0 : index
      %c0_11 = arith.constant 0 : index
      %13 = vector.load %arg8[%c0_10, %c0_11] : memref<256x128xf32, #tpu.memory_space<vmem>>, vector<256x128xf32>
      tpu.vector_store %arg8[%c0_10, %c0_11], %12 {strides = array<i32>} : memref<256x128xf32, #tpu.memory_space<vmem>>, vector<256x128xf32>,
    } else {
    }
    %c0 = arith.constant 0 : index
    %c0_1 = arith.constant 0 : index
    %3 = vector.load %arg8[%c0, %c0_1] : memref<256x128xf32, #tpu.memory_space<vmem>>, vector<256x128xf32>
    %c0_2 = arith.constant 0 : index
    %c0_3 = arith.constant 0 : index
    %4 = vector.load %arg3[%c0_2, %c0_3] : memref<256x128xbf16, #tpu.memory_space<vmem>>, vector<256x128xbf16>
    %c0_4 = arith.constant 0 : index
    %c0_5 = arith.constant 0 : index
    %5 = vector.load %arg4[%c0_4, %c0_5] : memref<128x128xbf16, #tpu.memory_space<vmem>>, vector<128x128xbf16>
    %cst = arith.constant dense<0.000000e+00> : vector<256x128xf32>
    %6 = tpu.matmul %4, %5, %cst {dimension_numbers = #tpu.dot_dimension_numbers<[1], [0], [0], [1], [0, 0, 1, 1], [], []>} : vector<256x128xbf16>, vector<128x128xbf16>, vector<256x128xf32> -> vector<256x128xf32>
    %7 = arith.addf %3, %6 : vector<256x128xf32>
    %c0_6 = arith.constant 0 : index
    %c0_7 = arith.constant 0 : index
    %8 = vector.load %arg8[%c0_6, %c0_7] : memref<256x128xf32, #tpu.memory_space<vmem>>, vector<256x128xf32>
    tpu.vector_store %arg8[%c0_6, %c0_7], %7 {strides = array<i32>} : memref<256x128xf32, #tpu.memory_space<vmem>>, vector<256x128xf32>,
    %c4_i32 = arith.constant 4 : i32
    %9 = arith.cmpi eq, %arg2, %c4_i32 : i32
    %10 = arith.extui %9 : i1 to i32
    %c0_i32_8 = arith.constant 0 : i32
    %11 = arith.cmpi ne, %10, %c0_i32_8 : i32
    scf.if %11 {
      %c0_9 = arith.constant 0 : index
      %c0_10 = arith.constant 0 : index
      %12 = vector.load %arg8[%c0_9, %c0_10] : memref<256x128xf32, #tpu.memory_space<vmem>>, vector<256x128xf32>
      %c0_11 = arith.constant 0 : index
      %c0_12 = arith.constant 0 : index
      %13 = vector.load %arg5[%c0_11, %c0_12] : memref<1x128xf32, #tpu.memory_space<vmem>>, vector<1x128xf32>
      %14 = vector.broadcast %13 : vector<1x128xf32> to vector<256x128xf32>
      %15 = arith.mulf %12, %14 : vector<256x128xf32>
      %c0_13 = arith.constant 0 : index
      %c0_14 = arith.constant 0 : index
      %16 = vector.load %arg6[%c0_13, %c0_14] : memref<1x128xf32, #tpu.memory_space<vmem>>, vector<1x128xf32>
      %17 = vector.broadcast %16 : vector<1x128xf32> to vector<256x128xf32>
      %18 = arith.addf %15, %17 : vector<256x128xf32>
      %cst_15 = arith.constant 0.000000e+00 : f32
      %19 = vector.broadcast %cst_15 : f32 to vector<256x128xf32>
      %20 = arith.maximumf %18, %19 : vector<256x128xf32>
      %21 = arith.truncf %20 : vector<256x128xf32> to vector<256x128xbf16>
      %c0_16 = arith.constant 0 : index
      %c0_17 = arith.constant 0 : index
      %22 = vector.load %arg7[%c0_16, %c0_17] : memref<256x128xbf16, #tpu.memory_space<vmem>>, vector<256x128xbf16>
      tpu.vector_store %arg7[%c0_16, %c0_17], %21 {strides = array<i32>} : memref<256x128xbf16, #tpu.memory_space<vmem>>, vector<256x128xbf16>,
    } else {
    }
    return
  }
  func.func @transform_0(%arg0: i32, %arg1: i32, %arg2: i32) -> (i32, i32) {
    %c0_i32 = arith.constant 0 : i32
    return %arg0, %arg2 : i32, i32
  }
  func.func @transform_1(%arg0: i32, %arg1: i32, %arg2: i32) -> (i32, i32) {
    %c0_i32 = arith.constant 0 : i32
    return %arg2, %arg1 : i32, i32
  }
  func.func @transform_2(%arg0: i32, %arg1: i32, %arg2: i32) -> (i32, i32) {
    %c0_i32 = arith.constant 0 : i32
    %c0_i32_0 = arith.constant 0 : i32
    return %c0_i32, %arg1 : i32, i32
  }
  func.func @transform_3(%arg0: i32, %arg1: i32, %arg2: i32) -> (i32, i32) {
    %c0_i32 = arith.constant 0 : i32
    %c0_i32_0 = arith.constant 0 : i32
    return %c0_i32, %arg1 : i32, i32
  }
  func.func @transform_4(%arg0: i32, %arg1: i32, %arg2: i32) -> (i32, i32) {
    %c0_i32 = arith.constant 0 : i32
    return %arg0, %arg1 : i32, i32
  }
}

module attributes {stable_mosaic.version = 11 : i64} {
  func.func @_mm_bn_res_act_kernel(%arg0: i32, %arg1: i32, %arg2: i32, %arg3: memref<256x128xbf16, #tpu.memory_space<vmem>>, %arg4: memref<128x128xbf16, #tpu.memory_space<vmem>>, %arg5: memref<1x128xf32, #tpu.memory_space<vmem>>, %arg6: memref<1x128xf32, #tpu.memory_space<vmem>>, %arg7: memref<256x128xbf16, #tpu.memory_space<vmem>>, %arg8: memref<256x128xbf16, #tpu.memory_space<vmem>>, %arg9: memref<256x128xf32, #tpu.memory_space<vmem>>) attributes {dimension_semantics = [#tpu.dimension_semantics<parallel>, #tpu.dimension_semantics<parallel>, #tpu.dimension_semantics<arbitrary>], iteration_bounds = array<i64: 2, 1, 5>, scalar_prefetch = 0 : i64, scratch_operands = 1 : i64, tpu.core_type = #tpu.core_type<tc>, window_params = [{transform_indices = @transform_0, window_bounds = array<i64: 256, 128>}, {transform_indices = @transform_1, window_bounds = array<i64: 128, 128>}, {transform_indices = @transform_2, window_bounds = array<i64: 1, 128>}, {transform_indices = @transform_3, window_bounds = array<i64: 1, 128>}, {transform_indices = @transform_4, window_bounds = array<i64: 256, 128>}, {transform_indices = @transform_5, window_bounds = array<i64: 256, 128>}]} {
    %c0_i32 = arith.constant 0 : i32
    %0 = arith.cmpi eq, %arg2, %c0_i32 : i32
    %1 = arith.extui %0 : i1 to i32
    %c0_i32_0 = arith.constant 0 : i32
    %2 = arith.cmpi ne, %1, %c0_i32_0 : i32
    scf.if %2 {
      %cst_9 = arith.constant 0.000000e+00 : f32
      %12 = vector.broadcast %cst_9 : f32 to vector<256x128xf32>
      %c0_10 = arith.constant 0 : index
      %c0_11 = arith.constant 0 : index
      %13 = vector.load %arg9[%c0_10, %c0_11] : memref<256x128xf32, #tpu.memory_space<vmem>>, vector<256x128xf32>
      tpu.vector_store %arg9[%c0_10, %c0_11], %12 {strides = array<i32>} : memref<256x128xf32, #tpu.memory_space<vmem>>, vector<256x128xf32>,
    } else {
    }
    %c0 = arith.constant 0 : index
    %c0_1 = arith.constant 0 : index
    %3 = vector.load %arg9[%c0, %c0_1] : memref<256x128xf32, #tpu.memory_space<vmem>>, vector<256x128xf32>
    %c0_2 = arith.constant 0 : index
    %c0_3 = arith.constant 0 : index
    %4 = vector.load %arg3[%c0_2, %c0_3] : memref<256x128xbf16, #tpu.memory_space<vmem>>, vector<256x128xbf16>
    %c0_4 = arith.constant 0 : index
    %c0_5 = arith.constant 0 : index
    %5 = vector.load %arg4[%c0_4, %c0_5] : memref<128x128xbf16, #tpu.memory_space<vmem>>, vector<128x128xbf16>
    %cst = arith.constant dense<0.000000e+00> : vector<256x128xf32>
    %6 = tpu.matmul %4, %5, %cst {dimension_numbers = #tpu.dot_dimension_numbers<[1], [0], [0], [1], [0, 0, 1, 1], [], []>} : vector<256x128xbf16>, vector<128x128xbf16>, vector<256x128xf32> -> vector<256x128xf32>
    %7 = arith.addf %3, %6 : vector<256x128xf32>
    %c0_6 = arith.constant 0 : index
    %c0_7 = arith.constant 0 : index
    %8 = vector.load %arg9[%c0_6, %c0_7] : memref<256x128xf32, #tpu.memory_space<vmem>>, vector<256x128xf32>
    tpu.vector_store %arg9[%c0_6, %c0_7], %7 {strides = array<i32>} : memref<256x128xf32, #tpu.memory_space<vmem>>, vector<256x128xf32>,
    %c4_i32 = arith.constant 4 : i32
    %9 = arith.cmpi eq, %arg2, %c4_i32 : i32
    %10 = arith.extui %9 : i1 to i32
    %c0_i32_8 = arith.constant 0 : i32
    %11 = arith.cmpi ne, %10, %c0_i32_8 : i32
    scf.if %11 {
      %c0_9 = arith.constant 0 : index
      %c0_10 = arith.constant 0 : index
      %12 = vector.load %arg9[%c0_9, %c0_10] : memref<256x128xf32, #tpu.memory_space<vmem>>, vector<256x128xf32>
      %c0_11 = arith.constant 0 : index
      %c0_12 = arith.constant 0 : index
      %13 = vector.load %arg5[%c0_11, %c0_12] : memref<1x128xf32, #tpu.memory_space<vmem>>, vector<1x128xf32>
      %14 = vector.broadcast %13 : vector<1x128xf32> to vector<256x128xf32>
      %15 = arith.mulf %12, %14 : vector<256x128xf32>
      %c0_13 = arith.constant 0 : index
      %c0_14 = arith.constant 0 : index
      %16 = vector.load %arg6[%c0_13, %c0_14] : memref<1x128xf32, #tpu.memory_space<vmem>>, vector<1x128xf32>
      %17 = vector.broadcast %16 : vector<1x128xf32> to vector<256x128xf32>
      %18 = arith.addf %15, %17 : vector<256x128xf32>
      %c0_15 = arith.constant 0 : index
      %c0_16 = arith.constant 0 : index
      %19 = vector.load %arg7[%c0_15, %c0_16] : memref<256x128xbf16, #tpu.memory_space<vmem>>, vector<256x128xbf16>
      %20 = arith.extf %19 : vector<256x128xbf16> to vector<256x128xf32>
      %21 = arith.addf %18, %20 : vector<256x128xf32>
      %cst_17 = arith.constant 0.000000e+00 : f32
      %22 = vector.broadcast %cst_17 : f32 to vector<256x128xf32>
      %23 = arith.maximumf %21, %22 : vector<256x128xf32>
      %24 = arith.truncf %23 : vector<256x128xf32> to vector<256x128xbf16>
      %c0_18 = arith.constant 0 : index
      %c0_19 = arith.constant 0 : index
      %25 = vector.load %arg8[%c0_18, %c0_19] : memref<256x128xbf16, #tpu.memory_space<vmem>>, vector<256x128xbf16>
      tpu.vector_store %arg8[%c0_18, %c0_19], %24 {strides = array<i32>} : memref<256x128xbf16, #tpu.memory_space<vmem>>, vector<256x128xbf16>,
    } else {
    }
    return
  }
  func.func @transform_0(%arg0: i32, %arg1: i32, %arg2: i32) -> (i32, i32) {
    %c0_i32 = arith.constant 0 : i32
    return %arg0, %arg2 : i32, i32
  }
  func.func @transform_1(%arg0: i32, %arg1: i32, %arg2: i32) -> (i32, i32) {
    %c0_i32 = arith.constant 0 : i32
    return %arg2, %arg1 : i32, i32
  }
  func.func @transform_2(%arg0: i32, %arg1: i32, %arg2: i32) -> (i32, i32) {
    %c0_i32 = arith.constant 0 : i32
    %c0_i32_0 = arith.constant 0 : i32
    return %c0_i32, %arg1 : i32, i32
  }
  func.func @transform_3(%arg0: i32, %arg1: i32, %arg2: i32) -> (i32, i32) {
    %c0_i32 = arith.constant 0 : i32
    %c0_i32_0 = arith.constant 0 : i32
    return %c0_i32, %arg1 : i32, i32
  }
  func.func @transform_4(%arg0: i32, %arg1: i32, %arg2: i32) -> (i32, i32) {
    %c0_i32 = arith.constant 0 : i32
    return %arg0, %arg1 : i32, i32
  }
  func.func @transform_5(%arg0: i32, %arg1: i32, %arg2: i32) -> (i32, i32) {
    %c0_i32 = arith.constant 0 : i32
    return %arg0, %arg1 : i32, i32
  }
}

module attributes {stable_mosaic.version = 11 : i64} {
  func.func @_mm_bn_act_kernel(%arg0: i32, %arg1: i32, %arg2: i32, %arg3: memref<128x128xbf16, #tpu.memory_space<vmem>>, %arg4: memref<128x128xbf16, #tpu.memory_space<vmem>>, %arg5: memref<1x128xf32, #tpu.memory_space<vmem>>, %arg6: memref<1x128xf32, #tpu.memory_space<vmem>>, %arg7: memref<128x128xbf16, #tpu.memory_space<vmem>>, %arg8: memref<128x128xf32, #tpu.memory_space<vmem>>) attributes {dimension_semantics = [#tpu.dimension_semantics<parallel>, #tpu.dimension_semantics<parallel>, #tpu.dimension_semantics<arbitrary>], iteration_bounds = array<i64: 1, 1, 5>, scalar_prefetch = 0 : i64, scratch_operands = 1 : i64, tpu.core_type = #tpu.core_type<tc>, window_params = [{transform_indices = @transform_0, window_bounds = array<i64: 128, 128>}, {transform_indices = @transform_1, window_bounds = array<i64: 128, 128>}, {transform_indices = @transform_2, window_bounds = array<i64: 1, 128>}, {transform_indices = @transform_3, window_bounds = array<i64: 1, 128>}, {transform_indices = @transform_4, window_bounds = array<i64: 128, 128>}]} {
    %c0_i32 = arith.constant 0 : i32
    %0 = arith.cmpi eq, %arg2, %c0_i32 : i32
    %1 = arith.extui %0 : i1 to i32
    %c0_i32_0 = arith.constant 0 : i32
    %2 = arith.cmpi ne, %1, %c0_i32_0 : i32
    scf.if %2 {
      %cst_9 = arith.constant 0.000000e+00 : f32
      %12 = vector.broadcast %cst_9 : f32 to vector<128x128xf32>
      %c0_10 = arith.constant 0 : index
      %c0_11 = arith.constant 0 : index
      %13 = vector.load %arg8[%c0_10, %c0_11] : memref<128x128xf32, #tpu.memory_space<vmem>>, vector<128x128xf32>
      tpu.vector_store %arg8[%c0_10, %c0_11], %12 {strides = array<i32>} : memref<128x128xf32, #tpu.memory_space<vmem>>, vector<128x128xf32>,
    } else {
    }
    %c0 = arith.constant 0 : index
    %c0_1 = arith.constant 0 : index
    %3 = vector.load %arg8[%c0, %c0_1] : memref<128x128xf32, #tpu.memory_space<vmem>>, vector<128x128xf32>
    %c0_2 = arith.constant 0 : index
    %c0_3 = arith.constant 0 : index
    %4 = vector.load %arg3[%c0_2, %c0_3] : memref<128x128xbf16, #tpu.memory_space<vmem>>, vector<128x128xbf16>
    %c0_4 = arith.constant 0 : index
    %c0_5 = arith.constant 0 : index
    %5 = vector.load %arg4[%c0_4, %c0_5] : memref<128x128xbf16, #tpu.memory_space<vmem>>, vector<128x128xbf16>
    %cst = arith.constant dense<0.000000e+00> : vector<128x128xf32>
    %6 = tpu.matmul %4, %5, %cst {dimension_numbers = #tpu.dot_dimension_numbers<[1], [0], [0], [1], [0, 0, 1, 1], [], []>} : vector<128x128xbf16>, vector<128x128xbf16>, vector<128x128xf32> -> vector<128x128xf32>
    %7 = arith.addf %3, %6 : vector<128x128xf32>
    %c0_6 = arith.constant 0 : index
    %c0_7 = arith.constant 0 : index
    %8 = vector.load %arg8[%c0_6, %c0_7] : memref<128x128xf32, #tpu.memory_space<vmem>>, vector<128x128xf32>
    tpu.vector_store %arg8[%c0_6, %c0_7], %7 {strides = array<i32>} : memref<128x128xf32, #tpu.memory_space<vmem>>, vector<128x128xf32>,
    %c4_i32 = arith.constant 4 : i32
    %9 = arith.cmpi eq, %arg2, %c4_i32 : i32
    %10 = arith.extui %9 : i1 to i32
    %c0_i32_8 = arith.constant 0 : i32
    %11 = arith.cmpi ne, %10, %c0_i32_8 : i32
    scf.if %11 {
      %c0_9 = arith.constant 0 : index
      %c0_10 = arith.constant 0 : index
      %12 = vector.load %arg8[%c0_9, %c0_10] : memref<128x128xf32, #tpu.memory_space<vmem>>, vector<128x128xf32>
      %c0_11 = arith.constant 0 : index
      %c0_12 = arith.constant 0 : index
      %13 = vector.load %arg5[%c0_11, %c0_12] : memref<1x128xf32, #tpu.memory_space<vmem>>, vector<1x128xf32>
      %14 = vector.broadcast %13 : vector<1x128xf32> to vector<128x128xf32>
      %15 = arith.mulf %12, %14 : vector<128x128xf32>
      %c0_13 = arith.constant 0 : index
      %c0_14 = arith.constant 0 : index
      %16 = vector.load %arg6[%c0_13, %c0_14] : memref<1x128xf32, #tpu.memory_space<vmem>>, vector<1x128xf32>
      %17 = vector.broadcast %16 : vector<1x128xf32> to vector<128x128xf32>
      %18 = arith.addf %15, %17 : vector<128x128xf32>
      %cst_15 = arith.constant 0.000000e+00 : f32
      %19 = vector.broadcast %cst_15 : f32 to vector<128x128xf32>
      %20 = arith.maximumf %18, %19 : vector<128x128xf32>
      %21 = arith.truncf %20 : vector<128x128xf32> to vector<128x128xbf16>
      %c0_16 = arith.constant 0 : index
      %c0_17 = arith.constant 0 : index
      %22 = vector.load %arg7[%c0_16, %c0_17] : memref<128x128xbf16, #tpu.memory_space<vmem>>, vector<128x128xbf16>
      tpu.vector_store %arg7[%c0_16, %c0_17], %21 {strides = array<i32>} : memref<128x128xbf16, #tpu.memory_space<vmem>>, vector<128x128xbf16>,
    } else {
    }
    return
  }
  func.func @transform_0(%arg0: i32, %arg1: i32, %arg2: i32) -> (i32, i32) {
    %c0_i32 = arith.constant 0 : i32
    return %arg0, %arg2 : i32, i32
  }
  func.func @transform_1(%arg0: i32, %arg1: i32, %arg2: i32) -> (i32, i32) {
    %c0_i32 = arith.constant 0 : i32
    return %arg2, %arg1 : i32, i32
  }
  func.func @transform_2(%arg0: i32, %arg1: i32, %arg2: i32) -> (i32, i32) {
    %c0_i32 = arith.constant 0 : i32
    %c0_i32_0 = arith.constant 0 : i32
    return %c0_i32, %arg1 : i32, i32
  }
  func.func @transform_3(%arg0: i32, %arg1: i32, %arg2: i32) -> (i32, i32) {
    %c0_i32 = arith.constant 0 : i32
    %c0_i32_0 = arith.constant 0 : i32
    return %c0_i32, %arg1 : i32, i32
  }
  func.func @transform_4(%arg0: i32, %arg1: i32, %arg2: i32) -> (i32, i32) {
    %c0_i32 = arith.constant 0 : i32
    return %arg0, %arg1 : i32, i32
  }
}

module attributes {stable_mosaic.version = 11 : i64} {
  func.func @_mm_bn_act_kernel(%arg0: i32, %arg1: i32, %arg2: i32, %arg3: memref<128x128xbf16, #tpu.memory_space<vmem>>, %arg4: memref<128x128xbf16, #tpu.memory_space<vmem>>, %arg5: memref<1x128xf32, #tpu.memory_space<vmem>>, %arg6: memref<1x128xf32, #tpu.memory_space<vmem>>, %arg7: memref<128x128xbf16, #tpu.memory_space<vmem>>, %arg8: memref<128x128xf32, #tpu.memory_space<vmem>>) attributes {dimension_semantics = [#tpu.dimension_semantics<parallel>, #tpu.dimension_semantics<parallel>, #tpu.dimension_semantics<arbitrary>], iteration_bounds = array<i64: 1, 1, 1>, scalar_prefetch = 0 : i64, scratch_operands = 1 : i64, tpu.core_type = #tpu.core_type<tc>, window_params = [{transform_indices = @transform_0, window_bounds = array<i64: 128, 128>}, {transform_indices = @transform_1, window_bounds = array<i64: 128, 128>}, {transform_indices = @transform_2, window_bounds = array<i64: 1, 128>}, {transform_indices = @transform_3, window_bounds = array<i64: 1, 128>}, {transform_indices = @transform_4, window_bounds = array<i64: 128, 128>}]} {
    %c0_i32 = arith.constant 0 : i32
    %0 = arith.cmpi eq, %arg2, %c0_i32 : i32
    %1 = arith.extui %0 : i1 to i32
    %c0_i32_0 = arith.constant 0 : i32
    %2 = arith.cmpi ne, %1, %c0_i32_0 : i32
    scf.if %2 {
      %cst_10 = arith.constant 0.000000e+00 : f32
      %12 = vector.broadcast %cst_10 : f32 to vector<128x128xf32>
      %c0_11 = arith.constant 0 : index
      %c0_12 = arith.constant 0 : index
      %13 = vector.load %arg8[%c0_11, %c0_12] : memref<128x128xf32, #tpu.memory_space<vmem>>, vector<128x128xf32>
      tpu.vector_store %arg8[%c0_11, %c0_12], %12 {strides = array<i32>} : memref<128x128xf32, #tpu.memory_space<vmem>>, vector<128x128xf32>,
    } else {
    }
    %c0 = arith.constant 0 : index
    %c0_1 = arith.constant 0 : index
    %3 = vector.load %arg8[%c0, %c0_1] : memref<128x128xf32, #tpu.memory_space<vmem>>, vector<128x128xf32>
    %c0_2 = arith.constant 0 : index
    %c0_3 = arith.constant 0 : index
    %4 = vector.load %arg3[%c0_2, %c0_3] : memref<128x128xbf16, #tpu.memory_space<vmem>>, vector<128x128xbf16>
    %c0_4 = arith.constant 0 : index
    %c0_5 = arith.constant 0 : index
    %5 = vector.load %arg4[%c0_4, %c0_5] : memref<128x128xbf16, #tpu.memory_space<vmem>>, vector<128x128xbf16>
    %cst = arith.constant dense<0.000000e+00> : vector<128x128xf32>
    %6 = tpu.matmul %4, %5, %cst {dimension_numbers = #tpu.dot_dimension_numbers<[1], [0], [0], [1], [0, 0, 1, 1], [], []>} : vector<128x128xbf16>, vector<128x128xbf16>, vector<128x128xf32> -> vector<128x128xf32>
    %7 = arith.addf %3, %6 : vector<128x128xf32>
    %c0_6 = arith.constant 0 : index
    %c0_7 = arith.constant 0 : index
    %8 = vector.load %arg8[%c0_6, %c0_7] : memref<128x128xf32, #tpu.memory_space<vmem>>, vector<128x128xf32>
    tpu.vector_store %arg8[%c0_6, %c0_7], %7 {strides = array<i32>} : memref<128x128xf32, #tpu.memory_space<vmem>>, vector<128x128xf32>,
    %c0_i32_8 = arith.constant 0 : i32
    %9 = arith.cmpi eq, %arg2, %c0_i32_8 : i32
    %10 = arith.extui %9 : i1 to i32
    %c0_i32_9 = arith.constant 0 : i32
    %11 = arith.cmpi ne, %10, %c0_i32_9 : i32
    scf.if %11 {
      %c0_10 = arith.constant 0 : index
      %c0_11 = arith.constant 0 : index
      %12 = vector.load %arg8[%c0_10, %c0_11] : memref<128x128xf32, #tpu.memory_space<vmem>>, vector<128x128xf32>
      %c0_12 = arith.constant 0 : index
      %c0_13 = arith.constant 0 : index
      %13 = vector.load %arg5[%c0_12, %c0_13] : memref<1x128xf32, #tpu.memory_space<vmem>>, vector<1x128xf32>
      %14 = vector.broadcast %13 : vector<1x128xf32> to vector<128x128xf32>
      %15 = arith.mulf %12, %14 : vector<128x128xf32>
      %c0_14 = arith.constant 0 : index
      %c0_15 = arith.constant 0 : index
      %16 = vector.load %arg6[%c0_14, %c0_15] : memref<1x128xf32, #tpu.memory_space<vmem>>, vector<1x128xf32>
      %17 = vector.broadcast %16 : vector<1x128xf32> to vector<128x128xf32>
      %18 = arith.addf %15, %17 : vector<128x128xf32>
      %19 = arith.truncf %18 : vector<128x128xf32> to vector<128x128xbf16>
      %c0_16 = arith.constant 0 : index
      %c0_17 = arith.constant 0 : index
      %20 = vector.load %arg7[%c0_16, %c0_17] : memref<128x128xbf16, #tpu.memory_space<vmem>>, vector<128x128xbf16>
      tpu.vector_store %arg7[%c0_16, %c0_17], %19 {strides = array<i32>} : memref<128x128xbf16, #tpu.memory_space<vmem>>, vector<128x128xbf16>,
    } else {
    }
    return
  }
  func.func @transform_0(%arg0: i32, %arg1: i32, %arg2: i32) -> (i32, i32) {
    %c0_i32 = arith.constant 0 : i32
    return %arg0, %arg2 : i32, i32
  }
  func.func @transform_1(%arg0: i32, %arg1: i32, %arg2: i32) -> (i32, i32) {
    %c0_i32 = arith.constant 0 : i32
    return %arg2, %arg1 : i32, i32
  }
  func.func @transform_2(%arg0: i32, %arg1: i32, %arg2: i32) -> (i32, i32) {
    %c0_i32 = arith.constant 0 : i32
    %c0_i32_0 = arith.constant 0 : i32
    return %c0_i32, %arg1 : i32, i32
  }
  func.func @transform_3(%arg0: i32, %arg1: i32, %arg2: i32) -> (i32, i32) {
    %c0_i32 = arith.constant 0 : i32
    %c0_i32_0 = arith.constant 0 : i32
    return %c0_i32, %arg1 : i32, i32
  }
  func.func @transform_4(%arg0: i32, %arg1: i32, %arg2: i32) -> (i32, i32) {
    %c0_i32 = arith.constant 0 : i32
    return %arg0, %arg1 : i32, i32
  }
}

module attributes {stable_mosaic.version = 11 : i64} {
  func.func @_mm_bn_res_act_kernel(%arg0: i32, %arg1: i32, %arg2: i32, %arg3: memref<128x384xbf16, #tpu.memory_space<vmem>>, %arg4: memref<384x128xbf16, #tpu.memory_space<vmem>>, %arg5: memref<1x128xf32, #tpu.memory_space<vmem>>, %arg6: memref<1x128xf32, #tpu.memory_space<vmem>>, %arg7: memref<128x128xbf16, #tpu.memory_space<vmem>>, %arg8: memref<128x128xbf16, #tpu.memory_space<vmem>>, %arg9: memref<128x128xf32, #tpu.memory_space<vmem>>) attributes {dimension_semantics = [#tpu.dimension_semantics<parallel>, #tpu.dimension_semantics<parallel>, #tpu.dimension_semantics<arbitrary>], iteration_bounds = array<i64: 1, 1, 3>, scalar_prefetch = 0 : i64, scratch_operands = 1 : i64, tpu.core_type = #tpu.core_type<tc>, window_params = [{transform_indices = @transform_0, window_bounds = array<i64: 128, 384>}, {transform_indices = @transform_1, window_bounds = array<i64: 384, 128>}, {transform_indices = @transform_2, window_bounds = array<i64: 1, 128>}, {transform_indices = @transform_3, window_bounds = array<i64: 1, 128>}, {transform_indices = @transform_4, window_bounds = array<i64: 128, 128>}, {transform_indices = @transform_5, window_bounds = array<i64: 128, 128>}]} {
    %c0_i32 = arith.constant 0 : i32
    %0 = arith.cmpi eq, %arg2, %c0_i32 : i32
    %1 = arith.extui %0 : i1 to i32
    %c0_i32_0 = arith.constant 0 : i32
    %2 = arith.cmpi ne, %1, %c0_i32_0 : i32
    scf.if %2 {
      %cst_9 = arith.constant 0.000000e+00 : f32
      %12 = vector.broadcast %cst_9 : f32 to vector<128x128xf32>
      %c0_10 = arith.constant 0 : index
      %c0_11 = arith.constant 0 : index
      %13 = vector.load %arg9[%c0_10, %c0_11] : memref<128x128xf32, #tpu.memory_space<vmem>>, vector<128x128xf32>
      tpu.vector_store %arg9[%c0_10, %c0_11], %12 {strides = array<i32>} : memref<128x128xf32, #tpu.memory_space<vmem>>, vector<128x128xf32>,
    } else {
    }
    %c0 = arith.constant 0 : index
    %c0_1 = arith.constant 0 : index
    %3 = vector.load %arg9[%c0, %c0_1] : memref<128x128xf32, #tpu.memory_space<vmem>>, vector<128x128xf32>
    %c0_2 = arith.constant 0 : index
    %c0_3 = arith.constant 0 : index
    %4 = vector.load %arg3[%c0_2, %c0_3] : memref<128x384xbf16, #tpu.memory_space<vmem>>, vector<128x384xbf16>
    %c0_4 = arith.constant 0 : index
    %c0_5 = arith.constant 0 : index
    %5 = vector.load %arg4[%c0_4, %c0_5] : memref<384x128xbf16, #tpu.memory_space<vmem>>, vector<384x128xbf16>
    %cst = arith.constant dense<0.000000e+00> : vector<128x128xf32>
    %6 = tpu.matmul %4, %5, %cst {dimension_numbers = #tpu.dot_dimension_numbers<[1], [0], [0], [1], [0, 0, 1, 1], [], []>} : vector<128x384xbf16>, vector<384x128xbf16>, vector<128x128xf32> -> vector<128x128xf32>
    %7 = arith.addf %3, %6 : vector<128x128xf32>
    %c0_6 = arith.constant 0 : index
    %c0_7 = arith.constant 0 : index
    %8 = vector.load %arg9[%c0_6, %c0_7] : memref<128x128xf32, #tpu.memory_space<vmem>>, vector<128x128xf32>
    tpu.vector_store %arg9[%c0_6, %c0_7], %7 {strides = array<i32>} : memref<128x128xf32, #tpu.memory_space<vmem>>, vector<128x128xf32>,
    %c2_i32 = arith.constant 2 : i32
    %9 = arith.cmpi eq, %arg2, %c2_i32 : i32
    %10 = arith.extui %9 : i1 to i32
    %c0_i32_8 = arith.constant 0 : i32
    %11 = arith.cmpi ne, %10, %c0_i32_8 : i32
    scf.if %11 {
      %c0_9 = arith.constant 0 : index
      %c0_10 = arith.constant 0 : index
      %12 = vector.load %arg9[%c0_9, %c0_10] : memref<128x128xf32, #tpu.memory_space<vmem>>, vector<128x128xf32>
      %c0_11 = arith.constant 0 : index
      %c0_12 = arith.constant 0 : index
      %13 = vector.load %arg5[%c0_11, %c0_12] : memref<1x128xf32, #tpu.memory_space<vmem>>, vector<1x128xf32>
      %14 = vector.broadcast %13 : vector<1x128xf32> to vector<128x128xf32>
      %15 = arith.mulf %12, %14 : vector<128x128xf32>
      %c0_13 = arith.constant 0 : index
      %c0_14 = arith.constant 0 : index
      %16 = vector.load %arg6[%c0_13, %c0_14] : memref<1x128xf32, #tpu.memory_space<vmem>>, vector<1x128xf32>
      %17 = vector.broadcast %16 : vector<1x128xf32> to vector<128x128xf32>
      %18 = arith.addf %15, %17 : vector<128x128xf32>
      %c0_15 = arith.constant 0 : index
      %c0_16 = arith.constant 0 : index
      %19 = vector.load %arg7[%c0_15, %c0_16] : memref<128x128xbf16, #tpu.memory_space<vmem>>, vector<128x128xbf16>
      %20 = arith.extf %19 : vector<128x128xbf16> to vector<128x128xf32>
      %21 = arith.addf %18, %20 : vector<128x128xf32>
      %cst_17 = arith.constant 0.000000e+00 : f32
      %22 = vector.broadcast %cst_17 : f32 to vector<128x128xf32>
      %23 = arith.maximumf %21, %22 : vector<128x128xf32>
      %24 = arith.truncf %23 : vector<128x128xf32> to vector<128x128xbf16>
      %c0_18 = arith.constant 0 : index
      %c0_19 = arith.constant 0 : index
      %25 = vector.load %arg8[%c0_18, %c0_19] : memref<128x128xbf16, #tpu.memory_space<vmem>>, vector<128x128xbf16>
      tpu.vector_store %arg8[%c0_18, %c0_19], %24 {strides = array<i32>} : memref<128x128xbf16, #tpu.memory_space<vmem>>, vector<128x128xbf16>,
    } else {
    }
    return
  }
  func.func @transform_0(%arg0: i32, %arg1: i32, %arg2: i32) -> (i32, i32) {
    %c0_i32 = arith.constant 0 : i32
    return %arg0, %arg2 : i32, i32
  }
  func.func @transform_1(%arg0: i32, %arg1: i32, %arg2: i32) -> (i32, i32) {
    %c0_i32 = arith.constant 0 : i32
    return %arg2, %arg1 : i32, i32
  }
  func.func @transform_2(%arg0: i32, %arg1: i32, %arg2: i32) -> (i32, i32) {
    %c0_i32 = arith.constant 0 : i32
    %c0_i32_0 = arith.constant 0 : i32
    return %c0_i32, %arg1 : i32, i32
  }
  func.func @transform_3(%arg0: i32, %arg1: i32, %arg2: i32) -> (i32, i32) {
    %c0_i32 = arith.constant 0 : i32
    %c0_i32_0 = arith.constant 0 : i32
    return %c0_i32, %arg1 : i32, i32
  }
  func.func @transform_4(%arg0: i32, %arg1: i32, %arg2: i32) -> (i32, i32) {
    %c0_i32 = arith.constant 0 : i32
    return %arg0, %arg1 : i32, i32
  }
  func.func @transform_5(%arg0: i32, %arg1: i32, %arg2: i32) -> (i32, i32) {
    %c0_i32 = arith.constant 0 : i32
    return %arg0, %arg1 : i32, i32
  }
}

module attributes {stable_mosaic.version = 11 : i64} {
  func.func @_mm_bn_act_kernel(%arg0: i32, %arg1: i32, %arg2: i32, %arg3: memref<32x384xbf16, #tpu.memory_space<vmem>>, %arg4: memref<384x256xbf16, #tpu.memory_space<vmem>>, %arg5: memref<1x256xf32, #tpu.memory_space<vmem>>, %arg6: memref<1x256xf32, #tpu.memory_space<vmem>>, %arg7: memref<32x256xbf16, #tpu.memory_space<vmem>>, %arg8: memref<32x256xf32, #tpu.memory_space<vmem>>) attributes {dimension_semantics = [#tpu.dimension_semantics<parallel>, #tpu.dimension_semantics<parallel>, #tpu.dimension_semantics<arbitrary>], iteration_bounds = array<i64: 1, 1, 3>, scalar_prefetch = 0 : i64, scratch_operands = 1 : i64, tpu.core_type = #tpu.core_type<tc>, window_params = [{transform_indices = @transform_0, window_bounds = array<i64: 32, 384>}, {transform_indices = @transform_1, window_bounds = array<i64: 384, 256>}, {transform_indices = @transform_2, window_bounds = array<i64: 1, 256>}, {transform_indices = @transform_3, window_bounds = array<i64: 1, 256>}, {transform_indices = @transform_4, window_bounds = array<i64: 32, 256>}]} {
    %c0_i32 = arith.constant 0 : i32
    %0 = arith.cmpi eq, %arg2, %c0_i32 : i32
    %1 = arith.extui %0 : i1 to i32
    %c0_i32_0 = arith.constant 0 : i32
    %2 = arith.cmpi ne, %1, %c0_i32_0 : i32
    scf.if %2 {
      %cst_9 = arith.constant 0.000000e+00 : f32
      %12 = vector.broadcast %cst_9 : f32 to vector<32x256xf32>
      %c0_10 = arith.constant 0 : index
      %c0_11 = arith.constant 0 : index
      %13 = vector.load %arg8[%c0_10, %c0_11] : memref<32x256xf32, #tpu.memory_space<vmem>>, vector<32x256xf32>
      tpu.vector_store %arg8[%c0_10, %c0_11], %12 {strides = array<i32>} : memref<32x256xf32, #tpu.memory_space<vmem>>, vector<32x256xf32>,
    } else {
    }
    %c0 = arith.constant 0 : index
    %c0_1 = arith.constant 0 : index
    %3 = vector.load %arg8[%c0, %c0_1] : memref<32x256xf32, #tpu.memory_space<vmem>>, vector<32x256xf32>
    %c0_2 = arith.constant 0 : index
    %c0_3 = arith.constant 0 : index
    %4 = vector.load %arg3[%c0_2, %c0_3] : memref<32x384xbf16, #tpu.memory_space<vmem>>, vector<32x384xbf16>
    %c0_4 = arith.constant 0 : index
    %c0_5 = arith.constant 0 : index
    %5 = vector.load %arg4[%c0_4, %c0_5] : memref<384x256xbf16, #tpu.memory_space<vmem>>, vector<384x256xbf16>
    %cst = arith.constant dense<0.000000e+00> : vector<32x256xf32>
    %6 = tpu.matmul %4, %5, %cst {dimension_numbers = #tpu.dot_dimension_numbers<[1], [0], [0], [1], [0, 0, 1, 1], [], []>} : vector<32x384xbf16>, vector<384x256xbf16>, vector<32x256xf32> -> vector<32x256xf32>
    %7 = arith.addf %3, %6 : vector<32x256xf32>
    %c0_6 = arith.constant 0 : index
    %c0_7 = arith.constant 0 : index
    %8 = vector.load %arg8[%c0_6, %c0_7] : memref<32x256xf32, #tpu.memory_space<vmem>>, vector<32x256xf32>
    tpu.vector_store %arg8[%c0_6, %c0_7], %7 {strides = array<i32>} : memref<32x256xf32, #tpu.memory_space<vmem>>, vector<32x256xf32>,
    %c2_i32 = arith.constant 2 : i32
    %9 = arith.cmpi eq, %arg2, %c2_i32 : i32
    %10 = arith.extui %9 : i1 to i32
    %c0_i32_8 = arith.constant 0 : i32
    %11 = arith.cmpi ne, %10, %c0_i32_8 : i32
    scf.if %11 {
      %c0_9 = arith.constant 0 : index
      %c0_10 = arith.constant 0 : index
      %12 = vector.load %arg8[%c0_9, %c0_10] : memref<32x256xf32, #tpu.memory_space<vmem>>, vector<32x256xf32>
      %c0_11 = arith.constant 0 : index
      %c0_12 = arith.constant 0 : index
      %13 = vector.load %arg5[%c0_11, %c0_12] : memref<1x256xf32, #tpu.memory_space<vmem>>, vector<1x256xf32>
      %14 = vector.broadcast %13 : vector<1x256xf32> to vector<32x256xf32>
      %15 = arith.mulf %12, %14 : vector<32x256xf32>
      %c0_13 = arith.constant 0 : index
      %c0_14 = arith.constant 0 : index
      %16 = vector.load %arg6[%c0_13, %c0_14] : memref<1x256xf32, #tpu.memory_space<vmem>>, vector<1x256xf32>
      %17 = vector.broadcast %16 : vector<1x256xf32> to vector<32x256xf32>
      %18 = arith.addf %15, %17 : vector<32x256xf32>
      %cst_15 = arith.constant 0.000000e+00 : f32
      %19 = vector.broadcast %cst_15 : f32 to vector<32x256xf32>
      %20 = arith.maximumf %18, %19 : vector<32x256xf32>
      %21 = arith.truncf %20 : vector<32x256xf32> to vector<32x256xbf16>
      %c0_16 = arith.constant 0 : index
      %c0_17 = arith.constant 0 : index
      %22 = vector.load %arg7[%c0_16, %c0_17] : memref<32x256xbf16, #tpu.memory_space<vmem>>, vector<32x256xbf16>
      tpu.vector_store %arg7[%c0_16, %c0_17], %21 {strides = array<i32>} : memref<32x256xbf16, #tpu.memory_space<vmem>>, vector<32x256xbf16>,
    } else {
    }
    return
  }
  func.func @transform_0(%arg0: i32, %arg1: i32, %arg2: i32) -> (i32, i32) {
    %c0_i32 = arith.constant 0 : i32
    return %arg0, %arg2 : i32, i32
  }
  func.func @transform_1(%arg0: i32, %arg1: i32, %arg2: i32) -> (i32, i32) {
    %c0_i32 = arith.constant 0 : i32
    return %arg2, %arg1 : i32, i32
  }
  func.func @transform_2(%arg0: i32, %arg1: i32, %arg2: i32) -> (i32, i32) {
    %c0_i32 = arith.constant 0 : i32
    %c0_i32_0 = arith.constant 0 : i32
    return %c0_i32, %arg1 : i32, i32
  }
  func.func @transform_3(%arg0: i32, %arg1: i32, %arg2: i32) -> (i32, i32) {
    %c0_i32 = arith.constant 0 : i32
    %c0_i32_0 = arith.constant 0 : i32
    return %c0_i32, %arg1 : i32, i32
  }
  func.func @transform_4(%arg0: i32, %arg1: i32, %arg2: i32) -> (i32, i32) {
    %c0_i32 = arith.constant 0 : i32
    return %arg0, %arg1 : i32, i32
  }
}

module attributes {stable_mosaic.version = 11 : i64} {
  func.func @_mm_bn_res_act_kernel(%arg0: i32, %arg1: i32, %arg2: i32, %arg3: memref<32x384xbf16, #tpu.memory_space<vmem>>, %arg4: memref<384x256xbf16, #tpu.memory_space<vmem>>, %arg5: memref<1x256xf32, #tpu.memory_space<vmem>>, %arg6: memref<1x256xf32, #tpu.memory_space<vmem>>, %arg7: memref<32x256xbf16, #tpu.memory_space<vmem>>, %arg8: memref<32x256xbf16, #tpu.memory_space<vmem>>, %arg9: memref<32x256xf32, #tpu.memory_space<vmem>>) attributes {dimension_semantics = [#tpu.dimension_semantics<parallel>, #tpu.dimension_semantics<parallel>, #tpu.dimension_semantics<arbitrary>], iteration_bounds = array<i64: 1, 1, 6>, scalar_prefetch = 0 : i64, scratch_operands = 1 : i64, tpu.core_type = #tpu.core_type<tc>, window_params = [{transform_indices = @transform_0, window_bounds = array<i64: 32, 384>}, {transform_indices = @transform_1, window_bounds = array<i64: 384, 256>}, {transform_indices = @transform_2, window_bounds = array<i64: 1, 256>}, {transform_indices = @transform_3, window_bounds = array<i64: 1, 256>}, {transform_indices = @transform_4, window_bounds = array<i64: 32, 256>}, {transform_indices = @transform_5, window_bounds = array<i64: 32, 256>}]} {
    %c0_i32 = arith.constant 0 : i32
    %0 = arith.cmpi eq, %arg2, %c0_i32 : i32
    %1 = arith.extui %0 : i1 to i32
    %c0_i32_0 = arith.constant 0 : i32
    %2 = arith.cmpi ne, %1, %c0_i32_0 : i32
    scf.if %2 {
      %cst_9 = arith.constant 0.000000e+00 : f32
      %12 = vector.broadcast %cst_9 : f32 to vector<32x256xf32>
      %c0_10 = arith.constant 0 : index
      %c0_11 = arith.constant 0 : index
      %13 = vector.load %arg9[%c0_10, %c0_11] : memref<32x256xf32, #tpu.memory_space<vmem>>, vector<32x256xf32>
      tpu.vector_store %arg9[%c0_10, %c0_11], %12 {strides = array<i32>} : memref<32x256xf32, #tpu.memory_space<vmem>>, vector<32x256xf32>,
    } else {
    }
    %c0 = arith.constant 0 : index
    %c0_1 = arith.constant 0 : index
    %3 = vector.load %arg9[%c0, %c0_1] : memref<32x256xf32, #tpu.memory_space<vmem>>, vector<32x256xf32>
    %c0_2 = arith.constant 0 : index
    %c0_3 = arith.constant 0 : index
    %4 = vector.load %arg3[%c0_2, %c0_3] : memref<32x384xbf16, #tpu.memory_space<vmem>>, vector<32x384xbf16>
    %c0_4 = arith.constant 0 : index
    %c0_5 = arith.constant 0 : index
    %5 = vector.load %arg4[%c0_4, %c0_5] : memref<384x256xbf16, #tpu.memory_space<vmem>>, vector<384x256xbf16>
    %cst = arith.constant dense<0.000000e+00> : vector<32x256xf32>
    %6 = tpu.matmul %4, %5, %cst {dimension_numbers = #tpu.dot_dimension_numbers<[1], [0], [0], [1], [0, 0, 1, 1], [], []>} : vector<32x384xbf16>, vector<384x256xbf16>, vector<32x256xf32> -> vector<32x256xf32>
    %7 = arith.addf %3, %6 : vector<32x256xf32>
    %c0_6 = arith.constant 0 : index
    %c0_7 = arith.constant 0 : index
    %8 = vector.load %arg9[%c0_6, %c0_7] : memref<32x256xf32, #tpu.memory_space<vmem>>, vector<32x256xf32>
    tpu.vector_store %arg9[%c0_6, %c0_7], %7 {strides = array<i32>} : memref<32x256xf32, #tpu.memory_space<vmem>>, vector<32x256xf32>,
    %c5_i32 = arith.constant 5 : i32
    %9 = arith.cmpi eq, %arg2, %c5_i32 : i32
    %10 = arith.extui %9 : i1 to i32
    %c0_i32_8 = arith.constant 0 : i32
    %11 = arith.cmpi ne, %10, %c0_i32_8 : i32
    scf.if %11 {
      %c0_9 = arith.constant 0 : index
      %c0_10 = arith.constant 0 : index
      %12 = vector.load %arg9[%c0_9, %c0_10] : memref<32x256xf32, #tpu.memory_space<vmem>>, vector<32x256xf32>
      %c0_11 = arith.constant 0 : index
      %c0_12 = arith.constant 0 : index
      %13 = vector.load %arg5[%c0_11, %c0_12] : memref<1x256xf32, #tpu.memory_space<vmem>>, vector<1x256xf32>
      %14 = vector.broadcast %13 : vector<1x256xf32> to vector<32x256xf32>
      %15 = arith.mulf %12, %14 : vector<32x256xf32>
      %c0_13 = arith.constant 0 : index
      %c0_14 = arith.constant 0 : index
      %16 = vector.load %arg6[%c0_13, %c0_14] : memref<1x256xf32, #tpu.memory_space<vmem>>, vector<1x256xf32>
      %17 = vector.broadcast %16 : vector<1x256xf32> to vector<32x256xf32>
      %18 = arith.addf %15, %17 : vector<32x256xf32>
      %c0_15 = arith.constant 0 : index
      %c0_16 = arith.constant 0 : index
      %19 = vector.load %arg7[%c0_15, %c0_16] : memref<32x256xbf16, #tpu.memory_space<vmem>>, vector<32x256xbf16>
      %20 = arith.extf %19 : vector<32x256xbf16> to vector<32x256xf32>
      %21 = arith.addf %18, %20 : vector<32x256xf32>
      %cst_17 = arith.constant 0.000000e+00 : f32
      %22 = vector.broadcast %cst_17 : f32 to vector<32x256xf32>
      %23 = arith.maximumf %21, %22 : vector<32x256xf32>
      %24 = arith.truncf %23 : vector<32x256xf32> to vector<32x256xbf16>
      %c0_18 = arith.constant 0 : index
      %c0_19 = arith.constant 0 : index
      %25 = vector.load %arg8[%c0_18, %c0_19] : memref<32x256xbf16, #tpu.memory_space<vmem>>, vector<32x256xbf16>
      tpu.vector_store %arg8[%c0_18, %c0_19], %24 {strides = array<i32>} : memref<32x256xbf16, #tpu.memory_space<vmem>>, vector<32x256xbf16>,
    } else {
    }
    return
  }
  func.func @transform_0(%arg0: i32, %arg1: i32, %arg2: i32) -> (i32, i32) {
    %c0_i32 = arith.constant 0 : i32
    return %arg0, %arg2 : i32, i32
  }
  func.func @transform_1(%arg0: i32, %arg1: i32, %arg2: i32) -> (i32, i32) {
    %c0_i32 = arith.constant 0 : i32
    return %arg2, %arg1 : i32, i32
  }
  func.func @transform_2(%arg0: i32, %arg1: i32, %arg2: i32) -> (i32, i32) {
    %c0_i32 = arith.constant 0 : i32
    %c0_i32_0 = arith.constant 0 : i32
    return %c0_i32, %arg1 : i32, i32
  }
  func.func @transform_3(%arg0: i32, %arg1: i32, %arg2: i32) -> (i32, i32) {
    %c0_i32 = arith.constant 0 : i32
    %c0_i32_0 = arith.constant 0 : i32
    return %c0_i32, %arg1 : i32, i32
  }
  func.func @transform_4(%arg0: i32, %arg1: i32, %arg2: i32) -> (i32, i32) {
    %c0_i32 = arith.constant 0 : i32
    return %arg0, %arg1 : i32, i32
  }
  func.func @transform_5(%arg0: i32, %arg1: i32, %arg2: i32) -> (i32, i32) {
    %c0_i32 = arith.constant 0 : i32
    return %arg0, %arg1 : i32, i32
  }
}

module attributes {stable_mosaic.version = 11 : i64} {
  func.func @_mm_bn_act_kernel(%arg0: i32, %arg1: i32, %arg2: i32, %arg3: memref<32x128xbf16, #tpu.memory_space<vmem>>, %arg4: memref<128x256xbf16, #tpu.memory_space<vmem>>, %arg5: memref<1x256xf32, #tpu.memory_space<vmem>>, %arg6: memref<1x256xf32, #tpu.memory_space<vmem>>, %arg7: memref<32x256xbf16, #tpu.memory_space<vmem>>, %arg8: memref<32x256xf32, #tpu.memory_space<vmem>>) attributes {dimension_semantics = [#tpu.dimension_semantics<parallel>, #tpu.dimension_semantics<parallel>, #tpu.dimension_semantics<arbitrary>], iteration_bounds = array<i64: 1, 1, 1>, scalar_prefetch = 0 : i64, scratch_operands = 1 : i64, tpu.core_type = #tpu.core_type<tc>, window_params = [{transform_indices = @transform_0, window_bounds = array<i64: 32, 128>}, {transform_indices = @transform_1, window_bounds = array<i64: 128, 256>}, {transform_indices = @transform_2, window_bounds = array<i64: 1, 256>}, {transform_indices = @transform_3, window_bounds = array<i64: 1, 256>}, {transform_indices = @transform_4, window_bounds = array<i64: 32, 256>}]} {
    %c0_i32 = arith.constant 0 : i32
    %0 = arith.cmpi eq, %arg2, %c0_i32 : i32
    %1 = arith.extui %0 : i1 to i32
    %c0_i32_0 = arith.constant 0 : i32
    %2 = arith.cmpi ne, %1, %c0_i32_0 : i32
    scf.if %2 {
      %cst_10 = arith.constant 0.000000e+00 : f32
      %12 = vector.broadcast %cst_10 : f32 to vector<32x256xf32>
      %c0_11 = arith.constant 0 : index
      %c0_12 = arith.constant 0 : index
      %13 = vector.load %arg8[%c0_11, %c0_12] : memref<32x256xf32, #tpu.memory_space<vmem>>, vector<32x256xf32>
      tpu.vector_store %arg8[%c0_11, %c0_12], %12 {strides = array<i32>} : memref<32x256xf32, #tpu.memory_space<vmem>>, vector<32x256xf32>,
    } else {
    }
    %c0 = arith.constant 0 : index
    %c0_1 = arith.constant 0 : index
    %3 = vector.load %arg8[%c0, %c0_1] : memref<32x256xf32, #tpu.memory_space<vmem>>, vector<32x256xf32>
    %c0_2 = arith.constant 0 : index
    %c0_3 = arith.constant 0 : index
    %4 = vector.load %arg3[%c0_2, %c0_3] : memref<32x128xbf16, #tpu.memory_space<vmem>>, vector<32x128xbf16>
    %c0_4 = arith.constant 0 : index
    %c0_5 = arith.constant 0 : index
    %5 = vector.load %arg4[%c0_4, %c0_5] : memref<128x256xbf16, #tpu.memory_space<vmem>>, vector<128x256xbf16>
    %cst = arith.constant dense<0.000000e+00> : vector<32x256xf32>
    %6 = tpu.matmul %4, %5, %cst {dimension_numbers = #tpu.dot_dimension_numbers<[1], [0], [0], [1], [0, 0, 1, 1], [], []>} : vector<32x128xbf16>, vector<128x256xbf16>, vector<32x256xf32> -> vector<32x256xf32>
    %7 = arith.addf %3, %6 : vector<32x256xf32>
    %c0_6 = arith.constant 0 : index
    %c0_7 = arith.constant 0 : index
    %8 = vector.load %arg8[%c0_6, %c0_7] : memref<32x256xf32, #tpu.memory_space<vmem>>, vector<32x256xf32>
    tpu.vector_store %arg8[%c0_6, %c0_7], %7 {strides = array<i32>} : memref<32x256xf32, #tpu.memory_space<vmem>>, vector<32x256xf32>,
    %c0_i32_8 = arith.constant 0 : i32
    %9 = arith.cmpi eq, %arg2, %c0_i32_8 : i32
    %10 = arith.extui %9 : i1 to i32
    %c0_i32_9 = arith.constant 0 : i32
    %11 = arith.cmpi ne, %10, %c0_i32_9 : i32
    scf.if %11 {
      %c0_10 = arith.constant 0 : index
      %c0_11 = arith.constant 0 : index
      %12 = vector.load %arg8[%c0_10, %c0_11] : memref<32x256xf32, #tpu.memory_space<vmem>>, vector<32x256xf32>
      %c0_12 = arith.constant 0 : index
      %c0_13 = arith.constant 0 : index
      %13 = vector.load %arg5[%c0_12, %c0_13] : memref<1x256xf32, #tpu.memory_space<vmem>>, vector<1x256xf32>
      %14 = vector.broadcast %13 : vector<1x256xf32> to vector<32x256xf32>
      %15 = arith.mulf %12, %14 : vector<32x256xf32>
      %c0_14 = arith.constant 0 : index
      %c0_15 = arith.constant 0 : index
      %16 = vector.load %arg6[%c0_14, %c0_15] : memref<1x256xf32, #tpu.memory_space<vmem>>, vector<1x256xf32>
      %17 = vector.broadcast %16 : vector<1x256xf32> to vector<32x256xf32>
      %18 = arith.addf %15, %17 : vector<32x256xf32>
      %19 = arith.truncf %18 : vector<32x256xf32> to vector<32x256xbf16>
      %c0_16 = arith.constant 0 : index
      %c0_17 = arith.constant 0 : index
      %20 = vector.load %arg7[%c0_16, %c0_17] : memref<32x256xbf16, #tpu.memory_space<vmem>>, vector<32x256xbf16>
      tpu.vector_store %arg7[%c0_16, %c0_17], %19 {strides = array<i32>} : memref<32x256xbf16, #tpu.memory_space<vmem>>, vector<32x256xbf16>,
    } else {
    }
    return
  }
  func.func @transform_0(%arg0: i32, %arg1: i32, %arg2: i32) -> (i32, i32) {
    %c0_i32 = arith.constant 0 : i32
    return %arg0, %arg2 : i32, i32
  }
  func.func @transform_1(%arg0: i32, %arg1: i32, %arg2: i32) -> (i32, i32) {
    %c0_i32 = arith.constant 0 : i32
    return %arg2, %arg1 : i32, i32
  }
  func.func @transform_2(%arg0: i32, %arg1: i32, %arg2: i32) -> (i32, i32) {
    %c0_i32 = arith.constant 0 : i32
    %c0_i32_0 = arith.constant 0 : i32
    return %c0_i32, %arg1 : i32, i32
  }
  func.func @transform_3(%arg0: i32, %arg1: i32, %arg2: i32) -> (i32, i32) {
    %c0_i32 = arith.constant 0 : i32
    %c0_i32_0 = arith.constant 0 : i32
    return %c0_i32, %arg1 : i32, i32
  }
  func.func @transform_4(%arg0: i32, %arg1: i32, %arg2: i32) -> (i32, i32) {
    %c0_i32 = arith.constant 0 : i32
    return %arg0, %arg1 : i32, i32
  }
}

module attributes {stable_mosaic.version = 11 : i64} {
  func.func @_mm_bn_act_kernel(%arg0: i32, %arg1: i32, %arg2: i32, %arg3: memref<8x384xbf16, #tpu.memory_space<vmem>>, %arg4: memref<384x256xbf16, #tpu.memory_space<vmem>>, %arg5: memref<1x256xf32, #tpu.memory_space<vmem>>, %arg6: memref<1x256xf32, #tpu.memory_space<vmem>>, %arg7: memref<8x256xbf16, #tpu.memory_space<vmem>>, %arg8: memref<8x256xf32, #tpu.memory_space<vmem>>) attributes {dimension_semantics = [#tpu.dimension_semantics<parallel>, #tpu.dimension_semantics<parallel>, #tpu.dimension_semantics<arbitrary>], iteration_bounds = array<i64: 1, 2, 6>, scalar_prefetch = 0 : i64, scratch_operands = 1 : i64, tpu.core_type = #tpu.core_type<tc>, window_params = [{transform_indices = @transform_0, window_bounds = array<i64: 8, 384>}, {transform_indices = @transform_1, window_bounds = array<i64: 384, 256>}, {transform_indices = @transform_2, window_bounds = array<i64: 1, 256>}, {transform_indices = @transform_3, window_bounds = array<i64: 1, 256>}, {transform_indices = @transform_4, window_bounds = array<i64: 8, 256>}]} {
    %c0_i32 = arith.constant 0 : i32
    %0 = arith.cmpi eq, %arg2, %c0_i32 : i32
    %1 = arith.extui %0 : i1 to i32
    %c0_i32_0 = arith.constant 0 : i32
    %2 = arith.cmpi ne, %1, %c0_i32_0 : i32
    scf.if %2 {
      %cst_9 = arith.constant 0.000000e+00 : f32
      %12 = vector.broadcast %cst_9 : f32 to vector<8x256xf32>
      %c0_10 = arith.constant 0 : index
      %c0_11 = arith.constant 0 : index
      %13 = vector.load %arg8[%c0_10, %c0_11] : memref<8x256xf32, #tpu.memory_space<vmem>>, vector<8x256xf32>
      tpu.vector_store %arg8[%c0_10, %c0_11], %12 {strides = array<i32>} : memref<8x256xf32, #tpu.memory_space<vmem>>, vector<8x256xf32>,
    } else {
    }
    %c0 = arith.constant 0 : index
    %c0_1 = arith.constant 0 : index
    %3 = vector.load %arg8[%c0, %c0_1] : memref<8x256xf32, #tpu.memory_space<vmem>>, vector<8x256xf32>
    %c0_2 = arith.constant 0 : index
    %c0_3 = arith.constant 0 : index
    %4 = vector.load %arg3[%c0_2, %c0_3] : memref<8x384xbf16, #tpu.memory_space<vmem>>, vector<8x384xbf16>
    %c0_4 = arith.constant 0 : index
    %c0_5 = arith.constant 0 : index
    %5 = vector.load %arg4[%c0_4, %c0_5] : memref<384x256xbf16, #tpu.memory_space<vmem>>, vector<384x256xbf16>
    %cst = arith.constant dense<0.000000e+00> : vector<8x256xf32>
    %6 = tpu.matmul %4, %5, %cst {dimension_numbers = #tpu.dot_dimension_numbers<[1], [0], [0], [1], [0, 0, 1, 1], [], []>} : vector<8x384xbf16>, vector<384x256xbf16>, vector<8x256xf32> -> vector<8x256xf32>
    %7 = arith.addf %3, %6 : vector<8x256xf32>
    %c0_6 = arith.constant 0 : index
    %c0_7 = arith.constant 0 : index
    %8 = vector.load %arg8[%c0_6, %c0_7] : memref<8x256xf32, #tpu.memory_space<vmem>>, vector<8x256xf32>
    tpu.vector_store %arg8[%c0_6, %c0_7], %7 {strides = array<i32>} : memref<8x256xf32, #tpu.memory_space<vmem>>, vector<8x256xf32>,
    %c5_i32 = arith.constant 5 : i32
    %9 = arith.cmpi eq, %arg2, %c5_i32 : i32
    %10 = arith.extui %9 : i1 to i32
    %c0_i32_8 = arith.constant 0 : i32
    %11 = arith.cmpi ne, %10, %c0_i32_8 : i32
    scf.if %11 {
      %c0_9 = arith.constant 0 : index
      %c0_10 = arith.constant 0 : index
      %12 = vector.load %arg8[%c0_9, %c0_10] : memref<8x256xf32, #tpu.memory_space<vmem>>, vector<8x256xf32>
      %c0_11 = arith.constant 0 : index
      %c0_12 = arith.constant 0 : index
      %13 = vector.load %arg5[%c0_11, %c0_12] : memref<1x256xf32, #tpu.memory_space<vmem>>, vector<1x256xf32>
      %14 = vector.broadcast %13 : vector<1x256xf32> to vector<8x256xf32>
      %15 = arith.mulf %12, %14 : vector<8x256xf32>
      %c0_13 = arith.constant 0 : index
      %c0_14 = arith.constant 0 : index
      %16 = vector.load %arg6[%c0_13, %c0_14] : memref<1x256xf32, #tpu.memory_space<vmem>>, vector<1x256xf32>
      %17 = vector.broadcast %16 : vector<1x256xf32> to vector<8x256xf32>
      %18 = arith.addf %15, %17 : vector<8x256xf32>
      %cst_15 = arith.constant 0.000000e+00 : f32
      %19 = vector.broadcast %cst_15 : f32 to vector<8x256xf32>
      %20 = arith.maximumf %18, %19 : vector<8x256xf32>
      %21 = arith.truncf %20 : vector<8x256xf32> to vector<8x256xbf16>
      %c0_16 = arith.constant 0 : index
      %c0_17 = arith.constant 0 : index
      %22 = vector.load %arg7[%c0_16, %c0_17] : memref<8x256xbf16, #tpu.memory_space<vmem>>, vector<8x256xbf16>
      tpu.vector_store %arg7[%c0_16, %c0_17], %21 {strides = array<i32>} : memref<8x256xbf16, #tpu.memory_space<vmem>>, vector<8x256xbf16>,
    } else {
    }
    return
  }
  func.func @transform_0(%arg0: i32, %arg1: i32, %arg2: i32) -> (i32, i32) {
    %c0_i32 = arith.constant 0 : i32
    return %arg0, %arg2 : i32, i32
  }
  func.func @transform_1(%arg0: i32, %arg1: i32, %arg2: i32) -> (i32, i32) {
    %c0_i32 = arith.constant 0 : i32
    return %arg2, %arg1 : i32, i32
  }
  func.func @transform_2(%arg0: i32, %arg1: i32, %arg2: i32) -> (i32, i32) {
    %c0_i32 = arith.constant 0 : i32
    %c0_i32_0 = arith.constant 0 : i32
    return %c0_i32, %arg1 : i32, i32
  }
  func.func @transform_3(%arg0: i32, %arg1: i32, %arg2: i32) -> (i32, i32) {
    %c0_i32 = arith.constant 0 : i32
    %c0_i32_0 = arith.constant 0 : i32
    return %c0_i32, %arg1 : i32, i32
  }
  func.func @transform_4(%arg0: i32, %arg1: i32, %arg2: i32) -> (i32, i32) {
    %c0_i32 = arith.constant 0 : i32
    return %arg0, %arg1 : i32, i32
  }
}

module attributes {stable_mosaic.version = 11 : i64} {
  func.func @_mm_bn_act_kernel(%arg0: i32, %arg1: i32, %arg2: i32, %arg3: memref<8x256xbf16, #tpu.memory_space<vmem>>, %arg4: memref<256x256xbf16, #tpu.memory_space<vmem>>, %arg5: memref<1x256xf32, #tpu.memory_space<vmem>>, %arg6: memref<1x256xf32, #tpu.memory_space<vmem>>, %arg7: memref<8x256xbf16, #tpu.memory_space<vmem>>, %arg8: memref<8x256xf32, #tpu.memory_space<vmem>>) attributes {dimension_semantics = [#tpu.dimension_semantics<parallel>, #tpu.dimension_semantics<parallel>, #tpu.dimension_semantics<arbitrary>], iteration_bounds = array<i64: 1, 2, 1>, scalar_prefetch = 0 : i64, scratch_operands = 1 : i64, tpu.core_type = #tpu.core_type<tc>, window_params = [{transform_indices = @transform_0, window_bounds = array<i64: 8, 256>}, {transform_indices = @transform_1, window_bounds = array<i64: 256, 256>}, {transform_indices = @transform_2, window_bounds = array<i64: 1, 256>}, {transform_indices = @transform_3, window_bounds = array<i64: 1, 256>}, {transform_indices = @transform_4, window_bounds = array<i64: 8, 256>}]} {
    %c0_i32 = arith.constant 0 : i32
    %0 = arith.cmpi eq, %arg2, %c0_i32 : i32
    %1 = arith.extui %0 : i1 to i32
    %c0_i32_0 = arith.constant 0 : i32
    %2 = arith.cmpi ne, %1, %c0_i32_0 : i32
    scf.if %2 {
      %cst_10 = arith.constant 0.000000e+00 : f32
      %12 = vector.broadcast %cst_10 : f32 to vector<8x256xf32>
      %c0_11 = arith.constant 0 : index
      %c0_12 = arith.constant 0 : index
      %13 = vector.load %arg8[%c0_11, %c0_12] : memref<8x256xf32, #tpu.memory_space<vmem>>, vector<8x256xf32>
      tpu.vector_store %arg8[%c0_11, %c0_12], %12 {strides = array<i32>} : memref<8x256xf32, #tpu.memory_space<vmem>>, vector<8x256xf32>,
    } else {
    }
    %c0 = arith.constant 0 : index
    %c0_1 = arith.constant 0 : index
    %3 = vector.load %arg8[%c0, %c0_1] : memref<8x256xf32, #tpu.memory_space<vmem>>, vector<8x256xf32>
    %c0_2 = arith.constant 0 : index
    %c0_3 = arith.constant 0 : index
    %4 = vector.load %arg3[%c0_2, %c0_3] : memref<8x256xbf16, #tpu.memory_space<vmem>>, vector<8x256xbf16>
    %c0_4 = arith.constant 0 : index
    %c0_5 = arith.constant 0 : index
    %5 = vector.load %arg4[%c0_4, %c0_5] : memref<256x256xbf16, #tpu.memory_space<vmem>>, vector<256x256xbf16>
    %cst = arith.constant dense<0.000000e+00> : vector<8x256xf32>
    %6 = tpu.matmul %4, %5, %cst {dimension_numbers = #tpu.dot_dimension_numbers<[1], [0], [0], [1], [0, 0, 1, 1], [], []>} : vector<8x256xbf16>, vector<256x256xbf16>, vector<8x256xf32> -> vector<8x256xf32>
    %7 = arith.addf %3, %6 : vector<8x256xf32>
    %c0_6 = arith.constant 0 : index
    %c0_7 = arith.constant 0 : index
    %8 = vector.load %arg8[%c0_6, %c0_7] : memref<8x256xf32, #tpu.memory_space<vmem>>, vector<8x256xf32>
    tpu.vector_store %arg8[%c0_6, %c0_7], %7 {strides = array<i32>} : memref<8x256xf32, #tpu.memory_space<vmem>>, vector<8x256xf32>,
    %c0_i32_8 = arith.constant 0 : i32
    %9 = arith.cmpi eq, %arg2, %c0_i32_8 : i32
    %10 = arith.extui %9 : i1 to i32
    %c0_i32_9 = arith.constant 0 : i32
    %11 = arith.cmpi ne, %10, %c0_i32_9 : i32
    scf.if %11 {
      %c0_10 = arith.constant 0 : index
      %c0_11 = arith.constant 0 : index
      %12 = vector.load %arg8[%c0_10, %c0_11] : memref<8x256xf32, #tpu.memory_space<vmem>>, vector<8x256xf32>
      %c0_12 = arith.constant 0 : index
      %c0_13 = arith.constant 0 : index
      %13 = vector.load %arg5[%c0_12, %c0_13] : memref<1x256xf32, #tpu.memory_space<vmem>>, vector<1x256xf32>
      %14 = vector.broadcast %13 : vector<1x256xf32> to vector<8x256xf32>
      %15 = arith.mulf %12, %14 : vector<8x256xf32>
      %c0_14 = arith.constant 0 : index
      %c0_15 = arith.constant 0 : index
      %16 = vector.load %arg6[%c0_14, %c0_15] : memref<1x256xf32, #tpu.memory_space<vmem>>, vector<1x256xf32>
      %17 = vector.broadcast %16 : vector<1x256xf32> to vector<8x256xf32>
      %18 = arith.addf %15, %17 : vector<8x256xf32>
      %19 = arith.truncf %18 : vector<8x256xf32> to vector<8x256xbf16>
      %c0_16 = arith.constant 0 : index
      %c0_17 = arith.constant 0 : index
      %20 = vector.load %arg7[%c0_16, %c0_17] : memref<8x256xbf16, #tpu.memory_space<vmem>>, vector<8x256xbf16>
      tpu.vector_store %arg7[%c0_16, %c0_17], %19 {strides = array<i32>} : memref<8x256xbf16, #tpu.memory_space<vmem>>, vector<8x256xbf16>,
    } else {
    }
    return
  }
  func.func @transform_0(%arg0: i32, %arg1: i32, %arg2: i32) -> (i32, i32) {
    %c0_i32 = arith.constant 0 : i32
    return %arg0, %arg2 : i32, i32
  }
  func.func @transform_1(%arg0: i32, %arg1: i32, %arg2: i32) -> (i32, i32) {
    %c0_i32 = arith.constant 0 : i32
    return %arg2, %arg1 : i32, i32
  }
  func.func @transform_2(%arg0: i32, %arg1: i32, %arg2: i32) -> (i32, i32) {
    %c0_i32 = arith.constant 0 : i32
    %c0_i32_0 = arith.constant 0 : i32
    return %c0_i32, %arg1 : i32, i32
  }
  func.func @transform_3(%arg0: i32, %arg1: i32, %arg2: i32) -> (i32, i32) {
    %c0_i32 = arith.constant 0 : i32
    %c0_i32_0 = arith.constant 0 : i32
    return %c0_i32, %arg1 : i32, i32
  }
  func.func @transform_4(%arg0: i32, %arg1: i32, %arg2: i32) -> (i32, i32) {
    %c0_i32 = arith.constant 0 : i32
    return %arg0, %arg1 : i32, i32
  }
}

module attributes {stable_mosaic.version = 11 : i64} {
  func.func @_mm_bn_res_act_kernel(%arg0: i32, %arg1: i32, %arg2: i32, %arg3: memref<8x512xbf16, #tpu.memory_space<vmem>>, %arg4: memref<512x256xbf16, #tpu.memory_space<vmem>>, %arg5: memref<1x256xf32, #tpu.memory_space<vmem>>, %arg6: memref<1x256xf32, #tpu.memory_space<vmem>>, %arg7: memref<8x256xbf16, #tpu.memory_space<vmem>>, %arg8: memref<8x256xbf16, #tpu.memory_space<vmem>>, %arg9: memref<8x256xf32, #tpu.memory_space<vmem>>) attributes {dimension_semantics = [#tpu.dimension_semantics<parallel>, #tpu.dimension_semantics<parallel>, #tpu.dimension_semantics<arbitrary>], iteration_bounds = array<i64: 1, 2, 9>, scalar_prefetch = 0 : i64, scratch_operands = 1 : i64, tpu.core_type = #tpu.core_type<tc>, window_params = [{transform_indices = @transform_0, window_bounds = array<i64: 8, 512>}, {transform_indices = @transform_1, window_bounds = array<i64: 512, 256>}, {transform_indices = @transform_2, window_bounds = array<i64: 1, 256>}, {transform_indices = @transform_3, window_bounds = array<i64: 1, 256>}, {transform_indices = @transform_4, window_bounds = array<i64: 8, 256>}, {transform_indices = @transform_5, window_bounds = array<i64: 8, 256>}]} {
    %c0_i32 = arith.constant 0 : i32
    %0 = arith.cmpi eq, %arg2, %c0_i32 : i32
    %1 = arith.extui %0 : i1 to i32
    %c0_i32_0 = arith.constant 0 : i32
    %2 = arith.cmpi ne, %1, %c0_i32_0 : i32
    scf.if %2 {
      %cst_9 = arith.constant 0.000000e+00 : f32
      %12 = vector.broadcast %cst_9 : f32 to vector<8x256xf32>
      %c0_10 = arith.constant 0 : index
      %c0_11 = arith.constant 0 : index
      %13 = vector.load %arg9[%c0_10, %c0_11] : memref<8x256xf32, #tpu.memory_space<vmem>>, vector<8x256xf32>
      tpu.vector_store %arg9[%c0_10, %c0_11], %12 {strides = array<i32>} : memref<8x256xf32, #tpu.memory_space<vmem>>, vector<8x256xf32>,
    } else {
    }
    %c0 = arith.constant 0 : index
    %c0_1 = arith.constant 0 : index
    %3 = vector.load %arg9[%c0, %c0_1] : memref<8x256xf32, #tpu.memory_space<vmem>>, vector<8x256xf32>
    %c0_2 = arith.constant 0 : index
    %c0_3 = arith.constant 0 : index
    %4 = vector.load %arg3[%c0_2, %c0_3] : memref<8x512xbf16, #tpu.memory_space<vmem>>, vector<8x512xbf16>
    %c0_4 = arith.constant 0 : index
    %c0_5 = arith.constant 0 : index
    %5 = vector.load %arg4[%c0_4, %c0_5] : memref<512x256xbf16, #tpu.memory_space<vmem>>, vector<512x256xbf16>
    %cst = arith.constant dense<0.000000e+00> : vector<8x256xf32>
    %6 = tpu.matmul %4, %5, %cst {dimension_numbers = #tpu.dot_dimension_numbers<[1], [0], [0], [1], [0, 0, 1, 1], [], []>} : vector<8x512xbf16>, vector<512x256xbf16>, vector<8x256xf32> -> vector<8x256xf32>
    %7 = arith.addf %3, %6 : vector<8x256xf32>
    %c0_6 = arith.constant 0 : index
    %c0_7 = arith.constant 0 : index
    %8 = vector.load %arg9[%c0_6, %c0_7] : memref<8x256xf32, #tpu.memory_space<vmem>>, vector<8x256xf32>
    tpu.vector_store %arg9[%c0_6, %c0_7], %7 {strides = array<i32>} : memref<8x256xf32, #tpu.memory_space<vmem>>, vector<8x256xf32>,
    %c8_i32 = arith.constant 8 : i32
    %9 = arith.cmpi eq, %arg2, %c8_i32 : i32
    %10 = arith.extui %9 : i1 to i32
    %c0_i32_8 = arith.constant 0 : i32
    %11 = arith.cmpi ne, %10, %c0_i32_8 : i32
    scf.if %11 {
      %c0_9 = arith.constant 0 : index
      %c0_10 = arith.constant 0 : index
      %12 = vector.load %arg9[%c0_9, %c0_10] : memref<8x256xf32, #tpu.memory_space<vmem>>, vector<8x256xf32>
      %c0_11 = arith.constant 0 : index
      %c0_12 = arith.constant 0 : index
      %13 = vector.load %arg5[%c0_11, %c0_12] : memref<1x256xf32, #tpu.memory_space<vmem>>, vector<1x256xf32>
      %14 = vector.broadcast %13 : vector<1x256xf32> to vector<8x256xf32>
      %15 = arith.mulf %12, %14 : vector<8x256xf32>
      %c0_13 = arith.constant 0 : index
      %c0_14 = arith.constant 0 : index
      %16 = vector.load %arg6[%c0_13, %c0_14] : memref<1x256xf32, #tpu.memory_space<vmem>>, vector<1x256xf32>
      %17 = vector.broadcast %16 : vector<1x256xf32> to vector<8x256xf32>
      %18 = arith.addf %15, %17 : vector<8x256xf32>
      %c0_15 = arith.constant 0 : index
      %c0_16 = arith.constant 0 : index
      %19 = vector.load %arg7[%c0_15, %c0_16] : memref<8x256xbf16, #tpu.memory_space<vmem>>, vector<8x256xbf16>
      %20 = arith.extf %19 : vector<8x256xbf16> to vector<8x256xf32>
      %21 = arith.addf %18, %20 : vector<8x256xf32>
      %cst_17 = arith.constant 0.000000e+00 : f32
      %22 = vector.broadcast %cst_17 : f32 to vector<8x256xf32>
      %23 = arith.maximumf %21, %22 : vector<8x256xf32>
      %24 = arith.truncf %23 : vector<8x256xf32> to vector<8x256xbf16>
      %c0_18 = arith.constant 0 : index
      %c0_19 = arith.constant 0 : index
      %25 = vector.load %arg8[%c0_18, %c0_19] : memref<8x256xbf16, #tpu.memory_space<vmem>>, vector<8x256xbf16>
      tpu.vector_store %arg8[%c0_18, %c0_19], %24 {strides = array<i32>} : memref<8x256xbf16, #tpu.memory_space<vmem>>, vector<8x256xbf16>,
    } else {
    }
    return
  }
  func.func @transform_0(%arg0: i32, %arg1: i32, %arg2: i32) -> (i32, i32) {
    %c0_i32 = arith.constant 0 : i32
    return %arg0, %arg2 : i32, i32
  }
  func.func @transform_1(%arg0: i32, %arg1: i32, %arg2: i32) -> (i32, i32) {
    %c0_i32 = arith.constant 0 : i32
    return %arg2, %arg1 : i32, i32
  }
  func.func @transform_2(%arg0: i32, %arg1: i32, %arg2: i32) -> (i32, i32) {
    %c0_i32 = arith.constant 0 : i32
    %c0_i32_0 = arith.constant 0 : i32
    return %c0_i32, %arg1 : i32, i32
  }
  func.func @transform_3(%arg0: i32, %arg1: i32, %arg2: i32) -> (i32, i32) {
    %c0_i32 = arith.constant 0 : i32
    %c0_i32_0 = arith.constant 0 : i32
    return %c0_i32, %arg1 : i32, i32
  }
  func.func @transform_4(%arg0: i32, %arg1: i32, %arg2: i32) -> (i32, i32) {
    %c0_i32 = arith.constant 0 : i32
    return %arg0, %arg1 : i32, i32
  }
  func.func @transform_5(%arg0: i32, %arg1: i32, %arg2: i32) -> (i32, i32) {
    %c0_i32 = arith.constant 0 : i32
    return %arg0, %arg1 : i32, i32
  }
}

module attributes {stable_mosaic.version = 11 : i64} {
  func.func @_avgpool_fc_kernel(%arg0: i32, %arg1: memref<8x4x512xbf16, #tpu.memory_space<vmem>>, %arg2: memref<512x128xbf16, #tpu.memory_space<vmem>>, %arg3: memref<1x128xf32, #tpu.memory_space<vmem>>, %arg4: memref<8x128xf32, #tpu.memory_space<vmem>>) attributes {dimension_semantics = [#tpu.dimension_semantics<arbitrary>], iteration_bounds = array<i64: 1>, scalar_prefetch = 0 : i64, scratch_operands = 0 : i64, tpu.core_type = #tpu.core_type<tc>, window_params = [{pipeline_mode = #tpu.pipeline_mode<synchronous>, transform_indices = @transform_0, window_bounds = array<i64: 8, 4, 512>}, {pipeline_mode = #tpu.pipeline_mode<synchronous>, transform_indices = @transform_1, window_bounds = array<i64: 512, 128>}, {pipeline_mode = #tpu.pipeline_mode<synchronous>, transform_indices = @transform_2, window_bounds = array<i64: 1, 128>}, {pipeline_mode = #tpu.pipeline_mode<synchronous>, transform_indices = @transform_3, window_bounds = array<i64: 8, 128>}]} {
    %c0 = arith.constant 0 : index
    %c0_0 = arith.constant 0 : index
    %c0_1 = arith.constant 0 : index
    %0 = vector.load %arg1[%c0, %c0_0, %c0_1] : memref<8x4x512xbf16, #tpu.memory_space<vmem>>, vector<8x4x512xbf16>
    %1 = arith.extf %0 : vector<8x4x512xbf16> to vector<8x4x512xf32>
    %cst = arith.constant dense<0.000000e+00> : vector<8x512xf32>
    %2 = vector.multi_reduction <add>, %1, %cst [1] : vector<8x4x512xf32> to vector<8x512xf32>
    %cst_2 = arith.constant 4.000000e+00 : f32
    %3 = vector.broadcast %cst_2 : f32 to vector<8x512xf32>
    %4 = arith.divf %2, %3 : vector<8x512xf32>
    %5 = arith.truncf %4 : vector<8x512xf32> to vector<8x512xbf16>
    %c0_3 = arith.constant 0 : index
    %c0_4 = arith.constant 0 : index
    %6 = vector.load %arg2[%c0_3, %c0_4] : memref<512x128xbf16, #tpu.memory_space<vmem>>, vector<512x128xbf16>
    %cst_5 = arith.constant dense<0.000000e+00> : vector<8x128xf32>
    %7 = tpu.matmul %5, %6, %cst_5 {dimension_numbers = #tpu.dot_dimension_numbers<[1], [0], [0], [1], [0, 0, 1, 1], [], []>} : vector<8x512xbf16>, vector<512x128xbf16>, vector<8x128xf32> -> vector<8x128xf32>
    %c0_6 = arith.constant 0 : index
    %c0_7 = arith.constant 0 : index
    %8 = vector.load %arg3[%c0_6, %c0_7] : memref<1x128xf32, #tpu.memory_space<vmem>>, vector<1x128xf32>
    %9 = vector.broadcast %8 : vector<1x128xf32> to vector<8x128xf32>
    %10 = arith.addf %7, %9 : vector<8x128xf32>
    %c0_8 = arith.constant 0 : index
    %c0_9 = arith.constant 0 : index
    %11 = vector.load %arg4[%c0_8, %c0_9] : memref<8x128xf32, #tpu.memory_space<vmem>>, vector<8x128xf32>
    tpu.vector_store %arg4[%c0_8, %c0_9], %10 {strides = array<i32>} : memref<8x128xf32, #tpu.memory_space<vmem>>, vector<8x128xf32>,
    return
  }
  func.func @transform_0(%arg0: i32) -> (i32, i32, i32) {
    %c0_i32 = arith.constant 0 : i32
    %c0_i32_0 = arith.constant 0 : i32
    %c0_i32_1 = arith.constant 0 : i32
    %c0_i32_2 = arith.constant 0 : i32
    return %c0_i32, %c0_i32_0, %c0_i32_1 : i32, i32, i32
  }
  func.func @transform_1(%arg0: i32) -> (i32, i32) {
    %c0_i32 = arith.constant 0 : i32
    %c0_i32_0 = arith.constant 0 : i32
    %c0_i32_1 = arith.constant 0 : i32
    return %c0_i32, %c0_i32_0 : i32, i32
  }
  func.func @transform_2(%arg0: i32) -> (i32, i32) {
    %c0_i32 = arith.constant 0 : i32
    %c0_i32_0 = arith.constant 0 : i32
    %c0_i32_1 = arith.constant 0 : i32
    return %c0_i32, %c0_i32_0 : i32, i32
  }
  func.func @transform_3(%arg0: i32) -> (i32, i32) {
    %c0_i32 = arith.constant 0 : i32
    %c0_i32_0 = arith.constant 0 : i32
    %c0_i32_1 = arith.constant 0 : i32
    return %c0_i32, %c0_i32_0 : i32, i32
  }
}

</mosaic_0001>

<bundles_post_ra>
// kernel: _lambda_.13
= control target key start
LH: loop header
LB: loop body
LE: loop exit
PB: predicated region body
PF: predicated region fallthrough
CT: control target
= control target key end

     0   :  { %s1843_s15 = smov 0   ;;  %s1845_s16 = smov 0   ;;  %s2054_s0 = inlined_call_operand.vmem [shape: bf16[512,256], index: 0, kind: input, shape index: {}]   ;;  %s2055_s1 = inlined_call_operand.vmem [shape: bf16[256,128], index: 1, kind: input, shape index: {}]   ;;  %s2056_s2 = inlined_call_operand.vmem [shape: f32[1,128], index: 2, kind: input, shape index: {}]   ;;  %s2057_s3 = inlined_call_operand.vmem [shape: f32[1,128], index: 3, kind: input, shape index: {}]   ;;  %s2058_s4 = inlined_call_operand.vmem [shape: bf16[512,128], index: 4, kind: output, shape index: {}]  }
   0x1   :  { %s1847_s17 = smov 0  }
   0x2 LB: > { %s33_s18 = sadd.s32 1, %s1812_s16  ;;  %p1360_p0 = scmp.ge.s32.totalorder %s1816_s17, 1  ;;  %s1816_s17 = sphi %s1847_s17, %s14_s17   ;;  %s1812_s16 = sphi %s1845_s16, %s2060_s16   ;;  %s1808_s15 = sphi %s1843_s15, %s2059_s15  }
   0x3   : > { %p35_p1 = scmp.ge.s32.totalorder %s33_s18, 2  ;;  %p224_p2 = scmp.lt.s32.totalorder %s1816_s17, 3 }
   0x5   : > { %s2062_s18 = smov (%p35_p1, %s33_s18), 0  ;;  %p225_p3 = pnand %p1360_p0, %p224_p2 }
   0x6   : > { %v1730_v0 = vld [vmem:[%s2055_s1 + $0x40] sm:$0xff] (!%p225_p3)   ;;  %s1361_s21 = sshll.u32 (!%p225_p3), %s1808_s15, 5  ;;  %v1732_v2 = vld [vmem:[%s2055_s1 + $0x48] sm:$0xff] (!%p225_p3)   ;;  %v1734_v4 = vld [vmem:[%s2055_s1 + $0x50] sm:$0xff] (!%p225_p3)  }
   0x7   : > { %228 = sbr.rel (%p225_p3) target bundleno = 322 (0x142), region = 36  ;;  %v1731_v1 = vld [vmem:[%s2055_s1] sm:$0xff] (!%p225_p3)   ;;  %1578 = vmatprep.subr.bf16.mxu0 (!%p225_p3), %v1730_v0  ;;  %1690 = vmatprep.subr.bf16.mxu1 (!%p225_p3), %v1730_v0  ;;  %v1733_v3 = vld [vmem:[%s2055_s1 + $0x8] sm:$0xff] (!%p225_p3)   ;;  %p274_p4 = scmp.lt.s32.totalorder (!%p225_p3), %s1361_s21, 63  ;;  %v1735_v5 = vld [vmem:[%s2055_s1 + $0x10] sm:$0xff] (!%p225_p3)  }
   0x8   : > { %1579 = vmatpush3.bf16.msra.mxu0 (!%p225_p3), %v1731_v1  ;;  %1698 = vmatpush3.bf16.msra.mxu1 (!%p225_p3), %v1731_v1  ;;  %v1736_v6 = vld [vmem:[%s2055_s1 + $0x58] sm:$0xff] (!%p225_p3)   ;;  %v1738_v8 = vld [vmem:[%s2055_s1 + $0x60] sm:$0xff] (!%p225_p3)   ;;  %v1740_v10 = vld [vmem:[%s2055_s1 + $0x68] sm:$0xff] (!%p225_p3)  }
   0x9   : > { %1580 = vmatprep.subr.bf16.mxu0 (!%p225_p3), %v1732_v2  ;;  %1691 = vmatprep.subr.bf16.mxu1 (!%p225_p3), %v1732_v2  ;;  %v1737_v7 = vld [vmem:[%s2055_s1 + $0x18] sm:$0xff] (!%p225_p3)   ;;  %v1739_v9 = vld [vmem:[%s2055_s1 + $0x20] sm:$0xff] (!%p225_p3)   ;;  %v1741_v13 = vld [vmem:[%s2055_s1 + $0x28] sm:$0xff] (!%p225_p3)  }
   0xa   : > { %v1742_v14 = vld [vmem:[%s2055_s1 + $0x70] sm:$0xff] (!%p225_p3)   ;;  %v1744_v16 = vld [vmem:[%s2055_s1 + $0x78] sm:$0xff] (!%p225_p3)   ;;  %v1952_v51 = vld [vmem:[%s2056_s2] ss:$0 sm:$0xff] (!%p225_p3) }
   0xb   : > { %v1743_v15 = vld [vmem:[%s2055_s1 + $0x30] sm:$0xff] (!%p225_p3)   ;;  %v1745_v17 = vld [vmem:[%s2055_s1 + $0x38] sm:$0xff] (!%p225_p3)   ;;  %v1957_v57 = vld [vmem:[%s2057_s3] ss:$0 sm:$0xff] (!%p225_p3) }
   0xc   : > { %1581 = vmatpush3.bf16.msra.mxu0 (!%p225_p3), %v1733_v3  ;;  %1699 = vmatpush3.bf16.msra.mxu1 (!%p225_p3), %v1733_v3 }
   0xd   : > { %1582 = vmatprep.subr.bf16.mxu0 (!%p225_p3), %v1734_v4  ;;  %1692 = vmatprep.subr.bf16.mxu1 (!%p225_p3), %v1734_v4 }
   0xe   : > { %s2064_s21 = smov (!%p274_p4, %s1361_s21), 63 }
   0xf   : > { %s1450_s10 = sshll.u32 %s2064_s21, 3  ;;  %s1365_s12 = sshll.u32 %s2064_s21, 2 }
  0x10   : > { %1583 = vmatpush3.bf16.msra.mxu0 %v1735_v5  ;;  %1700 = vmatpush3.bf16.msra.mxu1 %v1735_v5  ;;  %s1894_s15 = scalar_lea.vmem %s2054_s0, %s1450_s10  ;;  %s1971_s21 = scalar_lea.vmem %s2058_s4, %s1365_s12 }
  0x11   : > { %1584 = vmatprep.subr.bf16.mxu0 %v1736_v6  ;;  %1693 = vmatprep.subr.bf16.mxu1 %v1736_v6  ;;  %v1748_v11 = vld [vmem:[%s1894_s15 + $0x4] ss:$8 sps:$4 sm:$0xff]   ;;  %v1746_v18 = vld [vmem:[%s1894_s15] ss:$8 sps:$4 sm:$0xff]   ;;  %v1752_v20 = vld [vmem:[%s1894_s15 + $0x14] ss:$8 sps:$4 sm:$0xff]  }
  0x12   : > { %v1751_v12 = vld [vmem:[%s1894_s15 + $0x84] ss:$8 sps:$4 sm:$0xff]   ;;  %729 = vmatprep.mubr.bf16.mxu0 %v1748_v11  ;;  %v1749_v19 = vld [vmem:[%s1894_s15 + $0x80] ss:$8 sps:$4 sm:$0xff]   ;;  %v1754_v21 = vld [vmem:[%s1894_s15 + $0x94] ss:$8 sps:$4 sm:$0xff]  }
  0x13   : > { %793 = vmatprep.mubr.bf16.mxu1 %v1751_v12  ;;  %v1756_v22 = vld [vmem:[%s1894_s15 + $0x10] ss:$8 sps:$4 sm:$0xff]   ;;  %v1758_v24 = vld [vmem:[%s1894_s15 + $0x24] ss:$8 sps:$4 sm:$0xff]   ;;  %v1762_v26 = vld [vmem:[%s1894_s15 + $0x20] ss:$8 sps:$4 sm:$0xff]  }
  0x14   : > { %1585 = vmatpush3.bf16.msra.mxu0 %v1737_v7  ;;  %1701 = vmatpush3.bf16.msra.mxu1 %v1737_v7  ;;  %v1757_v23 = vld [vmem:[%s1894_s15 + $0x90] ss:$8 sps:$4 sm:$0xff]   ;;  %v1760_v25 = vld [vmem:[%s1894_s15 + $0xa4] ss:$8 sps:$4 sm:$0xff]   ;;  %v1763_v27 = vld [vmem:[%s1894_s15 + $0xa0] ss:$8 sps:$4 sm:$0xff]  }
  0x15   : > { %1586 = vmatprep.subr.bf16.mxu0 %v1738_v8  ;;  %1694 = vmatprep.subr.bf16.mxu1 %v1738_v8  ;;  %v1764_v28 = vld [vmem:[%s1894_s15 + $0x34] ss:$8 sps:$4 sm:$0xff]   ;;  %v1768_v30 = vld [vmem:[%s1894_s15 + $0x30] ss:$8 sps:$4 sm:$0xff]   ;;  %v1770_v32 = vld [vmem:[%s1894_s15 + $0x44] ss:$8 sps:$4 sm:$0xff]  }
  0x16   : > { %v1766_v29 = vld [vmem:[%s1894_s15 + $0xb4] ss:$8 sps:$4 sm:$0xff]   ;;  %v1769_v31 = vld [vmem:[%s1894_s15 + $0xb0] ss:$8 sps:$4 sm:$0xff]   ;;  %v1772_v33 = vld [vmem:[%s1894_s15 + $0xc4] ss:$8 sps:$4 sm:$0xff]  }
  0x17   : > { %v1774_v34 = vld [vmem:[%s1894_s15 + $0x40] ss:$8 sps:$4 sm:$0xff]   ;;  %v1776_v36 = vld [vmem:[%s1894_s15 + $0x54] ss:$8 sps:$4 sm:$0xff]   ;;  %v1780_v38 = vld [vmem:[%s1894_s15 + $0x50] ss:$8 sps:$4 sm:$0xff]  }
  0x18   : > { %1587 = vmatpush3.bf16.msra.mxu0 %v1739_v9  ;;  %1702 = vmatpush3.bf16.msra.mxu1 %v1739_v9  ;;  %v1775_v35 = vld [vmem:[%s1894_s15 + $0xc0] ss:$8 sps:$4 sm:$0xff]   ;;  %v1778_v37 = vld [vmem:[%s1894_s15 + $0xd4] ss:$8 sps:$4 sm:$0xff]   ;;  %v1781_v39 = vld [vmem:[%s1894_s15 + $0xd0] ss:$8 sps:$4 sm:$0xff]  }
  0x19   : > { %1588 = vmatprep.subr.bf16.mxu0 %v1740_v10  ;;  %1695 = vmatprep.subr.bf16.mxu1 %v1740_v10  ;;  %v1782_v40 = vld [vmem:[%s1894_s15 + $0x64] ss:$8 sps:$4 sm:$0xff]   ;;  %v1786_v42 = vld [vmem:[%s1894_s15 + $0x60] ss:$8 sps:$4 sm:$0xff]   ;;  %v1788_v44 = vld [vmem:[%s1894_s15 + $0x74] ss:$8 sps:$4 sm:$0xff]  }
  0x1a   : > { %v1784_v41 = vld [vmem:[%s1894_s15 + $0xe4] ss:$8 sps:$4 sm:$0xff]   ;;  %v1787_v43 = vld [vmem:[%s1894_s15 + $0xe0] ss:$8 sps:$4 sm:$0xff]   ;;  %v1790_v45 = vld [vmem:[%s1894_s15 + $0xf4] ss:$8 sps:$4 sm:$0xff]  }
  0x1b   : > { %v1792_v46 = vld [vmem:[%s1894_s15 + $0x70] ss:$8 sps:$4 sm:$0xff]  }
  0x1c   : > { %1589 = vmatpush3.bf16.msra.mxu0 %v1741_v13  ;;  %1703 = vmatpush3.bf16.msra.mxu1 %v1741_v13  ;;  %v1793_v47 = vld [vmem:[%s1894_s15 + $0xf0] ss:$8 sps:$4 sm:$0xff]  }
  0x1d   : > { %1590 = vmatprep.subr.bf16.mxu0 %v1742_v14  ;;  %1696 = vmatprep.subr.bf16.mxu1 %v1742_v14 }
  0x20   : > { %1591 = vmatpush3.bf16.msra.mxu0 %v1743_v15  ;;  %1704 = vmatpush3.bf16.msra.mxu1 %v1743_v15 }
  0x21   : > { %1592 = vmatprep.subr.bf16.mxu0 %v1744_v16  ;;  %1697 = vmatprep.subr.bf16.mxu1 %v1744_v16 }
  0x24   : > { %1593 = vmatpush3.bf16.msra.mxu0 %v1745_v17  ;;  %1705 = vmatpush3.bf16.msra.mxu1 %v1745_v17 }
  0x27   : > { %730 = vmatmul.mubr.bf16.vlgmr.msra.gmra.mrb[0].mxu0 %v1746_v18  ;;  %794 = vmatmul.mubr.bf16.vlgmr.msra.gmra.mrb[0].mxu1 %v1749_v19 }
  0x28   : > { %737 = vmatprep.mubr.bf16.mxu0 %v1752_v20  ;;  %801 = vmatprep.mubr.bf16.mxu1 %v1754_v21 }
  0x2f   : > { %738 = vmatmul.mubr.bf16.gmra.mrb[4].mxu0 %v1756_v22  ;;  %802 = vmatmul.mubr.bf16.gmra.mrb[4].mxu1 %v1757_v23 }
  0x30   : > { %745 = vmatprep.mubr.bf16.mxu0 %v1758_v24  ;;  %809 = vmatprep.mubr.bf16.mxu1 %v1760_v25 }
  0x37   : > { %746 = vmatmul.mubr.bf16.gmra.mrb[8].mxu0 %v1762_v26  ;;  %810 = vmatmul.mubr.bf16.gmra.mrb[8].mxu1 %v1763_v27 }
  0x38   : > { %753 = vmatprep.mubr.bf16.mxu0 %v1764_v28  ;;  %817 = vmatprep.mubr.bf16.mxu1 %v1766_v29 }
  0x3f   : > { %754 = vmatmul.mubr.bf16.gmra.mrb[12].mxu0 %v1768_v30  ;;  %818 = vmatmul.mubr.bf16.gmra.mrb[12].mxu1 %v1769_v31 }
  0x40   : > { %761 = vmatprep.mubr.bf16.mxu0 %v1770_v32  ;;  %825 = vmatprep.mubr.bf16.mxu1 %v1772_v33 }
  0x47   : > { %762 = vmatmul.mubr.bf16.gmra.mrb[16].mxu0 %v1774_v34  ;;  %826 = vmatmul.mubr.bf16.gmra.mrb[16].mxu1 %v1775_v35 }
  0x48   : > { %769 = vmatprep.mubr.bf16.mxu0 %v1776_v36  ;;  %833 = vmatprep.mubr.bf16.mxu1 %v1778_v37 }
  0x4f   : > { %770 = vmatmul.mubr.bf16.gmra.mrb[20].mxu0 %v1780_v38  ;;  %834 = vmatmul.mubr.bf16.gmra.mrb[20].mxu1 %v1781_v39 }
  0x50   : > { %777 = vmatprep.mubr.bf16.mxu0 %v1782_v40  ;;  %841 = vmatprep.mubr.bf16.mxu1 %v1784_v41 }
  0x57   : > { %778 = vmatmul.mubr.bf16.gmra.mrb[24].mxu0 %v1786_v42  ;;  %842 = vmatmul.mubr.bf16.gmra.mrb[24].mxu1 %v1787_v43 }
  0x58   : > { %785 = vmatprep.mubr.bf16.mxu0 %v1788_v44  ;;  %849 = vmatprep.mubr.bf16.mxu1 %v1790_v45 }
  0x5f   : > { %786 = vmatmul.mubr.bf16.gmra.mrb[28].mxu0 %v1792_v46  ;;  %850 = vmatmul.mubr.bf16.gmra.mrb[28].mxu1 %v1793_v47 }
  0xfa   : > { %v1594_v48 = vpop.f32.mrb[0].mxu0  ;;  %v1642_v49 = vpop.f32.mrb[0].mxu1 }
  0xfb   : > { %v1595_v50 = vpop.f32.mrb[1].mxu0  ;;  %v1643_v52 = vpop.f32.mrb[1].mxu1 }
  0xfc   : > { %v1596_v53 = vadd.f32 %v1595_v50, %v1594_v48  ;;  %v1644_v54 = vadd.f32 %v1643_v52, %v1642_v49  ;;  %v1597_v55 = vpop.f32.mrb[2].mxu0  ;;  %v1645_v56 = vpop.f32.mrb[2].mxu1 }
  0xfd   : > { %v1598_v58 = vpop.f32.mrb[3].mxu0  ;;  %v1646_v59 = vpop.f32.mrb[3].mxu1 }
  0xfe   : > { %v964_v60 = vmul.f32 %v1596_v53, %v1952_v51  ;;  %v980_v61 = vmul.f32 %v1644_v54, %v1952_v51  ;;  %v1599_v62 = vadd.f32 %v1598_v58, %v1597_v55  ;;  %v1647_v63 = vadd.f32 %v1646_v59, %v1645_v56 }
 0x100   : > { %v1003_v0 = vadd.f32 %v1957_v57, %v964_v60  ;;  %v1019_v1 = vadd.f32 %v1957_v57, %v980_v61  ;;  %v965_v2 = vmul.f32 %v1599_v62, %v1952_v51  ;;  %v981_v3 = vmul.f32 %v1647_v63, %v1952_v51 }
 0x102   : > { %v1004_v4 = vadd.f32 %v1957_v57, %v965_v2  ;;  %v1020_v5 = vadd.f32 %v1957_v57, %v981_v3  ;;  %v1600_v6 = vpop.f32.mrb[4].mxu0  ;;  %v1648_v7 = vpop.f32.mrb[4].mxu1  ;;  %v1035_v8 = vmax.f32 %v1003_v0, 0.0  ;;  %v1051_v9 = vmax.f32 %v1019_v1, 0.0 }
 0x103   : > { %v1601_v10 = vpop.f32.mrb[5].mxu0  ;;  %v1649_v11 = vpop.f32.mrb[5].mxu1 }
 0x104   : > { %v1036_v12 = vmax.f32 %v1004_v4, 0.0  ;;  %v1052_v13 = vmax.f32 %v1020_v5, 0.0  ;;  %v1602_v14 = vadd.f32 %v1601_v10, %v1600_v6  ;;  %v1650_v15 = vadd.f32 %v1649_v11, %v1648_v7  ;;  %v1603_v16 = vpop.f32.mrb[6].mxu0  ;;  %v1651_v17 = vpop.f32.mrb[6].mxu1 }
 0x105   : > { %v1604_v18 = vpop.f32.mrb[7].mxu0  ;;  %v1652_v19 = vpop.f32.mrb[7].mxu1 }
 0x106   : > { %v1486_v20 = vpack.c.bf16 %v1036_v12, %v1035_v8  ;;  %v1526_v21 = vpack.c.bf16 %v1052_v13, %v1051_v9  ;;  %v966_v22 = vmul.f32 %v1602_v14, %v1952_v51  ;;  %v982_v23 = vmul.f32 %v1650_v15, %v1952_v51 }
 0x107   : > { %v1605_v24 = vadd.f32 %v1604_v18, %v1603_v16  ;;  %v1653_v25 = vadd.f32 %v1652_v19, %v1651_v17 }
 0x108   : > { %1487 = vst [vmem:[%s1971_s21] sm:$0xff] %v1486_v20   ;;  %1570 = vst [vmem:[%s1971_s21 + $0x40] sm:$0xff] %v1526_v21   ;;  %v1005_v26 = vadd.f32 %v1957_v57, %v966_v22  ;;  %v1021_v27 = vadd.f32 %v1957_v57, %v982_v23 }
 0x109   : > { %v967_v28 = vmul.f32 %v1605_v24, %v1952_v51  ;;  %v983_v29 = vmul.f32 %v1653_v25, %v1952_v51 }
 0x10a   : > { %v1606_v30 = vpop.f32.mrb[8].mxu0  ;;  %v1654_v31 = vpop.f32.mrb[8].mxu1  ;;  %v1037_v40 = vmax.f32 %v1005_v26, 0.0  ;;  %v1053_v41 = vmax.f32 %v1021_v27, 0.0 }
 0x10b   : > { %v1006_v32 = vadd.f32 %v1957_v57, %v967_v28  ;;  %v1022_v33 = vadd.f32 %v1957_v57, %v983_v29  ;;  %v1607_v34 = vpop.f32.mrb[9].mxu0  ;;  %v1655_v35 = vpop.f32.mrb[9].mxu1 }
 0x10c   : > { %v1608_v36 = vadd.f32 %v1607_v34, %v1606_v30  ;;  %v1656_v37 = vadd.f32 %v1655_v35, %v1654_v31  ;;  %v1609_v38 = vpop.f32.mrb[10].mxu0  ;;  %v1657_v39 = vpop.f32.mrb[10].mxu1 }
 0x10d   : > { %v1038_v42 = vmax.f32 %v1006_v32, 0.0  ;;  %v1054_v43 = vmax.f32 %v1022_v33, 0.0  ;;  %v1610_v44 = vpop.f32.mrb[11].mxu0  ;;  %v1658_v45 = vpop.f32.mrb[11].mxu1 }
 0x10e   : > { %v968_v46 = vmul.f32 %v1608_v36, %v1952_v51  ;;  %v984_v47 = vmul.f32 %v1656_v37, %v1952_v51  ;;  %v1611_v48 = vadd.f32 %v1610_v44, %v1609_v38  ;;  %v1659_v49 = vadd.f32 %v1658_v45, %v1657_v39 }
 0x10f   : > { %v1491_v50 = vpack.c.bf16 %v1038_v42, %v1037_v40  ;;  %v1531_v52 = vpack.c.bf16 %v1054_v43, %v1053_v41 }
 0x110   : > { %v1007_v53 = vadd.f32 %v1957_v57, %v968_v46  ;;  %v1023_v54 = vadd.f32 %v1957_v57, %v984_v47  ;;  %v969_v55 = vmul.f32 %v1611_v48, %v1952_v51  ;;  %v985_v56 = vmul.f32 %v1659_v49, %v1952_v51 }
 0x111   : > { %1563 = vst [vmem:[%s1971_s21 + $0x8] sm:$0xff] %v1491_v50   ;;  %1571 = vst [vmem:[%s1971_s21 + $0x48] sm:$0xff] %v1531_v52  }
 0x112   : > { %v1008_v58 = vadd.f32 %v1957_v57, %v969_v55  ;;  %v1024_v59 = vadd.f32 %v1957_v57, %v985_v56  ;;  %v1612_v60 = vpop.f32.mrb[12].mxu0  ;;  %v1660_v61 = vpop.f32.mrb[12].mxu1  ;;  %v1039_v62 = vmax.f32 %v1007_v53, 0.0  ;;  %v1055_v63 = vmax.f32 %v1023_v54, 0.0 }
 0x113   : > { %v1613_v0 = vpop.f32.mrb[13].mxu0  ;;  %v1661_v1 = vpop.f32.mrb[13].mxu1 }
 0x114   : > { %v1040_v2 = vmax.f32 %v1008_v58, 0.0  ;;  %v1056_v3 = vmax.f32 %v1024_v59, 0.0  ;;  %v1614_v4 = vadd.f32 %v1613_v0, %v1612_v60  ;;  %v1662_v5 = vadd.f32 %v1661_v1, %v1660_v61  ;;  %v1615_v6 = vpop.f32.mrb[14].mxu0  ;;  %v1663_v7 = vpop.f32.mrb[14].mxu1 }
 0x115   : > { %v1616_v8 = vpop.f32.mrb[15].mxu0  ;;  %v1664_v9 = vpop.f32.mrb[15].mxu1 }
 0x116   : > { %v1496_v10 = vpack.c.bf16 %v1040_v2, %v1039_v62  ;;  %v1536_v11 = vpack.c.bf16 %v1056_v3, %v1055_v63  ;;  %v970_v12 = vmul.f32 %v1614_v4, %v1952_v51  ;;  %v986_v13 = vmul.f32 %v1662_v5, %v1952_v51 }
 0x117   : > { %v1617_v14 = vadd.f32 %v1616_v8, %v1615_v6  ;;  %v1665_v15 = vadd.f32 %v1664_v9, %v1663_v7 }
 0x118   : > { %1564 = vst [vmem:[%s1971_s21 + $0x10] sm:$0xff] %v1496_v10   ;;  %1572 = vst [vmem:[%s1971_s21 + $0x50] sm:$0xff] %v1536_v11   ;;  %v1009_v16 = vadd.f32 %v1957_v57, %v970_v12  ;;  %v1025_v17 = vadd.f32 %v1957_v57, %v986_v13 }
 0x119   : > { %v971_v18 = vmul.f32 %v1617_v14, %v1952_v51  ;;  %v987_v19 = vmul.f32 %v1665_v15, %v1952_v51 }
 0x11a   : > { %v1618_v20 = vpop.f32.mrb[16].mxu0  ;;  %v1666_v21 = vpop.f32.mrb[16].mxu1  ;;  %v1041_v30 = vmax.f32 %v1009_v16, 0.0  ;;  %v1057_v31 = vmax.f32 %v1025_v17, 0.0 }
 0x11b   : > { %v1010_v22 = vadd.f32 %v1957_v57, %v971_v18  ;;  %v1026_v23 = vadd.f32 %v1957_v57, %v987_v19  ;;  %v1619_v24 = vpop.f32.mrb[17].mxu0  ;;  %v1667_v25 = vpop.f32.mrb[17].mxu1 }
 0x11c   : > { %v1620_v26 = vadd.f32 %v1619_v24, %v1618_v20  ;;  %v1668_v27 = vadd.f32 %v1667_v25, %v1666_v21  ;;  %v1621_v28 = vpop.f32.mrb[18].mxu0  ;;  %v1669_v29 = vpop.f32.mrb[18].mxu1 }
 0x11d   : > { %v1042_v32 = vmax.f32 %v1010_v22, 0.0  ;;  %v1058_v33 = vmax.f32 %v1026_v23, 0.0  ;;  %v1622_v34 = vpop.f32.mrb[19].mxu0  ;;  %v1670_v35 = vpop.f32.mrb[19].mxu1 }
 0x11e   : > { %v972_v36 = vmul.f32 %v1620_v26, %v1952_v51  ;;  %v988_v37 = vmul.f32 %v1668_v27, %v1952_v51  ;;  %v1623_v38 = vadd.f32 %v1622_v34, %v1621_v28  ;;  %v1671_v39 = vadd.f32 %v1670_v35, %v1669_v29 }
 0x11f   : > { %v1501_v40 = vpack.c.bf16 %v1042_v32, %v1041_v30  ;;  %v1541_v41 = vpack.c.bf16 %v1058_v33, %v1057_v31 }
 0x120   : > { %v1011_v42 = vadd.f32 %v1957_v57, %v972_v36  ;;  %v1027_v43 = vadd.f32 %v1957_v57, %v988_v37  ;;  %v973_v44 = vmul.f32 %v1623_v38, %v1952_v51  ;;  %v989_v45 = vmul.f32 %v1671_v39, %v1952_v51 }
 0x121   : > { %1565 = vst [vmem:[%s1971_s21 + $0x18] sm:$0xff] %v1501_v40   ;;  %1573 = vst [vmem:[%s1971_s21 + $0x58] sm:$0xff] %v1541_v41  }
 0x122   : > { %v1012_v46 = vadd.f32 %v1957_v57, %v973_v44  ;;  %v1028_v47 = vadd.f32 %v1957_v57, %v989_v45  ;;  %v1624_v48 = vpop.f32.mrb[20].mxu0  ;;  %v1672_v49 = vpop.f32.mrb[20].mxu1  ;;  %v1043_v50 = vmax.f32 %v1011_v42, 0.0  ;;  %v1059_v52 = vmax.f32 %v1027_v43, 0.0 }
 0x123   : > { %v1625_v53 = vpop.f32.mrb[21].mxu0  ;;  %v1673_v54 = vpop.f32.mrb[21].mxu1 }
 0x124   : > { %v1044_v55 = vmax.f32 %v1012_v46, 0.0  ;;  %v1060_v56 = vmax.f32 %v1028_v47, 0.0  ;;  %v1626_v58 = vadd.f32 %v1625_v53, %v1624_v48  ;;  %v1674_v59 = vadd.f32 %v1673_v54, %v1672_v49  ;;  %v1627_v60 = vpop.f32.mrb[22].mxu0  ;;  %v1675_v61 = vpop.f32.mrb[22].mxu1 }
 0x125   : > { %v1628_v62 = vpop.f32.mrb[23].mxu0  ;;  %v1676_v63 = vpop.f32.mrb[23].mxu1 }
 0x126   : > { %v1506_v0 = vpack.c.bf16 %v1044_v55, %v1043_v50  ;;  %v1546_v1 = vpack.c.bf16 %v1060_v56, %v1059_v52  ;;  %v974_v2 = vmul.f32 %v1626_v58, %v1952_v51  ;;  %v990_v3 = vmul.f32 %v1674_v59, %v1952_v51 }
 0x127   : > { %v1629_v4 = vadd.f32 %v1628_v62, %v1627_v60  ;;  %v1677_v5 = vadd.f32 %v1676_v63, %v1675_v61 }
 0x128   : > { %1566 = vst [vmem:[%s1971_s21 + $0x20] sm:$0xff] %v1506_v0   ;;  %1574 = vst [vmem:[%s1971_s21 + $0x60] sm:$0xff] %v1546_v1   ;;  %v1013_v6 = vadd.f32 %v1957_v57, %v974_v2  ;;  %v1029_v7 = vadd.f32 %v1957_v57, %v990_v3 }
 0x129   : > { %v975_v8 = vmul.f32 %v1629_v4, %v1952_v51  ;;  %v991_v9 = vmul.f32 %v1677_v5, %v1952_v51 }
 0x12a   : > { %v1630_v10 = vpop.f32.mrb[24].mxu0  ;;  %v1678_v11 = vpop.f32.mrb[24].mxu1  ;;  %v1045_v20 = vmax.f32 %v1013_v6, 0.0  ;;  %v1061_v21 = vmax.f32 %v1029_v7, 0.0 }
 0x12b   : > { %v1014_v12 = vadd.f32 %v1957_v57, %v975_v8  ;;  %v1030_v13 = vadd.f32 %v1957_v57, %v991_v9  ;;  %v1631_v14 = vpop.f32.mrb[25].mxu0  ;;  %v1679_v15 = vpop.f32.mrb[25].mxu1 }
 0x12c   : > { %v1632_v16 = vadd.f32 %v1631_v14, %v1630_v10  ;;  %v1680_v17 = vadd.f32 %v1679_v15, %v1678_v11  ;;  %v1633_v18 = vpop.f32.mrb[26].mxu0  ;;  %v1681_v19 = vpop.f32.mrb[26].mxu1 }
 0x12d   : > { %v1046_v22 = vmax.f32 %v1014_v12, 0.0  ;;  %v1062_v23 = vmax.f32 %v1030_v13, 0.0  ;;  %v1634_v24 = vpop.f32.mrb[27].mxu0  ;;  %v1682_v25 = vpop.f32.mrb[27].mxu1 }
 0x12e   : > { %v976_v26 = vmul.f32 %v1632_v16, %v1952_v51  ;;  %v992_v27 = vmul.f32 %v1680_v17, %v1952_v51  ;;  %v1635_v28 = vadd.f32 %v1634_v24, %v1633_v18  ;;  %v1683_v29 = vadd.f32 %v1682_v25, %v1681_v19 }
 0x12f   : > { %v1511_v30 = vpack.c.bf16 %v1046_v22, %v1045_v20  ;;  %v1551_v31 = vpack.c.bf16 %v1062_v23, %v1061_v21 }
 0x130   : > { %v1015_v32 = vadd.f32 %v1957_v57, %v976_v26  ;;  %v1031_v33 = vadd.f32 %v1957_v57, %v992_v27  ;;  %v977_v34 = vmul.f32 %v1635_v28, %v1952_v51  ;;  %v993_v35 = vmul.f32 %v1683_v29, %v1952_v51 }
 0x131   : > { %1567 = vst [vmem:[%s1971_s21 + $0x28] sm:$0xff] %v1511_v30   ;;  %1575 = vst [vmem:[%s1971_s21 + $0x68] sm:$0xff] %v1551_v31  }
 0x132   : > { %v1016_v36 = vadd.f32 %v1957_v57, %v977_v34  ;;  %v1032_v37 = vadd.f32 %v1957_v57, %v993_v35  ;;  %v1636_v38 = vpop.f32.mrb[28].mxu0  ;;  %v1684_v39 = vpop.f32.mrb[28].mxu1  ;;  %v1047_v40 = vmax.f32 %v1015_v32, 0.0  ;;  %v1063_v41 = vmax.f32 %v1031_v33, 0.0 }
 0x133   : > { %v1637_v42 = vpop.f32.mrb[29].mxu0  ;;  %v1685_v43 = vpop.f32.mrb[29].mxu1 }
 0x134   : > { %v1048_v44 = vmax.f32 %v1016_v36, 0.0  ;;  %v1064_v45 = vmax.f32 %v1032_v37, 0.0  ;;  %v1638_v46 = vadd.f32 %v1637_v42, %v1636_v38  ;;  %v1686_v47 = vadd.f32 %v1685_v43, %v1684_v39  ;;  %v1639_v48 = vpop.f32.mrb[30].mxu0  ;;  %v1687_v49 = vpop.f32.mrb[30].mxu1 }
 0x135   : > { %v1640_v50 = vpop.f32.mrb[31].mxu0  ;;  %v1688_v52 = vpop.f32.mrb[31].mxu1 }
 0x136   : > { %v1516_v53 = vpack.c.bf16 %v1048_v44, %v1047_v40  ;;  %v1556_v54 = vpack.c.bf16 %v1064_v45, %v1063_v41  ;;  %v978_v55 = vmul.f32 %v1638_v46, %v1952_v51  ;;  %v994_v56 = vmul.f32 %v1686_v47, %v1952_v51 }
 0x137   : > { %v1641_v58 = vadd.f32 %v1640_v50, %v1639_v48  ;;  %v1689_v59 = vadd.f32 %v1688_v52, %v1687_v49 }
 0x138   : > { %1568 = vst [vmem:[%s1971_s21 + $0x30] sm:$0xff] %v1516_v53   ;;  %1576 = vst [vmem:[%s1971_s21 + $0x70] sm:$0xff] %v1556_v54   ;;  %v1017_v60 = vadd.f32 %v1957_v57, %v978_v55  ;;  %v1033_v61 = vadd.f32 %v1957_v57, %v994_v56 }
 0x139   : > { %v979_v62 = vmul.f32 %v1641_v58, %v1952_v51  ;;  %v995_v63 = vmul.f32 %v1689_v59, %v1952_v51 }
 0x13a   : > { %v1049_v2 = vmax.f32 %v1017_v60, 0.0  ;;  %v1065_v3 = vmax.f32 %v1033_v61, 0.0 }
 0x13b   : > { %v1018_v0 = vadd.f32 %v1957_v57, %v979_v62  ;;  %v1034_v1 = vadd.f32 %v1957_v57, %v995_v63 }
 0x13d   : > { %v1050_v4 = vmax.f32 %v1018_v0, 0.0  ;;  %v1066_v5 = vmax.f32 %v1034_v1, 0.0 }
 0x13f   : > { %v1521_v6 = vpack.c.bf16 %v1050_v4, %v1049_v2  ;;  %v1561_v7 = vpack.c.bf16 %v1066_v5, %v1065_v3 }
 0x141   : > { %1569 = vst [vmem:[%s1971_s21 + $0x38] sm:$0xff] %v1521_v6   ;;  %1577 = vst [vmem:[%s1971_s21 + $0x78] sm:$0xff] %v1561_v7  }
 0x142 PF: > { %s14_s17 = sadd.s32 1, %s1816_s17   ;;  %s2059_s15 = smov %s1812_s16 }
 0x143   : > { %p11_p5 = scmp.ge.s32.totalorder %s14_s17, 4   ;;  %s2060_s16 = smov %s2062_s18 }
 0x145   :  { %13 = sbr.rel (!%p11_p5) target bundleno = 2 (0x2), region = 83 }

// kernel: _lambda_.14
= control target key start
LH: loop header
LB: loop body
LE: loop exit
PB: predicated region body
PF: predicated region fallthrough
CT: control target
= control target key end

     0   :  { %s1835_s15 = smov 0   ;;  %s1837_s16 = smov 0   ;;  %s2117_s0 = inlined_call_operand.vmem [shape: bf16[512,640], index: 0, kind: input, shape index: {}]   ;;  %s2118_s1 = inlined_call_operand.vmem [shape: bf16[640,128], index: 1, kind: input, shape index: {}]   ;;  %s2119_s2 = inlined_call_operand.vmem [shape: f32[1,128], index: 2, kind: input, shape index: {}]   ;;  %s2120_s3 = inlined_call_operand.vmem [shape: f32[1,128], index: 3, kind: input, shape index: {}]   ;;  %s2121_s4 = inlined_call_operand.vmem [shape: bf16[512,128], index: 4, kind: output, shape index: {}]  }
   0x1   :  { %s1839_s17 = smov 0   ;;  %s1841_s18 = smov 0  }
   0x2   :  { %s1843_s19 = smov 0   ;;  %s1845_s20 = smov 0  }
   0x3   :  { %s1847_s21 = smov 0  }
   0x4 LB: > { %s26_s22 = sadd.s32 1, %s1799_s19  ;;  %s33_s23 = sadd.s32 1, %s1803_s20  ;;  %s1807_s21 = sphi %s1847_s21, %s14_s21   ;;  %s1803_s20 = sphi %s1845_s20, %s2127_s20   ;;  %s1799_s19 = sphi %s1843_s19, %s2126_s19   ;;  %s1795_s18 = sphi %s1841_s18, %s2125_s18   ;;  %s1791_s17 = sphi %s1839_s17, %s2124_s17   ;;  %s1787_s16 = sphi %s1837_s16, %s2123_s16   ;;  %s1783_s15 = sphi %s1835_s15, %s2122_s15  }
   0x5   : > { %p27_p0 = scmp.ge.s32.totalorder %s26_s22, 5  ;;  %p49_p1 = scmp.ne.s32.totalorder %s1787_s16, %s1783_s15 }
   0x6   : > { %p50_p2 = scmp.eq.s32.totalorder %s1807_s21, 0  ;;  %s42_s27 = sadd.s32 1, %s1787_s16 }
   0x7   : > { %s2129_s22 = smov (%p27_p0, %s26_s22), 0  ;;  %s2131_s23 = smov (!%p27_p0, %s33_s23), %s1803_s20 }
   0x8   : > { %p51_p3 = por %p50_p2, %p49_p1  ;;  %p35_p4 = scmp.ge.s32.totalorder %s2131_s23, 2 }
   0x9   : > { %s38_s24 = ssub.s32 %s1799_s19, %s2129_s22  ;;  %p1383_p6 = scmp.ge.s32.totalorder %s1807_s21, 10 }
   0xa   : > { %s2133_s23 = smov (%p35_p4, %s2131_s23), 0 }
   0xb   : > { %s37_s25 = ssub.s32 %s1803_s20, %s2133_s23  ;;  %195 = sbr.rel (%p1383_p6) target bundleno = 46 (0x2e), region = 24 }
   0xc   : > { %s39_s26 = sor.u32 %s38_s24, %s37_s25 }
   0xd   : > { %p40_p5 = scmp.eq.s32.totalorder %s39_s26, 0 }
   0xf   : > { %s1886_s28 = scalar_select %p40_p5, %s1787_s16, %s42_s27  }
  0x12   : > { %198 = sbr.rel (!%p51_p3) target bundleno = 46 (0x2e), region = 28  ;;  %s200_s29 = sand.u32 (%p51_p3), 1, %s1787_s16  }
  0x13   : > { %s1671_s30 = smul.u32 (%p51_p3), 160, %s1803_s20  ;;  %s1384_s5 = sshll.u32 (%p51_p3), %s200_s29, 7 }
  0x14   : > { %s1900_s11 = scalar_lea.vmem (%p51_p3), [#allocation3], %s1384_s5 }
  0x15   : > { %s205_s6 = sadd.s32 (%p51_p3), %s1799_s19, %s1671_s30 }
  0x16   : > { %s1387_s7 = sshll.u32 (%p51_p3), %s205_s6, 2 }
  0x17   : > { %s1895_s10 = scalar_lea.vmem (%p51_p3), %s2117_s0, %s1387_s7 }
  0x18   : > { %v223_v0 = vld [vmem:[%s1895_s10] sm:$0xf] (%p51_p3)  ;;  %v225_v1 = vld [vmem:[%s1895_s10 + $0x14] sm:$0xf] (%p51_p3)  ;;  %v227_v2 = vld [vmem:[%s1895_s10 + $0x28] sm:$0xf] (%p51_p3) }
  0x19   : > { %224 = vst [vmem:[%s1900_s11] sm:$0xf] %v223_v0  ;;  %226 = vst [vmem:[%s1900_s11 + $0x4] sm:$0xf] %v225_v1  ;;  %v229_v3 = vld [vmem:[%s1895_s10 + $0x3c] sm:$0xf] }
  0x1a   : > { %228 = vst [vmem:[%s1900_s11 + $0x8] sm:$0xf] %v227_v2  ;;  %v231_v4 = vld [vmem:[%s1895_s10 + $0x50] sm:$0xf]  ;;  %v233_v5 = vld [vmem:[%s1895_s10 + $0x64] sm:$0xf] }
  0x1b   : > { %230 = vst [vmem:[%s1900_s11 + $0xc] sm:$0xf] %v229_v3  ;;  %232 = vst [vmem:[%s1900_s11 + $0x10] sm:$0xf] %v231_v4  ;;  %v235_v6 = vld [vmem:[%s1895_s10 + $0x78] sm:$0xf] }
  0x1c   : > { %234 = vst [vmem:[%s1900_s11 + $0x14] sm:$0xf] %v233_v5  ;;  %v237_v7 = vld [vmem:[%s1895_s10 + $0x8c] sm:$0xf]  ;;  %v239_v8 = vld [vmem:[%s1895_s10 + $0xa0] sm:$0xf] }
  0x1d   : > { %236 = vst [vmem:[%s1900_s11 + $0x18] sm:$0xf] %v235_v6  ;;  %238 = vst [vmem:[%s1900_s11 + $0x1c] sm:$0xf] %v237_v7  ;;  %v241_v9 = vld [vmem:[%s1895_s10 + $0xb4] sm:$0xf] }
  0x1e   : > { %240 = vst [vmem:[%s1900_s11 + $0x20] sm:$0xf] %v239_v8  ;;  %v243_v10 = vld [vmem:[%s1895_s10 + $0xc8] sm:$0xf]  ;;  %v245_v11 = vld [vmem:[%s1895_s10 + $0xdc] sm:$0xf] }
  0x1f   : > { %242 = vst [vmem:[%s1900_s11 + $0x24] sm:$0xf] %v241_v9  ;;  %244 = vst [vmem:[%s1900_s11 + $0x28] sm:$0xf] %v243_v10  ;;  %v247_v12 = vld [vmem:[%s1895_s10 + $0xf0] sm:$0xf] }
  0x20   : > { %246 = vst [vmem:[%s1900_s11 + $0x2c] sm:$0xf] %v245_v11  ;;  %v249_v13 = vld [vmem:[%s1895_s10 + $0x104] sm:$0xf]  ;;  %v251_v14 = vld [vmem:[%s1895_s10 + $0x118] sm:$0xf] }
  0x21   : > { %248 = vst [vmem:[%s1900_s11 + $0x30] sm:$0xf] %v247_v12  ;;  %250 = vst [vmem:[%s1900_s11 + $0x34] sm:$0xf] %v249_v13  ;;  %v253_v15 = vld [vmem:[%s1895_s10 + $0x12c] sm:$0xf] }
  0x22   : > { %252 = vst [vmem:[%s1900_s11 + $0x38] sm:$0xf] %v251_v14  ;;  %v255_v16 = vld [vmem:[%s1895_s10 + $0x140] sm:$0xf]  ;;  %v257_v17 = vld [vmem:[%s1895_s10 + $0x154] sm:$0xf] }
  0x23   : > { %254 = vst [vmem:[%s1900_s11 + $0x3c] sm:$0xf] %v253_v15  ;;  %256 = vst [vmem:[%s1900_s11 + $0x40] sm:$0xf] %v255_v16  ;;  %v259_v18 = vld [vmem:[%s1895_s10 + $0x168] sm:$0xf] }
  0x24   : > { %258 = vst [vmem:[%s1900_s11 + $0x44] sm:$0xf] %v257_v17  ;;  %v261_v19 = vld [vmem:[%s1895_s10 + $0x17c] sm:$0xf]  ;;  %v263_v20 = vld [vmem:[%s1895_s10 + $0x190] sm:$0xf] }
  0x25   : > { %260 = vst [vmem:[%s1900_s11 + $0x48] sm:$0xf] %v259_v18  ;;  %262 = vst [vmem:[%s1900_s11 + $0x4c] sm:$0xf] %v261_v19  ;;  %v265_v21 = vld [vmem:[%s1895_s10 + $0x1a4] sm:$0xf] }
  0x26   : > { %264 = vst [vmem:[%s1900_s11 + $0x50] sm:$0xf] %v263_v20  ;;  %v267_v22 = vld [vmem:[%s1895_s10 + $0x1b8] sm:$0xf]  ;;  %v269_v23 = vld [vmem:[%s1895_s10 + $0x1cc] sm:$0xf] }
  0x27   : > { %266 = vst [vmem:[%s1900_s11 + $0x54] sm:$0xf] %v265_v21  ;;  %268 = vst [vmem:[%s1900_s11 + $0x58] sm:$0xf] %v267_v22  ;;  %v271_v24 = vld [vmem:[%s1895_s10 + $0x1e0] sm:$0xf] }
  0x28   : > { %270 = vst [vmem:[%s1900_s11 + $0x5c] sm:$0xf] %v269_v23  ;;  %v273_v25 = vld [vmem:[%s1895_s10 + $0x1f4] sm:$0xf]  ;;  %v275_v26 = vld [vmem:[%s1895_s10 + $0x208] sm:$0xf] }
  0x29   : > { %272 = vst [vmem:[%s1900_s11 + $0x60] sm:$0xf] %v271_v24  ;;  %274 = vst [vmem:[%s1900_s11 + $0x64] sm:$0xf] %v273_v25  ;;  %v277_v27 = vld [vmem:[%s1895_s10 + $0x21c] sm:$0xf] }
  0x2a   : > { %276 = vst [vmem:[%s1900_s11 + $0x68] sm:$0xf] %v275_v26  ;;  %v279_v28 = vld [vmem:[%s1895_s10 + $0x230] sm:$0xf]  ;;  %v281_v29 = vld [vmem:[%s1895_s10 + $0x244] sm:$0xf] }
  0x2b   : > { %278 = vst [vmem:[%s1900_s11 + $0x6c] sm:$0xf] %v277_v27  ;;  %280 = vst [vmem:[%s1900_s11 + $0x70] sm:$0xf] %v279_v28  ;;  %v283_v30 = vld [vmem:[%s1895_s10 + $0x258] sm:$0xf] }
  0x2c   : > { %282 = vst [vmem:[%s1900_s11 + $0x74] sm:$0xf] %v281_v29  ;;  %v285_v31 = vld [vmem:[%s1895_s10 + $0x26c] sm:$0xf]  ;;  %284 = vst [vmem:[%s1900_s11 + $0x78] sm:$0xf] %v283_v30 }
  0x2d   : > { %286 = vst [vmem:[%s1900_s11 + $0x7c] sm:$0xf] %v285_v31 }
  0x2e PF: > { %p1388_p7 = scmp.ge.s32.totalorder %s1807_s21, 1  ;;  %p384_p8 = scmp.lt.s32.totalorder %s1807_s21, 11 }
  0x30   : > { %p385_p9 = pnand %p1388_p7, %p384_p8 }
  0x31   : > { %s391_s12 = sand.u32 (!%p385_p9), 1, %s1783_s15   ;;  %s1390_s13 = sshll.u32 (!%p385_p9), %s1791_s17, 4 }
  0x32   : > { %388 = sbr.rel (%p385_p9) target bundleno = 375 (0x177), region = 73  ;;  %s1389_s14 = sshll.u32 (!%p385_p9), %s391_s12, 7 }
  0x33   : > { %p435_p10 = scmp.lt.s32.totalorder (!%p385_p9), %s1390_s13, 79  ;;  %s1392_s24 = sshll.u32 (!%p385_p9), %s1795_s18, 5 }
  0x34   : > { %p450_p11 = scmp.lt.s32.totalorder (!%p385_p9), %s1392_s24, 63  ;;  %s1978_s15 = scalar_lea.vmem (!%p385_p9), [#allocation3], %s1389_s14 }
  0x35   : > { %p1394_p12 = scmp.ne.s32.totalorder (!%p385_p9), %s1791_s17, 0 }
  0x39   : > { %s2135_s13 = smov (!%p435_p10, %s1390_s13), 79  ;;  %s2137_s24 = smov (!%p450_p11, %s1392_s24), 63 }
  0x3a   : > { %s1391_s25 = sshll.u32 %s2135_s13, 2  ;;  %s1393_s30 = sshll.u32 %s2137_s24, 2  ;;  %v1809_v32 = vmov (!%p1394_p12), 0.0  }
  0x3b   : > { %s1971_s29 = scalar_lea.vmem %s2118_s1, %s1391_s25  ;;  %s1976_s7 = scalar_lea.vmem %s2121_s4, %s1393_s30  ;;  %463 = vst [vmem:[#allocation2] sm:$0xff] (!%p1394_p12), %v1809_v32  ;;  %464 = vst [vmem:[#allocation2 + $0x8] sm:$0xff] (!%p1394_p12), %v1809_v32 }
  0x3c   : > { %462 = sbr.rel (%p1394_p12) target bundleno = 75 (0x4b), region = 81  ;;  %465 = vst [vmem:[#allocation2 + $0x10] sm:$0xff] (!%p1394_p12), %v1809_v32  ;;  %466 = vst [vmem:[#allocation2 + $0x18] sm:$0xff] (!%p1394_p12), %v1809_v32 }
  0x3d   : > { %467 = vst [vmem:[#allocation2 + $0x20] sm:$0xff] (!%p1394_p12), %v1809_v32  ;;  %468 = vst [vmem:[#allocation2 + $0x28] sm:$0xff] (!%p1394_p12), %v1809_v32 }
  0x3e   : > { %469 = vst [vmem:[#allocation2 + $0x30] sm:$0xff] (!%p1394_p12), %v1809_v32  ;;  %470 = vst [vmem:[#allocation2 + $0x38] sm:$0xff] (!%p1394_p12), %v1809_v32 }
  0x3f   : > { %471 = vst [vmem:[#allocation2 + $0x40] sm:$0xff] (!%p1394_p12), %v1809_v32  ;;  %472 = vst [vmem:[#allocation2 + $0x48] sm:$0xff] (!%p1394_p12), %v1809_v32 }
  0x40   : > { %473 = vst [vmem:[#allocation2 + $0x50] sm:$0xff] (!%p1394_p12), %v1809_v32  ;;  %474 = vst [vmem:[#allocation2 + $0x58] sm:$0xff] (!%p1394_p12), %v1809_v32 }
  0x41   : > { %475 = vst [vmem:[#allocation2 + $0x60] sm:$0xff] (!%p1394_p12), %v1809_v32  ;;  %476 = vst [vmem:[#allocation2 + $0x68] sm:$0xff] (!%p1394_p12), %v1809_v32 }
  0x42   : > { %477 = vst [vmem:[#allocation2 + $0x70] sm:$0xff] (!%p1394_p12), %v1809_v32  ;;  %478 = vst [vmem:[#allocation2 + $0x78] sm:$0xff] (!%p1394_p12), %v1809_v32 }
  0x43   : > { %479 = vst [vmem:[#allocation2 + $0x80] sm:$0xff] %v1809_v32  ;;  %480 = vst [vmem:[#allocation2 + $0x88] sm:$0xff] %v1809_v32 }
  0x44   : > { %481 = vst [vmem:[#allocation2 + $0x90] sm:$0xff] %v1809_v32  ;;  %482 = vst [vmem:[#allocation2 + $0x98] sm:$0xff] %v1809_v32 }
  0x45   : > { %483 = vst [vmem:[#allocation2 + $0xa0] sm:$0xff] %v1809_v32  ;;  %484 = vst [vmem:[#allocation2 + $0xa8] sm:$0xff] %v1809_v32 }
  0x46   : > { %485 = vst [vmem:[#allocation2 + $0xb0] sm:$0xff] %v1809_v32  ;;  %486 = vst [vmem:[#allocation2 + $0xb8] sm:$0xff] %v1809_v32 }
  0x47   : > { %487 = vst [vmem:[#allocation2 + $0xc0] sm:$0xff] %v1809_v32  ;;  %488 = vst [vmem:[#allocation2 + $0xc8] sm:$0xff] %v1809_v32 }
  0x48   : > { %489 = vst [vmem:[#allocation2 + $0xd0] sm:$0xff] %v1809_v32  ;;  %490 = vst [vmem:[#allocation2 + $0xd8] sm:$0xff] %v1809_v32 }
  0x49   : > { %491 = vst [vmem:[#allocation2 + $0xe0] sm:$0xff] %v1809_v32  ;;  %492 = vst [vmem:[#allocation2 + $0xe8] sm:$0xff] %v1809_v32 }
  0x4a   : > { %493 = vst [vmem:[#allocation2 + $0xf0] sm:$0xff] %v1809_v32  ;;  %494 = vst [vmem:[#allocation2 + $0xf8] sm:$0xff] %v1809_v32 }
  0x4b PF: > { %v1729_v33 = vld [vmem:[%s1971_s29] sm:$0xff]   ;;  %v1730_v34 = vld [vmem:[%s1971_s29 + $0x8] sm:$0xff]   ;;  %v1731_v35 = vld [vmem:[%s1971_s29 + $0x10] sm:$0xff]   ;;  %p1419_p13 = scmp.ne.s32.totalorder %s1791_s17, 4 }
  0x4c   : > { %1607 = vmatprep.subr.bf16.mxu0 %v1729_v33  ;;  %1655 = vmatprep.subr.bf16.mxu1 %v1729_v33  ;;  %v1732_v36 = vld [vmem:[%s1971_s29 + $0x18] sm:$0xff]   ;;  %v1737_v37 = vld [vmem:[%s1978_s15] sm:$0xff]   ;;  %v1734_v40 = vld [vmem:[%s1971_s29 + $0x28] sm:$0xff]  }
  0x4d   : > { %1608 = vmatpush3.bf16.msra.mxu0 %v1729_v33  ;;  %1663 = vmatpush3.bf16.msra.mxu1 %v1729_v33  ;;  %v1738_v38 = vld [vmem:[%s1978_s15 + $0x40] sm:$0xff]   ;;  %v1735_v41 = vld [vmem:[%s1971_s29 + $0x30] sm:$0xff]   ;;  %v1736_v42 = vld [vmem:[%s1971_s29 + $0x38] sm:$0xff]  }
  0x4e   : > { %1609 = vmatprep.subr.bf16.mxu0 %v1730_v34  ;;  %1656 = vmatprep.subr.bf16.mxu1 %v1730_v34  ;;  %v1733_v39 = vld [vmem:[%s1971_s29 + $0x20] sm:$0xff]   ;;  %v1739_v43 = vld [vmem:[%s1978_s15 + $0x8] sm:$0xff]   ;;  %v1741_v45 = vld [vmem:[%s1978_s15 + $0x10] sm:$0xff]  }
  0x4f   : > { %1623 = vmatprep.mubr.bf16.mxu0 %v1737_v37  ;;  %1639 = vmatprep.mubr.bf16.mxu1 %v1738_v38  ;;  %v1740_v44 = vld [vmem:[%s1978_s15 + $0x48] sm:$0xff]   ;;  %v1742_v46 = vld [vmem:[%s1978_s15 + $0x50] sm:$0xff]   ;;  %v1743_v47 = vld [vmem:[%s1978_s15 + $0x18] sm:$0xff]  }
  0x50   : > { %v1744_v48 = vld [vmem:[%s1978_s15 + $0x58] sm:$0xff]   ;;  %v1745_v49 = vld [vmem:[%s1978_s15 + $0x20] sm:$0xff]   ;;  %v1747_v51 = vld [vmem:[%s1978_s15 + $0x28] sm:$0xff]  }
  0x51   : > { %1610 = vmatpush3.bf16.msra.mxu0 %v1730_v34  ;;  %1664 = vmatpush3.bf16.msra.mxu1 %v1730_v34  ;;  %v1746_v50 = vld [vmem:[%s1978_s15 + $0x60] sm:$0xff]   ;;  %v1748_v52 = vld [vmem:[%s1978_s15 + $0x68] sm:$0xff]   ;;  %v1749_v53 = vld [vmem:[%s1978_s15 + $0x30] sm:$0xff]  }
  0x52   : > { %1611 = vmatprep.subr.bf16.mxu0 %v1731_v35  ;;  %1657 = vmatprep.subr.bf16.mxu1 %v1731_v35  ;;  %v1750_v54 = vld [vmem:[%s1978_s15 + $0x70] sm:$0xff]   ;;  %v1751_v55 = vld [vmem:[%s1978_s15 + $0x38] sm:$0xff]   ;;  %v495_v59 = vld [vmem:[#allocation2] sm:$0xff] }
  0x53   : > { %v1752_v56 = vld [vmem:[%s1978_s15 + $0x78] sm:$0xff]   ;;  %v497_v57 = vld [vmem:[#allocation2 + $0x10] sm:$0xff]  ;;  %v511_v60 = vld [vmem:[#allocation2 + $0x80] sm:$0xff] }
  0x54   : > { %v513_v58 = vld [vmem:[#allocation2 + $0x90] sm:$0xff]  ;;  %v498_v63 = vld [vmem:[#allocation2 + $0x18] sm:$0xff]  ;;  %v496_v5 = vld [vmem:[#allocation2 + $0x8] sm:$0xff] }
  0x55   : > { %1612 = vmatpush3.bf16.msra.mxu0 %v1731_v35  ;;  %1665 = vmatpush3.bf16.msra.mxu1 %v1731_v35  ;;  %v514_v0 = vld [vmem:[#allocation2 + $0x98] sm:$0xff]  ;;  %v512_v6 = vld [vmem:[#allocation2 + $0x88] sm:$0xff]  ;;  %v501_v17 = vld [vmem:[#allocation2 + $0x30] sm:$0xff] }
  0x56   : > { %1613 = vmatprep.subr.bf16.mxu0 %v1732_v36  ;;  %1658 = vmatprep.subr.bf16.mxu1 %v1732_v36  ;;  %v517_v18 = vld [vmem:[#allocation2 + $0xb0] sm:$0xff]  ;;  %v499_v19 = vld [vmem:[#allocation2 + $0x20] sm:$0xff]  ;;  %v502_v23 = vld [vmem:[#allocation2 + $0x38] sm:$0xff] }
  0x57   : > { %v515_v20 = vld [vmem:[#allocation2 + $0xa0] sm:$0xff]  ;;  %v518_v24 = vld [vmem:[#allocation2 + $0xb8] sm:$0xff]  ;;  %v500_v29 = vld [vmem:[#allocation2 + $0x28] sm:$0xff] }
  0x58   : > { %v516_v30 = vld [vmem:[#allocation2 + $0xa8] sm:$0xff] }
  0x59   : > { %1614 = vmatpush3.bf16.msra.mxu0 %v1732_v36  ;;  %1666 = vmatpush3.bf16.msra.mxu1 %v1732_v36 }
  0x5a   : > { %1615 = vmatprep.subr.bf16.mxu0 %v1733_v39  ;;  %1659 = vmatprep.subr.bf16.mxu1 %v1733_v39 }
  0x5d   : > { %1616 = vmatpush3.bf16.msra.mxu0 %v1733_v39  ;;  %1667 = vmatpush3.bf16.msra.mxu1 %v1733_v39 }
  0x5e   : > { %1617 = vmatprep.subr.bf16.mxu0 %v1734_v40  ;;  %1660 = vmatprep.subr.bf16.mxu1 %v1734_v40 }
  0x61   : > { %1618 = vmatpush3.bf16.msra.mxu0 %v1734_v40  ;;  %1668 = vmatpush3.bf16.msra.mxu1 %v1734_v40 }
  0x62   : > { %1619 = vmatprep.subr.bf16.mxu0 %v1735_v41  ;;  %1661 = vmatprep.subr.bf16.mxu1 %v1735_v41 }
  0x65   : > { %1620 = vmatpush3.bf16.msra.mxu0 %v1735_v41  ;;  %1669 = vmatpush3.bf16.msra.mxu1 %v1735_v41  ;;  %v505_v41 = vld [vmem:[#allocation2 + $0x50] sm:$0xff] }
  0x66   : > { %1621 = vmatprep.subr.bf16.mxu0 %v1736_v42  ;;  %1662 = vmatprep.subr.bf16.mxu1 %v1736_v42 }
  0x69   : > { %1622 = vmatpush3.bf16.msra.mxu0 %v1736_v42  ;;  %1670 = vmatpush3.bf16.msra.mxu1 %v1736_v42  ;;  %v521_v42 = vld [vmem:[#allocation2 + $0xd0] sm:$0xff] }
  0x6c   : > { %1624 = vmatmul.mubr.bf16.vlgmr.msra.gmra.mrb[0].mxu0 %v1739_v43  ;;  %1640 = vmatmul.mubr.bf16.vlgmr.msra.gmra.mrb[0].mxu1 %v1740_v44  ;;  %v503_v43 = vld [vmem:[#allocation2 + $0x40] sm:$0xff] }
  0x6d   : > { %1627 = vmatprep.mubr.bf16.mxu0 %v1741_v45  ;;  %1643 = vmatprep.mubr.bf16.mxu1 %v1742_v46  ;;  %v519_v44 = vld [vmem:[#allocation2 + $0xc0] sm:$0xff] }
  0x74   : > { %1628 = vmatmul.mubr.bf16.gmra.mrb[4].mxu0 %v1743_v47  ;;  %1644 = vmatmul.mubr.bf16.gmra.mrb[4].mxu1 %v1744_v48  ;;  %v506_v47 = vld [vmem:[#allocation2 + $0x58] sm:$0xff] }
  0x75   : > { %1631 = vmatprep.mubr.bf16.mxu0 %v1745_v49  ;;  %1647 = vmatprep.mubr.bf16.mxu1 %v1746_v50  ;;  %v522_v48 = vld [vmem:[#allocation2 + $0xd8] sm:$0xff] }
  0x7c   : > { %1632 = vmatmul.mubr.bf16.gmra.mrb[8].mxu0 %v1747_v51  ;;  %1648 = vmatmul.mubr.bf16.gmra.mrb[8].mxu1 %v1748_v52 }
  0x7d   : > { %1635 = vmatprep.mubr.bf16.mxu0 %v1749_v53  ;;  %1651 = vmatprep.mubr.bf16.mxu1 %v1750_v54  ;;  %v504_v53 = vld [vmem:[#allocation2 + $0x48] sm:$0xff] }
  0x7e   : > { %v520_v54 = vld [vmem:[#allocation2 + $0xc8] sm:$0xff] }
  0x84   : > { %1636 = vmatmul.mubr.bf16.gmra.mrb[12].mxu0 %v1751_v55  ;;  %1652 = vmatmul.mubr.bf16.gmra.mrb[12].mxu1 %v1752_v56 }
 0x13f   : > { %v1625_v61 = vpop.f32.mrb[0].mxu0  ;;  %v1641_v62 = vpop.f32.mrb[0].mxu1 }
 0x140   : > { %v882_v1 = vadd.f32 %v1625_v61, %v497_v57  ;;  %v898_v2 = vadd.f32 %v1641_v62, %v513_v58  ;;  %v753_v3 = vpop.f32.mrb[1].mxu0  ;;  %v817_v4 = vpop.f32.mrb[1].mxu1 }
 0x141   : > { %v880_v7 = vadd.f32 %v753_v3, %v495_v59  ;;  %v896_v8 = vadd.f32 %v817_v4, %v511_v60  ;;  %v1626_v9 = vpop.f32.mrb[2].mxu0  ;;  %v1642_v10 = vpop.f32.mrb[2].mxu1  ;;  %v507_v3 = vld [vmem:[#allocation2 + $0x60] sm:$0xff] }
 0x142   : > { %914 = vst [vmem:[#allocation2 + $0x10] sm:$0xff] %v882_v1  ;;  %930 = vst [vmem:[#allocation2 + $0x90] sm:$0xff] %v898_v2  ;;  %v883_v11 = vadd.f32 %v1626_v9, %v498_v63  ;;  %v899_v12 = vadd.f32 %v1642_v10, %v514_v0  ;;  %v756_v13 = vpop.f32.mrb[3].mxu0  ;;  %v820_v14 = vpop.f32.mrb[3].mxu1  ;;  %v509_v1 = vld [vmem:[#allocation2 + $0x70] sm:$0xff]  ;;  %v523_v4 = vld [vmem:[#allocation2 + $0xe0] sm:$0xff] }
 0x143   : > { %912 = vst [vmem:[#allocation2] sm:$0xff] %v880_v7  ;;  %928 = vst [vmem:[#allocation2 + $0x80] sm:$0xff] %v896_v8  ;;  %v881_v15 = vadd.f32 %v756_v13, %v496_v5  ;;  %v897_v16 = vadd.f32 %v820_v14, %v512_v6  ;;  %v525_v2 = vld [vmem:[#allocation2 + $0xf0] sm:$0xff]  ;;  %v510_v7 = vld [vmem:[#allocation2 + $0x78] sm:$0xff] }
 0x144   : > { %915 = vst [vmem:[#allocation2 + $0x18] sm:$0xff] %v883_v11  ;;  %931 = vst [vmem:[#allocation2 + $0x98] sm:$0xff] %v899_v12  ;;  %v526_v8 = vld [vmem:[#allocation2 + $0xf8] sm:$0xff]  ;;  %v508_v13 = vld [vmem:[#allocation2 + $0x68] sm:$0xff] }
 0x145   : > { %913 = vst [vmem:[#allocation2 + $0x8] sm:$0xff] %v881_v15  ;;  %929 = vst [vmem:[#allocation2 + $0x88] sm:$0xff] %v897_v16  ;;  %v524_v14 = vld [vmem:[#allocation2 + $0xe8] sm:$0xff] }
 0x147   : > { %v1629_v21 = vpop.f32.mrb[4].mxu0  ;;  %v1645_v22 = vpop.f32.mrb[4].mxu1 }
 0x148   : > { %v886_v25 = vadd.f32 %v1629_v21, %v501_v17  ;;  %v902_v26 = vadd.f32 %v1645_v22, %v517_v18  ;;  %v769_v27 = vpop.f32.mrb[5].mxu0  ;;  %v833_v28 = vpop.f32.mrb[5].mxu1 }
 0x149   : > { %v884_v31 = vadd.f32 %v769_v27, %v499_v19  ;;  %v900_v32 = vadd.f32 %v833_v28, %v515_v20  ;;  %v1630_v33 = vpop.f32.mrb[6].mxu0  ;;  %v1646_v34 = vpop.f32.mrb[6].mxu1  ;;  %v2009_v27 = vld [vmem:[%s2119_s2] ss:$0 sm:$0xff] (!%p1419_p13) }
 0x14a   : > { %918 = vst [vmem:[#allocation2 + $0x30] sm:$0xff] %v886_v25  ;;  %934 = vst [vmem:[#allocation2 + $0xb0] sm:$0xff] %v902_v26  ;;  %v887_v35 = vadd.f32 %v1630_v33, %v502_v23  ;;  %v903_v36 = vadd.f32 %v1646_v34, %v518_v24  ;;  %v772_v37 = vpop.f32.mrb[7].mxu0  ;;  %v836_v38 = vpop.f32.mrb[7].mxu1  ;;  %v948_v25 = vld [vmem:[#allocation2] sm:$0xff] (!%p1419_p13) }
 0x14b   : > { %916 = vst [vmem:[#allocation2 + $0x20] sm:$0xff] %v884_v31  ;;  %932 = vst [vmem:[#allocation2 + $0xa0] sm:$0xff] %v900_v32  ;;  %v885_v39 = vadd.f32 %v772_v37, %v500_v29  ;;  %v901_v40 = vadd.f32 %v836_v38, %v516_v30  ;;  %v987_v28 = vmul.f32 (!%p1419_p13), %v2009_v27, %v948_v25  ;;  %v2016_v30 = vld [vmem:[%s2120_s3] ss:$0 sm:$0xff] (!%p1419_p13)  ;;  %v950_v31 = vld [vmem:[#allocation2 + $0x10] sm:$0xff] (!%p1419_p13) }
 0x14c   : > { %919 = vst [vmem:[#allocation2 + $0x38] sm:$0xff] %v887_v35  ;;  %935 = vst [vmem:[#allocation2 + $0xb8] sm:$0xff] %v903_v36  ;;  %v949_v26 = vld [vmem:[#allocation2 + $0x8] sm:$0xff] (!%p1419_p13)  ;;  %v951_v32 = vld [vmem:[#allocation2 + $0x18] sm:$0xff] (!%p1419_p13)  ;;  %v989_v33 = vmul.f32 (!%p1419_p13), %v2009_v27, %v950_v31 }
 0x14d   : > { %917 = vst [vmem:[#allocation2 + $0x28] sm:$0xff] %v885_v39  ;;  %933 = vst [vmem:[#allocation2 + $0xa8] sm:$0xff] %v901_v40  ;;  %v988_v29 = vmul.f32 (!%p1419_p13), %v2009_v27, %v949_v26  ;;  %v990_v34 = vmul.f32 (!%p1419_p13), %v2009_v27, %v951_v32  ;;  %v1026_v38 = vadd.f32 (!%p1419_p13), %v2016_v30, %v987_v28  ;;  %v966_v31 = vld [vmem:[#allocation2 + $0x90] sm:$0xff] (!%p1419_p13)  ;;  %v967_v32 = vld [vmem:[#allocation2 + $0x98] sm:$0xff] (!%p1419_p13) }
 0x14f   : > { %v1633_v45 = vpop.f32.mrb[8].mxu0  ;;  %v1649_v46 = vpop.f32.mrb[8].mxu1  ;;  %v1027_v39 = vadd.f32 (!%p1419_p13), %v2016_v30, %v988_v29 }
 0x150   : > { %v890_v49 = vadd.f32 %v1633_v45, %v505_v41  ;;  %v906_v50 = vadd.f32 %v1649_v46, %v521_v42  ;;  %v785_v51 = vpop.f32.mrb[9].mxu0  ;;  %v849_v52 = vpop.f32.mrb[9].mxu1 }
 0x151   : > { %v888_v55 = vadd.f32 %v785_v51, %v503_v43  ;;  %v904_v56 = vadd.f32 %v849_v52, %v519_v44  ;;  %v1634_v57 = vpop.f32.mrb[10].mxu0  ;;  %v1650_v58 = vpop.f32.mrb[10].mxu1  ;;  %v954_v37 = vld [vmem:[#allocation2 + $0x30] sm:$0xff] (!%p1419_p13)  ;;  %v1028_v43 = vadd.f32 (!%p1419_p13), %v2016_v30, %v989_v33  ;;  %v1029_v44 = vadd.f32 (!%p1419_p13), %v2016_v30, %v990_v34 }
 0x152   : > { %922 = vst [vmem:[#allocation2 + $0x50] sm:$0xff] %v890_v49  ;;  %938 = vst [vmem:[#allocation2 + $0xd0] sm:$0xff] %v906_v50  ;;  %v891_v59 = vadd.f32 %v1634_v57, %v506_v47  ;;  %v907_v60 = vadd.f32 %v1650_v58, %v522_v48  ;;  %v788_v61 = vpop.f32.mrb[11].mxu0  ;;  %v852_v62 = vpop.f32.mrb[11].mxu1  ;;  %v952_v35 = vld [vmem:[#allocation2 + $0x20] sm:$0xff] (!%p1419_p13)  ;;  %v993_v45 = vmul.f32 (!%p1419_p13), %v2009_v27, %v954_v37  ;;  %v1058_v48 = vmax.f32 (!%p1419_p13), %v1026_v38, 0.0 }
 0x153   : > { %920 = vst [vmem:[#allocation2 + $0x40] sm:$0xff] %v888_v55  ;;  %936 = vst [vmem:[#allocation2 + $0xc0] sm:$0xff] %v904_v56  ;;  %v889_v63 = vadd.f32 %v788_v61, %v504_v53  ;;  %v905_v0 = vadd.f32 %v852_v62, %v520_v54  ;;  %v991_v40 = vmul.f32 (!%p1419_p13), %v2009_v27, %v952_v35  ;;  %v955_v42 = vld [vmem:[#allocation2 + $0x38] sm:$0xff] (!%p1419_p13)  ;;  %v1059_v49 = vmax.f32 (!%p1419_p13), %v1027_v39, 0.0  ;;  %v968_v37 = vld [vmem:[#allocation2 + $0xa0] sm:$0xff] (!%p1419_p13) }
 0x154   : > { %923 = vst [vmem:[#allocation2 + $0x58] sm:$0xff] %v891_v59  ;;  %939 = vst [vmem:[#allocation2 + $0xd8] sm:$0xff] %v907_v60  ;;  %v953_v36 = vld [vmem:[#allocation2 + $0x28] sm:$0xff] (!%p1419_p13)  ;;  %v994_v46 = vmul.f32 (!%p1419_p13), %v2009_v27, %v955_v42  ;;  %v1060_v53 = vmax.f32 (!%p1419_p13), %v1028_v43, 0.0  ;;  %v1061_v54 = vmax.f32 (!%p1419_p13), %v1029_v44, 0.0  ;;  %v1032_v55 = vadd.f32 (!%p1419_p13), %v2016_v30, %v993_v45  ;;  %v970_v43 = vld [vmem:[#allocation2 + $0xb0] sm:$0xff] (!%p1419_p13) }
 0x155   : > { %921 = vst [vmem:[#allocation2 + $0x48] sm:$0xff] %v889_v63  ;;  %937 = vst [vmem:[#allocation2 + $0xc8] sm:$0xff] %v905_v0  ;;  %v992_v41 = vmul.f32 (!%p1419_p13), %v2009_v27, %v953_v36  ;;  %v1030_v50 = vadd.f32 (!%p1419_p13), %v2016_v30, %v991_v40  ;;  %v1491_v59 = vpack.c.bf16 (!%p1419_p13), %v1059_v49, %v1058_v48  ;;  %v969_v38 = vld [vmem:[#allocation2 + $0xa8] sm:$0xff] (!%p1419_p13)  ;;  %v971_v48 = vld [vmem:[#allocation2 + $0xb8] sm:$0xff] (!%p1419_p13) }
 0x156   : > { %v1033_v56 = vadd.f32 (!%p1419_p13), %v2016_v30, %v994_v46  ;;  %v1005_v46 = vmul.f32 (!%p1419_p13), %v2009_v27, %v966_v31 }
 0x157   : > { %v1637_v5 = vpop.f32.mrb[12].mxu0  ;;  %v1653_v6 = vpop.f32.mrb[12].mxu1  ;;  %947 = sbr.rel (%p1419_p13) target bundleno = 375 (0x177), region = 85  ;;  %v1031_v51 = vadd.f32 (!%p1419_p13), %v2016_v30, %v992_v41  ;;  %v1062_v60 = vmax.f32 (!%p1419_p13), %v1030_v50, 0.0  ;;  %1492 = vst [vmem:[%s1976_s7] sm:$0xff] (!%p1419_p13), %v1491_v59  }
 0x158   : > { %v894_v9 = vadd.f32 %v1637_v5, %v509_v1  ;;  %v910_v10 = vadd.f32 %v1653_v6, %v525_v2  ;;  %v801_v11 = vpop.f32.mrb[13].mxu0  ;;  %v865_v12 = vpop.f32.mrb[13].mxu1  ;;  %v1496_v1 = vpack.c.bf16 (!%p1419_p13), %v1061_v54, %v1060_v53  ;;  %v1064_v2 = vmax.f32 (!%p1419_p13), %v1032_v55, 0.0 }
 0x159   : > { %v892_v15 = vadd.f32 %v801_v11, %v507_v3  ;;  %v908_v16 = vadd.f32 %v865_v12, %v523_v4  ;;  %v1638_v17 = vpop.f32.mrb[14].mxu0  ;;  %v1654_v18 = vpop.f32.mrb[14].mxu1  ;;  %v958_v57 = vld [vmem:[#allocation2 + $0x50] sm:$0xff] (!%p1419_p13)  ;;  %v1063_v61 = vmax.f32 (!%p1419_p13), %v1031_v51, 0.0  ;;  %v1065_v3 = vmax.f32 (!%p1419_p13), %v1033_v56, 0.0 }
 0x15a   : > { %926 = vst [vmem:[#allocation2 + $0x70] sm:$0xff] %v894_v9  ;;  %942 = vst [vmem:[#allocation2 + $0xf0] sm:$0xff] %v910_v10  ;;  %v895_v19 = vadd.f32 %v1638_v17, %v510_v7  ;;  %v911_v20 = vadd.f32 %v1654_v18, %v526_v8  ;;  %v804_v21 = vpop.f32.mrb[15].mxu0  ;;  %v868_v22 = vpop.f32.mrb[15].mxu1  ;;  %v956_v47 = vld [vmem:[#allocation2 + $0x40] sm:$0xff] (!%p1419_p13)  ;;  %v997_v8 = vmul.f32 (!%p1419_p13), %v2009_v27, %v958_v57 }
 0x15b   : > { %924 = vst [vmem:[#allocation2 + $0x60] sm:$0xff] %v892_v15  ;;  %940 = vst [vmem:[#allocation2 + $0xe0] sm:$0xff] %v908_v16  ;;  %v893_v23 = vadd.f32 %v804_v21, %v508_v13  ;;  %v909_v24 = vadd.f32 %v868_v22, %v524_v14  ;;  %v959_v58 = vld [vmem:[#allocation2 + $0x58] sm:$0xff] (!%p1419_p13)  ;;  %v995_v62 = vmul.f32 (!%p1419_p13), %v2009_v27, %v956_v47  ;;  %v964_v15 = vld [vmem:[#allocation2 + $0x80] sm:$0xff] (!%p1419_p13) }
 0x15c   : > { %927 = vst [vmem:[#allocation2 + $0x78] sm:$0xff] %v895_v19  ;;  %943 = vst [vmem:[#allocation2 + $0xf8] sm:$0xff] %v911_v20  ;;  %v957_v52 = vld [vmem:[#allocation2 + $0x48] sm:$0xff] (!%p1419_p13)  ;;  %v1501_v6 = vpack.c.bf16 (!%p1419_p13), %v1063_v61, %v1062_v60  ;;  %v998_v9 = vmul.f32 (!%p1419_p13), %v2009_v27, %v959_v58  ;;  %v1506_v11 = vpack.c.bf16 (!%p1419_p13), %v1065_v3, %v1064_v2  ;;  %v972_v53 = vld [vmem:[#allocation2 + $0xc0] sm:$0xff] (!%p1419_p13) }
 0x15d   : > { %925 = vst [vmem:[#allocation2 + $0x68] sm:$0xff] %v893_v23  ;;  %941 = vst [vmem:[#allocation2 + $0xe8] sm:$0xff] %v909_v24  ;;  %v996_v4 = vmul.f32 (!%p1419_p13), %v2009_v27, %v957_v52  ;;  %v1034_v7 = vadd.f32 (!%p1419_p13), %v2016_v30, %v995_v62  ;;  %v1036_v17 = vadd.f32 (!%p1419_p13), %v2016_v30, %v997_v8  ;;  %v965_v24 = vld [vmem:[#allocation2 + $0x88] sm:$0xff] (!%p1419_p13)  ;;  %v974_v3 = vld [vmem:[#allocation2 + $0xd0] sm:$0xff] (!%p1419_p13) }
 0x15e   : > { %1568 = vst [vmem:[%s1976_s7 + $0x8] sm:$0xff] %v1496_v1   ;;  %1569 = vst [vmem:[%s1976_s7 + $0x10] sm:$0xff] %v1501_v6   ;;  %v1037_v18 = vadd.f32 %v2016_v30, %v998_v9  ;;  %v1003_v29 = vmul.f32 %v2009_v27, %v964_v15  ;;  %v1004_v41 = vmul.f32 %v2009_v27, %v965_v24  ;;  %v973_v62 = vld [vmem:[#allocation2 + $0xc8] sm:$0xff] }
 0x15f   : > { %v1035_v12 = vadd.f32 %v2016_v30, %v996_v4  ;;  %v1066_v16 = vmax.f32 %v1034_v7, 0.0  ;;  %1570 = vst [vmem:[%s1976_s7 + $0x18] sm:$0xff] %v1506_v11   ;;  %v1068_v25 = vmax.f32 %v1036_v17, 0.0  ;;  %v1006_v47 = vmul.f32 %v2009_v27, %v967_v32  ;;  %v975_v4 = vld [vmem:[#allocation2 + $0xd8] sm:$0xff] }
 0x160   : > { %v1069_v26 = vmax.f32 %v1037_v18, 0.0  ;;  %v1042_v42 = vadd.f32 %v2016_v30, %v1003_v29  ;;  %v1043_v49 = vadd.f32 %v2016_v30, %v1004_v41  ;;  %v1007_v51 = vmul.f32 %v2009_v27, %v968_v37 }
 0x161   : > { %v962_v5 = vld [vmem:[#allocation2 + $0x70] sm:$0xff]  ;;  %v1067_v20 = vmax.f32 %v1035_v12, 0.0  ;;  %v1008_v52 = vmul.f32 %v2009_v27, %v969_v38  ;;  %v1044_v55 = vadd.f32 %v2016_v30, %v1005_v46  ;;  %v1045_v56 = vadd.f32 %v2016_v30, %v1006_v47 }
 0x162   : > { %v960_v63 = vld [vmem:[#allocation2 + $0x60] sm:$0xff]  ;;  %v1001_v19 = vmul.f32 %v2009_v27, %v962_v5  ;;  %v1516_v39 = vpack.c.bf16 %v1069_v26, %v1068_v25  ;;  %v1074_v50 = vmax.f32 %v1042_v42, 0.0  ;;  %v1009_v57 = vmul.f32 %v2009_v27, %v970_v43  ;;  %v978_v15 = vld [vmem:[#allocation2 + $0xf0] sm:$0xff] }
 0x163   : > { %v963_v10 = vld [vmem:[#allocation2 + $0x78] sm:$0xff]  ;;  %v999_v13 = vmul.f32 %v2009_v27, %v960_v63  ;;  %v1511_v33 = vpack.c.bf16 %v1067_v20, %v1066_v16  ;;  %v1075_v58 = vmax.f32 %v1043_v49, 0.0  ;;  %v1046_v59 = vadd.f32 %v2016_v30, %v1007_v51  ;;  %v976_v9 = vld [vmem:[#allocation2 + $0xe0] sm:$0xff] }
 0x164   : > { %v961_v0 = vld [vmem:[#allocation2 + $0x68] sm:$0xff]  ;;  %v1002_v23 = vmul.f32 %v2009_v27, %v963_v10  ;;  %v1040_v28 = vadd.f32 %v2016_v30, %v1001_v19  ;;  %1572 = vst [vmem:[%s1976_s7 + $0x28] sm:$0xff] %v1516_v39   ;;  %v1047_v60 = vadd.f32 %v2016_v30, %v1008_v52  ;;  %v1010_v61 = vmul.f32 %v2009_v27, %v971_v48  ;;  %v979_v20 = vld [vmem:[#allocation2 + $0xf8] sm:$0xff] }
 0x165   : > { %v1000_v14 = vmul.f32 %v2009_v27, %v961_v0  ;;  %v1038_v21 = vadd.f32 %v2016_v30, %v999_v13  ;;  %1571 = vst [vmem:[%s1976_s7 + $0x20] sm:$0xff] %v1511_v33   ;;  %v1076_v63 = vmax.f32 %v1044_v55, 0.0  ;;  %v1077_v0 = vmax.f32 %v1045_v56, 0.0  ;;  %v977_v10 = vld [vmem:[#allocation2 + $0xe8] sm:$0xff] }
 0x166   : > { %v1041_v36 = vadd.f32 %v2016_v30, %v1002_v23  ;;  %v1072_v40 = vmax.f32 %v1040_v28, 0.0  ;;  %v1048_v1 = vadd.f32 %v2016_v30, %v1009_v57  ;;  %v1011_v2 = vmul.f32 %v2009_v27, %v972_v53 }
 0x167   : > { %v1039_v22 = vadd.f32 %v2016_v30, %v1000_v14  ;;  %v1070_v34 = vmax.f32 %v1038_v21, 0.0  ;;  %v1531_v5 = vpack.c.bf16 %v1075_v58, %v1074_v50  ;;  %v1078_v6 = vmax.f32 %v1046_v59, 0.0 }
 0x168   : > { %v1073_v45 = vmax.f32 %v1041_v36, 0.0  ;;  %v1079_v7 = vmax.f32 %v1047_v60, 0.0  ;;  %v1049_v8 = vadd.f32 %v2016_v30, %v1010_v61  ;;  %v1536_v11 = vpack.c.bf16 %v1077_v0, %v1076_v63 }
 0x169   : > { %v1071_v35 = vmax.f32 %v1039_v22, 0.0  ;;  %v1080_v12 = vmax.f32 %v1048_v1, 0.0  ;;  %v1012_v13 = vmul.f32 %v2009_v27, %v973_v62  ;;  %v1050_v14 = vadd.f32 %v2016_v30, %v1011_v2  ;;  %1575 = vst [vmem:[%s1976_s7 + $0x40] sm:$0xff] %v1531_v5  }
 0x16a   : > { %v1526_v54 = vpack.c.bf16 %v1073_v45, %v1072_v40  ;;  %v1541_v16 = vpack.c.bf16 %v1079_v7, %v1078_v6  ;;  %v1081_v17 = vmax.f32 %v1049_v8, 0.0  ;;  %v1013_v18 = vmul.f32 %v2009_v27, %v974_v3  ;;  %1576 = vst [vmem:[%s1976_s7 + $0x48] sm:$0xff] %v1536_v11  }
 0x16b   : > { %v1521_v44 = vpack.c.bf16 %v1071_v35, %v1070_v34  ;;  %v1014_v19 = vmul.f32 %v2009_v27, %v975_v4  ;;  %v1051_v21 = vadd.f32 %v2016_v30, %v1012_v13  ;;  %v1082_v22 = vmax.f32 %v1050_v14, 0.0 }
 0x16c   : > { %1574 = vst [vmem:[%s1976_s7 + $0x38] sm:$0xff] %v1526_v54   ;;  %v1015_v23 = vmul.f32 %v2009_v27, %v976_v9  ;;  %v1016_v24 = vmul.f32 %v2009_v27, %v977_v10  ;;  %1577 = vst [vmem:[%s1976_s7 + $0x50] sm:$0xff] %v1541_v16   ;;  %v1546_v25 = vpack.c.bf16 %v1081_v17, %v1080_v12 }
 0x16d   : > { %1573 = vst [vmem:[%s1976_s7 + $0x30] sm:$0xff] %v1521_v44   ;;  %v1052_v26 = vadd.f32 %v2016_v30, %v1013_v18  ;;  %v1053_v28 = vadd.f32 %v2016_v30, %v1014_v19  ;;  %v1017_v29 = vmul.f32 %v2009_v27, %v978_v15  ;;  %v1083_v31 = vmax.f32 %v1051_v21, 0.0 }
 0x16e   : > { %v1054_v32 = vadd.f32 %v2016_v30, %v1015_v23  ;;  %v1055_v33 = vadd.f32 %v2016_v30, %v1016_v24  ;;  %v1018_v34 = vmul.f32 %v2009_v27, %v979_v20  ;;  %1578 = vst [vmem:[%s1976_s7 + $0x58] sm:$0xff] %v1546_v25  }
 0x16f   : > { %v1084_v35 = vmax.f32 %v1052_v26, 0.0  ;;  %v1085_v36 = vmax.f32 %v1053_v28, 0.0  ;;  %v1056_v37 = vadd.f32 %v2016_v30, %v1017_v29  ;;  %v1551_v38 = vpack.c.bf16 %v1083_v31, %v1082_v22 }
 0x170   : > { %v1086_v39 = vmax.f32 %v1054_v32, 0.0  ;;  %v1087_v40 = vmax.f32 %v1055_v33, 0.0  ;;  %v1057_v41 = vadd.f32 %v2016_v30, %v1018_v34 }
 0x171   : > { %v1556_v42 = vpack.c.bf16 %v1085_v36, %v1084_v35  ;;  %v1088_v43 = vmax.f32 %v1056_v37, 0.0  ;;  %1579 = vst [vmem:[%s1976_s7 + $0x60] sm:$0xff] %v1551_v38  }
 0x172   : > { %v1561_v44 = vpack.c.bf16 %v1087_v40, %v1086_v39  ;;  %v1089_v45 = vmax.f32 %v1057_v41, 0.0 }
 0x173   : > { %1580 = vst [vmem:[%s1976_s7 + $0x68] sm:$0xff] %v1556_v42  }
 0x174   : > { %1581 = vst [vmem:[%s1976_s7 + $0x70] sm:$0xff] %v1561_v44   ;;  %v1566_v46 = vpack.c.bf16 %v1089_v45, %v1088_v43 }
 0x176   : > { %1582 = vst [vmem:[%s1976_s7 + $0x78] sm:$0xff] %v1566_v46  }
 0x177 PF: > { %s14_s21 = sadd.s32 1, %s1807_s21   ;;  %s2122_s15 = smov %s1787_s16 }
 0x178   : > { %p11_p0 = scmp.ge.s32.totalorder %s14_s21, 12   ;;  %s2123_s16 = smov %s1886_s28 }
 0x179   : > { %s2124_s17 = smov %s1799_s19  ;;  %s2125_s18 = smov %s1803_s20 }
 0x17a   : > { %s2126_s19 = smov %s2129_s22  ;;  %s2127_s20 = smov %s2133_s23 }
 0x17b   :  { %13 = sbr.rel (!%p11_p0) target bundleno = 4 (0x4), region = 129 }

// kernel: _lambda_.15
= control target key start
LH: loop header
LB: loop body
LE: loop exit
PB: predicated region body
PF: predicated region fallthrough
CT: control target
= control target key end

     0   :  { %s2092_s18 = smov 0   ;;  %s2094_s19 = smov 0   ;;  %s2395_s0 = inlined_call_operand.vmem [shape: bf16[512,640], index: 0, kind: input, shape index: {}]   ;;  %s2396_s1 = inlined_call_operand.vmem [shape: bf16[640,128], index: 1, kind: input, shape index: {}]   ;;  %s2397_s2 = inlined_call_operand.vmem [shape: f32[1,128], index: 2, kind: input, shape index: {}]   ;;  %s2398_s3 = inlined_call_operand.vmem [shape: f32[1,128], index: 3, kind: input, shape index: {}]   ;;  %s2399_s4 = inlined_call_operand.vmem [shape: bf16[512,128], index: 4, kind: input, shape index: {}]   ;;  %s2400_s5 = inlined_call_operand.vmem [shape: bf16[512,128], index: 5, kind: output, shape index: {}]  }
   0x1   :  { %s2096_s20 = smov 0   ;;  %s2098_s21 = smov 0  }
   0x2   :  { %s2100_s22 = smov 0   ;;  %s2102_s23 = smov 0  }
   0x3   :  { %s2104_s24 = smov 0  }
   0x4 LB: > { %s27_s25 = sadd.s32 1, %s2051_s22  ;;  %s34_s26 = sadd.s32 1, %s2055_s23  ;;  %s2059_s24 = sphi %s2104_s24, %s15_s24   ;;  %s2055_s23 = sphi %s2102_s23, %s2406_s23   ;;  %s2051_s22 = sphi %s2100_s22, %s2405_s22   ;;  %s2047_s21 = sphi %s2098_s21, %s2404_s21   ;;  %s2043_s20 = sphi %s2096_s20, %s2403_s20   ;;  %s2039_s19 = sphi %s2094_s19, %s2402_s19   ;;  %s2035_s18 = sphi %s2092_s18, %s2401_s18  }
   0x5   : > { %p28_p0 = scmp.ge.s32.totalorder %s27_s25, 5  ;;  %p50_p1 = scmp.ne.s32.totalorder %s2039_s19, %s2035_s18 }
   0x6   : > { %p51_p2 = scmp.eq.s32.totalorder %s2059_s24, 0  ;;  %s43_s30 = sadd.s32 1, %s2039_s19 }
   0x7   : > { %s2408_s25 = smov (%p28_p0, %s27_s25), 0  ;;  %s2410_s26 = smov (!%p28_p0, %s34_s26), %s2055_s23 }
   0x8   : > { %p52_p3 = por %p51_p2, %p50_p1  ;;  %p36_p4 = scmp.ge.s32.totalorder %s2410_s26, 2 }
   0x9   : > { %s39_s27 = ssub.s32 %s2051_s22, %s2408_s25  ;;  %p1554_p6 = scmp.ge.s32.totalorder %s2059_s24, 10 }
   0xa   : > { %s2412_s26 = smov (%p36_p4, %s2410_s26), 0 }
   0xb   : > { %s38_s28 = ssub.s32 %s2055_s23, %s2412_s26  ;;  %224 = sbr.rel (%p1554_p6) target bundleno = 46 (0x2e), region = 24 }
   0xc   : > { %s40_s29 = sor.u32 %s39_s27, %s38_s28 }
   0xd   : > { %p41_p5 = scmp.eq.s32.totalorder %s40_s29, 0 }
   0xf   : > { %s2143_s6 = scalar_select %p41_p5, %s2039_s19, %s43_s30  }
  0x12   : > { %227 = sbr.rel (!%p52_p3) target bundleno = 46 (0x2e), region = 28  ;;  %s229_s7 = sand.u32 (%p52_p3), 1, %s2039_s19  }
  0x13   : > { %s1923_s8 = smul.u32 (%p52_p3), 160, %s2055_s23  ;;  %s1555_s9 = sshll.u32 (%p52_p3), %s229_s7, 7 }
  0x14   : > { %s2157_s15 = scalar_lea.vmem (%p52_p3), [#allocation3], %s1555_s9 }
  0x15   : > { %s234_s10 = sadd.s32 (%p52_p3), %s2051_s22, %s1923_s8 }
  0x16   : > { %s1558_s11 = sshll.u32 (%p52_p3), %s234_s10, 2 }
  0x17   : > { %s2152_s14 = scalar_lea.vmem (%p52_p3), %s2395_s0, %s1558_s11 }
  0x18   : > { %v252_v0 = vld [vmem:[%s2152_s14] sm:$0xf] (%p52_p3)  ;;  %v254_v1 = vld [vmem:[%s2152_s14 + $0x14] sm:$0xf] (%p52_p3)  ;;  %v256_v2 = vld [vmem:[%s2152_s14 + $0x28] sm:$0xf] (%p52_p3) }
  0x19   : > { %253 = vst [vmem:[%s2157_s15] sm:$0xf] %v252_v0  ;;  %255 = vst [vmem:[%s2157_s15 + $0x4] sm:$0xf] %v254_v1  ;;  %v258_v3 = vld [vmem:[%s2152_s14 + $0x3c] sm:$0xf] }
  0x1a   : > { %257 = vst [vmem:[%s2157_s15 + $0x8] sm:$0xf] %v256_v2  ;;  %v260_v4 = vld [vmem:[%s2152_s14 + $0x50] sm:$0xf]  ;;  %v262_v5 = vld [vmem:[%s2152_s14 + $0x64] sm:$0xf] }
  0x1b   : > { %259 = vst [vmem:[%s2157_s15 + $0xc] sm:$0xf] %v258_v3  ;;  %261 = vst [vmem:[%s2157_s15 + $0x10] sm:$0xf] %v260_v4  ;;  %v264_v6 = vld [vmem:[%s2152_s14 + $0x78] sm:$0xf] }
  0x1c   : > { %263 = vst [vmem:[%s2157_s15 + $0x14] sm:$0xf] %v262_v5  ;;  %v266_v7 = vld [vmem:[%s2152_s14 + $0x8c] sm:$0xf]  ;;  %v268_v8 = vld [vmem:[%s2152_s14 + $0xa0] sm:$0xf] }
  0x1d   : > { %265 = vst [vmem:[%s2157_s15 + $0x18] sm:$0xf] %v264_v6  ;;  %267 = vst [vmem:[%s2157_s15 + $0x1c] sm:$0xf] %v266_v7  ;;  %v270_v9 = vld [vmem:[%s2152_s14 + $0xb4] sm:$0xf] }
  0x1e   : > { %269 = vst [vmem:[%s2157_s15 + $0x20] sm:$0xf] %v268_v8  ;;  %v272_v10 = vld [vmem:[%s2152_s14 + $0xc8] sm:$0xf]  ;;  %v274_v11 = vld [vmem:[%s2152_s14 + $0xdc] sm:$0xf] }
  0x1f   : > { %271 = vst [vmem:[%s2157_s15 + $0x24] sm:$0xf] %v270_v9  ;;  %273 = vst [vmem:[%s2157_s15 + $0x28] sm:$0xf] %v272_v10  ;;  %v276_v12 = vld [vmem:[%s2152_s14 + $0xf0] sm:$0xf] }
  0x20   : > { %275 = vst [vmem:[%s2157_s15 + $0x2c] sm:$0xf] %v274_v11  ;;  %v278_v13 = vld [vmem:[%s2152_s14 + $0x104] sm:$0xf]  ;;  %v280_v14 = vld [vmem:[%s2152_s14 + $0x118] sm:$0xf] }
  0x21   : > { %277 = vst [vmem:[%s2157_s15 + $0x30] sm:$0xf] %v276_v12  ;;  %279 = vst [vmem:[%s2157_s15 + $0x34] sm:$0xf] %v278_v13  ;;  %v282_v15 = vld [vmem:[%s2152_s14 + $0x12c] sm:$0xf] }
  0x22   : > { %281 = vst [vmem:[%s2157_s15 + $0x38] sm:$0xf] %v280_v14  ;;  %v284_v16 = vld [vmem:[%s2152_s14 + $0x140] sm:$0xf]  ;;  %v286_v17 = vld [vmem:[%s2152_s14 + $0x154] sm:$0xf] }
  0x23   : > { %283 = vst [vmem:[%s2157_s15 + $0x3c] sm:$0xf] %v282_v15  ;;  %285 = vst [vmem:[%s2157_s15 + $0x40] sm:$0xf] %v284_v16  ;;  %v288_v18 = vld [vmem:[%s2152_s14 + $0x168] sm:$0xf] }
  0x24   : > { %287 = vst [vmem:[%s2157_s15 + $0x44] sm:$0xf] %v286_v17  ;;  %v290_v19 = vld [vmem:[%s2152_s14 + $0x17c] sm:$0xf]  ;;  %v292_v20 = vld [vmem:[%s2152_s14 + $0x190] sm:$0xf] }
  0x25   : > { %289 = vst [vmem:[%s2157_s15 + $0x48] sm:$0xf] %v288_v18  ;;  %291 = vst [vmem:[%s2157_s15 + $0x4c] sm:$0xf] %v290_v19  ;;  %v294_v21 = vld [vmem:[%s2152_s14 + $0x1a4] sm:$0xf] }
  0x26   : > { %293 = vst [vmem:[%s2157_s15 + $0x50] sm:$0xf] %v292_v20  ;;  %v296_v22 = vld [vmem:[%s2152_s14 + $0x1b8] sm:$0xf]  ;;  %v298_v23 = vld [vmem:[%s2152_s14 + $0x1cc] sm:$0xf] }
  0x27   : > { %295 = vst [vmem:[%s2157_s15 + $0x54] sm:$0xf] %v294_v21  ;;  %297 = vst [vmem:[%s2157_s15 + $0x58] sm:$0xf] %v296_v22  ;;  %v300_v24 = vld [vmem:[%s2152_s14 + $0x1e0] sm:$0xf] }
  0x28   : > { %299 = vst [vmem:[%s2157_s15 + $0x5c] sm:$0xf] %v298_v23  ;;  %v302_v25 = vld [vmem:[%s2152_s14 + $0x1f4] sm:$0xf]  ;;  %v304_v26 = vld [vmem:[%s2152_s14 + $0x208] sm:$0xf] }
  0x29   : > { %301 = vst [vmem:[%s2157_s15 + $0x60] sm:$0xf] %v300_v24  ;;  %303 = vst [vmem:[%s2157_s15 + $0x64] sm:$0xf] %v302_v25  ;;  %v306_v27 = vld [vmem:[%s2152_s14 + $0x21c] sm:$0xf] }
  0x2a   : > { %305 = vst [vmem:[%s2157_s15 + $0x68] sm:$0xf] %v304_v26  ;;  %v308_v28 = vld [vmem:[%s2152_s14 + $0x230] sm:$0xf]  ;;  %v310_v29 = vld [vmem:[%s2152_s14 + $0x244] sm:$0xf] }
  0x2b   : > { %307 = vst [vmem:[%s2157_s15 + $0x6c] sm:$0xf] %v306_v27  ;;  %309 = vst [vmem:[%s2157_s15 + $0x70] sm:$0xf] %v308_v28  ;;  %v312_v30 = vld [vmem:[%s2152_s14 + $0x258] sm:$0xf] }
  0x2c   : > { %311 = vst [vmem:[%s2157_s15 + $0x74] sm:$0xf] %v310_v29  ;;  %v314_v31 = vld [vmem:[%s2152_s14 + $0x26c] sm:$0xf]  ;;  %313 = vst [vmem:[%s2157_s15 + $0x78] sm:$0xf] %v312_v30 }
  0x2d   : > { %315 = vst [vmem:[%s2157_s15 + $0x7c] sm:$0xf] %v314_v31 }
  0x2e PF: > { %p1559_p7 = scmp.ge.s32.totalorder %s2059_s24, 1  ;;  %p425_p8 = scmp.lt.s32.totalorder %s2059_s24, 11 }
  0x30   : > { %p426_p9 = pnand %p1559_p7, %p425_p8 }
  0x31   : > { %s432_s16 = sand.u32 (!%p426_p9), 1, %s2035_s18   ;;  %s1561_s17 = sshll.u32 (!%p426_p9), %s2043_s20, 4 }
  0x32   : > { %429 = sbr.rel (%p426_p9) target bundleno = 390 (0x186), region = 77  ;;  %s1560_s27 = sshll.u32 (!%p426_p9), %s432_s16, 7 }
  0x33   : > { %p486_p10 = scmp.lt.s32.totalorder (!%p426_p9), %s1561_s17, 79  ;;  %s1563_s28 = sshll.u32 (!%p426_p9), %s2047_s21, 5 }
  0x34   : > { %p501_p11 = scmp.lt.s32.totalorder (!%p426_p9), %s1563_s28, 63  ;;  %s2240_s21 = scalar_lea.vmem (!%p426_p9), [#allocation3], %s1560_s27 }
  0x35   : > { %p1567_p12 = scmp.ne.s32.totalorder (!%p426_p9), %s2043_s20, 0 }
  0x39   : > { %s2414_s17 = smov (!%p486_p10, %s1561_s17), 79  ;;  %s2416_s28 = smov (!%p501_p11, %s1563_s28), 63 }
  0x3a   : > { %s1562_s29 = sshll.u32 %s2414_s17, 2  ;;  %s1564_s9 = sshll.u32 %s2416_s28, 2  ;;  %v2061_v32 = vmov (!%p1567_p12), 0.0  }
  0x3b   : > { %s2228_s8 = scalar_lea.vmem %s2396_s1, %s1562_s29  ;;  %s2233_s12 = scalar_lea.vmem %s2399_s4, %s1564_s9  ;;  %523 = vst [vmem:[#allocation2] sm:$0xff] (!%p1567_p12), %v2061_v32  ;;  %524 = vst [vmem:[#allocation2 + $0x8] sm:$0xff] (!%p1567_p12), %v2061_v32 }
  0x3c   : > { %s2238_s14 = scalar_lea.vmem %s2400_s5, %s1564_s9  ;;  %522 = sbr.rel (%p1567_p12) target bundleno = 75 (0x4b), region = 85  ;;  %525 = vst [vmem:[#allocation2 + $0x10] sm:$0xff] (!%p1567_p12), %v2061_v32  ;;  %526 = vst [vmem:[#allocation2 + $0x18] sm:$0xff] (!%p1567_p12), %v2061_v32 }
  0x3d   : > { %527 = vst [vmem:[#allocation2 + $0x20] sm:$0xff] (!%p1567_p12), %v2061_v32  ;;  %528 = vst [vmem:[#allocation2 + $0x28] sm:$0xff] (!%p1567_p12), %v2061_v32 }
  0x3e   : > { %529 = vst [vmem:[#allocation2 + $0x30] sm:$0xff] (!%p1567_p12), %v2061_v32  ;;  %530 = vst [vmem:[#allocation2 + $0x38] sm:$0xff] (!%p1567_p12), %v2061_v32 }
  0x3f   : > { %531 = vst [vmem:[#allocation2 + $0x40] sm:$0xff] (!%p1567_p12), %v2061_v32  ;;  %532 = vst [vmem:[#allocation2 + $0x48] sm:$0xff] (!%p1567_p12), %v2061_v32 }
  0x40   : > { %533 = vst [vmem:[#allocation2 + $0x50] sm:$0xff] (!%p1567_p12), %v2061_v32  ;;  %534 = vst [vmem:[#allocation2 + $0x58] sm:$0xff] (!%p1567_p12), %v2061_v32 }
  0x41   : > { %535 = vst [vmem:[#allocation2 + $0x60] sm:$0xff] (!%p1567_p12), %v2061_v32  ;;  %536 = vst [vmem:[#allocation2 + $0x68] sm:$0xff] (!%p1567_p12), %v2061_v32 }
  0x42   : > { %537 = vst [vmem:[#allocation2 + $0x70] sm:$0xff] (!%p1567_p12), %v2061_v32  ;;  %538 = vst [vmem:[#allocation2 + $0x78] sm:$0xff] (!%p1567_p12), %v2061_v32 }
  0x43   : > { %539 = vst [vmem:[#allocation2 + $0x80] sm:$0xff] %v2061_v32  ;;  %540 = vst [vmem:[#allocation2 + $0x88] sm:$0xff] %v2061_v32 }
  0x44   : > { %541 = vst [vmem:[#allocation2 + $0x90] sm:$0xff] %v2061_v32  ;;  %542 = vst [vmem:[#allocation2 + $0x98] sm:$0xff] %v2061_v32 }
  0x45   : > { %543 = vst [vmem:[#allocation2 + $0xa0] sm:$0xff] %v2061_v32  ;;  %544 = vst [vmem:[#allocation2 + $0xa8] sm:$0xff] %v2061_v32 }
  0x46   : > { %545 = vst [vmem:[#allocation2 + $0xb0] sm:$0xff] %v2061_v32  ;;  %546 = vst [vmem:[#allocation2 + $0xb8] sm:$0xff] %v2061_v32 }
  0x47   : > { %547 = vst [vmem:[#allocation2 + $0xc0] sm:$0xff] %v2061_v32  ;;  %548 = vst [vmem:[#allocation2 + $0xc8] sm:$0xff] %v2061_v32 }
  0x48   : > { %549 = vst [vmem:[#allocation2 + $0xd0] sm:$0xff] %v2061_v32  ;;  %550 = vst [vmem:[#allocation2 + $0xd8] sm:$0xff] %v2061_v32 }
  0x49   : > { %551 = vst [vmem:[#allocation2 + $0xe0] sm:$0xff] %v2061_v32  ;;  %552 = vst [vmem:[#allocation2 + $0xe8] sm:$0xff] %v2061_v32 }
  0x4a   : > { %553 = vst [vmem:[#allocation2 + $0xf0] sm:$0xff] %v2061_v32  ;;  %554 = vst [vmem:[#allocation2 + $0xf8] sm:$0xff] %v2061_v32 }
  0x4b PF: > { %v1981_v33 = vld [vmem:[%s2228_s8] sm:$0xff]   ;;  %v1982_v34 = vld [vmem:[%s2228_s8 + $0x8] sm:$0xff]   ;;  %v1983_v35 = vld [vmem:[%s2228_s8 + $0x10] sm:$0xff]   ;;  %p1592_p13 = scmp.ne.s32.totalorder %s2043_s20, 4 }
  0x4c   : > { %1859 = vmatprep.subr.bf16.mxu0 %v1981_v33  ;;  %1907 = vmatprep.subr.bf16.mxu1 %v1981_v33  ;;  %v1984_v36 = vld [vmem:[%s2228_s8 + $0x18] sm:$0xff]   ;;  %v1989_v37 = vld [vmem:[%s2240_s21] sm:$0xff]   ;;  %v1986_v40 = vld [vmem:[%s2228_s8 + $0x28] sm:$0xff]  }
  0x4d   : > { %1860 = vmatpush3.bf16.msra.mxu0 %v1981_v33  ;;  %1915 = vmatpush3.bf16.msra.mxu1 %v1981_v33  ;;  %v1990_v38 = vld [vmem:[%s2240_s21 + $0x40] sm:$0xff]   ;;  %v1987_v41 = vld [vmem:[%s2228_s8 + $0x30] sm:$0xff]   ;;  %v1988_v42 = vld [vmem:[%s2228_s8 + $0x38] sm:$0xff]  }
  0x4e   : > { %1861 = vmatprep.subr.bf16.mxu0 %v1982_v34  ;;  %1908 = vmatprep.subr.bf16.mxu1 %v1982_v34  ;;  %v1985_v39 = vld [vmem:[%s2228_s8 + $0x20] sm:$0xff]   ;;  %v1991_v43 = vld [vmem:[%s2240_s21 + $0x8] sm:$0xff]   ;;  %v1993_v45 = vld [vmem:[%s2240_s21 + $0x10] sm:$0xff]  }
  0x4f   : > { %1875 = vmatprep.mubr.bf16.mxu0 %v1989_v37  ;;  %1891 = vmatprep.mubr.bf16.mxu1 %v1990_v38  ;;  %v1992_v44 = vld [vmem:[%s2240_s21 + $0x48] sm:$0xff]   ;;  %v1994_v46 = vld [vmem:[%s2240_s21 + $0x50] sm:$0xff]   ;;  %v1995_v47 = vld [vmem:[%s2240_s21 + $0x18] sm:$0xff]  }
  0x50   : > { %v1996_v48 = vld [vmem:[%s2240_s21 + $0x58] sm:$0xff]   ;;  %v1997_v49 = vld [vmem:[%s2240_s21 + $0x20] sm:$0xff]   ;;  %v1999_v51 = vld [vmem:[%s2240_s21 + $0x28] sm:$0xff]  }
  0x51   : > { %1862 = vmatpush3.bf16.msra.mxu0 %v1982_v34  ;;  %1916 = vmatpush3.bf16.msra.mxu1 %v1982_v34  ;;  %v1998_v50 = vld [vmem:[%s2240_s21 + $0x60] sm:$0xff]   ;;  %v2000_v52 = vld [vmem:[%s2240_s21 + $0x68] sm:$0xff]   ;;  %v2001_v53 = vld [vmem:[%s2240_s21 + $0x30] sm:$0xff]  }
  0x52   : > { %1863 = vmatprep.subr.bf16.mxu0 %v1983_v35  ;;  %1909 = vmatprep.subr.bf16.mxu1 %v1983_v35  ;;  %v2002_v54 = vld [vmem:[%s2240_s21 + $0x70] sm:$0xff]   ;;  %v2003_v55 = vld [vmem:[%s2240_s21 + $0x38] sm:$0xff]   ;;  %v555_v59 = vld [vmem:[#allocation2] sm:$0xff] }
  0x53   : > { %v2004_v56 = vld [vmem:[%s2240_s21 + $0x78] sm:$0xff]   ;;  %v557_v57 = vld [vmem:[#allocation2 + $0x10] sm:$0xff]  ;;  %v571_v60 = vld [vmem:[#allocation2 + $0x80] sm:$0xff] }
  0x54   : > { %v573_v58 = vld [vmem:[#allocation2 + $0x90] sm:$0xff]  ;;  %v558_v63 = vld [vmem:[#allocation2 + $0x18] sm:$0xff]  ;;  %v556_v5 = vld [vmem:[#allocation2 + $0x8] sm:$0xff] }
  0x55   : > { %1864 = vmatpush3.bf16.msra.mxu0 %v1983_v35  ;;  %1917 = vmatpush3.bf16.msra.mxu1 %v1983_v35  ;;  %v574_v0 = vld [vmem:[#allocation2 + $0x98] sm:$0xff]  ;;  %v572_v6 = vld [vmem:[#allocation2 + $0x88] sm:$0xff]  ;;  %v561_v17 = vld [vmem:[#allocation2 + $0x30] sm:$0xff] }
  0x56   : > { %1865 = vmatprep.subr.bf16.mxu0 %v1984_v36  ;;  %1910 = vmatprep.subr.bf16.mxu1 %v1984_v36  ;;  %v577_v18 = vld [vmem:[#allocation2 + $0xb0] sm:$0xff]  ;;  %v559_v19 = vld [vmem:[#allocation2 + $0x20] sm:$0xff]  ;;  %v562_v23 = vld [vmem:[#allocation2 + $0x38] sm:$0xff] }
  0x57   : > { %v575_v20 = vld [vmem:[#allocation2 + $0xa0] sm:$0xff]  ;;  %v578_v24 = vld [vmem:[#allocation2 + $0xb8] sm:$0xff]  ;;  %v560_v29 = vld [vmem:[#allocation2 + $0x28] sm:$0xff] }
  0x58   : > { %v576_v30 = vld [vmem:[#allocation2 + $0xa8] sm:$0xff] }
  0x59   : > { %1866 = vmatpush3.bf16.msra.mxu0 %v1984_v36  ;;  %1918 = vmatpush3.bf16.msra.mxu1 %v1984_v36 }
  0x5a   : > { %1867 = vmatprep.subr.bf16.mxu0 %v1985_v39  ;;  %1911 = vmatprep.subr.bf16.mxu1 %v1985_v39 }
  0x5d   : > { %1868 = vmatpush3.bf16.msra.mxu0 %v1985_v39  ;;  %1919 = vmatpush3.bf16.msra.mxu1 %v1985_v39 }
  0x5e   : > { %1869 = vmatprep.subr.bf16.mxu0 %v1986_v40  ;;  %1912 = vmatprep.subr.bf16.mxu1 %v1986_v40 }
  0x61   : > { %1870 = vmatpush3.bf16.msra.mxu0 %v1986_v40  ;;  %1920 = vmatpush3.bf16.msra.mxu1 %v1986_v40 }
  0x62   : > { %1871 = vmatprep.subr.bf16.mxu0 %v1987_v41  ;;  %1913 = vmatprep.subr.bf16.mxu1 %v1987_v41 }
  0x65   : > { %1872 = vmatpush3.bf16.msra.mxu0 %v1987_v41  ;;  %1921 = vmatpush3.bf16.msra.mxu1 %v1987_v41  ;;  %v565_v41 = vld [vmem:[#allocation2 + $0x50] sm:$0xff] }
  0x66   : > { %1873 = vmatprep.subr.bf16.mxu0 %v1988_v42  ;;  %1914 = vmatprep.subr.bf16.mxu1 %v1988_v42 }
  0x69   : > { %1874 = vmatpush3.bf16.msra.mxu0 %v1988_v42  ;;  %1922 = vmatpush3.bf16.msra.mxu1 %v1988_v42  ;;  %v581_v42 = vld [vmem:[#allocation2 + $0xd0] sm:$0xff] }
  0x6c   : > { %1876 = vmatmul.mubr.bf16.vlgmr.msra.gmra.mrb[0].mxu0 %v1991_v43  ;;  %1892 = vmatmul.mubr.bf16.vlgmr.msra.gmra.mrb[0].mxu1 %v1992_v44  ;;  %v563_v43 = vld [vmem:[#allocation2 + $0x40] sm:$0xff] }
  0x6d   : > { %1879 = vmatprep.mubr.bf16.mxu0 %v1993_v45  ;;  %1895 = vmatprep.mubr.bf16.mxu1 %v1994_v46  ;;  %v579_v44 = vld [vmem:[#allocation2 + $0xc0] sm:$0xff] }
  0x74   : > { %1880 = vmatmul.mubr.bf16.gmra.mrb[4].mxu0 %v1995_v47  ;;  %1896 = vmatmul.mubr.bf16.gmra.mrb[4].mxu1 %v1996_v48  ;;  %v566_v47 = vld [vmem:[#allocation2 + $0x58] sm:$0xff] }
  0x75   : > { %1883 = vmatprep.mubr.bf16.mxu0 %v1997_v49  ;;  %1899 = vmatprep.mubr.bf16.mxu1 %v1998_v50  ;;  %v582_v48 = vld [vmem:[#allocation2 + $0xd8] sm:$0xff] }
  0x7c   : > { %1884 = vmatmul.mubr.bf16.gmra.mrb[8].mxu0 %v1999_v51  ;;  %1900 = vmatmul.mubr.bf16.gmra.mrb[8].mxu1 %v2000_v52 }
  0x7d   : > { %1887 = vmatprep.mubr.bf16.mxu0 %v2001_v53  ;;  %1903 = vmatprep.mubr.bf16.mxu1 %v2002_v54  ;;  %v564_v53 = vld [vmem:[#allocation2 + $0x48] sm:$0xff] }
  0x7e   : > { %v580_v54 = vld [vmem:[#allocation2 + $0xc8] sm:$0xff] }
  0x84   : > { %1888 = vmatmul.mubr.bf16.gmra.mrb[12].mxu0 %v2003_v55  ;;  %1904 = vmatmul.mubr.bf16.gmra.mrb[12].mxu1 %v2004_v56 }
 0x13f   : > { %v1877_v61 = vpop.f32.mrb[0].mxu0  ;;  %v1893_v62 = vpop.f32.mrb[0].mxu1 }
 0x140   : > { %v942_v1 = vadd.f32 %v1877_v61, %v557_v57  ;;  %v958_v2 = vadd.f32 %v1893_v62, %v573_v58  ;;  %v813_v3 = vpop.f32.mrb[1].mxu0  ;;  %v877_v4 = vpop.f32.mrb[1].mxu1 }
 0x141   : > { %v940_v7 = vadd.f32 %v813_v3, %v555_v59  ;;  %v956_v8 = vadd.f32 %v877_v4, %v571_v60  ;;  %v1878_v9 = vpop.f32.mrb[2].mxu0  ;;  %v1894_v10 = vpop.f32.mrb[2].mxu1  ;;  %v567_v3 = vld [vmem:[#allocation2 + $0x60] sm:$0xff] }
 0x142   : > { %974 = vst [vmem:[#allocation2 + $0x10] sm:$0xff] %v942_v1  ;;  %990 = vst [vmem:[#allocation2 + $0x90] sm:$0xff] %v958_v2  ;;  %v943_v11 = vadd.f32 %v1878_v9, %v558_v63  ;;  %v959_v12 = vadd.f32 %v1894_v10, %v574_v0  ;;  %v816_v13 = vpop.f32.mrb[3].mxu0  ;;  %v880_v14 = vpop.f32.mrb[3].mxu1  ;;  %v569_v1 = vld [vmem:[#allocation2 + $0x70] sm:$0xff]  ;;  %v583_v4 = vld [vmem:[#allocation2 + $0xe0] sm:$0xff] }
 0x143   : > { %972 = vst [vmem:[#allocation2] sm:$0xff] %v940_v7  ;;  %988 = vst [vmem:[#allocation2 + $0x80] sm:$0xff] %v956_v8  ;;  %v941_v15 = vadd.f32 %v816_v13, %v556_v5  ;;  %v957_v16 = vadd.f32 %v880_v14, %v572_v6  ;;  %v585_v2 = vld [vmem:[#allocation2 + $0xf0] sm:$0xff]  ;;  %v570_v7 = vld [vmem:[#allocation2 + $0x78] sm:$0xff] }
 0x144   : > { %975 = vst [vmem:[#allocation2 + $0x18] sm:$0xff] %v943_v11  ;;  %991 = vst [vmem:[#allocation2 + $0x98] sm:$0xff] %v959_v12  ;;  %v586_v8 = vld [vmem:[#allocation2 + $0xf8] sm:$0xff]  ;;  %v568_v13 = vld [vmem:[#allocation2 + $0x68] sm:$0xff] }
 0x145   : > { %973 = vst [vmem:[#allocation2 + $0x8] sm:$0xff] %v941_v15  ;;  %989 = vst [vmem:[#allocation2 + $0x88] sm:$0xff] %v957_v16  ;;  %v584_v14 = vld [vmem:[#allocation2 + $0xe8] sm:$0xff] }
 0x147   : > { %v1881_v21 = vpop.f32.mrb[4].mxu0  ;;  %v1897_v22 = vpop.f32.mrb[4].mxu1 }
 0x148   : > { %v946_v25 = vadd.f32 %v1881_v21, %v561_v17  ;;  %v962_v26 = vadd.f32 %v1897_v22, %v577_v18  ;;  %v829_v27 = vpop.f32.mrb[5].mxu0  ;;  %v893_v28 = vpop.f32.mrb[5].mxu1 }
 0x149   : > { %v944_v31 = vadd.f32 %v829_v27, %v559_v19  ;;  %v960_v32 = vadd.f32 %v893_v28, %v575_v20  ;;  %v1882_v33 = vpop.f32.mrb[6].mxu0  ;;  %v1898_v34 = vpop.f32.mrb[6].mxu1  ;;  %v2271_v27 = vld [vmem:[%s2397_s2] ss:$0 sm:$0xff] (!%p1592_p13) }
 0x14a   : > { %978 = vst [vmem:[#allocation2 + $0x30] sm:$0xff] %v946_v25  ;;  %994 = vst [vmem:[#allocation2 + $0xb0] sm:$0xff] %v962_v26  ;;  %v947_v35 = vadd.f32 %v1882_v33, %v562_v23  ;;  %v963_v36 = vadd.f32 %v1898_v34, %v578_v24  ;;  %v832_v37 = vpop.f32.mrb[7].mxu0  ;;  %v896_v38 = vpop.f32.mrb[7].mxu1  ;;  %v1008_v25 = vld [vmem:[#allocation2] sm:$0xff] (!%p1592_p13) }
 0x14b   : > { %976 = vst [vmem:[#allocation2 + $0x20] sm:$0xff] %v944_v31  ;;  %992 = vst [vmem:[#allocation2 + $0xa0] sm:$0xff] %v960_v32  ;;  %v945_v39 = vadd.f32 %v832_v37, %v560_v29  ;;  %v961_v40 = vadd.f32 %v896_v38, %v576_v30  ;;  %v1047_v28 = vmul.f32 (!%p1592_p13), %v2271_v27, %v1008_v25  ;;  %v2278_v30 = vld [vmem:[%s2398_s3] ss:$0 sm:$0xff] (!%p1592_p13)  ;;  %v1010_v32 = vld [vmem:[#allocation2 + $0x10] sm:$0xff] (!%p1592_p13) }
 0x14c   : > { %979 = vst [vmem:[#allocation2 + $0x38] sm:$0xff] %v947_v35  ;;  %995 = vst [vmem:[#allocation2 + $0xb8] sm:$0xff] %v963_v36  ;;  %v1009_v26 = vld [vmem:[#allocation2 + $0x8] sm:$0xff] (!%p1592_p13)  ;;  %v1662_v31 = vld [vmem:[%s2233_s12] sm:$0xff] (!%p1592_p13)   ;;  %v1049_v36 = vmul.f32 (!%p1592_p13), %v2271_v27, %v1010_v32 }
 0x14d   : > { %977 = vst [vmem:[#allocation2 + $0x28] sm:$0xff] %v945_v39  ;;  %993 = vst [vmem:[#allocation2 + $0xa8] sm:$0xff] %v961_v40  ;;  %v1048_v29 = vmul.f32 (!%p1592_p13), %v2271_v27, %v1009_v26  ;;  %v1663_v33 = vunpack.c.l.bf16 (!%p1592_p13), %v1662_v31  ;;  %v1664_v34 = vunpack.c.h.bf16 (!%p1592_p13), %v1662_v31  ;;  %v1011_v35 = vld [vmem:[#allocation2 + $0x18] sm:$0xff] (!%p1592_p13)  ;;  %v1805_v37 = vld [vmem:[%s2233_s12 + $0x8] sm:$0xff] (!%p1592_p13)   ;;  %v1086_v39 = vadd.f32 (!%p1592_p13), %v2278_v30, %v1047_v28 }
 0x14f   : > { %v1885_v45 = vpop.f32.mrb[8].mxu0  ;;  %v1901_v46 = vpop.f32.mrb[8].mxu1  ;;  %v1087_v40 = vadd.f32 (!%p1592_p13), %v2278_v30, %v1048_v29 }
 0x150   : > { %v950_v49 = vadd.f32 %v1885_v45, %v565_v41  ;;  %v966_v50 = vadd.f32 %v1901_v46, %v581_v42  ;;  %v845_v51 = vpop.f32.mrb[9].mxu0  ;;  %v909_v52 = vpop.f32.mrb[9].mxu1  ;;  %v1050_v41 = vmul.f32 (!%p1592_p13), %v2271_v27, %v1011_v35  ;;  %v1667_v42 = vunpack.c.l.bf16 (!%p1592_p13), %v1805_v37 }
 0x151   : > { %v948_v55 = vadd.f32 %v845_v51, %v563_v43  ;;  %v964_v56 = vadd.f32 %v909_v52, %v579_v44  ;;  %v1886_v57 = vpop.f32.mrb[10].mxu0  ;;  %v1902_v58 = vpop.f32.mrb[10].mxu1  ;;  %v1806_v44 = vld [vmem:[%s2233_s12 + $0x10] sm:$0xff] (!%p1592_p13)   ;;  %v1088_v45 = vadd.f32 (!%p1592_p13), %v2278_v30, %v1049_v36  ;;  %v1668_v46 = vunpack.c.h.bf16 (!%p1592_p13), %v1805_v37 }
 0x152   : > { %982 = vst [vmem:[#allocation2 + $0x50] sm:$0xff] %v950_v49  ;;  %998 = vst [vmem:[#allocation2 + $0xd0] sm:$0xff] %v966_v50  ;;  %v951_v59 = vadd.f32 %v1886_v57, %v566_v47  ;;  %v967_v60 = vadd.f32 %v1902_v58, %v582_v48  ;;  %v848_v61 = vpop.f32.mrb[11].mxu0  ;;  %v912_v62 = vpop.f32.mrb[11].mxu1  ;;  %v1012_v38 = vld [vmem:[#allocation2 + $0x20] sm:$0xff] (!%p1592_p13)  ;;  %v1014_v49 = vld [vmem:[#allocation2 + $0x30] sm:$0xff] (!%p1592_p13)  ;;  %v1182_v50 = vadd.f32 (!%p1592_p13), %v1663_v33, %v1086_v39  ;;  %v1672_v58 = vunpack.c.h.bf16 (!%p1592_p13), %v1806_v44 }
 0x153   : > { %980 = vst [vmem:[#allocation2 + $0x40] sm:$0xff] %v948_v55  ;;  %996 = vst [vmem:[#allocation2 + $0xc0] sm:$0xff] %v964_v56  ;;  %v949_v63 = vadd.f32 %v848_v61, %v564_v53  ;;  %v965_v0 = vadd.f32 %v912_v62, %v580_v54  ;;  %v1051_v47 = vmul.f32 (!%p1592_p13), %v2271_v27, %v1012_v38  ;;  %v1671_v53 = vunpack.c.l.bf16 (!%p1592_p13), %v1806_v44  ;;  %v1015_v54 = vld [vmem:[#allocation2 + $0x38] sm:$0xff] (!%p1592_p13) }
 0x154   : > { %983 = vst [vmem:[#allocation2 + $0x58] sm:$0xff] %v951_v59  ;;  %999 = vst [vmem:[#allocation2 + $0xd8] sm:$0xff] %v967_v60  ;;  %v1013_v43 = vld [vmem:[#allocation2 + $0x28] sm:$0xff] (!%p1592_p13)  ;;  %v1183_v51 = vadd.f32 (!%p1592_p13), %v1664_v34, %v1087_v40  ;;  %v1089_v52 = vadd.f32 (!%p1592_p13), %v2278_v30, %v1050_v41  ;;  %v1184_v55 = vadd.f32 (!%p1592_p13), %v1667_v42, %v1088_v45  ;;  %v1807_v59 = vld [vmem:[%s2233_s12 + $0x18] sm:$0xff] (!%p1592_p13)   ;;  %v1214_v60 = vmax.f32 (!%p1592_p13), %v1182_v50, 0.0 }
 0x155   : > { %981 = vst [vmem:[#allocation2 + $0x48] sm:$0xff] %v949_v63  ;;  %997 = vst [vmem:[#allocation2 + $0xc8] sm:$0xff] %v965_v0  ;;  %v1052_v48 = vmul.f32 (!%p1592_p13), %v2271_v27, %v1013_v43  ;;  %v1090_v56 = vadd.f32 (!%p1592_p13), %v2278_v30, %v1051_v47  ;;  %v1053_v63 = vmul.f32 (!%p1592_p13), %v2271_v27, %v1014_v49  ;;  %v1810_v34 = vld [vmem:[%s2233_s12 + $0x30] sm:$0xff] (!%p1592_p13)  }
 0x156   : > { %v1215_v61 = vmax.f32 (!%p1592_p13), %v1183_v51, 0.0  ;;  %v1185_v62 = vadd.f32 (!%p1592_p13), %v1668_v46, %v1089_v52  ;;  %v1216_v0 = vmax.f32 (!%p1592_p13), %v1184_v55, 0.0  ;;  %v1687_v47 = vunpack.c.l.bf16 (!%p1592_p13), %v1810_v34 }
 0x157   : > { %v1889_v5 = vpop.f32.mrb[12].mxu0  ;;  %v1905_v6 = vpop.f32.mrb[12].mxu1  ;;  %1007 = sbr.rel (%p1592_p13) target bundleno = 390 (0x186), region = 89  ;;  %v1091_v57 = vadd.f32 (!%p1592_p13), %v2278_v30, %v1052_v48 }
 0x158   : > { %v954_v9 = vadd.f32 %v1889_v5, %v569_v1  ;;  %v970_v10 = vadd.f32 %v1905_v6, %v585_v2  ;;  %v861_v11 = vpop.f32.mrb[13].mxu0  ;;  %v925_v12 = vpop.f32.mrb[13].mxu1  ;;  %v1186_v1 = vadd.f32 (!%p1592_p13), %v1671_v53, %v1090_v56  ;;  %v1728_v6 = vpack.c.bf16 (!%p1592_p13), %v1215_v61, %v1214_v60  ;;  %v1811_v53 = vld [vmem:[%s2233_s12 + $0x38] sm:$0xff] (!%p1592_p13)  }
 0x159   : > { %v952_v15 = vadd.f32 %v861_v11, %v567_v3  ;;  %v968_v16 = vadd.f32 %v925_v12, %v583_v4  ;;  %v1890_v17 = vpop.f32.mrb[14].mxu0  ;;  %v1906_v18 = vpop.f32.mrb[14].mxu1  ;;  %v1187_v2 = vadd.f32 (!%p1592_p13), %v1672_v58, %v1091_v57  ;;  %v1054_v3 = vmul.f32 (!%p1592_p13), %v2271_v27, %v1015_v54  ;;  %v1024_v58 = vld [vmem:[#allocation2 + $0x80] sm:$0xff] (!%p1592_p13) }
 0x15a   : > { %986 = vst [vmem:[#allocation2 + $0x70] sm:$0xff] %v954_v9  ;;  %1002 = vst [vmem:[#allocation2 + $0xf0] sm:$0xff] %v970_v10  ;;  %v955_v19 = vadd.f32 %v1890_v17, %v570_v7  ;;  %v971_v20 = vadd.f32 %v1906_v18, %v586_v8  ;;  %v864_v21 = vpop.f32.mrb[15].mxu0  ;;  %v928_v22 = vpop.f32.mrb[15].mxu1  ;;  %v1016_v4 = vld [vmem:[#allocation2 + $0x40] sm:$0xff] (!%p1592_p13)  ;;  %v1217_v7 = vmax.f32 (!%p1592_p13), %v1185_v62, 0.0  ;;  %v1092_v8 = vadd.f32 (!%p1592_p13), %v2278_v30, %v1053_v63 }
 0x15b   : > { %984 = vst [vmem:[#allocation2 + $0x60] sm:$0xff] %v952_v15  ;;  %1000 = vst [vmem:[#allocation2 + $0xe0] sm:$0xff] %v968_v16  ;;  %v953_v23 = vadd.f32 %v864_v21, %v568_v13  ;;  %v969_v24 = vadd.f32 %v928_v22, %v584_v14  ;;  %v1675_v9 = vunpack.c.l.bf16 (!%p1592_p13), %v1807_v59  ;;  %v1808_v10 = vld [vmem:[%s2233_s12 + $0x20] sm:$0xff] (!%p1592_p13)   ;;  %v1218_v11 = vmax.f32 (!%p1592_p13), %v1186_v1, 0.0  ;;  %v1018_v15 = vld [vmem:[#allocation2 + $0x50] sm:$0xff] (!%p1592_p13) }
 0x15c   : > { %987 = vst [vmem:[#allocation2 + $0x78] sm:$0xff] %v955_v19  ;;  %1003 = vst [vmem:[#allocation2 + $0xf8] sm:$0xff] %v971_v20  ;;  %v1017_v5 = vld [vmem:[#allocation2 + $0x48] sm:$0xff] (!%p1592_p13)  ;;  %v1219_v12 = vmax.f32 (!%p1592_p13), %v1187_v2, 0.0  ;;  %v1093_v13 = vadd.f32 (!%p1592_p13), %v2278_v30, %v1054_v3  ;;  %v1676_v14 = vunpack.c.h.bf16 (!%p1592_p13), %v1807_v59  ;;  %v1733_v16 = vpack.c.bf16 (!%p1592_p13), %v1217_v7, %v1216_v0  ;;  %v1019_v20 = vld [vmem:[#allocation2 + $0x58] sm:$0xff] (!%p1592_p13) }
 0x15d   : > { %985 = vst [vmem:[#allocation2 + $0x68] sm:$0xff] %v953_v23  ;;  %1001 = vst [vmem:[#allocation2 + $0xe8] sm:$0xff] %v969_v24  ;;  %v1188_v17 = vadd.f32 (!%p1592_p13), %v1675_v9, %v1092_v8  ;;  %v1055_v18 = vmul.f32 (!%p1592_p13), %v2271_v27, %v1016_v4  ;;  %v1056_v19 = vmul.f32 (!%p1592_p13), %v2271_v27, %v1017_v5  ;;  %v1809_v21 = vld [vmem:[%s2233_s12 + $0x28] sm:$0xff] (!%p1592_p13)   ;;  %v1679_v24 = vunpack.c.l.bf16 (!%p1592_p13), %v1808_v10  ;;  %v1812_v4 = vld [vmem:[%s2233_s12 + $0x40] sm:$0xff] (!%p1592_p13)  }
 0x15e   : > { %1729 = vst [vmem:[%s2238_s14] sm:$0xff] %v1728_v6   ;;  %v1738_v22 = vpack.c.bf16 %v1219_v12, %v1218_v11  ;;  %v1189_v23 = vadd.f32 %v1676_v14, %v1093_v13  ;;  %v1680_v25 = vunpack.c.h.bf16 %v1808_v10  ;;  %1820 = vst [vmem:[%s2238_s14 + $0x8] sm:$0xff] %v1733_v16   ;;  %v1057_v32 = vmul.f32 %v2271_v27, %v1018_v15  ;;  %v1025_v63 = vld [vmem:[#allocation2 + $0x88] sm:$0xff]  ;;  %v1026_v9 = vld [vmem:[#allocation2 + $0x90] sm:$0xff] }
 0x15f   : > { %v1220_v28 = vmax.f32 %v1188_v17, 0.0  ;;  %v1094_v29 = vadd.f32 %v2278_v30, %v1055_v18  ;;  %v1095_v31 = vadd.f32 %v2278_v30, %v1056_v19  ;;  %v1058_v36 = vmul.f32 %v2271_v27, %v1019_v20  ;;  %v1027_v14 = vld [vmem:[#allocation2 + $0x98] sm:$0xff]  ;;  %v1813_v15 = vld [vmem:[%s2233_s12 + $0x48] sm:$0xff]   ;;  %v1028_v20 = vld [vmem:[#allocation2 + $0xa0] sm:$0xff] }
 0x160   : > { %1821 = vst [vmem:[%s2238_s14 + $0x10] sm:$0xff] %v1738_v22   ;;  %v1221_v35 = vmax.f32 %v1189_v23, 0.0  ;;  %v1683_v37 = vunpack.c.l.bf16 %v1809_v21  ;;  %v1684_v38 = vunpack.c.h.bf16 %v1809_v21  ;;  %v1096_v41 = vadd.f32 %v2278_v30, %v1057_v32  ;;  %v1814_v32 = vld [vmem:[%s2233_s12 + $0x50] sm:$0xff]  }
 0x161   : > { %v1190_v39 = vadd.f32 %v1679_v24, %v1094_v29  ;;  %v1191_v40 = vadd.f32 %v1680_v25, %v1095_v31  ;;  %v1022_v43 = vld [vmem:[#allocation2 + $0x70] sm:$0xff]  ;;  %v1097_v45 = vadd.f32 %v2278_v30, %v1058_v36  ;;  %v1688_v56 = vunpack.c.h.bf16 %v1810_v34  ;;  %v1029_v25 = vld [vmem:[#allocation2 + $0xa8] sm:$0xff] }
 0x162   : > { %v1020_v26 = vld [vmem:[#allocation2 + $0x60] sm:$0xff]  ;;  %v1743_v44 = vpack.c.bf16 %v1221_v35, %v1220_v28  ;;  %v1192_v51 = vadd.f32 %v1683_v37, %v1096_v41  ;;  %v1061_v57 = vmul.f32 %v2271_v27, %v1022_v43  ;;  %v1691_v3 = vunpack.c.l.bf16 %v1811_v53  ;;  %v1030_v37 = vld [vmem:[#allocation2 + $0xb0] sm:$0xff] }
 0x163   : > { %v1059_v42 = vmul.f32 %v2271_v27, %v1020_v26  ;;  %v1023_v48 = vld [vmem:[#allocation2 + $0x78] sm:$0xff]  ;;  %v1222_v49 = vmax.f32 %v1190_v39, 0.0  ;;  %v1223_v50 = vmax.f32 %v1191_v40, 0.0  ;;  %v1193_v54 = vadd.f32 %v1684_v38, %v1097_v45 }
 0x164   : > { %v1021_v33 = vld [vmem:[#allocation2 + $0x68] sm:$0xff]  ;;  %1822 = vst [vmem:[%s2238_s14 + $0x18] sm:$0xff] %v1743_v44   ;;  %v1224_v60 = vmax.f32 %v1192_v51, 0.0  ;;  %v1062_v62 = vmul.f32 %v2271_v27, %v1023_v48  ;;  %v1100_v2 = vadd.f32 %v2278_v30, %v1061_v57  ;;  %v1692_v7 = vunpack.c.h.bf16 %v1811_v53 }
 0x165   : > { %v1060_v46 = vmul.f32 %v2271_v27, %v1021_v33  ;;  %v1098_v52 = vadd.f32 %v2278_v30, %v1059_v42  ;;  %v1748_v59 = vpack.c.bf16 %v1223_v50, %v1222_v49  ;;  %v1225_v0 = vmax.f32 %v1193_v54, 0.0  ;;  %v1031_v42 = vld [vmem:[#allocation2 + $0xb8] sm:$0xff]  ;;  %v1033_v57 = vld [vmem:[#allocation2 + $0xc8] sm:$0xff] }
 0x166   : > { %v1101_v6 = vadd.f32 %v2278_v30, %v1062_v62  ;;  %v1063_v8 = vmul.f32 %v2271_v27, %v1024_v58  ;;  %v1196_v12 = vadd.f32 %v1691_v3, %v1100_v2  ;;  %v1064_v13 = vmul.f32 %v2271_v27, %v1025_v63  ;;  %v1816_v62 = vld [vmem:[%s2233_s12 + $0x60] sm:$0xff]   ;;  %v1034_v3 = vld [vmem:[#allocation2 + $0xd0] sm:$0xff] }
 0x167   : > { %v1099_v55 = vadd.f32 %v2278_v30, %v1060_v46  ;;  %v1194_v61 = vadd.f32 %v1687_v47, %v1098_v52  ;;  %1823 = vst [vmem:[%s2238_s14 + $0x20] sm:$0xff] %v1748_v59   ;;  %v1753_v10 = vpack.c.bf16 %v1225_v0, %v1224_v60  ;;  %v1695_v18 = vunpack.c.l.bf16 %v1812_v4  ;;  %v1815_v47 = vld [vmem:[%s2233_s12 + $0x58] sm:$0xff]   ;;  %v1032_v52 = vld [vmem:[#allocation2 + $0xc0] sm:$0xff] }
 0x168   : > { %v1197_v16 = vadd.f32 %v1692_v7, %v1101_v6  ;;  %v1102_v17 = vadd.f32 %v2278_v30, %v1063_v8  ;;  %v1696_v19 = vunpack.c.h.bf16 %v1812_v4  ;;  %v1228_v22 = vmax.f32 %v1196_v12, 0.0  ;;  %v1035_v8 = vld [vmem:[#allocation2 + $0xd8] sm:$0xff] }
 0x169   : > { %v1195_v1 = vadd.f32 %v1688_v56, %v1099_v55  ;;  %v1226_v5 = vmax.f32 %v1194_v61, 0.0  ;;  %1824 = vst [vmem:[%s2238_s14 + $0x28] sm:$0xff] %v1753_v10   ;;  %v1103_v23 = vadd.f32 %v2278_v30, %v1064_v13  ;;  %v1065_v24 = vmul.f32 %v2271_v27, %v1026_v9  ;;  %v1817_v9 = vld [vmem:[%s2233_s12 + $0x68] sm:$0xff]  }
 0x16a   : > { %v1229_v26 = vmax.f32 %v1197_v16, 0.0  ;;  %v1198_v28 = vadd.f32 %v1695_v18, %v1102_v17  ;;  %v1066_v29 = vmul.f32 %v2271_v27, %v1027_v14  ;;  %v1699_v31 = vunpack.c.l.bf16 %v1813_v15  ;;  %v1036_v14 = vld [vmem:[#allocation2 + $0xe0] sm:$0xff] }
 0x16b   : > { %v1227_v11 = vmax.f32 %v1195_v1, 0.0  ;;  %v1199_v33 = vadd.f32 %v1696_v19, %v1103_v23  ;;  %v1104_v34 = vadd.f32 %v2278_v30, %v1065_v24  ;;  %v1700_v35 = vunpack.c.h.bf16 %v1813_v15  ;;  %v1037_v19 = vld [vmem:[#allocation2 + $0xe8] sm:$0xff]  ;;  %v1818_v24 = vld [vmem:[%s2233_s12 + $0x70] sm:$0xff]  }
 0x16c   : > { %v1067_v36 = vmul.f32 %v2271_v27, %v1028_v20  ;;  %v1763_v38 = vpack.c.bf16 %v1229_v26, %v1228_v22  ;;  %v1230_v39 = vmax.f32 %v1198_v28, 0.0  ;;  %v1105_v40 = vadd.f32 %v2278_v30, %v1066_v29 }
 0x16d   : > { %v1758_v21 = vpack.c.bf16 %v1227_v11, %v1226_v5  ;;  %v1068_v41 = vmul.f32 %v2271_v27, %v1029_v25  ;;  %v1231_v43 = vmax.f32 %v1199_v33, 0.0  ;;  %v1200_v44 = vadd.f32 %v1699_v31, %v1104_v34  ;;  %v1038_v31 = vld [vmem:[#allocation2 + $0xf0] sm:$0xff] }
 0x16e   : > { %v1106_v45 = vadd.f32 %v2278_v30, %v1067_v36  ;;  %v1703_v46 = vunpack.c.l.bf16 %v1814_v32  ;;  %1826 = vst [vmem:[%s2238_s14 + $0x38] sm:$0xff] %v1763_v38   ;;  %v1201_v48 = vadd.f32 %v1700_v35, %v1105_v40  ;;  %v1704_v50 = vunpack.c.h.bf16 %v1814_v32  ;;  %v1039_v36 = vld [vmem:[#allocation2 + $0xf8] sm:$0xff] }
 0x16f   : > { %1825 = vst [vmem:[%s2238_s14 + $0x30] sm:$0xff] %v1758_v21   ;;  %v1107_v49 = vadd.f32 %v2278_v30, %v1068_v41  ;;  %v1069_v51 = vmul.f32 %v2271_v27, %v1030_v37  ;;  %v1768_v53 = vpack.c.bf16 %v1231_v43, %v1230_v39  ;;  %v1232_v54 = vmax.f32 %v1200_v44, 0.0  ;;  %v1819_v41 = vld [vmem:[%s2233_s12 + $0x78] sm:$0xff]  }
 0x170   : > { %v1202_v55 = vadd.f32 %v1703_v46, %v1106_v45  ;;  %v1070_v56 = vmul.f32 %v2271_v27, %v1031_v42  ;;  %v1233_v58 = vmax.f32 %v1201_v48, 0.0  ;;  %v1707_v61 = vunpack.c.l.bf16 %v1815_v47 }
 0x171   : > { %v1203_v59 = vadd.f32 %v1704_v50, %v1107_v49  ;;  %v1108_v60 = vadd.f32 %v2278_v30, %v1069_v51  ;;  %1827 = vst [vmem:[%s2238_s14 + $0x40] sm:$0xff] %v1768_v53   ;;  %v1708_v1 = vunpack.c.h.bf16 %v1815_v47  ;;  %v1071_v2 = vmul.f32 %v2271_v27, %v1032_v52 }
 0x172   : > { %v1234_v63 = vmax.f32 %v1202_v55, 0.0  ;;  %v1109_v0 = vadd.f32 %v2278_v30, %v1070_v56  ;;  %v1773_v4 = vpack.c.bf16 %v1233_v58, %v1232_v54  ;;  %v1072_v7 = vmul.f32 %v2271_v27, %v1033_v57 }
 0x173   : > { %v1235_v5 = vmax.f32 %v1203_v59, 0.0  ;;  %v1204_v6 = vadd.f32 %v1707_v61, %v1108_v60  ;;  %v1110_v11 = vadd.f32 %v2278_v30, %v1071_v2  ;;  %v1711_v12 = vunpack.c.l.bf16 %v1816_v62 }
 0x174   : > { %v1205_v10 = vadd.f32 %v1708_v1, %v1109_v0  ;;  %v1712_v13 = vunpack.c.h.bf16 %v1816_v62  ;;  %1828 = vst [vmem:[%s2238_s14 + $0x48] sm:$0xff] %v1773_v4   ;;  %v1111_v17 = vadd.f32 %v2278_v30, %v1072_v7  ;;  %v1073_v18 = vmul.f32 %v2271_v27, %v1034_v3 }
 0x175   : > { %v1778_v15 = vpack.c.bf16 %v1235_v5, %v1234_v63  ;;  %v1236_v16 = vmax.f32 %v1204_v6, 0.0  ;;  %v1206_v21 = vadd.f32 %v1711_v12, %v1110_v11  ;;  %v1074_v22 = vmul.f32 %v2271_v27, %v1035_v8 }
 0x176   : > { %v1237_v20 = vmax.f32 %v1205_v10, 0.0  ;;  %v1715_v23 = vunpack.c.l.bf16 %v1817_v9  ;;  %v1207_v25 = vadd.f32 %v1712_v13, %v1111_v17  ;;  %v1112_v26 = vadd.f32 %v2278_v30, %v1073_v18 }
 0x177   : > { %1829 = vst [vmem:[%s2238_s14 + $0x50] sm:$0xff] %v1778_v15   ;;  %v1716_v28 = vunpack.c.h.bf16 %v1817_v9  ;;  %v1075_v29 = vmul.f32 %v2271_v27, %v1036_v14  ;;  %v1238_v33 = vmax.f32 %v1206_v21, 0.0  ;;  %v1113_v34 = vadd.f32 %v2278_v30, %v1074_v22 }
 0x178   : > { %v1783_v32 = vpack.c.bf16 %v1237_v20, %v1236_v16  ;;  %v1076_v35 = vmul.f32 %v2271_v27, %v1037_v19  ;;  %v1239_v37 = vmax.f32 %v1207_v25, 0.0  ;;  %v1208_v38 = vadd.f32 %v1715_v23, %v1112_v26 }
 0x179   : > { %v1114_v39 = vadd.f32 %v2278_v30, %v1075_v29  ;;  %v1719_v40 = vunpack.c.l.bf16 %v1818_v24  ;;  %v1209_v42 = vadd.f32 %v1716_v28, %v1113_v34  ;;  %v1720_v44 = vunpack.c.h.bf16 %v1818_v24 }
 0x17a   : > { %1830 = vst [vmem:[%s2238_s14 + $0x58] sm:$0xff] %v1783_v32   ;;  %v1115_v43 = vadd.f32 %v2278_v30, %v1076_v35  ;;  %v1077_v45 = vmul.f32 %v2271_v27, %v1038_v31  ;;  %v1788_v46 = vpack.c.bf16 %v1239_v37, %v1238_v33  ;;  %v1240_v47 = vmax.f32 %v1208_v38, 0.0 }
 0x17b   : > { %v1210_v48 = vadd.f32 %v1719_v40, %v1114_v39  ;;  %v1078_v49 = vmul.f32 %v2271_v27, %v1039_v36  ;;  %v1241_v50 = vmax.f32 %v1209_v42, 0.0  ;;  %v1723_v53 = vunpack.c.l.bf16 %v1819_v41 }
 0x17c   : > { %v1211_v51 = vadd.f32 %v1720_v44, %v1115_v43  ;;  %v1116_v52 = vadd.f32 %v2278_v30, %v1077_v45  ;;  %1831 = vst [vmem:[%s2238_s14 + $0x60] sm:$0xff] %v1788_v46   ;;  %v1724_v56 = vunpack.c.h.bf16 %v1819_v41 }
 0x17d   : > { %v1242_v54 = vmax.f32 %v1210_v48, 0.0  ;;  %v1117_v55 = vadd.f32 %v2278_v30, %v1078_v49  ;;  %v1793_v57 = vpack.c.bf16 %v1241_v50, %v1240_v47 }
 0x17e   : > { %v1243_v58 = vmax.f32 %v1211_v51, 0.0  ;;  %v1212_v59 = vadd.f32 %v1723_v53, %v1116_v52 }
 0x17f   : > { %v1213_v60 = vadd.f32 %v1724_v56, %v1117_v55  ;;  %1832 = vst [vmem:[%s2238_s14 + $0x68] sm:$0xff] %v1793_v57  }
 0x180   : > { %v1798_v61 = vpack.c.bf16 %v1243_v58, %v1242_v54  ;;  %v1244_v62 = vmax.f32 %v1212_v59, 0.0 }
 0x181   : > { %v1245_v27 = vmax.f32 %v1213_v60, 0.0 }
 0x182   : > { %1833 = vst [vmem:[%s2238_s14 + $0x70] sm:$0xff] %v1798_v61  }
 0x183   : > { %v1803_v63 = vpack.c.bf16 %v1245_v27, %v1244_v62 }
 0x185   : > { %1834 = vst [vmem:[%s2238_s14 + $0x78] sm:$0xff] %v1803_v63  }
 0x186 PF: > { %s15_s24 = sadd.s32 1, %s2059_s24   ;;  %s2401_s18 = smov %s2039_s19 }
 0x187   : > { %p12_p0 = scmp.ge.s32.totalorder %s15_s24, 12   ;;  %s2402_s19 = smov %s2143_s6 }
 0x188   : > { %s2403_s20 = smov %s2051_s22  ;;  %s2404_s21 = smov %s2055_s23 }
 0x189   : > { %s2405_s22 = smov %s2408_s25  ;;  %s2406_s23 = smov %s2412_s26 }
 0x18a   :  { %14 = sbr.rel (!%p12_p0) target bundleno = 4 (0x4), region = 136 }

// kernel: _lambda_.17
= control target key start
LH: loop header
LB: loop body
LE: loop exit
PB: predicated region body
PF: predicated region fallthrough
CT: control target
= control target key end

     0   :  { %s1273_s15 = smov 0   ;;  %s1275_s16 = smov 0   ;;  %s1444_s0 = inlined_call_operand.vmem [shape: bf16[128,640], index: 0, kind: input, shape index: {}]   ;;  %s1445_s1 = inlined_call_operand.vmem [shape: bf16[640,128], index: 1, kind: input, shape index: {}]   ;;  %s1446_s2 = inlined_call_operand.vmem [shape: f32[1,128], index: 2, kind: input, shape index: {}]   ;;  %s1447_s3 = inlined_call_operand.vmem [shape: f32[1,128], index: 3, kind: input, shape index: {}]   ;;  %s1448_s4 = inlined_call_operand.vmem [shape: bf16[128,128], index: 4, kind: output, shape index: {}]  }
   0x1   :  { %s1277_s17 = smov 0   ;;  %s1279_s18 = smov 0  }
   0x2   :  { %s1281_s19 = smov 0  }
   0x3 LB: > { %s26_s20 = sadd.s32 1, %s1241_s18  ;;  %p49_p1 = scmp.ne.s32.totalorder %s1233_s16, %s1229_s15  ;;  %s1245_s19 = sphi %s1281_s19, %s14_s19   ;;  %s1241_s18 = sphi %s1279_s18, %s1452_s18   ;;  %s1237_s17 = sphi %s1277_s17, %s1451_s17   ;;  %s1233_s16 = sphi %s1275_s16, %s1450_s16   ;;  %s1229_s15 = sphi %s1273_s15, %s1449_s15  }
   0x4   : > { %p27_p0 = scmp.ge.s32.totalorder %s26_s20, 5  ;;  %p50_p2 = scmp.eq.s32.totalorder %s1245_s19, 0 }
   0x5   : > { %s42_s22 = sadd.s32 1, %s1233_s16  ;;  %p976_p5 = scmp.ge.s32.totalorder %s1245_s19, 5 }
   0x6   : > { %s1454_s20 = smov (%p27_p0, %s26_s20), 0  ;;  %p51_p3 = por %p50_p2, %p49_p1 }
   0x7   : > { %s38_s21 = ssub.s32 %s1241_s18, %s1454_s20  ;;  %195 = sbr.rel (%p976_p5) target bundleno = 28 (0x1c), region = 24 }
   0x8   : > { %p40_p4 = scmp.eq.s32.totalorder %s38_s21, 0 }
   0xa   : > { %s1308_s23 = scalar_select %p40_p4, %s1233_s16, %s42_s22  }
   0xe   : > { %198 = sbr.rel (!%p51_p3) target bundleno = 28 (0x1c), region = 28  ;;  %s200_s24 = sand.u32 (%p51_p3), 1, %s1233_s16  }
   0xf   : > { %s978_s25 = sshll.u32 (%p51_p3), %s1241_s18, 2  ;;  %s977_s26 = sshll.u32 (%p51_p3), %s200_s24, 6 }
  0x10   : > { %s1316_s29 = scalar_lea.vmem (%p51_p3), %s1444_s0, %s978_s25  ;;  %s202_s30 = scalar_lea.vmem (%p51_p3), [#allocation3], %s977_s26 }
  0x11   : > { %v223_v0 = vld [vmem:[%s1316_s29] sm:$0xf] (%p51_p3)  ;;  %v225_v1 = vld [vmem:[%s1316_s29 + $0x14] sm:$0xf] (%p51_p3)  ;;  %v227_v2 = vld [vmem:[%s1316_s29 + $0x28] sm:$0xf] (%p51_p3) }
  0x12   : > { %224 = vst [vmem:[%s202_s30] sm:$0xf] (%p51_p3), %v223_v0  ;;  %226 = vst [vmem:[%s202_s30 + $0x4] sm:$0xf] (%p51_p3), %v225_v1  ;;  %v229_v3 = vld [vmem:[%s1316_s29 + $0x3c] sm:$0xf] (%p51_p3) }
  0x13   : > { %v231_v4 = vld [vmem:[%s1316_s29 + $0x50] sm:$0xf] (%p51_p3)  ;;  %228 = vst [vmem:[%s202_s30 + $0x8] sm:$0xf] (%p51_p3), %v227_v2  ;;  %230 = vst [vmem:[%s202_s30 + $0xc] sm:$0xf] (%p51_p3), %v229_v3 }
  0x14   : > { %232 = vst [vmem:[%s202_s30 + $0x10] sm:$0xf] (%p51_p3), %v231_v4  ;;  %v233_v5 = vld [vmem:[%s1316_s29 + $0x64] sm:$0xf] (%p51_p3)  ;;  %v235_v6 = vld [vmem:[%s1316_s29 + $0x78] sm:$0xf] (%p51_p3) }
  0x15   : > { %v237_v7 = vld [vmem:[%s1316_s29 + $0x8c] sm:$0xf]  ;;  %234 = vst [vmem:[%s202_s30 + $0x14] sm:$0xf] %v233_v5  ;;  %236 = vst [vmem:[%s202_s30 + $0x18] sm:$0xf] %v235_v6 }
  0x16   : > { %238 = vst [vmem:[%s202_s30 + $0x1c] sm:$0xf] %v237_v7  ;;  %v239_v8 = vld [vmem:[%s1316_s29 + $0xa0] sm:$0xf]  ;;  %v241_v9 = vld [vmem:[%s1316_s29 + $0xb4] sm:$0xf] }
  0x17   : > { %v243_v10 = vld [vmem:[%s1316_s29 + $0xc8] sm:$0xf]  ;;  %240 = vst [vmem:[%s202_s30 + $0x20] sm:$0xf] %v239_v8  ;;  %242 = vst [vmem:[%s202_s30 + $0x24] sm:$0xf] %v241_v9 }
  0x18   : > { %244 = vst [vmem:[%s202_s30 + $0x28] sm:$0xf] %v243_v10  ;;  %v245_v11 = vld [vmem:[%s1316_s29 + $0xdc] sm:$0xf]  ;;  %v247_v12 = vld [vmem:[%s1316_s29 + $0xf0] sm:$0xf] }
  0x19   : > { %v249_v13 = vld [vmem:[%s1316_s29 + $0x104] sm:$0xf]  ;;  %246 = vst [vmem:[%s202_s30 + $0x2c] sm:$0xf] %v245_v11  ;;  %248 = vst [vmem:[%s202_s30 + $0x30] sm:$0xf] %v247_v12 }
  0x1a   : > { %250 = vst [vmem:[%s202_s30 + $0x34] sm:$0xf] %v249_v13  ;;  %v251_v14 = vld [vmem:[%s1316_s29 + $0x118] sm:$0xf]  ;;  %v253_v15 = vld [vmem:[%s1316_s29 + $0x12c] sm:$0xf] }
  0x1b   : > { %252 = vst [vmem:[%s202_s30 + $0x38] sm:$0xf] %v251_v14  ;;  %254 = vst [vmem:[%s202_s30 + $0x3c] sm:$0xf] %v253_v15 }
  0x1c PF: > { %p979_p6 = scmp.ge.s32.totalorder %s1245_s19, 1  ;;  %p320_p7 = scmp.lt.s32.totalorder %s1245_s19, 6 }
  0x1e   : > { %p321_p8 = pnand %p979_p6, %p320_p7 }
  0x1f   : > { %s327_s5 = sand.u32 (!%p321_p8), 1, %s1229_s15   ;;  %s981_s6 = sshll.u32 (!%p321_p8), %s1237_s17, 4 }
  0x20   : > { %324 = sbr.rel (%p321_p8) target bundleno = 325 (0x145), region = 73  ;;  %s980_s7 = sshll.u32 (!%p321_p8), %s327_s5, 6 }
  0x21   : > { %p371_p9 = scmp.lt.s32.totalorder (!%p321_p8), %s981_s6, 79  ;;  %s1343_s12 = scalar_lea.vmem (!%p321_p8), [#allocation3], %s980_s7 }
  0x22   : > { %p983_p10 = scmp.ne.s32.totalorder (!%p321_p8), %s1237_s17, 0 }
  0x27   : > { %s1456_s6 = smov (!%p371_p9, %s981_s6), 79  ;;  %398 = sbr.rel (%p983_p10) target bundleno = 49 (0x31), region = 81 }
  0x28   : > { %s982_s8 = sshll.u32 %s1456_s6, 2  ;;  %v1247_v16 = vmov (!%p983_p10), 0.0  }
  0x29   : > { %s1341_s11 = scalar_lea.vmem %s1445_s1, %s982_s8  ;;  %399 = vst [vmem:[#allocation2] sm:$0xff] (!%p983_p10), %v1247_v16  ;;  %400 = vst [vmem:[#allocation2 + $0x8] sm:$0xff] (!%p983_p10), %v1247_v16 }
  0x2a   : > { %401 = vst [vmem:[#allocation2 + $0x10] sm:$0xff] (!%p983_p10), %v1247_v16  ;;  %402 = vst [vmem:[#allocation2 + $0x18] sm:$0xff] (!%p983_p10), %v1247_v16 }
  0x2b   : > { %403 = vst [vmem:[#allocation2 + $0x20] sm:$0xff] (!%p983_p10), %v1247_v16  ;;  %404 = vst [vmem:[#allocation2 + $0x28] sm:$0xff] (!%p983_p10), %v1247_v16 }
  0x2c   : > { %405 = vst [vmem:[#allocation2 + $0x30] sm:$0xff] (!%p983_p10), %v1247_v16  ;;  %406 = vst [vmem:[#allocation2 + $0x38] sm:$0xff] (!%p983_p10), %v1247_v16 }
  0x2d   : > { %407 = vst [vmem:[#allocation2 + $0x40] sm:$0xff] (!%p983_p10), %v1247_v16  ;;  %408 = vst [vmem:[#allocation2 + $0x48] sm:$0xff] (!%p983_p10), %v1247_v16 }
  0x2e   : > { %409 = vst [vmem:[#allocation2 + $0x50] sm:$0xff] %v1247_v16  ;;  %410 = vst [vmem:[#allocation2 + $0x58] sm:$0xff] %v1247_v16 }
  0x2f   : > { %411 = vst [vmem:[#allocation2 + $0x60] sm:$0xff] %v1247_v16  ;;  %412 = vst [vmem:[#allocation2 + $0x68] sm:$0xff] %v1247_v16 }
  0x30   : > { %413 = vst [vmem:[#allocation2 + $0x70] sm:$0xff] %v1247_v16  ;;  %414 = vst [vmem:[#allocation2 + $0x78] sm:$0xff] %v1247_v16 }
  0x31 PF: > { %v1191_v17 = vld [vmem:[%s1341_s11] sm:$0xff]   ;;  %v1192_v18 = vld [vmem:[%s1341_s11 + $0x8] sm:$0xff]   ;;  %v1193_v19 = vld [vmem:[%s1341_s11 + $0x10] sm:$0xff]   ;;  %p1000_p11 = scmp.ne.s32.totalorder %s1237_s17, 4 }
  0x32   : > { %1102 = vmatprep.subr.bf16.mxu0 %v1191_v17  ;;  %1134 = vmatprep.subr.bf16.mxu1 %v1191_v17  ;;  %v1194_v20 = vld [vmem:[%s1341_s11 + $0x18] sm:$0xff]   ;;  %v1199_v21 = vld [vmem:[%s1343_s12] sm:$0xff]   ;;  %v1196_v24 = vld [vmem:[%s1341_s11 + $0x28] sm:$0xff]  }
  0x33   : > { %1103 = vmatpush3.bf16.msra.mxu0 %v1191_v17  ;;  %1142 = vmatpush3.bf16.msra.mxu1 %v1191_v17  ;;  %v1200_v22 = vld [vmem:[%s1343_s12 + $0x20] sm:$0xff]   ;;  %v1197_v25 = vld [vmem:[%s1341_s11 + $0x30] sm:$0xff]   ;;  %v1198_v26 = vld [vmem:[%s1341_s11 + $0x38] sm:$0xff]  }
  0x34   : > { %1104 = vmatprep.subr.bf16.mxu0 %v1192_v18  ;;  %1135 = vmatprep.subr.bf16.mxu1 %v1192_v18  ;;  %v1195_v23 = vld [vmem:[%s1341_s11 + $0x20] sm:$0xff]   ;;  %v1201_v27 = vld [vmem:[%s1343_s12 + $0x8] sm:$0xff]   ;;  %v1203_v29 = vld [vmem:[%s1343_s12 + $0x10] sm:$0xff]  }
  0x35   : > { %1118 = vmatprep.mubr.bf16.mxu0 %v1199_v21  ;;  %1126 = vmatprep.mubr.bf16.mxu1 %v1200_v22  ;;  %v1202_v28 = vld [vmem:[%s1343_s12 + $0x28] sm:$0xff]   ;;  %v1204_v30 = vld [vmem:[%s1343_s12 + $0x30] sm:$0xff]   ;;  %v1205_v31 = vld [vmem:[%s1343_s12 + $0x18] sm:$0xff]  }
  0x36   : > { %v1206_v32 = vld [vmem:[%s1343_s12 + $0x38] sm:$0xff]   ;;  %v417_v33 = vld [vmem:[#allocation2 + $0x10] sm:$0xff]  ;;  %v415_v35 = vld [vmem:[#allocation2] sm:$0xff] }
  0x37   : > { %1105 = vmatpush3.bf16.msra.mxu0 %v1192_v18  ;;  %1143 = vmatpush3.bf16.msra.mxu1 %v1192_v18  ;;  %v425_v34 = vld [vmem:[#allocation2 + $0x50] sm:$0xff]  ;;  %v423_v36 = vld [vmem:[#allocation2 + $0x40] sm:$0xff]  ;;  %v418_v39 = vld [vmem:[#allocation2 + $0x18] sm:$0xff] }
  0x38   : > { %1106 = vmatprep.subr.bf16.mxu0 %v1193_v19  ;;  %1136 = vmatprep.subr.bf16.mxu1 %v1193_v19  ;;  %v426_v40 = vld [vmem:[#allocation2 + $0x58] sm:$0xff]  ;;  %v416_v45 = vld [vmem:[#allocation2 + $0x8] sm:$0xff]  ;;  %v421_v57 = vld [vmem:[#allocation2 + $0x30] sm:$0xff] }
  0x39   : > { %v424_v46 = vld [vmem:[#allocation2 + $0x48] sm:$0xff]  ;;  %v429_v58 = vld [vmem:[#allocation2 + $0x70] sm:$0xff]  ;;  %v419_v59 = vld [vmem:[#allocation2 + $0x20] sm:$0xff] }
  0x3a   : > { %v427_v60 = vld [vmem:[#allocation2 + $0x60] sm:$0xff]  ;;  %v422_v63 = vld [vmem:[#allocation2 + $0x38] sm:$0xff]  ;;  %v420_v5 = vld [vmem:[#allocation2 + $0x28] sm:$0xff] }
  0x3b   : > { %1107 = vmatpush3.bf16.msra.mxu0 %v1193_v19  ;;  %1144 = vmatpush3.bf16.msra.mxu1 %v1193_v19  ;;  %v430_v0 = vld [vmem:[#allocation2 + $0x78] sm:$0xff]  ;;  %v428_v6 = vld [vmem:[#allocation2 + $0x68] sm:$0xff]  ;;  %v1366_v19 = vld [vmem:[%s1446_s2] ss:$0 sm:$0xff] (!%p1000_p11) }
  0x3c   : > { %1108 = vmatprep.subr.bf16.mxu0 %v1194_v20  ;;  %1137 = vmatprep.subr.bf16.mxu1 %v1194_v20  ;;  %v1373_v22 = vld [vmem:[%s1447_s3] ss:$0 sm:$0xff] (!%p1000_p11) }
  0x3f   : > { %1109 = vmatpush3.bf16.msra.mxu0 %v1194_v20  ;;  %1145 = vmatpush3.bf16.msra.mxu1 %v1194_v20 }
  0x40   : > { %1110 = vmatprep.subr.bf16.mxu0 %v1195_v23  ;;  %1138 = vmatprep.subr.bf16.mxu1 %v1195_v23 }
  0x43   : > { %1111 = vmatpush3.bf16.msra.mxu0 %v1195_v23  ;;  %1146 = vmatpush3.bf16.msra.mxu1 %v1195_v23 }
  0x44   : > { %1112 = vmatprep.subr.bf16.mxu0 %v1196_v24  ;;  %1139 = vmatprep.subr.bf16.mxu1 %v1196_v24 }
  0x47   : > { %1113 = vmatpush3.bf16.msra.mxu0 %v1196_v24  ;;  %1147 = vmatpush3.bf16.msra.mxu1 %v1196_v24 }
  0x48   : > { %1114 = vmatprep.subr.bf16.mxu0 %v1197_v25  ;;  %1140 = vmatprep.subr.bf16.mxu1 %v1197_v25 }
  0x4b   : > { %1115 = vmatpush3.bf16.msra.mxu0 %v1197_v25  ;;  %1148 = vmatpush3.bf16.msra.mxu1 %v1197_v25 }
  0x4c   : > { %1116 = vmatprep.subr.bf16.mxu0 %v1198_v26  ;;  %1141 = vmatprep.subr.bf16.mxu1 %v1198_v26 }
  0x4f   : > { %1117 = vmatpush3.bf16.msra.mxu0 %v1198_v26  ;;  %1149 = vmatpush3.bf16.msra.mxu1 %v1198_v26 }
  0x52   : > { %1119 = vmatmul.mubr.bf16.vlgmr.msra.gmra.mrb[0].mxu0 %v1201_v27  ;;  %1127 = vmatmul.mubr.bf16.vlgmr.msra.gmra.mrb[0].mxu1 %v1202_v28 }
  0x53   : > { %1122 = vmatprep.mubr.bf16.mxu0 %v1203_v29  ;;  %1130 = vmatprep.mubr.bf16.mxu1 %v1204_v30 }
  0x5a   : > { %1123 = vmatmul.mubr.bf16.gmra.mrb[4].mxu0 %v1205_v31  ;;  %1131 = vmatmul.mubr.bf16.gmra.mrb[4].mxu1 %v1206_v32 }
 0x125   : > { %v1120_v37 = vpop.f32.mrb[0].mxu0  ;;  %v1128_v38 = vpop.f32.mrb[0].mxu1 }
 0x126   : > { %v658_v41 = vadd.f32 %v1120_v37, %v417_v33  ;;  %v666_v42 = vadd.f32 %v1128_v38, %v425_v34  ;;  %v593_v43 = vpop.f32.mrb[1].mxu0  ;;  %v625_v44 = vpop.f32.mrb[1].mxu1 }
 0x127   : > { %v656_v47 = vadd.f32 %v593_v43, %v415_v35  ;;  %v664_v48 = vadd.f32 %v625_v44, %v423_v36  ;;  %v1121_v49 = vpop.f32.mrb[2].mxu0  ;;  %v1129_v50 = vpop.f32.mrb[2].mxu1 }
 0x128   : > { %674 = vst [vmem:[#allocation2 + $0x10] sm:$0xff] %v658_v41  ;;  %682 = vst [vmem:[#allocation2 + $0x50] sm:$0xff] %v666_v42  ;;  %v659_v51 = vadd.f32 %v1121_v49, %v418_v39  ;;  %v667_v52 = vadd.f32 %v1129_v50, %v426_v40  ;;  %v596_v53 = vpop.f32.mrb[3].mxu0  ;;  %v628_v54 = vpop.f32.mrb[3].mxu1 }
 0x129   : > { %672 = vst [vmem:[#allocation2] sm:$0xff] %v656_v47  ;;  %680 = vst [vmem:[#allocation2 + $0x40] sm:$0xff] %v664_v48  ;;  %v657_v55 = vadd.f32 %v596_v53, %v416_v45  ;;  %v665_v56 = vadd.f32 %v628_v54, %v424_v46 }
 0x12a   : > { %675 = vst [vmem:[#allocation2 + $0x18] sm:$0xff] %v659_v51  ;;  %683 = vst [vmem:[#allocation2 + $0x58] sm:$0xff] %v667_v52 }
 0x12b   : > { %673 = vst [vmem:[#allocation2 + $0x8] sm:$0xff] %v657_v55  ;;  %681 = vst [vmem:[#allocation2 + $0x48] sm:$0xff] %v665_v56 }
 0x12d   : > { %v1124_v61 = vpop.f32.mrb[4].mxu0  ;;  %v1132_v62 = vpop.f32.mrb[4].mxu1  ;;  %691 = sbr.rel (%p1000_p11) target bundleno = 325 (0x145), region = 85 }
 0x12e   : > { %v662_v1 = vadd.f32 %v1124_v61, %v421_v57  ;;  %v670_v2 = vadd.f32 %v1132_v62, %v429_v58  ;;  %v609_v3 = vpop.f32.mrb[5].mxu0  ;;  %v641_v4 = vpop.f32.mrb[5].mxu1 }
 0x12f   : > { %v660_v7 = vadd.f32 %v609_v3, %v419_v59  ;;  %v668_v8 = vadd.f32 %v641_v4, %v427_v60  ;;  %v1125_v9 = vpop.f32.mrb[6].mxu0  ;;  %v1133_v10 = vpop.f32.mrb[6].mxu1  ;;  %v694_v23 = vld [vmem:[#allocation2 + $0x10] sm:$0xff] (!%p1000_p11) }
 0x130   : > { %678 = vst [vmem:[#allocation2 + $0x30] sm:$0xff] %v662_v1  ;;  %686 = vst [vmem:[#allocation2 + $0x70] sm:$0xff] %v670_v2  ;;  %v663_v11 = vadd.f32 %v1125_v9, %v422_v63  ;;  %v671_v12 = vadd.f32 %v1133_v10, %v430_v0  ;;  %v612_v13 = vpop.f32.mrb[7].mxu0  ;;  %v644_v14 = vpop.f32.mrb[7].mxu1  ;;  %v692_v17 = vld [vmem:[#allocation2] sm:$0xff] (!%p1000_p11)  ;;  %v717_v25 = vmul.f32 (!%p1000_p11), %v1366_v19, %v694_v23  ;;  %v702_v49 = vld [vmem:[#allocation2 + $0x50] sm:$0xff] (!%p1000_p11) }
 0x131   : > { %676 = vst [vmem:[#allocation2 + $0x20] sm:$0xff] %v660_v7  ;;  %684 = vst [vmem:[#allocation2 + $0x60] sm:$0xff] %v668_v8  ;;  %v661_v15 = vadd.f32 %v612_v13, %v420_v5  ;;  %v669_v16 = vadd.f32 %v644_v14, %v428_v6  ;;  %v715_v20 = vmul.f32 (!%p1000_p11), %v1366_v19, %v692_v17  ;;  %v695_v24 = vld [vmem:[#allocation2 + $0x18] sm:$0xff] (!%p1000_p11)  ;;  %v700_v39 = vld [vmem:[#allocation2 + $0x40] sm:$0xff] (!%p1000_p11) }
 0x132   : > { %679 = vst [vmem:[#allocation2 + $0x38] sm:$0xff] %v663_v11  ;;  %687 = vst [vmem:[#allocation2 + $0x78] sm:$0xff] %v671_v12  ;;  %v693_v18 = vld [vmem:[#allocation2 + $0x8] sm:$0xff] (!%p1000_p11)  ;;  %v718_v26 = vmul.f32 (!%p1000_p11), %v1366_v19, %v695_v24  ;;  %v740_v35 = vadd.f32 (!%p1000_p11), %v1373_v22, %v717_v25  ;;  %v703_v50 = vld [vmem:[#allocation2 + $0x58] sm:$0xff] (!%p1000_p11)  ;;  %v723_v54 = vmul.f32 (!%p1000_p11), %v1366_v19, %v700_v39 }
 0x133   : > { %677 = vst [vmem:[#allocation2 + $0x28] sm:$0xff] %v661_v15  ;;  %685 = vst [vmem:[#allocation2 + $0x68] sm:$0xff] %v669_v16  ;;  %v716_v21 = vmul.f32 (!%p1000_p11), %v1366_v19, %v693_v18  ;;  %v738_v30 = vadd.f32 (!%p1000_p11), %v1373_v22, %v715_v20  ;;  %v701_v44 = vld [vmem:[#allocation2 + $0x48] sm:$0xff] (!%p1000_p11)  ;;  %v725_v0 = vmul.f32 (!%p1000_p11), %v1366_v19, %v702_v49 }
 0x134   : > { %v741_v36 = vadd.f32 %v1373_v22, %v718_v26  ;;  %v756_v45 = vmax.f32 %v740_v35, 0.0  ;;  %v724_v60 = vmul.f32 %v1366_v19, %v701_v44  ;;  %v746_v63 = vadd.f32 %v1373_v22, %v723_v54 }
 0x135   : > { %v739_v31 = vadd.f32 %v1373_v22, %v716_v21  ;;  %v754_v40 = vmax.f32 %v738_v30, 0.0  ;;  %v726_v1 = vmul.f32 %v1366_v19, %v703_v50  ;;  %v748_v8 = vadd.f32 %v1373_v22, %v725_v0 }
 0x136   : > { %v757_v46 = vmax.f32 %v741_v36, 0.0  ;;  %v747_v4 = vadd.f32 %v1373_v22, %v724_v60  ;;  %v762_v7 = vmax.f32 %v746_v63, 0.0 }
 0x137   : > { %v698_v29 = vld [vmem:[#allocation2 + $0x30] sm:$0xff]  ;;  %v755_v41 = vmax.f32 %v739_v31, 0.0  ;;  %v749_v9 = vadd.f32 %v1373_v22, %v726_v1  ;;  %v764_v15 = vmax.f32 %v748_v8, 0.0 }
 0x138   : > { %v696_v27 = vld [vmem:[#allocation2 + $0x20] sm:$0xff]  ;;  %v721_v37 = vmul.f32 %v1366_v19, %v698_v29  ;;  %v1047_v57 = vpack.c.bf16 %v757_v46, %v756_v45  ;;  %v706_v61 = vld [vmem:[#allocation2 + $0x70] sm:$0xff]  ;;  %v763_v11 = vmax.f32 %v747_v4, 0.0 }
 0x139   : > { %v719_v32 = vmul.f32 %v1366_v19, %v696_v27  ;;  %v699_v34 = vld [vmem:[#allocation2 + $0x38] sm:$0xff]  ;;  %v1042_v51 = vpack.c.bf16 %v755_v41, %v754_v40  ;;  %v704_v55 = vld [vmem:[#allocation2 + $0x60] sm:$0xff]  ;;  %v729_v10 = vmul.f32 %v1366_v19, %v706_v61  ;;  %v765_v16 = vmax.f32 %v749_v9, 0.0 }
 0x13a   : > { %v697_v28 = vld [vmem:[#allocation2 + $0x28] sm:$0xff]  ;;  %v722_v38 = vmul.f32 %v1366_v19, %v699_v34  ;;  %v744_v47 = vadd.f32 %v1373_v22, %v721_v37  ;;  %v707_v2 = vld [vmem:[#allocation2 + $0x78] sm:$0xff]  ;;  %1079 = vst [vmem:[%s1448_s4 + $0x8] sm:$0xff] %v1047_v57   ;;  %v727_v5 = vmul.f32 %v1366_v19, %v704_v55  ;;  %v1062_v18 = vpack.c.bf16 %v763_v11, %v762_v7 }
 0x13b   : > { %v720_v33 = vmul.f32 %v1366_v19, %v697_v28  ;;  %v742_v42 = vadd.f32 %v1373_v22, %v719_v32  ;;  %v705_v56 = vld [vmem:[#allocation2 + $0x68] sm:$0xff]  ;;  %1043 = vst [vmem:[%s1448_s4] sm:$0xff] %v1042_v51   ;;  %v730_v14 = vmul.f32 %v1366_v19, %v707_v2  ;;  %v752_v17 = vadd.f32 %v1373_v22, %v729_v10 }
 0x13c   : > { %v745_v48 = vadd.f32 %v1373_v22, %v722_v38  ;;  %v760_v58 = vmax.f32 %v744_v47, 0.0  ;;  %v728_v6 = vmul.f32 %v1366_v19, %v705_v56  ;;  %v750_v12 = vadd.f32 %v1373_v22, %v727_v5  ;;  %1082 = vst [vmem:[%s1448_s4 + $0x20] sm:$0xff] %v1062_v18  }
 0x13d   : > { %v743_v43 = vadd.f32 %v1373_v22, %v720_v33  ;;  %v758_v52 = vmax.f32 %v742_v42, 0.0  ;;  %v753_v23 = vadd.f32 %v1373_v22, %v730_v14  ;;  %v1067_v24 = vpack.c.bf16 %v765_v16, %v764_v15 }
 0x13e   : > { %v761_v59 = vmax.f32 %v745_v48, 0.0  ;;  %v751_v13 = vadd.f32 %v1373_v22, %v728_v6  ;;  %v766_v20 = vmax.f32 %v750_v12, 0.0  ;;  %v768_v25 = vmax.f32 %v752_v17, 0.0 }
 0x13f   : > { %v759_v53 = vmax.f32 %v743_v43, 0.0  ;;  %v769_v27 = vmax.f32 %v753_v23, 0.0  ;;  %1083 = vst [vmem:[%s1448_s4 + $0x28] sm:$0xff] %v1067_v24  }
 0x140   : > { %v1057_v3 = vpack.c.bf16 %v761_v59, %v760_v58  ;;  %v767_v21 = vmax.f32 %v751_v13, 0.0 }
 0x141   : > { %v1052_v62 = vpack.c.bf16 %v759_v53, %v758_v52  ;;  %v1077_v19 = vpack.c.bf16 %v769_v27, %v768_v25 }
 0x142   : > { %1081 = vst [vmem:[%s1448_s4 + $0x18] sm:$0xff] %v1057_v3   ;;  %v1072_v26 = vpack.c.bf16 %v767_v21, %v766_v20 }
 0x143   : > { %1080 = vst [vmem:[%s1448_s4 + $0x10] sm:$0xff] %v1052_v62   ;;  %1085 = vst [vmem:[%s1448_s4 + $0x38] sm:$0xff] %v1077_v19  }
 0x144   : > { %1084 = vst [vmem:[%s1448_s4 + $0x30] sm:$0xff] %v1072_v26  }
 0x145 PF: > { %s14_s19 = sadd.s32 1, %s1245_s19   ;;  %s1449_s15 = smov %s1233_s16 }
 0x146   : > { %p11_p12 = scmp.ge.s32.totalorder %s14_s19, 7   ;;  %s1450_s16 = smov %s1308_s23 }
 0x147   : > { %s1451_s17 = smov %s1241_s18  ;;  %s1452_s18 = smov %s1454_s20 }
 0x148   :  { %13 = sbr.rel (!%p11_p12) target bundleno = 3 (0x3), region = 129 }

// kernel: _lambda_.16
= control target key start
LH: loop header
LB: loop body
LE: loop exit
PB: predicated region body
PF: predicated region fallthrough
CT: control target
= control target key end

     0   :  { %s740_s1 = inlined_call_operand.vmem [shape: bf16[128,128], index: 1, kind: input, shape index: {}]   ;;  %s741_s0 = inlined_call_operand.vmem [shape: bf16[128,128], index: 0, kind: input, shape index: {}]   ;;  %s742_s2 = inlined_call_operand.vmem [shape: f32[1,128], index: 2, kind: input, shape index: {}]   ;;  %s743_s3 = inlined_call_operand.vmem [shape: f32[1,128], index: 3, kind: input, shape index: {}]   ;;  %s744_s4 = inlined_call_operand.vmem [shape: bf16[128,128], index: 4, kind: output, shape index: {}]  }
   0x1   :  { %v621_v0 = vld [vmem:[%s740_s1] sm:$0xff]   ;;  %v622_v1 = vld [vmem:[%s740_s1 + $0x8] sm:$0xff]   ;;  %v623_v2 = vld [vmem:[%s740_s1 + $0x10] sm:$0xff]  }
   0x2   :  { %573 = vmatprep.subr.bf16.mxu0 %v621_v0  ;;  %605 = vmatprep.subr.bf16.mxu1 %v621_v0  ;;  %v624_v3 = vld [vmem:[%s740_s1 + $0x18] sm:$0xff]   ;;  %v629_v4 = vld [vmem:[%s741_s0] sm:$0xff]   ;;  %v626_v7 = vld [vmem:[%s740_s1 + $0x28] sm:$0xff]  }
   0x3   :  { %574 = vmatpush3.bf16.msra.mxu0 %v621_v0  ;;  %613 = vmatpush3.bf16.msra.mxu1 %v621_v0  ;;  %v630_v5 = vld [vmem:[%s741_s0 + $0x20] sm:$0xff]   ;;  %v627_v8 = vld [vmem:[%s740_s1 + $0x30] sm:$0xff]   ;;  %v628_v9 = vld [vmem:[%s740_s1 + $0x38] sm:$0xff]  }
   0x4   :  { %575 = vmatprep.subr.bf16.mxu0 %v622_v1  ;;  %606 = vmatprep.subr.bf16.mxu1 %v622_v1  ;;  %v625_v6 = vld [vmem:[%s740_s1 + $0x20] sm:$0xff]   ;;  %v631_v10 = vld [vmem:[%s741_s0 + $0x8] sm:$0xff]   ;;  %v633_v12 = vld [vmem:[%s741_s0 + $0x10] sm:$0xff]  }
   0x5   :  { %589 = vmatprep.mubr.bf16.mxu0 %v629_v4  ;;  %597 = vmatprep.mubr.bf16.mxu1 %v630_v5  ;;  %v632_v11 = vld [vmem:[%s741_s0 + $0x28] sm:$0xff]   ;;  %v634_v13 = vld [vmem:[%s741_s0 + $0x30] sm:$0xff]   ;;  %v635_v14 = vld [vmem:[%s741_s0 + $0x18] sm:$0xff]  }
   0x6   :  { %v636_v15 = vld [vmem:[%s741_s0 + $0x38] sm:$0xff]   ;;  %v476_v16 = vld [vmem:[%s742_s2] ss:$0 sm:$0xff] }
   0x7   :  { %576 = vmatpush3.bf16.msra.mxu0 %v622_v1  ;;  %614 = vmatpush3.bf16.msra.mxu1 %v622_v1  ;;  %v477_v23 = vld [vmem:[%s743_s3] ss:$0 sm:$0xff] }
   0x8   :  { %577 = vmatprep.subr.bf16.mxu0 %v623_v2  ;;  %607 = vmatprep.subr.bf16.mxu1 %v623_v2 }
   0xb   :  { %578 = vmatpush3.bf16.msra.mxu0 %v623_v2  ;;  %615 = vmatpush3.bf16.msra.mxu1 %v623_v2 }
   0xc   :  { %579 = vmatprep.subr.bf16.mxu0 %v624_v3  ;;  %608 = vmatprep.subr.bf16.mxu1 %v624_v3 }
   0xf   :  { %580 = vmatpush3.bf16.msra.mxu0 %v624_v3  ;;  %616 = vmatpush3.bf16.msra.mxu1 %v624_v3 }
  0x10   :  { %581 = vmatprep.subr.bf16.mxu0 %v625_v6  ;;  %609 = vmatprep.subr.bf16.mxu1 %v625_v6 }
  0x13   :  { %582 = vmatpush3.bf16.msra.mxu0 %v625_v6  ;;  %617 = vmatpush3.bf16.msra.mxu1 %v625_v6 }
  0x14   :  { %583 = vmatprep.subr.bf16.mxu0 %v626_v7  ;;  %610 = vmatprep.subr.bf16.mxu1 %v626_v7 }
  0x17   :  { %584 = vmatpush3.bf16.msra.mxu0 %v626_v7  ;;  %618 = vmatpush3.bf16.msra.mxu1 %v626_v7 }
  0x18   :  { %585 = vmatprep.subr.bf16.mxu0 %v627_v8  ;;  %611 = vmatprep.subr.bf16.mxu1 %v627_v8 }
  0x1b   :  { %586 = vmatpush3.bf16.msra.mxu0 %v627_v8  ;;  %619 = vmatpush3.bf16.msra.mxu1 %v627_v8 }
  0x1c   :  { %587 = vmatprep.subr.bf16.mxu0 %v628_v9  ;;  %612 = vmatprep.subr.bf16.mxu1 %v628_v9 }
  0x1f   :  { %588 = vmatpush3.bf16.msra.mxu0 %v628_v9  ;;  %620 = vmatpush3.bf16.msra.mxu1 %v628_v9 }
  0x22   :  { %590 = vmatmul.mubr.bf16.vlgmr.msra.gmra.mrb[0].mxu0 %v631_v10  ;;  %598 = vmatmul.mubr.bf16.vlgmr.msra.gmra.mrb[0].mxu1 %v632_v11 }
  0x23   :  { %593 = vmatprep.mubr.bf16.mxu0 %v633_v12  ;;  %601 = vmatprep.mubr.bf16.mxu1 %v634_v13 }
  0x2a   :  { %594 = vmatmul.mubr.bf16.gmra.mrb[4].mxu0 %v635_v14  ;;  %602 = vmatmul.mubr.bf16.gmra.mrb[4].mxu1 %v636_v15 }
  0xf5   :  { %v591_v17 = vpop.f32.mrb[0].mxu0  ;;  %v599_v18 = vpop.f32.mrb[0].mxu1 }
  0xf6   :  { %v339_v19 = vmul.f32 %v591_v17, %v476_v16  ;;  %v347_v20 = vmul.f32 %v599_v18, %v476_v16  ;;  %v216_v21 = vpop.f32.mrb[1].mxu0  ;;  %v248_v22 = vpop.f32.mrb[1].mxu1 }
  0xf7   :  { %v337_v24 = vmul.f32 %v476_v16, %v216_v21  ;;  %v345_v25 = vmul.f32 %v476_v16, %v248_v22  ;;  %v592_v26 = vpop.f32.mrb[2].mxu0  ;;  %v600_v27 = vpop.f32.mrb[2].mxu1 }
  0xf8   :  { %v340_v28 = vmul.f32 %v592_v26, %v476_v16  ;;  %v348_v29 = vmul.f32 %v600_v27, %v476_v16  ;;  %v219_v30 = vpop.f32.mrb[3].mxu0  ;;  %v251_v31 = vpop.f32.mrb[3].mxu1  ;;  %v362_v34 = vadd.f32 %v477_v23, %v339_v19  ;;  %v370_v35 = vadd.f32 %v477_v23, %v347_v20 }
  0xf9   :  { %v338_v32 = vmul.f32 %v476_v16, %v219_v30  ;;  %v346_v33 = vmul.f32 %v476_v16, %v251_v31  ;;  %v360_v38 = vadd.f32 %v477_v23, %v337_v24  ;;  %v368_v39 = vadd.f32 %v477_v23, %v345_v25 }
  0xfa   :  { %v363_v36 = vadd.f32 %v477_v23, %v340_v28  ;;  %v371_v37 = vadd.f32 %v477_v23, %v348_v29 }
  0xfb   :  { %v361_v40 = vadd.f32 %v477_v23, %v338_v32  ;;  %v369_v41 = vadd.f32 %v477_v23, %v346_v33 }
  0xfc   :  { %v518_v42 = vpack.c.bf16 %v363_v36, %v362_v34  ;;  %v538_v43 = vpack.c.bf16 %v371_v37, %v370_v35 }
  0xfd   :  { %v513_v44 = vpack.c.bf16 %v361_v40, %v360_v38  ;;  %v533_v45 = vpack.c.bf16 %v369_v41, %v368_v39  ;;  %v595_v46 = vpop.f32.mrb[4].mxu0  ;;  %v603_v47 = vpop.f32.mrb[4].mxu1 }
  0xfe   :  { %550 = vst [vmem:[%s744_s4 + $0x8] sm:$0xff] %v518_v42   ;;  %554 = vst [vmem:[%s744_s4 + $0x28] sm:$0xff] %v538_v43   ;;  %v343_v48 = vmul.f32 %v595_v46, %v476_v16  ;;  %v351_v49 = vmul.f32 %v603_v47, %v476_v16  ;;  %v232_v50 = vpop.f32.mrb[5].mxu0  ;;  %v264_v51 = vpop.f32.mrb[5].mxu1 }
  0xff   :  { %514 = vst [vmem:[%s744_s4] sm:$0xff] %v513_v44   ;;  %553 = vst [vmem:[%s744_s4 + $0x20] sm:$0xff] %v533_v45   ;;  %v341_v52 = vmul.f32 %v476_v16, %v232_v50  ;;  %v349_v53 = vmul.f32 %v476_v16, %v264_v51  ;;  %v596_v54 = vpop.f32.mrb[6].mxu0  ;;  %v604_v55 = vpop.f32.mrb[6].mxu1 }
 0x100   :  { %v344_v56 = vmul.f32 %v596_v54, %v476_v16  ;;  %v352_v57 = vmul.f32 %v604_v55, %v476_v16  ;;  %v235_v58 = vpop.f32.mrb[7].mxu0  ;;  %v267_v59 = vpop.f32.mrb[7].mxu1  ;;  %v366_v62 = vadd.f32 %v477_v23, %v343_v48  ;;  %v374_v63 = vadd.f32 %v477_v23, %v351_v49 }
 0x101   :  { %v342_v60 = vmul.f32 %v476_v16, %v235_v58  ;;  %v350_v61 = vmul.f32 %v476_v16, %v267_v59  ;;  %v364_v2 = vadd.f32 %v477_v23, %v341_v52  ;;  %v372_v3 = vadd.f32 %v477_v23, %v349_v53 }
 0x102   :  { %v367_v0 = vadd.f32 %v477_v23, %v344_v56  ;;  %v375_v1 = vadd.f32 %v477_v23, %v352_v57 }
 0x103   :  { %v365_v4 = vadd.f32 %v477_v23, %v342_v60  ;;  %v373_v5 = vadd.f32 %v477_v23, %v350_v61 }
 0x104   :  { %v528_v6 = vpack.c.bf16 %v367_v0, %v366_v62  ;;  %v548_v7 = vpack.c.bf16 %v375_v1, %v374_v63 }
 0x105   :  { %v523_v8 = vpack.c.bf16 %v365_v4, %v364_v2  ;;  %v543_v9 = vpack.c.bf16 %v373_v5, %v372_v3 }
 0x106   :  { %552 = vst [vmem:[%s744_s4 + $0x18] sm:$0xff] %v528_v6   ;;  %556 = vst [vmem:[%s744_s4 + $0x38] sm:$0xff] %v548_v7  }
 0x107   :  { %551 = vst [vmem:[%s744_s4 + $0x10] sm:$0xff] %v523_v8   ;;  %555 = vst [vmem:[%s744_s4 + $0x30] sm:$0xff] %v543_v9  }

// kernel: _lambda_.18
= control target key start
LH: loop header
LB: loop body
LE: loop exit
PB: predicated region body
PF: predicated region fallthrough
CT: control target
= control target key end

     0   :  { %s1913_s18 = smov 0   ;;  %s1915_s19 = smov 0   ;;  %s2190_s0 = inlined_call_operand.vmem [shape: bf16[128,1152], index: 0, kind: input, shape index: {}]   ;;  %s2191_s1 = inlined_call_operand.vmem [shape: bf16[1152,128], index: 1, kind: input, shape index: {}]   ;;  %s2192_s2 = inlined_call_operand.vmem [shape: f32[1,128], index: 2, kind: input, shape index: {}]   ;;  %s2193_s3 = inlined_call_operand.vmem [shape: f32[1,128], index: 3, kind: input, shape index: {}]   ;;  %s2194_s4 = inlined_call_operand.vmem [shape: bf16[128,128], index: 4, kind: input, shape index: {}]   ;;  %s2195_s5 = inlined_call_operand.vmem [shape: bf16[128,128], index: 5, kind: output, shape index: {}]  }
   0x1   :  { %s1917_s20 = smov 0   ;;  %s1919_s21 = smov 0  }
   0x2   :  { %s1921_s22 = smov 0  }
   0x3 LB: > { %s27_s23 = sadd.s32 1, %s1876_s21  ;;  %p50_p1 = scmp.ne.s32.totalorder %s1868_s19, %s1864_s18  ;;  %s1880_s22 = sphi %s1921_s22, %s15_s22   ;;  %s1876_s21 = sphi %s1919_s21, %s2199_s21   ;;  %s1872_s20 = sphi %s1917_s20, %s2198_s20   ;;  %s1868_s19 = sphi %s1915_s19, %s2197_s19   ;;  %s1864_s18 = sphi %s1913_s18, %s2196_s18  }
   0x4   : > { %p28_p0 = scmp.ge.s32.totalorder %s27_s23, 3  ;;  %p51_p2 = scmp.eq.s32.totalorder %s1880_s22, 0 }
   0x5   : > { %s43_s25 = sadd.s32 1, %s1868_s19  ;;  %p1420_p5 = scmp.ge.s32.totalorder %s1880_s22, 3 }
   0x6   : > { %s2201_s23 = smov (%p28_p0, %s27_s23), 0  ;;  %p52_p3 = por %p51_p2, %p50_p1 }
   0x7   : > { %s39_s24 = ssub.s32 %s1876_s21, %s2201_s23  ;;  %236 = sbr.rel (%p1420_p5) target bundleno = 37 (0x25), region = 28 }
   0x8   : > { %p41_p4 = scmp.eq.s32.totalorder %s39_s24, 0 }
   0xa   : > { %s1948_s26 = scalar_select %p41_p4, %s1868_s19, %s43_s25  }
   0xe   : > { %239 = sbr.rel (!%p52_p3) target bundleno = 37 (0x25), region = 32  ;;  %s241_s27 = sand.u32 (%p52_p3), 1, %s1868_s19  }
   0xf   : > { %s1528_s28 = smul.u32 (%p52_p3), 12, %s1876_s21 }
  0x10   : > { %s1743_s29 = smul.u32 (%p52_p3), 192, %s241_s27 }
  0x11   : > { %s1956_s7 = scalar_lea.vmem (%p52_p3), %s2190_s0, %s1528_s28 }
  0x12   : > { %v264_v0 = vld [vmem:[%s1956_s7] sm:$0xff] (%p52_p3)  ;;  %v268_v2 = vld [vmem:[%s1956_s7 + $0x48] sm:$0xff] (%p52_p3)  ;;  %s1961_s8 = scalar_lea.vmem (%p52_p3), [#allocation3], %s1743_s29  ;;  %v272_v4 = vld [vmem:[%s1956_s7 + $0x90] sm:$0xff] (%p52_p3) }
  0x13   : > { %v266_v1 = vld [vmem:[%s1956_s7 + $0x24] sm:$0xff] (%p52_p3)  ;;  %265 = vst [vmem:[%s1961_s8] sm:$0xff] (%p52_p3), %v264_v0  ;;  %269 = vst [vmem:[%s1961_s8 + $0x18] sm:$0xff] (%p52_p3), %v268_v2  ;;  %v270_v3 = vld [vmem:[%s1956_s7 + $0x6c] sm:$0xff] (%p52_p3) }
  0x14   : > { %267 = vst [vmem:[%s1961_s8 + $0xc] sm:$0xff] (%p52_p3), %v266_v1  ;;  %v274_v5 = vld [vmem:[%s1956_s7 + $0xb4] sm:$0xff] (%p52_p3)  ;;  %271 = vst [vmem:[%s1961_s8 + $0x24] sm:$0xff] (%p52_p3), %v270_v3  ;;  %v278_v7 = vld [vmem:[%s1956_s7 + $0xfc] sm:$0xff] (%p52_p3) }
  0x15   : > { %273 = vst [vmem:[%s1961_s8 + $0x30] sm:$0xff] %v272_v4  ;;  %275 = vst [vmem:[%s1961_s8 + $0x3c] sm:$0xff] %v274_v5  ;;  %v276_v6 = vld [vmem:[%s1956_s7 + $0xd8] sm:$0xff]  ;;  %v280_v8 = vld [vmem:[%s1956_s7 + $0x120] sm:$0xff] }
  0x16   : > { %277 = vst [vmem:[%s1961_s8 + $0x48] sm:$0xff] %v276_v6  ;;  %279 = vst [vmem:[%s1961_s8 + $0x54] sm:$0xff] %v278_v7  ;;  %v282_v9 = vld [vmem:[%s1956_s7 + $0x144] sm:$0xff]  ;;  %v286_v11 = vld [vmem:[%s1956_s7 + $0x18c] sm:$0xff] }
  0x17   : > { %281 = vst [vmem:[%s1961_s8 + $0x60] sm:$0xff] %v280_v8  ;;  %v284_v10 = vld [vmem:[%s1956_s7 + $0x168] sm:$0xff]  ;;  %283 = vst [vmem:[%s1961_s8 + $0x6c] sm:$0xff] %v282_v9  ;;  %v288_v12 = vld [vmem:[%s1956_s7 + $0x1b0] sm:$0xff] }
  0x18   : > { %285 = vst [vmem:[%s1961_s8 + $0x78] sm:$0xff] %v284_v10  ;;  %287 = vst [vmem:[%s1961_s8 + $0x84] sm:$0xff] %v286_v11  ;;  %v290_v13 = vld [vmem:[%s1956_s7 + $0x1d4] sm:$0xff]  ;;  %v294_v15 = vld [vmem:[%s1956_s7 + $0x21c] sm:$0xff] }
  0x19   : > { %v292_v14 = vld [vmem:[%s1956_s7 + $0x1f8] sm:$0xff]  ;;  %289 = vst [vmem:[%s1961_s8 + $0x90] sm:$0xff] %v288_v12  ;;  %291 = vst [vmem:[%s1961_s8 + $0x9c] sm:$0xff] %v290_v13  ;;  %v1422_v16 = vld [vmem:[%s1956_s7 + $0x8] sm:$0xf] }
  0x1a   : > { %293 = vst [vmem:[%s1961_s8 + $0xa8] sm:$0xff] %v292_v14  ;;  %v1424_v17 = vld [vmem:[%s1956_s7 + $0x2c] sm:$0xf]  ;;  %295 = vst [vmem:[%s1961_s8 + $0xb4] sm:$0xff] %v294_v15  ;;  %v1426_v18 = vld [vmem:[%s1956_s7 + $0x50] sm:$0xf] }
  0x1b   : > { %1423 = vst [vmem:[%s1961_s8 + $0x8] sm:$0xf] %v1422_v16  ;;  %1425 = vst [vmem:[%s1961_s8 + $0x14] sm:$0xf] %v1424_v17  ;;  %v1428_v19 = vld [vmem:[%s1956_s7 + $0x74] sm:$0xf] }
  0x1c   : > { %v1430_v20 = vld [vmem:[%s1956_s7 + $0x98] sm:$0xf]  ;;  %1427 = vst [vmem:[%s1961_s8 + $0x20] sm:$0xf] %v1426_v18  ;;  %1429 = vst [vmem:[%s1961_s8 + $0x2c] sm:$0xf] %v1428_v19 }
  0x1d   : > { %1431 = vst [vmem:[%s1961_s8 + $0x38] sm:$0xf] %v1430_v20  ;;  %v1432_v21 = vld [vmem:[%s1956_s7 + $0xbc] sm:$0xf]  ;;  %v1434_v22 = vld [vmem:[%s1956_s7 + $0xe0] sm:$0xf] }
  0x1e   : > { %v1436_v23 = vld [vmem:[%s1956_s7 + $0x104] sm:$0xf]  ;;  %1433 = vst [vmem:[%s1961_s8 + $0x44] sm:$0xf] %v1432_v21  ;;  %1435 = vst [vmem:[%s1961_s8 + $0x50] sm:$0xf] %v1434_v22 }
  0x1f   : > { %1437 = vst [vmem:[%s1961_s8 + $0x5c] sm:$0xf] %v1436_v23  ;;  %v1438_v24 = vld [vmem:[%s1956_s7 + $0x128] sm:$0xf]  ;;  %v1440_v25 = vld [vmem:[%s1956_s7 + $0x14c] sm:$0xf] }
  0x20   : > { %v1442_v26 = vld [vmem:[%s1956_s7 + $0x170] sm:$0xf]  ;;  %1439 = vst [vmem:[%s1961_s8 + $0x68] sm:$0xf] %v1438_v24  ;;  %1441 = vst [vmem:[%s1961_s8 + $0x74] sm:$0xf] %v1440_v25 }
  0x21   : > { %1443 = vst [vmem:[%s1961_s8 + $0x80] sm:$0xf] %v1442_v26  ;;  %v1444_v27 = vld [vmem:[%s1956_s7 + $0x194] sm:$0xf]  ;;  %v1446_v28 = vld [vmem:[%s1956_s7 + $0x1b8] sm:$0xf] }
  0x22   : > { %v1448_v29 = vld [vmem:[%s1956_s7 + $0x1dc] sm:$0xf]  ;;  %1445 = vst [vmem:[%s1961_s8 + $0x8c] sm:$0xf] %v1444_v27  ;;  %1447 = vst [vmem:[%s1961_s8 + $0x98] sm:$0xf] %v1446_v28 }
  0x23   : > { %1449 = vst [vmem:[%s1961_s8 + $0xa4] sm:$0xf] %v1448_v29  ;;  %v1450_v30 = vld [vmem:[%s1956_s7 + $0x200] sm:$0xf]  ;;  %v1452_v31 = vld [vmem:[%s1956_s7 + $0x224] sm:$0xf] }
  0x24   : > { %1451 = vst [vmem:[%s1961_s8 + $0xb0] sm:$0xf] %v1450_v30  ;;  %1453 = vst [vmem:[%s1961_s8 + $0xbc] sm:$0xf] %v1452_v31 }
  0x25 PF: > { %p1454_p6 = scmp.ge.s32.totalorder %s1880_s22, 1  ;;  %p351_p7 = scmp.lt.s32.totalorder %s1880_s22, 4 }
  0x27   : > { %p352_p8 = pnand %p1454_p6, %p351_p7 }
  0x28   : > { %s358_s9 = sand.u32 (!%p352_p8), 1, %s1864_s18   ;;  %s412_s10 = smul.u32 (!%p352_p8), 48, %s1872_s20 }
  0x29   : > { %355 = sbr.rel (%p352_p8) target bundleno = 387 (0x183), region = 62  ;;  %p1456_p10 = scmp.ne.s32.totalorder (!%p352_p8), %s1872_s20, 0 }
  0x2a   : > { %s1744_s11 = smul.u32 (!%p352_p8), 192, %s358_s9  ;;  %p413_p9 = scmp.lt.s32.totalorder (!%p352_p8), %s412_s10, 143 }
  0x2c   : > { %s2033_s16 = scalar_lea.vmem (!%p352_p8), [#allocation3], %s1744_s11 }
  0x30   : > { %s2203_s10 = smov (!%p413_p9, %s412_s10), 143  ;;  %449 = sbr.rel (%p1456_p10) target bundleno = 58 (0x3a), region = 70 }
  0x31   : > { %s1455_s12 = sshll.u32 %s2203_s10, 2  ;;  %v1882_v32 = vmov (!%p1456_p10), 0.0  }
  0x32   : > { %s2031_s15 = scalar_lea.vmem %s2191_s1, %s1455_s12  ;;  %450 = vst [vmem:[#allocation2] sm:$0xff] (!%p1456_p10), %v1882_v32  ;;  %451 = vst [vmem:[#allocation2 + $0x8] sm:$0xff] (!%p1456_p10), %v1882_v32 }
  0x33   : > { %452 = vst [vmem:[#allocation2 + $0x10] sm:$0xff] (!%p1456_p10), %v1882_v32  ;;  %453 = vst [vmem:[#allocation2 + $0x18] sm:$0xff] (!%p1456_p10), %v1882_v32 }
  0x34   : > { %454 = vst [vmem:[#allocation2 + $0x20] sm:$0xff] (!%p1456_p10), %v1882_v32  ;;  %455 = vst [vmem:[#allocation2 + $0x28] sm:$0xff] (!%p1456_p10), %v1882_v32 }
  0x35   : > { %456 = vst [vmem:[#allocation2 + $0x30] sm:$0xff] (!%p1456_p10), %v1882_v32  ;;  %457 = vst [vmem:[#allocation2 + $0x38] sm:$0xff] (!%p1456_p10), %v1882_v32 }
  0x36   : > { %458 = vst [vmem:[#allocation2 + $0x40] sm:$0xff] (!%p1456_p10), %v1882_v32  ;;  %459 = vst [vmem:[#allocation2 + $0x48] sm:$0xff] (!%p1456_p10), %v1882_v32 }
  0x37   : > { %460 = vst [vmem:[#allocation2 + $0x50] sm:$0xff] %v1882_v32  ;;  %461 = vst [vmem:[#allocation2 + $0x58] sm:$0xff] %v1882_v32 }
  0x38   : > { %462 = vst [vmem:[#allocation2 + $0x60] sm:$0xff] %v1882_v32  ;;  %463 = vst [vmem:[#allocation2 + $0x68] sm:$0xff] %v1882_v32 }
  0x39   : > { %464 = vst [vmem:[#allocation2 + $0x70] sm:$0xff] %v1882_v32  ;;  %465 = vst [vmem:[#allocation2 + $0x78] sm:$0xff] %v1882_v32 }
  0x3a PF: > { %v1786_v33 = vld [vmem:[%s2031_s15 + $0x40] sm:$0xff]   ;;  %v1789_v36 = vld [vmem:[%s2031_s15 + $0x48] sm:$0xff]   ;;  %v1792_v39 = vld [vmem:[%s2031_s15 + $0x50] sm:$0xff]   ;;  %p1505_p11 = scmp.ne.s32.totalorder %s1872_s20, 2 }
  0x3b   : > { %v1787_v34 = vld [vmem:[%s2031_s15] sm:$0xff]   ;;  %1631 = vmatprep.subr.bf16.mxu0 %v1786_v33  ;;  %v1790_v37 = vld [vmem:[%s2031_s15 + $0x8] sm:$0xff]   ;;  %v1793_v40 = vld [vmem:[%s2031_s15 + $0x10] sm:$0xff]  }
  0x3c   : > { %v1788_v35 = vld [vmem:[%s2031_s15 + $0x80] sm:$0xff]   ;;  %1632 = vmatpush3.bf16.msra.mxu0 %v1787_v34  ;;  %v1791_v38 = vld [vmem:[%s2031_s15 + $0x88] sm:$0xff]   ;;  %v1794_v41 = vld [vmem:[%s2031_s15 + $0x90] sm:$0xff]  }
  0x3d   : > { %1711 = vmatprep.subr.bf16.mxu1 %v1788_v35  ;;  %1633 = vmatprep.subr.bf16.mxu0 %v1789_v36  ;;  %v1795_v42 = vld [vmem:[%s2031_s15 + $0x58] sm:$0xff]   ;;  %v1798_v45 = vld [vmem:[%s2031_s15 + $0x60] sm:$0xff]   ;;  %v1801_v48 = vld [vmem:[%s2031_s15 + $0x68] sm:$0xff]  }
  0x3e   : > { %1712 = vmatpush3.bf16.msra.mxu1 %v1788_v35  ;;  %v1796_v43 = vld [vmem:[%s2031_s15 + $0x18] sm:$0xff]   ;;  %v1800_v46 = vld [vmem:[%s2031_s15 + $0xa0] sm:$0xff]   ;;  %v1803_v49 = vld [vmem:[%s2031_s15 + $0xa8] sm:$0xff]  }
  0x3f   : > { %1713 = vmatprep.subr.bf16.mxu1 %v1791_v38  ;;  %v1797_v44 = vld [vmem:[%s2031_s15 + $0x98] sm:$0xff]   ;;  %v1799_v47 = vld [vmem:[%s2031_s15 + $0x20] sm:$0xff]   ;;  %v1802_v50 = vld [vmem:[%s2031_s15 + $0x28] sm:$0xff]  }
  0x40   : > { %1634 = vmatpush3.bf16.msra.mxu0 %v1790_v37  ;;  %v1804_v51 = vld [vmem:[%s2031_s15 + $0x70] sm:$0xff]   ;;  %v1807_v54 = vld [vmem:[%s2031_s15 + $0x78] sm:$0xff]   ;;  %v1810_v59 = vld [vmem:[%s2033_s16] ss:$12 sps:$4 sm:$0xff]  }
  0x41   : > { %1635 = vmatprep.subr.bf16.mxu0 %v1792_v39  ;;  %v1805_v52 = vld [vmem:[%s2031_s15 + $0x30] sm:$0xff]   ;;  %v1809_v55 = vld [vmem:[%s2031_s15 + $0xb8] sm:$0xff]   ;;  %v1814_v61 = vld [vmem:[%s2033_s16 + $0x20] ss:$12 sps:$4 sm:$0xff]  }
  0x42   : > { %1714 = vmatpush3.bf16.msra.mxu1 %v1791_v38  ;;  %v1806_v53 = vld [vmem:[%s2031_s15 + $0xb0] sm:$0xff]   ;;  %v1808_v58 = vld [vmem:[%s2031_s15 + $0x38] sm:$0xff]   ;;  %v1830_v5 = vld [vmem:[%s2033_s16 + $0x80] ss:$12 sps:$4 sm:$0xff]  }
  0x43   : > { %1715 = vmatprep.subr.bf16.mxu1 %v1794_v41  ;;  %v1812_v56 = vld [vmem:[%s2033_s16 + $0x4] ss:$12 sps:$4 sm:$0xff]   ;;  %v1813_v57 = vld [vmem:[%s2033_s16 + $0x8] ss:$12 sps:$4 sm:$0xff]   ;;  %v1823_v4 = vld [vmem:[%s2033_s16 + $0x4c] ss:$12 sps:$4 sm:$0xff]  }
  0x44   : > { %1636 = vmatpush3.bf16.msra.mxu0 %v1793_v40  ;;  %866 = vmatprep.mubr.bf16.mxu0 %v1812_v56  ;;  %v1815_v60 = vld [vmem:[%s2033_s16 + $0x1c] ss:$12 sps:$4 sm:$0xff]   ;;  %v1821_v62 = vld [vmem:[%s2033_s16 + $0x38] ss:$12 sps:$4 sm:$0xff]   ;;  %v1818_v0 = vld [vmem:[%s2033_s16 + $0x34] ss:$12 sps:$4 sm:$0xff]  }
  0x45   : > { %1637 = vmatprep.subr.bf16.mxu0 %v1795_v42  ;;  %1727 = vmatprep.mubr.bf16.mxu1 %v1813_v57  ;;  %v1817_v63 = vld [vmem:[%s2033_s16 + $0x18] ss:$12 sps:$4 sm:$0xff]   ;;  %v1822_v1 = vld [vmem:[%s2033_s16 + $0x50] ss:$12 sps:$4 sm:$0xff]   ;;  %v1829_v2 = vld [vmem:[%s2033_s16 + $0x68] ss:$12 sps:$4 sm:$0xff]  }
  0x46   : > { %1716 = vmatpush3.bf16.msra.mxu1 %v1794_v41  ;;  %v1820_v3 = vld [vmem:[%s2033_s16 + $0x30] ss:$12 sps:$4 sm:$0xff]   ;;  %v1837_v6 = vld [vmem:[%s2033_s16 + $0x98] ss:$12 sps:$4 sm:$0xff]   ;;  %v1825_v7 = vld [vmem:[%s2033_s16 + $0x48] ss:$12 sps:$4 sm:$0xff]  }
  0x47   : > { %1717 = vmatprep.subr.bf16.mxu1 %v1797_v44  ;;  %v1826_v8 = vld [vmem:[%s2033_s16 + $0x64] ss:$12 sps:$4 sm:$0xff]   ;;  %v1828_v10 = vld [vmem:[%s2033_s16 + $0x60] ss:$12 sps:$4 sm:$0xff]   ;;  %v1831_v11 = vld [vmem:[%s2033_s16 + $0x7c] ss:$12 sps:$4 sm:$0xff]  }
  0x48   : > { %1638 = vmatpush3.bf16.msra.mxu0 %v1796_v43  ;;  %v1838_v9 = vld [vmem:[%s2033_s16 + $0xb0] ss:$12 sps:$4 sm:$0xff]   ;;  %v1833_v12 = vld [vmem:[%s2033_s16 + $0x78] ss:$12 sps:$4 sm:$0xff]   ;;  %v1834_v13 = vld [vmem:[%s2033_s16 + $0x94] ss:$12 sps:$4 sm:$0xff]  }
  0x49   : > { %1639 = vmatprep.subr.bf16.mxu0 %v1798_v45  ;;  %v1836_v14 = vld [vmem:[%s2033_s16 + $0x90] ss:$12 sps:$4 sm:$0xff]   ;;  %v1839_v15 = vld [vmem:[%s2033_s16 + $0xac] ss:$12 sps:$4 sm:$0xff]   ;;  %v1841_v16 = vld [vmem:[%s2033_s16 + $0xa8] ss:$12 sps:$4 sm:$0xff]  }
  0x4a   : > { %1718 = vmatpush3.bf16.msra.mxu1 %v1797_v44  ;;  %v466_v23 = vld [vmem:[#allocation2] sm:$0xff]  ;;  %v467_v28 = vld [vmem:[#allocation2 + $0x8] sm:$0xff]  ;;  %v468_v38 = vld [vmem:[#allocation2 + $0x10] sm:$0xff] }
  0x4b   : > { %1719 = vmatprep.subr.bf16.mxu1 %v1800_v46  ;;  %v469_v44 = vld [vmem:[#allocation2 + $0x18] sm:$0xff] }
  0x4c   : > { %1640 = vmatpush3.bf16.msra.mxu0 %v1799_v47 }
  0x4d   : > { %1641 = vmatprep.subr.bf16.mxu0 %v1801_v48 }
  0x4e   : > { %1720 = vmatpush3.bf16.msra.mxu1 %v1800_v46 }
  0x4f   : > { %1721 = vmatprep.subr.bf16.mxu1 %v1803_v49 }
  0x50   : > { %1642 = vmatpush3.bf16.msra.mxu0 %v1802_v50 }
  0x51   : > { %1643 = vmatprep.subr.bf16.mxu0 %v1804_v51 }
  0x52   : > { %1722 = vmatpush3.bf16.msra.mxu1 %v1803_v49 }
  0x53   : > { %1723 = vmatprep.subr.bf16.mxu1 %v1806_v53 }
  0x54   : > { %1644 = vmatpush3.bf16.msra.mxu0 %v1805_v52 }
  0x55   : > { %1645 = vmatprep.subr.bf16.mxu0 %v1807_v54 }
  0x56   : > { %1724 = vmatpush3.bf16.msra.mxu1 %v1806_v53 }
  0x57   : > { %1725 = vmatprep.subr.bf16.mxu1 %v1809_v55 }
  0x58   : > { %1646 = vmatpush3.bf16.msra.mxu0 %v1808_v58 }
  0x5a   : > { %1726 = vmatpush3.bf16.msra.mxu1 %v1809_v55  ;;  %v470_v55 = vld [vmem:[#allocation2 + $0x20] sm:$0xff] }
  0x5b   : > { %867 = vmatmul.mubr.bf16.vlgmr.msra.gmra.mrb[0].mxu0 %v1810_v59 }
  0x5c   : > { %874 = vmatprep.mubr.bf16.mxu0 %v1815_v60  ;;  %v471_v60 = vld [vmem:[#allocation2 + $0x28] sm:$0xff] }
  0x5d   : > { %1728 = vmatmul.mubr.bf16.vlgmr.msra.gmra.mrb[0].mxu1 %v1814_v61 }
  0x5e   : > { %1731 = vmatprep.mubr.bf16.mxu1 %v1821_v62 }
  0x63   : > { %875 = vmatmul.mubr.bf16.gmra.mrb[4].mxu0 %v1817_v63 }
  0x64   : > { %882 = vmatprep.mubr.bf16.mxu0 %v1818_v0 }
  0x65   : > { %1732 = vmatmul.mubr.bf16.gmra.mrb[4].mxu1 %v1822_v1 }
  0x66   : > { %1735 = vmatprep.mubr.bf16.mxu1 %v1829_v2 }
  0x6b   : > { %883 = vmatmul.mubr.bf16.gmra.mrb[8].mxu0 %v1820_v3 }
  0x6c   : > { %890 = vmatprep.mubr.bf16.mxu0 %v1823_v4 }
  0x6d   : > { %1736 = vmatmul.mubr.bf16.gmra.mrb[8].mxu1 %v1830_v5 }
  0x6e   : > { %1739 = vmatprep.mubr.bf16.mxu1 %v1837_v6  ;;  %v472_v6 = vld [vmem:[#allocation2 + $0x30] sm:$0xff] }
  0x73   : > { %891 = vmatmul.mubr.bf16.gmra.mrb[12].mxu0 %v1825_v7 }
  0x74   : > { %898 = vmatprep.mubr.bf16.mxu0 %v1826_v8 }
  0x75   : > { %1740 = vmatmul.mubr.bf16.gmra.mrb[12].mxu1 %v1838_v9 }
  0x7b   : > { %899 = vmatmul.mubr.bf16.gmra.mrb[16].mxu0 %v1828_v10 }
  0x7c   : > { %906 = vmatprep.mubr.bf16.mxu0 %v1831_v11 }
  0x83   : > { %907 = vmatmul.mubr.bf16.gmra.mrb[20].mxu0 %v1833_v12  ;;  %v473_v12 = vld [vmem:[#allocation2 + $0x38] sm:$0xff] }
  0x84   : > { %914 = vmatprep.mubr.bf16.mxu0 %v1834_v13 }
  0x8b   : > { %915 = vmatmul.mubr.bf16.gmra.mrb[24].mxu0 %v1836_v14 }
  0x8c   : > { %922 = vmatprep.mubr.bf16.mxu0 %v1839_v15 }
  0x93   : > { %923 = vmatmul.mubr.bf16.gmra.mrb[28].mxu0 %v1841_v16 }
 0x12e   : > { %v1647_v17 = vpop.f32.mrb[0].mxu0 }
 0x12f   : > { %v1648_v18 = vpop.f32.mrb[1].mxu0 }
 0x130   : > { %v1649_v19 = vadd.f32 %v1648_v18, %v1647_v17  ;;  %v1650_v20 = vpop.f32.mrb[2].mxu0  ;;  %v1729_v21 = vpop.f32.mrb[0].mxu1 }
 0x131   : > { %v1651_v22 = vpop.f32.mrb[3].mxu0  ;;  %v965_v24 = vpop.f32.mrb[1].mxu1 }
 0x132   : > { %v1652_v25 = vadd.f32 %v1651_v22, %v1650_v20  ;;  %v966_v26 = vadd.f32 %v1649_v19, %v965_v24  ;;  %v1730_v27 = vpop.f32.mrb[2].mxu1  ;;  %v474_v22 = vld [vmem:[#allocation2 + $0x40] sm:$0xff] }
 0x133   : > { %v968_v29 = vpop.f32.mrb[3].mxu1 }
 0x134   : > { %v1028_v30 = vadd.f32 %v966_v26, %v466_v23  ;;  %v969_v31 = vadd.f32 %v1652_v25, %v968_v29  ;;  %v475_v25 = vld [vmem:[#allocation2 + $0x48] sm:$0xff] }
 0x136   : > { %1044 = vst [vmem:[#allocation2] sm:$0xff] %v1028_v30  ;;  %v1029_v32 = vadd.f32 %v969_v31, %v467_v28  ;;  %v1653_v33 = vpop.f32.mrb[4].mxu0 }
 0x137   : > { %v1654_v34 = vpop.f32.mrb[5].mxu0 }
 0x138   : > { %1045 = vst [vmem:[#allocation2 + $0x8] sm:$0xff] %v1029_v32  ;;  %v1655_v35 = vadd.f32 %v1654_v34, %v1653_v33  ;;  %v1656_v36 = vpop.f32.mrb[6].mxu0  ;;  %v1733_v37 = vpop.f32.mrb[4].mxu1  ;;  %v476_v33 = vld [vmem:[#allocation2 + $0x50] sm:$0xff] }
 0x139   : > { %v1657_v39 = vpop.f32.mrb[7].mxu0  ;;  %v981_v40 = vpop.f32.mrb[5].mxu1 }
 0x13a   : > { %v974_v41 = vadd.f32 %v1729_v21, %v1655_v35  ;;  %v1658_v42 = vadd.f32 %v1657_v39, %v1656_v36  ;;  %v1734_v43 = vpop.f32.mrb[6].mxu1 }
 0x13b   : > { %v984_v45 = vpop.f32.mrb[7].mxu1 }
 0x13c   : > { %v1030_v46 = vadd.f32 %v974_v41, %v468_v38  ;;  %v977_v47 = vadd.f32 %v1730_v27, %v1658_v42 }
 0x13e   : > { %1046 = vst [vmem:[#allocation2 + $0x10] sm:$0xff] %v1030_v46  ;;  %v1031_v48 = vadd.f32 %v977_v47, %v469_v44  ;;  %v1659_v49 = vpop.f32.mrb[8].mxu0  ;;  %v478_v46 = vld [vmem:[#allocation2 + $0x60] sm:$0xff] }
 0x13f   : > { %v1660_v50 = vpop.f32.mrb[9].mxu0 }
 0x140   : > { %1047 = vst [vmem:[#allocation2 + $0x18] sm:$0xff] %v1031_v48  ;;  %v1661_v51 = vadd.f32 %v1660_v50, %v1659_v49  ;;  %v1662_v52 = vpop.f32.mrb[10].mxu0  ;;  %v1737_v53 = vpop.f32.mrb[8].mxu1  ;;  %v479_v49 = vld [vmem:[#allocation2 + $0x68] sm:$0xff] }
 0x141   : > { %v1663_v54 = vpop.f32.mrb[11].mxu0  ;;  %v997_v56 = vpop.f32.mrb[9].mxu1 }
 0x142   : > { %v1664_v57 = vadd.f32 %v1663_v54, %v1662_v52  ;;  %v982_v58 = vadd.f32 %v1661_v51, %v981_v40  ;;  %v1738_v59 = vpop.f32.mrb[10].mxu1 }
 0x143   : > { %v1000_v61 = vpop.f32.mrb[11].mxu1 }
 0x144   : > { %v1032_v62 = vadd.f32 %v982_v58, %v470_v55  ;;  %v985_v63 = vadd.f32 %v1664_v57, %v984_v45  ;;  %v480_v57 = vld [vmem:[#allocation2 + $0x70] sm:$0xff] }
 0x146   : > { %1048 = vst [vmem:[#allocation2 + $0x20] sm:$0xff] %v1032_v62  ;;  %v1033_v0 = vadd.f32 %v985_v63, %v471_v60  ;;  %v1665_v1 = vpop.f32.mrb[12].mxu0 }
 0x147   : > { %v1666_v2 = vpop.f32.mrb[13].mxu0 }
 0x148   : > { %1049 = vst [vmem:[#allocation2 + $0x28] sm:$0xff] %v1033_v0  ;;  %v1667_v3 = vadd.f32 %v1666_v2, %v1665_v1  ;;  %v1668_v4 = vpop.f32.mrb[14].mxu0  ;;  %v1741_v5 = vpop.f32.mrb[12].mxu1  ;;  %v1064_v1 = vld [vmem:[#allocation2] sm:$0xff] (!%p1505_p11)  ;;  %v1065_v2 = vld [vmem:[#allocation2 + $0x8] sm:$0xff] (!%p1505_p11) }
 0x149   : > { %v1669_v7 = vpop.f32.mrb[15].mxu0  ;;  %v1013_v8 = vpop.f32.mrb[13].mxu1 }
 0x14a   : > { %v990_v9 = vadd.f32 %v1733_v37, %v1667_v3  ;;  %v1670_v10 = vadd.f32 %v1669_v7, %v1668_v4  ;;  %v1742_v11 = vpop.f32.mrb[14].mxu1  ;;  %v477_v37 = vld [vmem:[#allocation2 + $0x58] sm:$0xff]  ;;  %v2088_v3 = vld [vmem:[%s2192_s2] ss:$0 sm:$0xff] (!%p1505_p11) }
 0x14b   : > { %v1016_v13 = vpop.f32.mrb[15].mxu1  ;;  %v1087_v4 = vmul.f32 (!%p1505_p11), %v2088_v3, %v1064_v1  ;;  %v1546_v7 = vld [vmem:[%s2194_s4] sm:$0xff] (!%p1505_p11)  }
 0x14c   : > { %v1034_v14 = vadd.f32 %v990_v9, %v472_v6  ;;  %v993_v15 = vadd.f32 %v1734_v43, %v1670_v10  ;;  %v2095_v6 = vld [vmem:[%s2193_s3] ss:$0 sm:$0xff] (!%p1505_p11)  ;;  %v1547_v9 = vunpack.c.l.bf16 (!%p1505_p11), %v1546_v7  ;;  %v1548_v10 = vunpack.c.h.bf16 (!%p1505_p11), %v1546_v7 }
 0x14e   : > { %1050 = vst [vmem:[#allocation2 + $0x30] sm:$0xff] %v1034_v14  ;;  %v1035_v16 = vadd.f32 %v993_v15, %v473_v12  ;;  %v1671_v17 = vpop.f32.mrb[16].mxu0  ;;  %v1068_v14 = vld [vmem:[#allocation2 + $0x20] sm:$0xff] (!%p1505_p11)  ;;  %v1110_v15 = vadd.f32 (!%p1505_p11), %v2095_v6, %v1087_v4 }
 0x14f   : > { %v1672_v18 = vpop.f32.mrb[17].mxu0 }
 0x150   : > { %1051 = vst [vmem:[#allocation2 + $0x38] sm:$0xff] %v1035_v16  ;;  %v1673_v19 = vadd.f32 %v1672_v18, %v1671_v17  ;;  %v1674_v20 = vpop.f32.mrb[18].mxu0 }
 0x151   : > { %v1675_v21 = vpop.f32.mrb[19].mxu0 }
 0x152   : > { %v1676_v23 = vadd.f32 %v1675_v21, %v1674_v20  ;;  %v998_v24 = vadd.f32 %v1673_v19, %v997_v56  ;;  %v1069_v19 = vld [vmem:[#allocation2 + $0x28] sm:$0xff] (!%p1505_p11)  ;;  %v1618_v20 = vld [vmem:[%s2194_s4 + $0x10] sm:$0xff] (!%p1505_p11)  }
 0x154   : > { %v1036_v26 = vadd.f32 %v998_v24, %v474_v22  ;;  %v1001_v27 = vadd.f32 %v1676_v23, %v1000_v61  ;;  %v481_v61 = vld [vmem:[#allocation2 + $0x78] sm:$0xff]  ;;  %v1091_v23 = vmul.f32 (!%p1505_p11), %v2088_v3, %v1068_v14  ;;  %v1092_v24 = vmul.f32 (!%p1505_p11), %v2088_v3, %v1069_v19 }
 0x156   : > { %1052 = vst [vmem:[#allocation2 + $0x40] sm:$0xff] %v1036_v26  ;;  %v1037_v28 = vadd.f32 %v1001_v27, %v475_v25  ;;  %v1677_v29 = vpop.f32.mrb[20].mxu0  ;;  %v1070_v25 = vld [vmem:[#allocation2 + $0x30] sm:$0xff] (!%p1505_p11)  ;;  %v1158_v26 = vadd.f32 (!%p1505_p11), %v1547_v9, %v1110_v15 }
 0x157   : > { %v1678_v30 = vpop.f32.mrb[21].mxu0 }
 0x158   : > { %1053 = vst [vmem:[#allocation2 + $0x48] sm:$0xff] %v1037_v28  ;;  %v1679_v31 = vadd.f32 %v1678_v30, %v1677_v29  ;;  %v1680_v32 = vpop.f32.mrb[22].mxu0  ;;  %v1555_v29 = vunpack.c.l.bf16 (!%p1505_p11), %v1618_v20  ;;  %v1071_v30 = vld [vmem:[#allocation2 + $0x38] sm:$0xff] (!%p1505_p11) }
 0x159   : > { %v1681_v34 = vpop.f32.mrb[23].mxu0 }
 0x15a   : > { %v1006_v35 = vadd.f32 %v1737_v53, %v1679_v31  ;;  %v1682_v36 = vadd.f32 %v1681_v34, %v1680_v32  ;;  %v1114_v32 = vadd.f32 (!%p1505_p11), %v2095_v6, %v1091_v23  ;;  %v1556_v34 = vunpack.c.h.bf16 (!%p1505_p11), %v1618_v20 }
 0x15c   : > { %v1038_v38 = vadd.f32 %v1006_v35, %v476_v33  ;;  %v1009_v39 = vadd.f32 %v1738_v59, %v1682_v36  ;;  %v1115_v33 = vadd.f32 (!%p1505_p11), %v2095_v6, %v1092_v24  ;;  %v1619_v35 = vld [vmem:[%s2194_s4 + $0x18] sm:$0xff] (!%p1505_p11)   ;;  %v1174_v36 = vmax.f32 (!%p1505_p11), %v1158_v26, 0.0 }
 0x15e   : > { %1054 = vst [vmem:[#allocation2 + $0x50] sm:$0xff] %v1038_v38  ;;  %v1039_v40 = vadd.f32 %v1009_v39, %v477_v37  ;;  %v1683_v41 = vpop.f32.mrb[24].mxu0  ;;  %v1093_v39 = vmul.f32 (!%p1505_p11), %v2088_v3, %v1070_v25 }
 0x15f   : > { %v1684_v42 = vpop.f32.mrb[25].mxu0 }
 0x160   : > { %1055 = vst [vmem:[#allocation2 + $0x58] sm:$0xff] %v1039_v40  ;;  %v1685_v43 = vadd.f32 %v1684_v42, %v1683_v41  ;;  %v1686_v44 = vpop.f32.mrb[26].mxu0  ;;  %v1162_v41 = vadd.f32 (!%p1505_p11), %v1555_v29, %v1114_v32  ;;  %v1163_v42 = vadd.f32 (!%p1505_p11), %v1556_v34, %v1115_v33  ;;  %v1623_v29 = vld [vmem:[%s2194_s4 + $0x38] sm:$0xff] (!%p1505_p11)  }
 0x161   : > { %v1687_v45 = vpop.f32.mrb[27].mxu0 }
 0x162   : > { %v1688_v47 = vadd.f32 %v1687_v45, %v1686_v44  ;;  %v1014_v48 = vadd.f32 %v1685_v43, %v1013_v8  ;;  %v1066_v8 = vld [vmem:[#allocation2 + $0x10] sm:$0xff] (!%p1505_p11)  ;;  %v1094_v43 = vmul.f32 (!%p1505_p11), %v2088_v3, %v1071_v30  ;;  %v1072_v44 = vld [vmem:[#allocation2 + $0x40] sm:$0xff] (!%p1505_p11)  ;;  %v1073_v45 = vld [vmem:[#allocation2 + $0x48] sm:$0xff] (!%p1505_p11) }
 0x163   : > { %v1089_v12 = vmul.f32 (!%p1505_p11), %v2088_v3, %v1066_v8 }
 0x164   : > { %v1040_v50 = vadd.f32 %v1014_v48, %v478_v46  ;;  %v1017_v51 = vadd.f32 %v1688_v47, %v1016_v13  ;;  %v1617_v13 = vld [vmem:[%s2194_s4 + $0x8] sm:$0xff] (!%p1505_p11)   ;;  %v1116_v48 = vadd.f32 (!%p1505_p11), %v2095_v6, %v1093_v39 }
 0x165   : > { %v1551_v18 = vunpack.c.l.bf16 (!%p1505_p11), %v1617_v13  ;;  %v1112_v21 = vadd.f32 (!%p1505_p11), %v2095_v6, %v1089_v12  ;;  %v1552_v22 = vunpack.c.h.bf16 (!%p1505_p11), %v1617_v13 }
 0x166   : > { %1056 = vst [vmem:[#allocation2 + $0x60] sm:$0xff] %v1040_v50  ;;  %v1041_v52 = vadd.f32 %v1017_v51, %v479_v49  ;;  %v1689_v53 = vpop.f32.mrb[28].mxu0  ;;  %v1559_v49 = vunpack.c.l.bf16 (!%p1505_p11), %v1619_v35  ;;  %v1620_v50 = vld [vmem:[%s2194_s4 + $0x20] sm:$0xff] (!%p1505_p11)   ;;  %v1178_v51 = vmax.f32 (!%p1505_p11), %v1162_v41, 0.0  ;;  %v1575_v41 = vunpack.c.l.bf16 (!%p1505_p11), %v1623_v29 }
 0x167   : > { %v1690_v54 = vpop.f32.mrb[29].mxu0  ;;  %v1160_v31 = vadd.f32 (!%p1505_p11), %v1551_v18, %v1112_v21  ;;  %v1564_v1 = vunpack.c.h.bf16 (!%p1505_p11), %v1620_v50 }
 0x168   : > { %1057 = vst [vmem:[#allocation2 + $0x68] sm:$0xff] %v1041_v52  ;;  %v1691_v55 = vadd.f32 %v1690_v54, %v1689_v53  ;;  %v1692_v56 = vpop.f32.mrb[30].mxu0  ;;  %v1179_v52 = vmax.f32 (!%p1505_p11), %v1163_v42, 0.0  ;;  %v1117_v53 = vadd.f32 (!%p1505_p11), %v2095_v6, %v1094_v43  ;;  %v1560_v54 = vunpack.c.h.bf16 (!%p1505_p11), %v1619_v35 }
 0x169   : > { %v1693_v58 = vpop.f32.mrb[31].mxu0  ;;  %v1176_v40 = vmax.f32 (!%p1505_p11), %v1160_v31, 0.0 }
 0x16a   : > { %v1022_v59 = vadd.f32 %v1741_v5, %v1691_v55  ;;  %v1694_v60 = vadd.f32 %v1693_v58, %v1692_v56  ;;  %1063 = sbr.rel (%p1505_p11) target bundleno = 387 (0x183), region = 74  ;;  %v1088_v5 = vmul.f32 (!%p1505_p11), %v2088_v3, %v1065_v2  ;;  %v1074_v55 = vld [vmem:[#allocation2 + $0x50] sm:$0xff] (!%p1505_p11)  ;;  %v1095_v58 = vmul.f32 (!%p1505_p11), %v2088_v3, %v1072_v44 }
 0x16b   : > { %v1097_v8 = vmul.f32 (!%p1505_p11), %v2088_v3, %v1074_v55  ;;  %v1576_v44 = vunpack.c.h.bf16 (!%p1505_p11), %v1623_v29 }
 0x16c   : > { %v1042_v62 = vadd.f32 %v1022_v59, %v480_v57  ;;  %v1025_v63 = vadd.f32 %v1742_v11, %v1694_v60  ;;  %v1067_v11 = vld [vmem:[#allocation2 + $0x18] sm:$0xff] (!%p1505_p11)  ;;  %v1111_v16 = vadd.f32 (!%p1505_p11), %v2095_v6, %v1088_v5  ;;  %v1164_v57 = vadd.f32 (!%p1505_p11), %v1559_v49, %v1116_v48 }
 0x16d   : > { %v1090_v17 = vmul.f32 (!%p1505_p11), %v2088_v3, %v1067_v11  ;;  %v1096_v59 = vmul.f32 (!%p1505_p11), %v2088_v3, %v1073_v45  ;;  %v1075_v60 = vld [vmem:[#allocation2 + $0x58] sm:$0xff] (!%p1505_p11)  ;;  %v1076_v2 = vld [vmem:[#allocation2 + $0x60] sm:$0xff] (!%p1505_p11)  ;;  %v1118_v5 = vadd.f32 (!%p1505_p11), %v2095_v6, %v1095_v58 }
 0x16e   : > { %1058 = vst [vmem:[#allocation2 + $0x70] sm:$0xff] %v1042_v62  ;;  %v1043_v0 = vadd.f32 %v1025_v63, %v481_v61  ;;  %v1159_v27 = vadd.f32 (!%p1505_p11), %v1548_v10, %v1111_v16  ;;  %v1621_v61 = vld [vmem:[%s2194_s4 + $0x28] sm:$0xff] (!%p1505_p11)   ;;  %v1590_v62 = vpack.c.bf16 (!%p1505_p11), %v1179_v52, %v1178_v51  ;;  %v1165_v63 = vadd.f32 (!%p1505_p11), %v1560_v54, %v1117_v53  ;;  %v1622_v10 = vld [vmem:[%s2194_s4 + $0x30] sm:$0xff] (!%p1505_p11)  }
 0x16f   : > { %v1113_v28 = vadd.f32 (!%p1505_p11), %v2095_v6, %v1090_v17  ;;  %v1180_v4 = vmax.f32 (!%p1505_p11), %v1164_v57, 0.0  ;;  %v1119_v7 = vadd.f32 (!%p1505_p11), %v2095_v6, %v1096_v59  ;;  %v1077_v9 = vld [vmem:[#allocation2 + $0x68] sm:$0xff] (!%p1505_p11)  ;;  %v1098_v12 = vmul.f32 (!%p1505_p11), %v2088_v3, %v1075_v60 }
 0x170   : > { %1059 = vst [vmem:[#allocation2 + $0x78] sm:$0xff] %v1043_v0  ;;  %v1175_v37 = vmax.f32 (!%p1505_p11), %v1159_v27, 0.0  ;;  %v1563_v0 = vunpack.c.l.bf16 (!%p1505_p11), %v1620_v50  ;;  %1625 = vst [vmem:[%s2195_s5 + $0x10] sm:$0xff] (!%p1505_p11), %v1590_v62   ;;  %v1181_v11 = vmax.f32 (!%p1505_p11), %v1165_v63, 0.0  ;;  %v1567_v13 = vunpack.c.l.bf16 (!%p1505_p11), %v1621_v61 }
 0x171   : > { %v1161_v38 = vadd.f32 %v1552_v22, %v1113_v28  ;;  %v1568_v14 = vunpack.c.h.bf16 %v1621_v61  ;;  %v1167_v16 = vadd.f32 %v1564_v1, %v1119_v7  ;;  %v1120_v17 = vadd.f32 %v2095_v6, %v1097_v8 }
 0x172   : > { %v1580_v46 = vpack.c.bf16 %v1175_v37, %v1174_v36  ;;  %v1166_v15 = vadd.f32 %v1563_v0, %v1118_v5  ;;  %v1099_v18 = vmul.f32 %v2088_v3, %v1076_v2  ;;  %v1595_v20 = vpack.c.bf16 %v1181_v11, %v1180_v4 }
 0x173   : > { %v1177_v47 = vmax.f32 %v1161_v38, 0.0  ;;  %v1121_v21 = vadd.f32 %v2095_v6, %v1098_v12  ;;  %v1100_v22 = vmul.f32 %v2088_v3, %v1077_v9  ;;  %v1571_v23 = vunpack.c.l.bf16 %v1622_v10 }
 0x174   : > { %1581 = vst [vmem:[%s2195_s5] sm:$0xff] %v1580_v46   ;;  %v1182_v25 = vmax.f32 %v1166_v15, 0.0  ;;  %v1183_v26 = vmax.f32 %v1167_v16, 0.0  ;;  %v1168_v27 = vadd.f32 %v1567_v13, %v1120_v17  ;;  %v1122_v28 = vadd.f32 %v2095_v6, %v1099_v18  ;;  %1626 = vst [vmem:[%s2195_s5 + $0x18] sm:$0xff] %v1595_v20  }
 0x175   : > { %v1585_v56 = vpack.c.bf16 %v1177_v47, %v1176_v40  ;;  %v1078_v19 = vld [vmem:[#allocation2 + $0x70] sm:$0xff]  ;;  %v1169_v30 = vadd.f32 %v1568_v14, %v1121_v21  ;;  %v1123_v31 = vadd.f32 %v2095_v6, %v1100_v22  ;;  %v1572_v32 = vunpack.c.h.bf16 %v1622_v10 }
 0x176   : > { %v1101_v33 = vmul.f32 %v2088_v3, %v1078_v19  ;;  %v1600_v34 = vpack.c.bf16 %v1183_v26, %v1182_v25  ;;  %v1184_v35 = vmax.f32 %v1168_v27, 0.0  ;;  %v1170_v36 = vadd.f32 %v1571_v23, %v1122_v28 }
 0x177   : > { %1624 = vst [vmem:[%s2195_s5 + $0x8] sm:$0xff] %v1585_v56   ;;  %v1079_v24 = vld [vmem:[#allocation2 + $0x78] sm:$0xff]  ;;  %v1185_v38 = vmax.f32 %v1169_v30, 0.0  ;;  %v1171_v39 = vadd.f32 %v1572_v32, %v1123_v31 }
 0x178   : > { %v1102_v37 = vmul.f32 %v2088_v3, %v1079_v24  ;;  %v1124_v40 = vadd.f32 %v2095_v6, %v1101_v33  ;;  %1627 = vst [vmem:[%s2195_s5 + $0x20] sm:$0xff] %v1600_v34   ;;  %v1186_v42 = vmax.f32 %v1170_v36, 0.0 }
 0x179   : > { %v1605_v45 = vpack.c.bf16 %v1185_v38, %v1184_v35  ;;  %v1187_v46 = vmax.f32 %v1171_v39, 0.0 }
 0x17a   : > { %v1125_v43 = vadd.f32 %v2095_v6, %v1102_v37  ;;  %v1172_v47 = vadd.f32 %v1575_v41, %v1124_v40 }
 0x17b   : > { %1628 = vst [vmem:[%s2195_s5 + $0x28] sm:$0xff] %v1605_v45   ;;  %v1610_v3 = vpack.c.bf16 %v1187_v46, %v1186_v42 }
 0x17c   : > { %v1173_v48 = vadd.f32 %v1576_v44, %v1125_v43  ;;  %v1188_v49 = vmax.f32 %v1172_v47, 0.0 }
 0x17d   : > { %1629 = vst [vmem:[%s2195_s5 + $0x30] sm:$0xff] %v1610_v3  }
 0x17e   : > { %v1189_v50 = vmax.f32 %v1173_v48, 0.0 }
 0x180   : > { %v1615_v51 = vpack.c.bf16 %v1189_v50, %v1188_v49 }
 0x182   : > { %1630 = vst [vmem:[%s2195_s5 + $0x38] sm:$0xff] %v1615_v51  }
 0x183 PF: > { %s15_s22 = sadd.s32 1, %s1880_s22   ;;  %s2196_s18 = smov %s1868_s19 }
 0x184   : > { %p12_p12 = scmp.ge.s32.totalorder %s15_s22, 5   ;;  %s2197_s19 = smov %s1948_s26 }
 0x185   : > { %s2198_s20 = smov %s1876_s21  ;;  %s2199_s21 = smov %s2201_s23 }
 0x186   :  { %14 = sbr.rel (!%p12_p12) target bundleno = 3 (0x3), region = 127 }

// kernel: _lambda_.20
= control target key start
LH: loop header
LB: loop body
LE: loop exit
PB: predicated region body
PF: predicated region fallthrough
CT: control target
= control target key end

     0   :  { %s1344_s15 = smov 0   ;;  %s1346_s16 = smov 0   ;;  %s1489_s0 = inlined_call_operand.vmem [shape: bf16[32,1152], index: 0, kind: input, shape index: {}]   ;;  %s1490_s1 = inlined_call_operand.vmem [shape: bf16[1152,256], index: 1, kind: input, shape index: {}]   ;;  %s1491_s2 = inlined_call_operand.vmem [shape: f32[1,256], index: 2, kind: input, shape index: {}]   ;;  %s1492_s3 = inlined_call_operand.vmem [shape: f32[1,256], index: 3, kind: input, shape index: {}]   ;;  %s1493_s4 = inlined_call_operand.vmem [shape: bf16[32,256], index: 4, kind: output, shape index: {}]  }
   0x1   :  { %s1348_s17 = smov 0   ;;  %s1350_s18 = smov 0  }
   0x2   :  { %s1352_s19 = smov 0  }
   0x3 LB: > { %s26_s20 = sadd.s32 1, %s1311_s18  ;;  %p49_p1 = scmp.ne.s32.totalorder %s1303_s16, %s1299_s15  ;;  %s1315_s19 = sphi %s1352_s19, %s14_s19   ;;  %s1311_s18 = sphi %s1350_s18, %s1497_s18   ;;  %s1307_s17 = sphi %s1348_s17, %s1496_s17   ;;  %s1303_s16 = sphi %s1346_s16, %s1495_s16   ;;  %s1299_s15 = sphi %s1344_s15, %s1494_s15  }
   0x4   : > { %p27_p0 = scmp.ge.s32.totalorder %s26_s20, 3  ;;  %p50_p2 = scmp.eq.s32.totalorder %s1315_s19, 0 }
   0x5   : > { %s42_s22 = sadd.s32 1, %s1303_s16  ;;  %p1062_p5 = scmp.ge.s32.totalorder %s1315_s19, 3 }
   0x6   : > { %s1499_s20 = smov (%p27_p0, %s26_s20), 0  ;;  %p51_p3 = por %p50_p2, %p49_p1 }
   0x7   : > { %s38_s21 = ssub.s32 %s1311_s18, %s1499_s20  ;;  %199 = sbr.rel (%p1062_p5) target bundleno = 23 (0x17), region = 24 }
   0x8   : > { %p40_p4 = scmp.eq.s32.totalorder %s38_s21, 0 }
   0xa   : > { %s1379_s23 = scalar_select %p40_p4, %s1303_s16, %s42_s22  }
   0xe   : > { %202 = sbr.rel (!%p51_p3) target bundleno = 23 (0x17), region = 28  ;;  %s204_s24 = sand.u32 (%p51_p3), 1, %s1303_s16  }
   0xf   : > { %s1139_s25 = smul.u32 (%p51_p3), 12, %s1311_s18 }
  0x10   : > { %s1153_s26 = smul.u32 (%p51_p3), 48, %s204_s24 }
  0x11   : > { %s212_s29 = scalar_lea.vmem (%p51_p3), %s1489_s0, %s1139_s25 }
  0x12   : > { %v227_v0 = vld [vmem:[%s212_s29] sm:$0xff] (%p51_p3)  ;;  %v231_v2 = vld [vmem:[%s212_s29 + $0x48] sm:$0xff] (%p51_p3)  ;;  %s206_s30 = scalar_lea.vmem (%p51_p3), [#allocation3], %s1153_s26  ;;  %v1068_v6 = vld [vmem:[%s212_s29 + $0x50] sm:$0xf] (%p51_p3) }
  0x13   : > { %v229_v1 = vld [vmem:[%s212_s29 + $0x24] sm:$0xff] (%p51_p3)  ;;  %228 = vst [vmem:[%s206_s30] sm:$0xff] (%p51_p3), %v227_v0  ;;  %232 = vst [vmem:[%s206_s30 + $0x18] sm:$0xff] (%p51_p3), %v231_v2  ;;  %v233_v3 = vld [vmem:[%s212_s29 + $0x6c] sm:$0xff] (%p51_p3) }
  0x14   : > { %230 = vst [vmem:[%s206_s30 + $0xc] sm:$0xff] (%p51_p3), %v229_v1  ;;  %v1064_v4 = vld [vmem:[%s212_s29 + $0x8] sm:$0xf] (%p51_p3)  ;;  %v1066_v5 = vld [vmem:[%s212_s29 + $0x2c] sm:$0xf] (%p51_p3)  ;;  %234 = vst [vmem:[%s206_s30 + $0x24] sm:$0xff] (%p51_p3), %v233_v3 }
  0x15   : > { %1065 = vst [vmem:[%s206_s30 + $0x8] sm:$0xf] %v1064_v4  ;;  %1067 = vst [vmem:[%s206_s30 + $0x14] sm:$0xf] %v1066_v5  ;;  %v1070_v7 = vld [vmem:[%s212_s29 + $0x74] sm:$0xf] }
  0x16   : > { %1069 = vst [vmem:[%s206_s30 + $0x20] sm:$0xf] %v1068_v6  ;;  %1071 = vst [vmem:[%s206_s30 + $0x2c] sm:$0xf] %v1070_v7 }
  0x17 PF: > { %p1072_p6 = scmp.ge.s32.totalorder %s1315_s19, 1  ;;  %p269_p7 = scmp.lt.s32.totalorder %s1315_s19, 4 }
  0x19   : > { %p270_p8 = pnand %p1072_p6, %p269_p7 }
  0x1a   : > { %s276_s5 = sand.u32 (!%p270_p8), 1, %s1299_s15   ;;  %s326_s6 = smul.u32 (!%p270_p8), 48, %s1307_s17 }
  0x1b   : > { %273 = sbr.rel (%p270_p8) target bundleno = 350 (0x15e), region = 58  ;;  %p1075_p10 = scmp.ne.s32.totalorder (!%p270_p8), %s1307_s17, 0 }
  0x1c   : > { %s1154_s7 = smul.u32 (!%p270_p8), 48, %s276_s5  ;;  %p328_p9 = scmp.lt.s32.totalorder (!%p270_p8), %s326_s6, 143 }
  0x1e   : > { %s1396_s12 = scalar_lea.vmem (!%p270_p8), [#allocation3], %s1154_s7 }
  0x22   : > { %s1501_s6 = smov (!%p328_p9, %s326_s6), 143  ;;  %364 = sbr.rel (%p1075_p10) target bundleno = 41 (0x29), region = 66 }
  0x23   : > { %s1140_s8 = sshll.u32 %s1501_s6, 3  ;;  %v1317_v8 = vmov (!%p1075_p10), 0.0  }
  0x24   : > { %s1394_s11 = scalar_lea.vmem %s1490_s1, %s1140_s8  ;;  %365 = vst [vmem:[#allocation2] sm:$0xff] (!%p1075_p10), %v1317_v8  ;;  %366 = vst [vmem:[#allocation2 + $0x8] sm:$0xff] (!%p1075_p10), %v1317_v8 }
  0x25   : > { %367 = vst [vmem:[#allocation2 + $0x10] sm:$0xff] (!%p1075_p10), %v1317_v8  ;;  %368 = vst [vmem:[#allocation2 + $0x18] sm:$0xff] (!%p1075_p10), %v1317_v8 }
  0x26   : > { %369 = vst [vmem:[#allocation2 + $0x20] sm:$0xff] (!%p1075_p10), %v1317_v8  ;;  %370 = vst [vmem:[#allocation2 + $0x28] sm:$0xff] (!%p1075_p10), %v1317_v8 }
  0x27   : > { %371 = vst [vmem:[#allocation2 + $0x30] sm:$0xff] (!%p1075_p10), %v1317_v8  ;;  %372 = vst [vmem:[#allocation2 + $0x38] sm:$0xff] (!%p1075_p10), %v1317_v8 }
  0x29 PF: > { %v1197_v9 = vld [vmem:[%s1394_s11 + $0x4] ss:$8 sps:$4 sm:$0xff]   ;;  %v1199_v10 = vld [vmem:[%s1394_s11] ss:$8 sps:$4 sm:$0xff]   ;;  %v1318_v11 = vmov 0   ;;  %p1130_p11 = scmp.ne.s32.totalorder %s1307_s17, 2 }
  0x2a   : > { %794 = vmatprep.mubr.bf16.mxu0 %v1318_v11  ;;  %709 = vmatprep.subr.bf16.mxu1 %v1197_v9  ;;  %v1200_v12 = vld [vmem:[%s1394_s11 + $0x14] ss:$8 sps:$4 sm:$0xff]   ;;  %v1202_v13 = vld [vmem:[%s1394_s11 + $0x10] ss:$8 sps:$4 sm:$0xff]   ;;  %v1203_v14 = vld [vmem:[%s1394_s11 + $0x24] ss:$8 sps:$4 sm:$0xff]  }
  0x2b   : > { %710 = vmatpush1.bf16.msra.mxu1 %v1199_v10  ;;  %v1205_v15 = vld [vmem:[%s1394_s11 + $0x20] ss:$8 sps:$4 sm:$0xff]   ;;  %v1206_v16 = vld [vmem:[%s1394_s11 + $0x34] ss:$8 sps:$4 sm:$0xff]   ;;  %v1208_v17 = vld [vmem:[%s1394_s11 + $0x30] ss:$8 sps:$4 sm:$0xff]  }
  0x2c   : > { %711 = vmatprep.subr.bf16.mxu1 %v1200_v12  ;;  %v1221_v18 = vld [vmem:[%s1394_s11 + $0x104] ss:$8 sps:$4 sm:$0xff]   ;;  %v1223_v19 = vld [vmem:[%s1394_s11 + $0x100] ss:$8 sps:$4 sm:$0xff]   ;;  %v1227_v21 = vld [vmem:[%s1394_s11 + $0x114] ss:$8 sps:$4 sm:$0xff]  }
  0x2d   : > { %v1209_v20 = vld [vmem:[%s1394_s11 + $0x44] ss:$8 sps:$4 sm:$0xff]   ;;  %762 = vmatprep.subr.bf16.mxu0 %v1221_v18  ;;  %v1229_v22 = vld [vmem:[%s1394_s11 + $0x110] ss:$8 sps:$4 sm:$0xff]   ;;  %v1211_v23 = vld [vmem:[%s1394_s11 + $0x40] ss:$8 sps:$4 sm:$0xff]  }
  0x2e   : > { %763 = vmatpush1.bf16.msra.mxu0 %v1223_v19  ;;  %v1212_v24 = vld [vmem:[%s1394_s11 + $0x54] ss:$8 sps:$4 sm:$0xff]   ;;  %v1233_v25 = vld [vmem:[%s1394_s11 + $0x124] ss:$8 sps:$4 sm:$0xff]   ;;  %v1235_v26 = vld [vmem:[%s1394_s11 + $0x120] ss:$8 sps:$4 sm:$0xff]  }
  0x2f   : > { %712 = vmatpush1.bf16.msra.mxu1 %v1202_v13  ;;  %764 = vmatprep.subr.bf16.mxu0 %v1227_v21  ;;  %v1214_v27 = vld [vmem:[%s1394_s11 + $0x50] ss:$8 sps:$4 sm:$0xff]   ;;  %v1239_v28 = vld [vmem:[%s1394_s11 + $0x134] ss:$8 sps:$4 sm:$0xff]   ;;  %v1215_v29 = vld [vmem:[%s1394_s11 + $0x64] ss:$8 sps:$4 sm:$0xff]  }
  0x30   : > { %713 = vmatprep.subr.bf16.mxu1 %v1203_v14  ;;  %v1241_v30 = vld [vmem:[%s1394_s11 + $0x130] ss:$8 sps:$4 sm:$0xff]   ;;  %v1217_v31 = vld [vmem:[%s1394_s11 + $0x60] ss:$8 sps:$4 sm:$0xff]   ;;  %v1245_v32 = vld [vmem:[%s1394_s11 + $0x144] ss:$8 sps:$4 sm:$0xff]  }
  0x31   : > { %v1218_v33 = vld [vmem:[%s1394_s11 + $0x74] ss:$8 sps:$4 sm:$0xff]   ;;  %v1247_v34 = vld [vmem:[%s1394_s11 + $0x140] ss:$8 sps:$4 sm:$0xff]   ;;  %v1220_v35 = vld [vmem:[%s1394_s11 + $0x70] ss:$8 sps:$4 sm:$0xff]  }
  0x32   : > { %765 = vmatpush1.bf16.msra.mxu0 %v1229_v22  ;;  %v1251_v36 = vld [vmem:[%s1394_s11 + $0x154] ss:$8 sps:$4 sm:$0xff]   ;;  %v1224_v37 = vld [vmem:[%s1394_s11 + $0x84] ss:$8 sps:$4 sm:$0xff]   ;;  %v1253_v38 = vld [vmem:[%s1394_s11 + $0x150] ss:$8 sps:$4 sm:$0xff]  }
  0x33   : > { %714 = vmatpush1.bf16.msra.mxu1 %v1205_v15  ;;  %766 = vmatprep.subr.bf16.mxu0 %v1233_v25  ;;  %v1226_v39 = vld [vmem:[%s1394_s11 + $0x80] ss:$8 sps:$4 sm:$0xff]   ;;  %v1257_v40 = vld [vmem:[%s1394_s11 + $0x164] ss:$8 sps:$4 sm:$0xff]   ;;  %v1230_v41 = vld [vmem:[%s1394_s11 + $0x94] ss:$8 sps:$4 sm:$0xff]  }
  0x34   : > { %715 = vmatprep.subr.bf16.mxu1 %v1206_v16  ;;  %v1232_v42 = vld [vmem:[%s1394_s11 + $0x90] ss:$8 sps:$4 sm:$0xff]   ;;  %v1259_v43 = vld [vmem:[%s1394_s11 + $0x160] ss:$8 sps:$4 sm:$0xff]   ;;  %v1263_v45 = vld [vmem:[%s1394_s11 + $0x174] ss:$8 sps:$4 sm:$0xff]  }
  0x35   : > { %v1272_v44 = vld [vmem:[%s1396_s12 + $0x4] ss:$12 sps:$4 sm:$0xff]   ;;  %v1269_v50 = vld [vmem:[%s1396_s12 + $0x8] ss:$12 sps:$4 sm:$0xff]   ;;  %v1273_v55 = vld [vmem:[%s1396_s12 + $0x20] ss:$12 sps:$4 sm:$0xff]  }
  0x36   : > { %767 = vmatpush1.bf16.msra.mxu0 %v1235_v26  ;;  %v1236_v46 = vld [vmem:[%s1394_s11 + $0xa4] ss:$8 sps:$4 sm:$0xff]   ;;  %741 = vmatprep.mubr.bf16.mxu1 %v1272_v44  ;;  %v1265_v47 = vld [vmem:[%s1394_s11 + $0x170] ss:$8 sps:$4 sm:$0xff]   ;;  %v1238_v48 = vld [vmem:[%s1394_s11 + $0xa0] ss:$8 sps:$4 sm:$0xff]  }
  0x37   : > { %716 = vmatpush1.bf16.msra.mxu1 %v1208_v17  ;;  %768 = vmatprep.subr.bf16.mxu0 %v1239_v28  ;;  %v1242_v49 = vld [vmem:[%s1394_s11 + $0xb4] ss:$8 sps:$4 sm:$0xff]   ;;  %v1244_v51 = vld [vmem:[%s1394_s11 + $0xb0] ss:$8 sps:$4 sm:$0xff]   ;;  %v1248_v52 = vld [vmem:[%s1394_s11 + $0xc4] ss:$8 sps:$4 sm:$0xff]  }
  0x38   : > { %717 = vmatprep.subr.bf16.mxu1 %v1209_v20  ;;  %v1250_v53 = vld [vmem:[%s1394_s11 + $0xc0] ss:$8 sps:$4 sm:$0xff]   ;;  %v1254_v54 = vld [vmem:[%s1394_s11 + $0xd4] ss:$8 sps:$4 sm:$0xff]   ;;  %v1256_v56 = vld [vmem:[%s1394_s11 + $0xd0] ss:$8 sps:$4 sm:$0xff]  }
  0x39   : > { %v1260_v57 = vld [vmem:[%s1394_s11 + $0xe4] ss:$8 sps:$4 sm:$0xff]   ;;  %v1262_v58 = vld [vmem:[%s1394_s11 + $0xe0] ss:$8 sps:$4 sm:$0xff]   ;;  %v1266_v59 = vld [vmem:[%s1394_s11 + $0xf4] ss:$8 sps:$4 sm:$0xff]  }
  0x3a   : > { %769 = vmatpush1.bf16.msra.mxu0 %v1241_v30  ;;  %v1268_v60 = vld [vmem:[%s1394_s11 + $0xf0] ss:$8 sps:$4 sm:$0xff]   ;;  %v373_v8 = vld [vmem:[#allocation2] sm:$0xff] }
  0x3b   : > { %718 = vmatpush1.bf16.msra.mxu1 %v1211_v23  ;;  %770 = vmatprep.subr.bf16.mxu0 %v1245_v32  ;;  %v1270_v61 = vld [vmem:[%s1396_s12] ss:$12 sps:$4 sm:$0xff]   ;;  %v1274_v62 = vld [vmem:[%s1396_s12 + $0x1c] ss:$12 sps:$4 sm:$0xff]   ;;  %v1276_v63 = vld [vmem:[%s1396_s12 + $0x18] ss:$12 sps:$4 sm:$0xff]  }
  0x3c   : > { %719 = vmatprep.subr.bf16.mxu1 %v1212_v24  ;;  %v375_v14 = vld [vmem:[#allocation2 + $0x10] sm:$0xff]  ;;  %v376_v18 = vld [vmem:[#allocation2 + $0x18] sm:$0xff]  ;;  %v377_v24 = vld [vmem:[#allocation2 + $0x20] sm:$0xff] }
  0x3d   : > { %v379_v30 = vld [vmem:[#allocation2 + $0x30] sm:$0xff] }
  0x3e   : > { %771 = vmatpush1.bf16.msra.mxu0 %v1247_v34  ;;  %v380_v34 = vld [vmem:[#allocation2 + $0x38] sm:$0xff] }
  0x3f   : > { %720 = vmatpush1.bf16.msra.mxu1 %v1214_v27  ;;  %772 = vmatprep.subr.bf16.mxu0 %v1251_v36  ;;  %v378_v27 = vld [vmem:[#allocation2 + $0x28] sm:$0xff] }
  0x40   : > { %721 = vmatprep.subr.bf16.mxu1 %v1215_v29 }
  0x42   : > { %773 = vmatpush1.bf16.msra.mxu0 %v1253_v38 }
  0x43   : > { %722 = vmatpush1.bf16.msra.mxu1 %v1217_v31  ;;  %774 = vmatprep.subr.bf16.mxu0 %v1257_v40  ;;  %v845_v40 = vlaneseq (!%p1130_p11) }
  0x44   : > { %723 = vmatprep.subr.bf16.mxu1 %v1218_v33 }
  0x46   : > { %775 = vmatpush1.bf16.msra.mxu0 %v1259_v43  ;;  %v863_v43 = vld [vmem:[%s1492_s3] sm:$0x3] (!%p1130_p11) }
  0x47   : > { %724 = vmatpush1.bf16.msra.mxu1 %v1220_v35  ;;  %776 = vmatprep.subr.bf16.mxu0 %v1263_v45 }
  0x48   : > { %725 = vmatprep.subr.bf16.mxu1 %v1224_v37 }
  0x4a   : > { %777 = vmatpush1.bf16.msra.mxu0 %v1265_v47 }
  0x4b   : > { %726 = vmatpush1.bf16.msra.mxu1 %v1226_v39 }
  0x4c   : > { %727 = vmatprep.subr.bf16.mxu1 %v1230_v41  ;;  %v846_v41 = vshrl.u32 (!%p1130_p11), %v845_v40, 7 }
  0x4d   : > { %795 = vmatmul.mubr.bf16.vlgmr.msra.gmra.mrb[0].mxu0 %v1269_v50 }
  0x4e   : > { %804 = vmatprep.mubr.bf16.mxu0 %v1318_v11  ;;  %v374_v11 = vld [vmem:[#allocation2 + $0x8] sm:$0xff]  ;;  %v851_v47 = vsub.s32 (!%p1130_p11), 1, %v846_v41 }
  0x4f   : > { %728 = vmatpush1.bf16.msra.mxu1 %v1232_v42  ;;  %v843_v42 = vld [vmem:[%s1491_s2] sm:$0x3] (!%p1130_p11) }
  0x50   : > { %729 = vmatprep.subr.bf16.mxu1 %v1236_v46  ;;  %v847_v46 = vsub.s32 (!%p1130_p11), 0, %v846_v41 }
  0x53   : > { %730 = vmatpush1.bf16.msra.mxu1 %v1238_v48 }
  0x54   : > { %731 = vmatprep.subr.bf16.mxu1 %v1242_v49 }
  0x55   : > { %805 = vmatmul.mubr.bf16.gmra.mrb[4].mxu0 %v1273_v55 }
  0x57   : > { %732 = vmatpush1.bf16.msra.mxu1 %v1244_v51  ;;  %v848_v51 = vrot.slane (!%p1130_p11), %v843_v42, %v847_v46 }
  0x58   : > { %733 = vmatprep.subr.bf16.mxu1 %v1248_v52  ;;  %v852_v52 = vrot.slane (!%p1130_p11), %v843_v42, %v851_v47 }
  0x5b   : > { %734 = vmatpush1.bf16.msra.mxu1 %v1250_v53  ;;  %v868_v53 = vrot.slane (!%p1130_p11), %v863_v43, %v847_v46 }
  0x5c   : > { %735 = vmatprep.subr.bf16.mxu1 %v1254_v54  ;;  %v872_v54 = vrot.slane (!%p1130_p11), %v863_v43, %v851_v47 }
  0x5f   : > { %736 = vmatpush1.bf16.msra.mxu1 %v1256_v56 }
  0x60   : > { %737 = vmatprep.subr.bf16.mxu1 %v1260_v57 }
  0x63   : > { %738 = vmatpush1.bf16.msra.mxu1 %v1262_v58 }
  0x64   : > { %739 = vmatprep.subr.bf16.mxu1 %v1266_v59 }
  0x67   : > { %740 = vmatpush1.bf16.msra.mxu1 %v1268_v60 }
  0x6a   : > { %742 = vmatmul.mubr.bf16.vlgmr.msra.gmra.mrb[0].mxu1 %v1270_v61 }
  0x6b   : > { %751 = vmatprep.mubr.bf16.mxu1 %v1274_v62 }
  0x72   : > { %752 = vmatmul.mubr.bf16.gmra.mrb[4].mxu1 %v1276_v63 }
 0x120   : > { %v796_v0 = vpop.f32.mrb[0].mxu0 }
 0x121   : > { %v798_v1 = vpop.f32.mrb[1].mxu0 }
 0x122   : > { %v800_v2 = vpop.f32.mrb[2].mxu0 }
 0x123   : > { %v802_v3 = vpop.f32.mrb[3].mxu0 }
 0x128   : > { %v806_v4 = vpop.f32.mrb[4].mxu0 }
 0x129   : > { %v808_v5 = vpop.f32.mrb[5].mxu0 }
 0x12a   : > { %v810_v6 = vpop.f32.mrb[6].mxu0 }
 0x12b   : > { %v812_v7 = vpop.f32.mrb[7].mxu0 }
 0x13d   : > { %v743_v9 = vpop.f32.mrb[0].mxu1 }
 0x13e   : > { %v797_v10 = vadd.f32 %v796_v0, %v743_v9  ;;  %v745_v12 = vpop.f32.mrb[1].mxu1 }
 0x13f   : > { %v799_v13 = vadd.f32 %v798_v1, %v745_v12  ;;  %v747_v15 = vpop.f32.mrb[2].mxu1 }
 0x140   : > { %v815_v16 = vadd.f32 %v797_v10, %v373_v8  ;;  %v801_v17 = vadd.f32 %v800_v2, %v747_v15  ;;  %v749_v19 = vpop.f32.mrb[3].mxu1 }
 0x141   : > { %v816_v20 = vadd.f32 %v799_v13, %v374_v11  ;;  %v803_v21 = vadd.f32 %v802_v3, %v749_v19 }
 0x142   : > { %823 = vst [vmem:[#allocation2] sm:$0xff] %v815_v16  ;;  %v817_v22 = vadd.f32 %v801_v17, %v375_v14 }
 0x143   : > { %824 = vst [vmem:[#allocation2 + $0x8] sm:$0xff] %v816_v20  ;;  %v818_v23 = vadd.f32 %v803_v21, %v376_v18 }
 0x144   : > { %825 = vst [vmem:[#allocation2 + $0x10] sm:$0xff] %v817_v22 }
 0x145   : > { %826 = vst [vmem:[#allocation2 + $0x18] sm:$0xff] %v818_v23  ;;  %v753_v25 = vpop.f32.mrb[4].mxu1 }
 0x146   : > { %v807_v26 = vadd.f32 %v806_v4, %v753_v25  ;;  %v755_v28 = vpop.f32.mrb[5].mxu1 }
 0x147   : > { %v809_v29 = vadd.f32 %v808_v5, %v755_v28  ;;  %v757_v31 = vpop.f32.mrb[6].mxu1  ;;  %834 = sbr.rel (%p1130_p11) target bundleno = 350 (0x15e), region = 70 }
 0x148   : > { %v819_v32 = vadd.f32 %v807_v26, %v377_v24  ;;  %v811_v33 = vadd.f32 %v810_v6, %v757_v31  ;;  %v759_v35 = vpop.f32.mrb[7].mxu1 }
 0x149   : > { %v820_v36 = vadd.f32 %v809_v29, %v378_v27  ;;  %v813_v37 = vadd.f32 %v812_v7, %v759_v35  ;;  %v835_v44 = vld [vmem:[#allocation2] sm:$0xff] (!%p1130_p11) }
 0x14a   : > { %827 = vst [vmem:[#allocation2 + $0x20] sm:$0xff] %v819_v32  ;;  %v821_v38 = vadd.f32 %v811_v33, %v379_v30  ;;  %v836_v45 = vld [vmem:[#allocation2 + $0x8] sm:$0xff] (!%p1130_p11)  ;;  %v855_v58 = vmul.f32 (!%p1130_p11), %v848_v51, %v835_v44 }
 0x14b   : > { %828 = vst [vmem:[#allocation2 + $0x28] sm:$0xff] %v820_v36  ;;  %v822_v39 = vadd.f32 %v813_v37, %v380_v34  ;;  %v837_v48 = vld [vmem:[#allocation2 + $0x10] sm:$0xff] (!%p1130_p11)  ;;  %v856_v59 = vmul.f32 (!%p1130_p11), %v852_v52, %v836_v45 }
 0x14c   : > { %829 = vst [vmem:[#allocation2 + $0x30] sm:$0xff] %v821_v38  ;;  %v838_v49 = vld [vmem:[#allocation2 + $0x18] sm:$0xff] (!%p1130_p11)  ;;  %v857_v60 = vmul.f32 (!%p1130_p11), %v848_v51, %v837_v48  ;;  %v875_v2 = vadd.f32 (!%p1130_p11), %v868_v53, %v855_v58 }
 0x14d   : > { %830 = vst [vmem:[#allocation2 + $0x38] sm:$0xff] %v822_v39  ;;  %v858_v61 = vmul.f32 (!%p1130_p11), %v852_v52, %v838_v49  ;;  %v876_v3 = vadd.f32 (!%p1130_p11), %v872_v54, %v856_v59 }
 0x14e   : > { %v877_v4 = vadd.f32 %v868_v53, %v857_v60  ;;  %v883_v10 = vmax.f32 %v875_v2, 0.0 }
 0x14f   : > { %v878_v5 = vadd.f32 %v872_v54, %v858_v61  ;;  %v884_v11 = vmax.f32 %v876_v3, 0.0 }
 0x150   : > { %v885_v12 = vmax.f32 %v877_v4, 0.0 }
 0x151   : > { %v839_v50 = vld [vmem:[#allocation2 + $0x20] sm:$0xff]  ;;  %v886_v13 = vmax.f32 %v878_v5, 0.0  ;;  %v1141_v18 = vpack.c.bf16 %v884_v11, %v883_v10 }
 0x152   : > { %v840_v55 = vld [vmem:[#allocation2 + $0x28] sm:$0xff]  ;;  %v859_v62 = vmul.f32 %v848_v51, %v839_v50 }
 0x153   : > { %v841_v56 = vld [vmem:[#allocation2 + $0x30] sm:$0xff]  ;;  %v860_v63 = vmul.f32 %v852_v52, %v840_v55  ;;  %v1142_v19 = vpack.c.bf16 %v886_v13, %v885_v12  ;;  %915 = vst [vmem:[%s1493_s4] sm:$0xff] %v1141_v18 }
 0x154   : > { %v842_v57 = vld [vmem:[#allocation2 + $0x38] sm:$0xff]  ;;  %v861_v0 = vmul.f32 %v848_v51, %v841_v56  ;;  %v879_v6 = vadd.f32 %v868_v53, %v859_v62 }
 0x155   : > { %v862_v1 = vmul.f32 %v852_v52, %v842_v57  ;;  %v880_v7 = vadd.f32 %v872_v54, %v860_v63  ;;  %916 = vst [vmem:[%s1493_s4 + $0x8] sm:$0xff] %v1142_v19 }
 0x156   : > { %v881_v8 = vadd.f32 %v868_v53, %v861_v0  ;;  %v887_v14 = vmax.f32 %v879_v6, 0.0 }
 0x157   : > { %v882_v9 = vadd.f32 %v872_v54, %v862_v1  ;;  %v888_v15 = vmax.f32 %v880_v7, 0.0 }
 0x158   : > { %v889_v16 = vmax.f32 %v881_v8, 0.0 }
 0x159   : > { %v890_v17 = vmax.f32 %v882_v9, 0.0  ;;  %v1143_v20 = vpack.c.bf16 %v888_v15, %v887_v14 }
 0x15b   : > { %v1144_v21 = vpack.c.bf16 %v890_v17, %v889_v16  ;;  %917 = vst [vmem:[%s1493_s4 + $0x10] sm:$0xff] %v1143_v20 }
 0x15d   : > { %918 = vst [vmem:[%s1493_s4 + $0x18] sm:$0xff] %v1144_v21 }
 0x15e PF: > { %s14_s19 = sadd.s32 1, %s1315_s19   ;;  %s1494_s15 = smov %s1303_s16 }
 0x15f   : > { %p11_p12 = scmp.ge.s32.totalorder %s14_s19, 5   ;;  %s1495_s16 = smov %s1379_s23 }
 0x160   : > { %s1496_s17 = smov %s1311_s18  ;;  %s1497_s18 = smov %s1499_s20 }
 0x161   :  { %13 = sbr.rel (!%p11_p12) target bundleno = 3 (0x3), region = 120 }

// kernel: _lambda_.19
= control target key start
LH: loop header
LB: loop body
LE: loop exit
PB: predicated region body
PF: predicated region fallthrough
CT: control target
= control target key end

     0   :  { %v371_v1 = vmov 0   ;;  %v232_v19 = vlaneseq  ;;  %s469_s1 = inlined_call_operand.vmem [shape: bf16[128,256], index: 1, kind: input, shape index: {}]   ;;  %s470_s0 = inlined_call_operand.vmem [shape: bf16[32,128], index: 0, kind: input, shape index: {}]   ;;  %s471_s2 = inlined_call_operand.vmem [shape: f32[1,256], index: 2, kind: input, shape index: {}]   ;;  %s472_s3 = inlined_call_operand.vmem [shape: f32[1,256], index: 3, kind: input, shape index: {}]   ;;  %s473_s4 = inlined_call_operand.vmem [shape: bf16[32,256], index: 4, kind: output, shape index: {}]  }
   0x1   :  { %v345_v0 = vld [vmem:[%s469_s1 + $0x4] ss:$8 sps:$4 sm:$0xff]   ;;  %182 = vmatprep.mubr.bf16.mxu0 %v371_v1  ;;  %192 = vmatprep.mubr.bf16.mxu1 %v371_v1  ;;  %v347_v2 = vld [vmem:[%s469_s1] ss:$8 sps:$4 sm:$0xff]   ;;  %v348_v3 = vld [vmem:[%s469_s1 + $0x14] ss:$8 sps:$4 sm:$0xff]  }
   0x2   :  { %150 = vmatprep.subr.bf16.mxu0 %v345_v0  ;;  %328 = vmatprep.subr.bf16.mxu1 %v345_v0  ;;  %v350_v4 = vld [vmem:[%s469_s1 + $0x10] ss:$8 sps:$4 sm:$0xff]   ;;  %v351_v5 = vld [vmem:[%s469_s1 + $0x24] ss:$8 sps:$4 sm:$0xff]   ;;  %v353_v6 = vld [vmem:[%s469_s1 + $0x20] ss:$8 sps:$4 sm:$0xff]  }
   0x3   :  { %151 = vmatpush1.bf16.msra.mxu0 %v347_v2  ;;  %336 = vmatpush1.bf16.msra.mxu1 %v347_v2  ;;  %v354_v7 = vld [vmem:[%s469_s1 + $0x34] ss:$8 sps:$4 sm:$0xff]   ;;  %v356_v8 = vld [vmem:[%s469_s1 + $0x30] ss:$8 sps:$4 sm:$0xff]   ;;  %v357_v9 = vld [vmem:[%s469_s1 + $0x44] ss:$8 sps:$4 sm:$0xff]  }
   0x4   :  { %152 = vmatprep.subr.bf16.mxu0 %v348_v3  ;;  %329 = vmatprep.subr.bf16.mxu1 %v348_v3  ;;  %v359_v10 = vld [vmem:[%s469_s1 + $0x40] ss:$8 sps:$4 sm:$0xff]   ;;  %v360_v11 = vld [vmem:[%s469_s1 + $0x54] ss:$8 sps:$4 sm:$0xff]   ;;  %v362_v12 = vld [vmem:[%s469_s1 + $0x50] ss:$8 sps:$4 sm:$0xff]  }
   0x5   :  { %v363_v13 = vld [vmem:[%s469_s1 + $0x64] ss:$8 sps:$4 sm:$0xff]   ;;  %v365_v14 = vld [vmem:[%s469_s1 + $0x60] ss:$8 sps:$4 sm:$0xff]   ;;  %v366_v15 = vld [vmem:[%s469_s1 + $0x74] ss:$8 sps:$4 sm:$0xff]  }
   0x6   :  { %v368_v16 = vld [vmem:[%s469_s1 + $0x70] ss:$8 sps:$4 sm:$0xff]   ;;  %v369_v17 = vld [vmem:[%s470_s0] sm:$0xff]   ;;  %v370_v18 = vld [vmem:[%s470_s0 + $0x8] sm:$0xff]   ;;  %v233_v20 = vshrl.u32 %v232_v19, 7 }
   0x7   :  { %153 = vmatpush1.bf16.msra.mxu0 %v350_v4  ;;  %337 = vmatpush1.bf16.msra.mxu1 %v350_v4  ;;  %v230_v22 = vld [vmem:[%s471_s2] sm:$0x3] }
   0x8   :  { %154 = vmatprep.subr.bf16.mxu0 %v351_v5  ;;  %330 = vmatprep.subr.bf16.mxu1 %v351_v5  ;;  %v234_v21 = vsub.s32 0, %v233_v20  ;;  %v238_v23 = vsub.s32 1, %v233_v20  ;;  %v250_v24 = vld [vmem:[%s472_s3] sm:$0x3] }
   0xa   :  { %v235_v25 = vrot.slane %v230_v22, %v234_v21  ;;  %v239_v26 = vrot.slane %v230_v22, %v238_v23  ;;  %v255_v27 = vrot.slane %v250_v24, %v234_v21  ;;  %v259_v30 = vrot.slane %v250_v24, %v238_v23 }
   0xb   :  { %155 = vmatpush1.bf16.msra.mxu0 %v353_v6  ;;  %338 = vmatpush1.bf16.msra.mxu1 %v353_v6 }
   0xc   :  { %156 = vmatprep.subr.bf16.mxu0 %v354_v7  ;;  %331 = vmatprep.subr.bf16.mxu1 %v354_v7 }
   0xf   :  { %157 = vmatpush1.bf16.msra.mxu0 %v356_v8  ;;  %339 = vmatpush1.bf16.msra.mxu1 %v356_v8 }
  0x10   :  { %158 = vmatprep.subr.bf16.mxu0 %v357_v9  ;;  %332 = vmatprep.subr.bf16.mxu1 %v357_v9 }
  0x13   :  { %159 = vmatpush1.bf16.msra.mxu0 %v359_v10  ;;  %340 = vmatpush1.bf16.msra.mxu1 %v359_v10 }
  0x14   :  { %160 = vmatprep.subr.bf16.mxu0 %v360_v11  ;;  %333 = vmatprep.subr.bf16.mxu1 %v360_v11 }
  0x17   :  { %161 = vmatpush1.bf16.msra.mxu0 %v362_v12  ;;  %341 = vmatpush1.bf16.msra.mxu1 %v362_v12 }
  0x18   :  { %162 = vmatprep.subr.bf16.mxu0 %v363_v13  ;;  %334 = vmatprep.subr.bf16.mxu1 %v363_v13 }
  0x1b   :  { %163 = vmatpush1.bf16.msra.mxu0 %v365_v14  ;;  %342 = vmatpush1.bf16.msra.mxu1 %v365_v14 }
  0x1c   :  { %164 = vmatprep.subr.bf16.mxu0 %v366_v15  ;;  %335 = vmatprep.subr.bf16.mxu1 %v366_v15 }
  0x1f   :  { %165 = vmatpush1.bf16.msra.mxu0 %v368_v16  ;;  %343 = vmatpush1.bf16.msra.mxu1 %v368_v16 }
  0x22   :  { %183 = vmatmul.mubr.bf16.vlgmr.msra.gmra.mrb[0].mxu0 %v369_v17  ;;  %193 = vmatmul.mubr.bf16.vlgmr.msra.gmra.mrb[0].mxu1 %v370_v18 }
  0xf5   :  { %v184_v28 = vpop.f32.mrb[0].mxu0  ;;  %v194_v29 = vpop.f32.mrb[0].mxu1 }
  0xf6   :  { %v242_v31 = vmul.f32 %v235_v25, %v184_v28  ;;  %v246_v32 = vmul.f32 %v235_v25, %v194_v29  ;;  %v186_v33 = vpop.f32.mrb[1].mxu0  ;;  %v196_v34 = vpop.f32.mrb[1].mxu1 }
  0xf7   :  { %v243_v35 = vmul.f32 %v239_v26, %v186_v33  ;;  %v247_v36 = vmul.f32 %v239_v26, %v196_v34  ;;  %v188_v37 = vpop.f32.mrb[2].mxu0  ;;  %v198_v38 = vpop.f32.mrb[2].mxu1 }
  0xf8   :  { %v262_v39 = vadd.f32 %v255_v27, %v242_v31  ;;  %v266_v40 = vadd.f32 %v255_v27, %v246_v32  ;;  %v244_v41 = vmul.f32 %v235_v25, %v188_v37  ;;  %v248_v42 = vmul.f32 %v235_v25, %v198_v38  ;;  %v190_v43 = vpop.f32.mrb[3].mxu0  ;;  %v200_v44 = vpop.f32.mrb[3].mxu1 }
  0xf9   :  { %v263_v45 = vadd.f32 %v259_v30, %v243_v35  ;;  %v267_v46 = vadd.f32 %v259_v30, %v247_v36  ;;  %v245_v47 = vmul.f32 %v239_v26, %v190_v43  ;;  %v249_v48 = vmul.f32 %v239_v26, %v200_v44 }
  0xfa   :  { %v264_v49 = vadd.f32 %v255_v27, %v244_v41  ;;  %v268_v50 = vadd.f32 %v255_v27, %v248_v42 }
  0xfb   :  { %v324_v51 = vpack.c.bf16 %v263_v45, %v262_v39  ;;  %v326_v52 = vpack.c.bf16 %v267_v46, %v266_v40  ;;  %v265_v53 = vadd.f32 %v259_v30, %v245_v47  ;;  %v269_v54 = vadd.f32 %v259_v30, %v249_v48 }
  0xfd   :  { %294 = vst [vmem:[%s473_s4] sm:$0xff] %v324_v51  ;;  %296 = vst [vmem:[%s473_s4 + $0x10] sm:$0xff] %v326_v52  ;;  %v325_v55 = vpack.c.bf16 %v265_v53, %v264_v49  ;;  %v327_v56 = vpack.c.bf16 %v269_v54, %v268_v50 }
  0xff   :  { %295 = vst [vmem:[%s473_s4 + $0x8] sm:$0xff] %v325_v55  ;;  %297 = vst [vmem:[%s473_s4 + $0x18] sm:$0xff] %v327_v56 }

// kernel: _lambda_.21
= control target key start
LH: loop header
LB: loop body
LE: loop exit
PB: predicated region body
PF: predicated region fallthrough
CT: control target
= control target key end

     0   :  { %s1459_s18 = smov 0   ;;  %s1461_s19 = smov 0   ;;  %s1616_s0 = inlined_call_operand.vmem [shape: bf16[32,2304], index: 0, kind: input, shape index: {}]   ;;  %s1617_s1 = inlined_call_operand.vmem [shape: bf16[2304,256], index: 1, kind: input, shape index: {}]   ;;  %s1618_s2 = inlined_call_operand.vmem [shape: f32[1,256], index: 2, kind: input, shape index: {}]   ;;  %s1619_s3 = inlined_call_operand.vmem [shape: f32[1,256], index: 3, kind: input, shape index: {}]   ;;  %s1620_s4 = inlined_call_operand.vmem [shape: bf16[32,256], index: 4, kind: input, shape index: {}]   ;;  %s1621_s5 = inlined_call_operand.vmem [shape: bf16[32,256], index: 5, kind: output, shape index: {}]  }
   0x1   :  { %s1463_s20 = smov 0   ;;  %s1465_s21 = smov 0  }
   0x2   :  { %s1467_s22 = smov 0  }
   0x3 LB: > { %s27_s23 = sadd.s32 1, %s1421_s21  ;;  %p50_p1 = scmp.ne.s32.totalorder %s1413_s19, %s1409_s18  ;;  %s1425_s22 = sphi %s1467_s22, %s15_s22   ;;  %s1421_s21 = sphi %s1465_s21, %s1625_s21   ;;  %s1417_s20 = sphi %s1463_s20, %s1624_s20   ;;  %s1413_s19 = sphi %s1461_s19, %s1623_s19   ;;  %s1409_s18 = sphi %s1459_s18, %s1622_s18  }
   0x4   : > { %p28_p0 = scmp.ge.s32.totalorder %s27_s23, 6  ;;  %p51_p2 = scmp.eq.s32.totalorder %s1425_s22, 0 }
   0x5   : > { %s43_s25 = sadd.s32 1, %s1413_s19  ;;  %p1172_p5 = scmp.ge.s32.totalorder %s1425_s22, 6 }
   0x6   : > { %s1627_s23 = smov (%p28_p0, %s27_s23), 0  ;;  %p52_p3 = por %p51_p2, %p50_p1 }
   0x7   : > { %s39_s24 = ssub.s32 %s1421_s21, %s1627_s23  ;;  %243 = sbr.rel (%p1172_p5) target bundleno = 23 (0x17), region = 28 }
   0x8   : > { %p41_p4 = scmp.eq.s32.totalorder %s39_s24, 0 }
   0xa   : > { %s1494_s26 = scalar_select %p41_p4, %s1413_s19, %s43_s25  }
   0xe   : > { %246 = sbr.rel (!%p52_p3) target bundleno = 23 (0x17), region = 32  ;;  %s248_s27 = sand.u32 (%p52_p3), 1, %s1413_s19  }
   0xf   : > { %s1249_s28 = smul.u32 (%p52_p3), 12, %s1421_s21 }
  0x10   : > { %s1263_s29 = smul.u32 (%p52_p3), 48, %s248_s27 }
  0x11   : > { %s256_s7 = scalar_lea.vmem (%p52_p3), %s1616_s0, %s1249_s28 }
  0x12   : > { %v271_v0 = vld [vmem:[%s256_s7] sm:$0xff] (%p52_p3)  ;;  %v273_v1 = vld [vmem:[%s256_s7 + $0x48] sm:$0xff] (%p52_p3)  ;;  %v275_v2 = vld [vmem:[%s256_s7 + $0x90] sm:$0xff] (%p52_p3)  ;;  %s250_s8 = scalar_lea.vmem (%p52_p3), [#allocation3], %s1263_s29 }
  0x13   : > { %272 = vst [vmem:[%s250_s8] sm:$0xff] (%p52_p3), %v271_v0  ;;  %274 = vst [vmem:[%s250_s8 + $0xc] sm:$0xff] (%p52_p3), %v273_v1  ;;  %v277_v3 = vld [vmem:[%s256_s7 + $0xd8] sm:$0xff] (%p52_p3)  ;;  %v1174_v4 = vld [vmem:[%s256_s7 + $0x8] sm:$0xf] (%p52_p3) }
  0x14   : > { %276 = vst [vmem:[%s250_s8 + $0x18] sm:$0xff] (%p52_p3), %v275_v2  ;;  %v1176_v5 = vld [vmem:[%s256_s7 + $0x50] sm:$0xf] (%p52_p3)  ;;  %278 = vst [vmem:[%s250_s8 + $0x24] sm:$0xff] (%p52_p3), %v277_v3  ;;  %v1178_v6 = vld [vmem:[%s256_s7 + $0x98] sm:$0xf] (%p52_p3) }
  0x15   : > { %1175 = vst [vmem:[%s250_s8 + $0x8] sm:$0xf] %v1174_v4  ;;  %1177 = vst [vmem:[%s250_s8 + $0x14] sm:$0xf] %v1176_v5  ;;  %v1180_v7 = vld [vmem:[%s256_s7 + $0xe0] sm:$0xf] }
  0x16   : > { %1179 = vst [vmem:[%s250_s8 + $0x20] sm:$0xf] %v1178_v6  ;;  %1181 = vst [vmem:[%s250_s8 + $0x2c] sm:$0xf] %v1180_v7 }
  0x17 PF: > { %p1182_p6 = scmp.ge.s32.totalorder %s1425_s22, 1  ;;  %p313_p7 = scmp.lt.s32.totalorder %s1425_s22, 7 }
  0x19   : > { %p314_p8 = pnand %p1182_p6, %p313_p7 }
  0x1a   : > { %s320_s9 = sand.u32 (!%p314_p8), 1, %s1409_s18   ;;  %s382_s10 = smul.u32 (!%p314_p8), 48, %s1417_s20 }
  0x1b   : > { %317 = sbr.rel (%p314_p8) target bundleno = 352 (0x160), region = 62  ;;  %p1185_p10 = scmp.ne.s32.totalorder (!%p314_p8), %s1417_s20, 0 }
  0x1c   : > { %s1264_s11 = smul.u32 (!%p314_p8), 48, %s320_s9  ;;  %p384_p9 = scmp.lt.s32.totalorder (!%p314_p8), %s382_s10, 287 }
  0x1e   : > { %s1511_s16 = scalar_lea.vmem (!%p314_p8), [#allocation3], %s1264_s11 }
  0x22   : > { %s1629_s10 = smov (!%p384_p9, %s382_s10), 287  ;;  %432 = sbr.rel (%p1185_p10) target bundleno = 41 (0x29), region = 70 }
  0x23   : > { %s1250_s12 = sshll.u32 %s1629_s10, 3  ;;  %v1427_v8 = vmov (!%p1185_p10), 0.0  }
  0x24   : > { %s1509_s15 = scalar_lea.vmem %s1617_s1, %s1250_s12  ;;  %433 = vst [vmem:[#allocation2] sm:$0xff] (!%p1185_p10), %v1427_v8  ;;  %434 = vst [vmem:[#allocation2 + $0x8] sm:$0xff] (!%p1185_p10), %v1427_v8 }
  0x25   : > { %435 = vst [vmem:[#allocation2 + $0x10] sm:$0xff] (!%p1185_p10), %v1427_v8  ;;  %436 = vst [vmem:[#allocation2 + $0x18] sm:$0xff] (!%p1185_p10), %v1427_v8 }
  0x26   : > { %437 = vst [vmem:[#allocation2 + $0x20] sm:$0xff] (!%p1185_p10), %v1427_v8  ;;  %438 = vst [vmem:[#allocation2 + $0x28] sm:$0xff] (!%p1185_p10), %v1427_v8 }
  0x27   : > { %439 = vst [vmem:[#allocation2 + $0x30] sm:$0xff] (!%p1185_p10), %v1427_v8  ;;  %440 = vst [vmem:[#allocation2 + $0x38] sm:$0xff] (!%p1185_p10), %v1427_v8 }
  0x29 PF: > { %v1307_v9 = vld [vmem:[%s1509_s15 + $0x4] ss:$8 sps:$4 sm:$0xff]   ;;  %v1309_v10 = vld [vmem:[%s1509_s15] ss:$8 sps:$4 sm:$0xff]   ;;  %v1428_v11 = vmov 0   ;;  %p1240_p11 = scmp.ne.s32.totalorder %s1417_s20, 5 }
  0x2a   : > { %862 = vmatprep.mubr.bf16.mxu0 %v1428_v11  ;;  %777 = vmatprep.subr.bf16.mxu1 %v1307_v9  ;;  %v1310_v12 = vld [vmem:[%s1509_s15 + $0x14] ss:$8 sps:$4 sm:$0xff]   ;;  %v1312_v13 = vld [vmem:[%s1509_s15 + $0x10] ss:$8 sps:$4 sm:$0xff]   ;;  %v1313_v14 = vld [vmem:[%s1509_s15 + $0x24] ss:$8 sps:$4 sm:$0xff]  }
  0x2b   : > { %778 = vmatpush1.bf16.msra.mxu1 %v1309_v10  ;;  %v1315_v15 = vld [vmem:[%s1509_s15 + $0x20] ss:$8 sps:$4 sm:$0xff]   ;;  %v1316_v16 = vld [vmem:[%s1509_s15 + $0x34] ss:$8 sps:$4 sm:$0xff]   ;;  %v1318_v17 = vld [vmem:[%s1509_s15 + $0x30] ss:$8 sps:$4 sm:$0xff]  }
  0x2c   : > { %779 = vmatprep.subr.bf16.mxu1 %v1310_v12  ;;  %v1331_v18 = vld [vmem:[%s1509_s15 + $0x104] ss:$8 sps:$4 sm:$0xff]   ;;  %v1333_v19 = vld [vmem:[%s1509_s15 + $0x100] ss:$8 sps:$4 sm:$0xff]   ;;  %v1337_v21 = vld [vmem:[%s1509_s15 + $0x114] ss:$8 sps:$4 sm:$0xff]  }
  0x2d   : > { %v1319_v20 = vld [vmem:[%s1509_s15 + $0x44] ss:$8 sps:$4 sm:$0xff]   ;;  %830 = vmatprep.subr.bf16.mxu0 %v1331_v18  ;;  %v1339_v22 = vld [vmem:[%s1509_s15 + $0x110] ss:$8 sps:$4 sm:$0xff]   ;;  %v1321_v23 = vld [vmem:[%s1509_s15 + $0x40] ss:$8 sps:$4 sm:$0xff]  }
  0x2e   : > { %831 = vmatpush1.bf16.msra.mxu0 %v1333_v19  ;;  %v1322_v24 = vld [vmem:[%s1509_s15 + $0x54] ss:$8 sps:$4 sm:$0xff]   ;;  %v1343_v25 = vld [vmem:[%s1509_s15 + $0x124] ss:$8 sps:$4 sm:$0xff]   ;;  %v1345_v26 = vld [vmem:[%s1509_s15 + $0x120] ss:$8 sps:$4 sm:$0xff]  }
  0x2f   : > { %780 = vmatpush1.bf16.msra.mxu1 %v1312_v13  ;;  %832 = vmatprep.subr.bf16.mxu0 %v1337_v21  ;;  %v1324_v27 = vld [vmem:[%s1509_s15 + $0x50] ss:$8 sps:$4 sm:$0xff]   ;;  %v1349_v28 = vld [vmem:[%s1509_s15 + $0x134] ss:$8 sps:$4 sm:$0xff]   ;;  %v1325_v29 = vld [vmem:[%s1509_s15 + $0x64] ss:$8 sps:$4 sm:$0xff]  }
  0x30   : > { %781 = vmatprep.subr.bf16.mxu1 %v1313_v14  ;;  %v1351_v30 = vld [vmem:[%s1509_s15 + $0x130] ss:$8 sps:$4 sm:$0xff]   ;;  %v1327_v31 = vld [vmem:[%s1509_s15 + $0x60] ss:$8 sps:$4 sm:$0xff]   ;;  %v1355_v32 = vld [vmem:[%s1509_s15 + $0x144] ss:$8 sps:$4 sm:$0xff]  }
  0x31   : > { %v1328_v33 = vld [vmem:[%s1509_s15 + $0x74] ss:$8 sps:$4 sm:$0xff]   ;;  %v1357_v34 = vld [vmem:[%s1509_s15 + $0x140] ss:$8 sps:$4 sm:$0xff]   ;;  %v1330_v35 = vld [vmem:[%s1509_s15 + $0x70] ss:$8 sps:$4 sm:$0xff]  }
  0x32   : > { %833 = vmatpush1.bf16.msra.mxu0 %v1339_v22  ;;  %v1361_v36 = vld [vmem:[%s1509_s15 + $0x154] ss:$8 sps:$4 sm:$0xff]   ;;  %v1334_v37 = vld [vmem:[%s1509_s15 + $0x84] ss:$8 sps:$4 sm:$0xff]   ;;  %v1363_v38 = vld [vmem:[%s1509_s15 + $0x150] ss:$8 sps:$4 sm:$0xff]  }
  0x33   : > { %782 = vmatpush1.bf16.msra.mxu1 %v1315_v15  ;;  %834 = vmatprep.subr.bf16.mxu0 %v1343_v25  ;;  %v1336_v39 = vld [vmem:[%s1509_s15 + $0x80] ss:$8 sps:$4 sm:$0xff]   ;;  %v1367_v40 = vld [vmem:[%s1509_s15 + $0x164] ss:$8 sps:$4 sm:$0xff]   ;;  %v1340_v41 = vld [vmem:[%s1509_s15 + $0x94] ss:$8 sps:$4 sm:$0xff]  }
  0x34   : > { %783 = vmatprep.subr.bf16.mxu1 %v1316_v16  ;;  %v1342_v42 = vld [vmem:[%s1509_s15 + $0x90] ss:$8 sps:$4 sm:$0xff]   ;;  %v1369_v43 = vld [vmem:[%s1509_s15 + $0x160] ss:$8 sps:$4 sm:$0xff]   ;;  %v1373_v45 = vld [vmem:[%s1509_s15 + $0x174] ss:$8 sps:$4 sm:$0xff]  }
  0x35   : > { %v1382_v44 = vld [vmem:[%s1511_s16 + $0x4] ss:$12 sps:$4 sm:$0xff]   ;;  %v1379_v50 = vld [vmem:[%s1511_s16 + $0x8] ss:$12 sps:$4 sm:$0xff]   ;;  %v1383_v55 = vld [vmem:[%s1511_s16 + $0x20] ss:$12 sps:$4 sm:$0xff]  }
  0x36   : > { %835 = vmatpush1.bf16.msra.mxu0 %v1345_v26  ;;  %v1346_v46 = vld [vmem:[%s1509_s15 + $0xa4] ss:$8 sps:$4 sm:$0xff]   ;;  %809 = vmatprep.mubr.bf16.mxu1 %v1382_v44  ;;  %v1375_v47 = vld [vmem:[%s1509_s15 + $0x170] ss:$8 sps:$4 sm:$0xff]   ;;  %v1348_v48 = vld [vmem:[%s1509_s15 + $0xa0] ss:$8 sps:$4 sm:$0xff]  }
  0x37   : > { %784 = vmatpush1.bf16.msra.mxu1 %v1318_v17  ;;  %836 = vmatprep.subr.bf16.mxu0 %v1349_v28  ;;  %v1352_v49 = vld [vmem:[%s1509_s15 + $0xb4] ss:$8 sps:$4 sm:$0xff]   ;;  %v1354_v51 = vld [vmem:[%s1509_s15 + $0xb0] ss:$8 sps:$4 sm:$0xff]   ;;  %v1358_v52 = vld [vmem:[%s1509_s15 + $0xc4] ss:$8 sps:$4 sm:$0xff]  }
  0x38   : > { %785 = vmatprep.subr.bf16.mxu1 %v1319_v20  ;;  %v1360_v53 = vld [vmem:[%s1509_s15 + $0xc0] ss:$8 sps:$4 sm:$0xff]   ;;  %v1364_v54 = vld [vmem:[%s1509_s15 + $0xd4] ss:$8 sps:$4 sm:$0xff]   ;;  %v1366_v56 = vld [vmem:[%s1509_s15 + $0xd0] ss:$8 sps:$4 sm:$0xff]  }
  0x39   : > { %v1370_v57 = vld [vmem:[%s1509_s15 + $0xe4] ss:$8 sps:$4 sm:$0xff]   ;;  %v1372_v58 = vld [vmem:[%s1509_s15 + $0xe0] ss:$8 sps:$4 sm:$0xff]   ;;  %v1376_v59 = vld [vmem:[%s1509_s15 + $0xf4] ss:$8 sps:$4 sm:$0xff]  }
  0x3a   : > { %837 = vmatpush1.bf16.msra.mxu0 %v1351_v30  ;;  %v1378_v60 = vld [vmem:[%s1509_s15 + $0xf0] ss:$8 sps:$4 sm:$0xff]   ;;  %v441_v8 = vld [vmem:[#allocation2] sm:$0xff] }
  0x3b   : > { %786 = vmatpush1.bf16.msra.mxu1 %v1321_v23  ;;  %838 = vmatprep.subr.bf16.mxu0 %v1355_v32  ;;  %v1380_v61 = vld [vmem:[%s1511_s16] ss:$12 sps:$4 sm:$0xff]   ;;  %v1384_v62 = vld [vmem:[%s1511_s16 + $0x1c] ss:$12 sps:$4 sm:$0xff]   ;;  %v1386_v63 = vld [vmem:[%s1511_s16 + $0x18] ss:$12 sps:$4 sm:$0xff]  }
  0x3c   : > { %787 = vmatprep.subr.bf16.mxu1 %v1322_v24  ;;  %v443_v14 = vld [vmem:[#allocation2 + $0x10] sm:$0xff]  ;;  %v444_v18 = vld [vmem:[#allocation2 + $0x18] sm:$0xff]  ;;  %v445_v24 = vld [vmem:[#allocation2 + $0x20] sm:$0xff] }
  0x3d   : > { %v447_v30 = vld [vmem:[#allocation2 + $0x30] sm:$0xff] }
  0x3e   : > { %839 = vmatpush1.bf16.msra.mxu0 %v1357_v34  ;;  %v448_v34 = vld [vmem:[#allocation2 + $0x38] sm:$0xff] }
  0x3f   : > { %788 = vmatpush1.bf16.msra.mxu1 %v1324_v27  ;;  %840 = vmatprep.subr.bf16.mxu0 %v1361_v36  ;;  %v446_v27 = vld [vmem:[#allocation2 + $0x28] sm:$0xff] }
  0x40   : > { %789 = vmatprep.subr.bf16.mxu1 %v1325_v29 }
  0x42   : > { %841 = vmatpush1.bf16.msra.mxu0 %v1363_v38 }
  0x43   : > { %790 = vmatpush1.bf16.msra.mxu1 %v1327_v31  ;;  %842 = vmatprep.subr.bf16.mxu0 %v1367_v40  ;;  %v913_v40 = vlaneseq (!%p1240_p11) }
  0x44   : > { %791 = vmatprep.subr.bf16.mxu1 %v1328_v33 }
  0x46   : > { %843 = vmatpush1.bf16.msra.mxu0 %v1369_v43  ;;  %v952_v43 = vld [vmem:[%s1620_s4 + $0x8] sm:$0xff] (!%p1240_p11) }
  0x47   : > { %792 = vmatpush1.bf16.msra.mxu1 %v1330_v35  ;;  %844 = vmatprep.subr.bf16.mxu0 %v1373_v45  ;;  %v911_v45 = vld [vmem:[%s1618_s2] sm:$0x3] (!%p1240_p11) }
  0x48   : > { %793 = vmatprep.subr.bf16.mxu1 %v1334_v37 }
  0x4a   : > { %845 = vmatpush1.bf16.msra.mxu0 %v1375_v47 }
  0x4b   : > { %794 = vmatpush1.bf16.msra.mxu1 %v1336_v39 }
  0x4c   : > { %795 = vmatprep.subr.bf16.mxu1 %v1340_v41  ;;  %v914_v41 = vshrl.u32 (!%p1240_p11), %v913_v40, 7 }
  0x4d   : > { %863 = vmatmul.mubr.bf16.vlgmr.msra.gmra.mrb[0].mxu0 %v1379_v50  ;;  %v953_v50 = vld [vmem:[%s1620_s4 + $0x10] sm:$0xff] (!%p1240_p11) }
  0x4e   : > { %872 = vmatprep.mubr.bf16.mxu0 %v1428_v11  ;;  %v442_v11 = vld [vmem:[#allocation2 + $0x8] sm:$0xff] }
  0x4f   : > { %796 = vmatpush1.bf16.msra.mxu1 %v1342_v42  ;;  %v951_v42 = vld [vmem:[%s1620_s4] sm:$0xff] (!%p1240_p11) }
  0x50   : > { %797 = vmatprep.subr.bf16.mxu1 %v1346_v46  ;;  %v931_v46 = vld [vmem:[%s1619_s3] sm:$0x3] (!%p1240_p11) }
  0x53   : > { %798 = vmatpush1.bf16.msra.mxu1 %v1348_v48  ;;  %v915_v48 = vsub.s32 (!%p1240_p11), 0, %v914_v41 }
  0x54   : > { %799 = vmatprep.subr.bf16.mxu1 %v1352_v49  ;;  %v919_v49 = vsub.s32 (!%p1240_p11), 1, %v914_v41 }
  0x55   : > { %873 = vmatmul.mubr.bf16.gmra.mrb[4].mxu0 %v1383_v55 }
  0x57   : > { %800 = vmatpush1.bf16.msra.mxu1 %v1354_v51  ;;  %v954_v51 = vld [vmem:[%s1620_s4 + $0x18] sm:$0xff] (!%p1240_p11) }
  0x58   : > { %801 = vmatprep.subr.bf16.mxu1 %v1358_v52  ;;  %v955_v52 = vunpack.c.l.bf16 (!%p1240_p11), %v951_v42 }
  0x5b   : > { %802 = vmatpush1.bf16.msra.mxu1 %v1360_v53  ;;  %v956_v53 = vunpack.c.h.bf16 (!%p1240_p11), %v951_v42 }
  0x5c   : > { %803 = vmatprep.subr.bf16.mxu1 %v1364_v54 }
  0x5f   : > { %804 = vmatpush1.bf16.msra.mxu1 %v1366_v56  ;;  %v957_v56 = vunpack.c.l.bf16 (!%p1240_p11), %v952_v43 }
  0x60   : > { %805 = vmatprep.subr.bf16.mxu1 %v1370_v57  ;;  %v958_v57 = vunpack.c.h.bf16 (!%p1240_p11), %v952_v43 }
  0x63   : > { %806 = vmatpush1.bf16.msra.mxu1 %v1372_v58 }
  0x64   : > { %807 = vmatprep.subr.bf16.mxu1 %v1376_v59  ;;  %v916_v59 = vrot.slane (!%p1240_p11), %v911_v45, %v915_v48 }
  0x67   : > { %808 = vmatpush1.bf16.msra.mxu1 %v1378_v60  ;;  %v920_v60 = vrot.slane (!%p1240_p11), %v911_v45, %v919_v49 }
  0x6a   : > { %810 = vmatmul.mubr.bf16.vlgmr.msra.gmra.mrb[0].mxu1 %v1380_v61  ;;  %v936_v61 = vrot.slane (!%p1240_p11), %v931_v46, %v915_v48 }
  0x6b   : > { %819 = vmatprep.mubr.bf16.mxu1 %v1384_v62  ;;  %v940_v62 = vrot.slane (!%p1240_p11), %v931_v46, %v919_v49 }
  0x72   : > { %820 = vmatmul.mubr.bf16.gmra.mrb[4].mxu1 %v1386_v63 }
 0x120   : > { %v864_v0 = vpop.f32.mrb[0].mxu0 }
 0x121   : > { %v866_v1 = vpop.f32.mrb[1].mxu0 }
 0x122   : > { %v868_v2 = vpop.f32.mrb[2].mxu0 }
 0x123   : > { %v870_v3 = vpop.f32.mrb[3].mxu0 }
 0x128   : > { %v874_v4 = vpop.f32.mrb[4].mxu0 }
 0x129   : > { %v876_v5 = vpop.f32.mrb[5].mxu0 }
 0x12a   : > { %v878_v6 = vpop.f32.mrb[6].mxu0 }
 0x12b   : > { %v880_v7 = vpop.f32.mrb[7].mxu0 }
 0x13d   : > { %v811_v9 = vpop.f32.mrb[0].mxu1 }
 0x13e   : > { %v865_v10 = vadd.f32 %v864_v0, %v811_v9  ;;  %v813_v12 = vpop.f32.mrb[1].mxu1 }
 0x13f   : > { %v867_v13 = vadd.f32 %v866_v1, %v813_v12  ;;  %v815_v15 = vpop.f32.mrb[2].mxu1 }
 0x140   : > { %v883_v16 = vadd.f32 %v865_v10, %v441_v8  ;;  %v869_v17 = vadd.f32 %v868_v2, %v815_v15  ;;  %v817_v19 = vpop.f32.mrb[3].mxu1  ;;  %v959_v2 = vunpack.c.l.bf16 (!%p1240_p11), %v953_v50 }
 0x141   : > { %v884_v20 = vadd.f32 %v867_v13, %v442_v11  ;;  %v871_v21 = vadd.f32 %v870_v3, %v817_v19  ;;  %v960_v3 = vunpack.c.h.bf16 (!%p1240_p11), %v953_v50 }
 0x142   : > { %891 = vst [vmem:[#allocation2] sm:$0xff] %v883_v16  ;;  %v885_v22 = vadd.f32 %v869_v17, %v443_v14 }
 0x143   : > { %892 = vst [vmem:[#allocation2 + $0x8] sm:$0xff] %v884_v20  ;;  %v886_v23 = vadd.f32 %v871_v21, %v444_v18 }
 0x144   : > { %893 = vst [vmem:[#allocation2 + $0x10] sm:$0xff] %v885_v22 }
 0x145   : > { %894 = vst [vmem:[#allocation2 + $0x18] sm:$0xff] %v886_v23  ;;  %v821_v25 = vpop.f32.mrb[4].mxu1 }
 0x146   : > { %v875_v26 = vadd.f32 %v874_v4, %v821_v25  ;;  %v823_v28 = vpop.f32.mrb[5].mxu1  ;;  %v961_v4 = vunpack.c.l.bf16 (!%p1240_p11), %v954_v51 }
 0x147   : > { %v877_v29 = vadd.f32 %v876_v5, %v823_v28  ;;  %v825_v31 = vpop.f32.mrb[6].mxu1  ;;  %902 = sbr.rel (%p1240_p11) target bundleno = 352 (0x160), region = 74  ;;  %v962_v5 = vunpack.c.h.bf16 (!%p1240_p11), %v954_v51 }
 0x148   : > { %v887_v32 = vadd.f32 %v875_v26, %v445_v24  ;;  %v879_v33 = vadd.f32 %v878_v6, %v825_v31  ;;  %v827_v35 = vpop.f32.mrb[7].mxu1 }
 0x149   : > { %v888_v36 = vadd.f32 %v877_v29, %v446_v27  ;;  %v881_v37 = vadd.f32 %v880_v7, %v827_v35  ;;  %v903_v44 = vld [vmem:[#allocation2] sm:$0xff] (!%p1240_p11) }
 0x14a   : > { %895 = vst [vmem:[#allocation2 + $0x20] sm:$0xff] %v887_v32  ;;  %v889_v38 = vadd.f32 %v879_v33, %v447_v30  ;;  %v904_v47 = vld [vmem:[#allocation2 + $0x8] sm:$0xff] (!%p1240_p11)  ;;  %v923_v6 = vmul.f32 (!%p1240_p11), %v916_v59, %v903_v44 }
 0x14b   : > { %896 = vst [vmem:[#allocation2 + $0x28] sm:$0xff] %v888_v36  ;;  %v890_v39 = vadd.f32 %v881_v37, %v448_v34  ;;  %v905_v54 = vld [vmem:[#allocation2 + $0x10] sm:$0xff] (!%p1240_p11)  ;;  %v924_v7 = vmul.f32 (!%p1240_p11), %v920_v60, %v904_v47 }
 0x14c   : > { %897 = vst [vmem:[#allocation2 + $0x30] sm:$0xff] %v889_v38  ;;  %v906_v55 = vld [vmem:[#allocation2 + $0x18] sm:$0xff] (!%p1240_p11)  ;;  %v925_v8 = vmul.f32 (!%p1240_p11), %v916_v59, %v905_v54  ;;  %v943_v14 = vadd.f32 (!%p1240_p11), %v936_v61, %v923_v6 }
 0x14d   : > { %898 = vst [vmem:[#allocation2 + $0x38] sm:$0xff] %v890_v39  ;;  %v926_v9 = vmul.f32 (!%p1240_p11), %v920_v60, %v906_v55  ;;  %v944_v15 = vadd.f32 (!%p1240_p11), %v940_v62, %v924_v7 }
 0x14e   : > { %v945_v16 = vadd.f32 %v936_v61, %v925_v8  ;;  %v963_v22 = vadd.f32 %v955_v52, %v943_v14 }
 0x14f   : > { %v946_v17 = vadd.f32 %v940_v62, %v926_v9  ;;  %v964_v23 = vadd.f32 %v956_v53, %v944_v15 }
 0x150   : > { %v965_v24 = vadd.f32 %v957_v56, %v945_v16  ;;  %v971_v30 = vmax.f32 %v963_v22, 0.0 }
 0x151   : > { %v907_v58 = vld [vmem:[#allocation2 + $0x20] sm:$0xff]  ;;  %v966_v25 = vadd.f32 %v958_v57, %v946_v17  ;;  %v972_v31 = vmax.f32 %v964_v23, 0.0 }
 0x152   : > { %v908_v63 = vld [vmem:[#allocation2 + $0x28] sm:$0xff]  ;;  %v927_v10 = vmul.f32 %v916_v59, %v907_v58  ;;  %v973_v32 = vmax.f32 %v965_v24, 0.0 }
 0x153   : > { %v909_v0 = vld [vmem:[#allocation2 + $0x30] sm:$0xff]  ;;  %v928_v11 = vmul.f32 %v920_v60, %v908_v63  ;;  %v974_v33 = vmax.f32 %v966_v25, 0.0  ;;  %v1251_v38 = vpack.c.bf16 %v972_v31, %v971_v30 }
 0x154   : > { %v910_v1 = vld [vmem:[#allocation2 + $0x38] sm:$0xff]  ;;  %v929_v12 = vmul.f32 %v916_v59, %v909_v0  ;;  %v947_v18 = vadd.f32 %v936_v61, %v927_v10 }
 0x155   : > { %v930_v13 = vmul.f32 %v920_v60, %v910_v1  ;;  %v948_v19 = vadd.f32 %v940_v62, %v928_v11  ;;  %v1252_v39 = vpack.c.bf16 %v974_v33, %v973_v32  ;;  %1003 = vst [vmem:[%s1621_s5] sm:$0xff] %v1251_v38 }
 0x156   : > { %v949_v20 = vadd.f32 %v936_v61, %v929_v12  ;;  %v967_v26 = vadd.f32 %v959_v2, %v947_v18 }
 0x157   : > { %v950_v21 = vadd.f32 %v940_v62, %v930_v13  ;;  %v968_v27 = vadd.f32 %v960_v3, %v948_v19  ;;  %1004 = vst [vmem:[%s1621_s5 + $0x8] sm:$0xff] %v1252_v39 }
 0x158   : > { %v969_v28 = vadd.f32 %v961_v4, %v949_v20  ;;  %v975_v34 = vmax.f32 %v967_v26, 0.0 }
 0x159   : > { %v970_v29 = vadd.f32 %v962_v5, %v950_v21  ;;  %v976_v35 = vmax.f32 %v968_v27, 0.0 }
 0x15a   : > { %v977_v36 = vmax.f32 %v969_v28, 0.0 }
 0x15b   : > { %v978_v37 = vmax.f32 %v970_v29, 0.0  ;;  %v1253_v40 = vpack.c.bf16 %v976_v35, %v975_v34 }
 0x15d   : > { %v1254_v41 = vpack.c.bf16 %v978_v37, %v977_v36  ;;  %1005 = vst [vmem:[%s1621_s5 + $0x10] sm:$0xff] %v1253_v40 }
 0x15f   : > { %1006 = vst [vmem:[%s1621_s5 + $0x18] sm:$0xff] %v1254_v41 }
 0x160 PF: > { %s15_s22 = sadd.s32 1, %s1425_s22   ;;  %s1622_s18 = smov %s1413_s19 }
 0x161   : > { %p12_p12 = scmp.ge.s32.totalorder %s15_s22, 8   ;;  %s1623_s19 = smov %s1494_s26 }
 0x162   : > { %s1624_s20 = smov %s1421_s21  ;;  %s1625_s21 = smov %s1627_s23 }
 0x163   :  { %14 = sbr.rel (!%p12_p12) target bundleno = 3 (0x3), region = 127 }

// kernel: _lambda_.23
= control target key start
LH: loop header
LB: loop body
LE: loop exit
PB: predicated region body
PF: predicated region fallthrough
CT: control target
= control target key end

     0   :  { %s1394_s15 = smov 0   ;;  %s1396_s16 = smov 0   ;;  %s1666_s0 = inlined_call_operand.vmem [shape: bf16[8,2304], index: 0, kind: input, shape index: {}]   ;;  %s1667_s1 = inlined_call_operand.vmem [shape: bf16[2304,512], index: 1, kind: input, shape index: {}]   ;;  %s1668_s2 = inlined_call_operand.vmem [shape: f32[1,512], index: 2, kind: input, shape index: {}]   ;;  %s1669_s3 = inlined_call_operand.vmem [shape: f32[1,512], index: 3, kind: input, shape index: {}]   ;;  %s1670_s4 = inlined_call_operand.vmem [shape: bf16[8,512], index: 4, kind: output, shape index: {}]  }
   0x1   :  { %s1398_s17 = smov 0   ;;  %s1400_s18 = smov 0  }
   0x2   :  { %s1402_s19 = smov 0   ;;  %s1404_s20 = smov 0  }
   0x3   :  { %s1406_s21 = smov 0  }
   0x4 LB: > { %s26_s22 = sadd.s32 1, %s1357_s19  ;;  %s29_s23 = sadd.s32 1, %s1361_s20  ;;  %s1365_s21 = sphi %s1406_s21, %s14_s21   ;;  %s1361_s20 = sphi %s1404_s20, %s1676_s20   ;;  %s1357_s19 = sphi %s1402_s19, %s1675_s19   ;;  %s1353_s18 = sphi %s1400_s18, %s1674_s18   ;;  %s1349_s17 = sphi %s1398_s17, %s1673_s17   ;;  %s1345_s16 = sphi %s1396_s16, %s1672_s16   ;;  %s1341_s15 = sphi %s1394_s15, %s1671_s15  }
   0x5   : > { %p27_p0 = scmp.ge.s32.totalorder %s26_s22, 6  ;;  %p77_p1 = scmp.ne.s32.totalorder %s1345_s16, %s1341_s15 }
   0x6   : > { %p78_p2 = scmp.eq.s32.totalorder %s1365_s21, 0  ;;  %s70_s27 = sadd.s32 1, %s1345_s16 }
   0x7   : > { %s1678_s22 = smov (%p27_p0, %s26_s22), 0  ;;  %s1680_s23 = smov (!%p27_p0, %s29_s23), %s1361_s20 }
   0x8   : > { %p79_p3 = por %p78_p2, %p77_p1  ;;  %p31_p4 = scmp.ge.s32.totalorder %s1680_s23, 2 }
   0x9   : > { %s65_s24 = ssub.s32 %s1357_s19, %s1678_s22  ;;  %p1108_p6 = scmp.ge.s32.totalorder %s1365_s21, 12 }
   0xa   : > { %s1682_s23 = smov (%p31_p4, %s1680_s23), 0 }
   0xb   : > { %s66_s25 = ssub.s32 %s1361_s20, %s1682_s23  ;;  %183 = sbr.rel (%p1108_p6) target bundleno = 50 (0x32), region = 16 }
   0xc   : > { %s67_s26 = sor.u32 %s66_s25, %s65_s24 }
   0xd   : > { %p68_p5 = scmp.eq.s32.totalorder %s67_s26, 0 }
   0xf   : > { %s1445_s28 = scalar_select %p68_p5, %s1345_s16, %s70_s27  }
  0x12   : > { %199 = sbr.rel (!%p79_p3) target bundleno = 50 (0x32), region = 24  ;;  %s201_s29 = sand.u32 (%p79_p3), 1, %s1345_s16  }
  0x13   : > { %s1176_s30 = smul.u32 (%p79_p3), 384, %s201_s29  ;;  %s1109_s5 = sshll.u32 (%p79_p3), %s1361_s20, 1 }
  0x14   : > { %s1174_s6 = smul.u32 (%p79_p3), 192, %s1357_s19 }
  0x15   : > { %s1459_s12 = scalar_lea.vmem (%p79_p3), [#allocation3], %s1176_s30 }
  0x16   : > { %s207_s7 = sadd.s32 (%p79_p3), %s1174_s6, %s1109_s5 }
  0x17   : > { %s1111_s8 = sshll.u32 (%p79_p3), %s207_s7, 2 }
  0x18   : > { %s1454_s11 = scalar_lea.vmem (%p79_p3), %s1667_s1, %s1111_s8 }
  0x19   : > { %v331_v0 = vld [vmem:[%s1454_s11] sm:$0xff]  ;;  %v333_v1 = vld [vmem:[%s1454_s11 + $0x10] sm:$0xff] }
  0x1a   : > { %v335_v2 = vld [vmem:[%s1454_s11 + $0x20] sm:$0xff]  ;;  %332 = vst [vmem:[%s1459_s12] sm:$0xff] %v331_v0  ;;  %334 = vst [vmem:[%s1459_s12 + $0x8] sm:$0xff] %v333_v1  ;;  %v337_v3 = vld [vmem:[%s1454_s11 + $0x30] sm:$0xff] }
  0x1b   : > { %336 = vst [vmem:[%s1459_s12 + $0x10] sm:$0xff] %v335_v2  ;;  %v339_v4 = vld [vmem:[%s1454_s11 + $0x40] sm:$0xff]  ;;  %v341_v5 = vld [vmem:[%s1454_s11 + $0x50] sm:$0xff]  ;;  %338 = vst [vmem:[%s1459_s12 + $0x18] sm:$0xff] %v337_v3 }
  0x1c   : > { %340 = vst [vmem:[%s1459_s12 + $0x20] sm:$0xff] %v339_v4  ;;  %342 = vst [vmem:[%s1459_s12 + $0x28] sm:$0xff] %v341_v5  ;;  %v343_v6 = vld [vmem:[%s1454_s11 + $0x60] sm:$0xff]  ;;  %v345_v7 = vld [vmem:[%s1454_s11 + $0x70] sm:$0xff] }
  0x1d   : > { %v347_v8 = vld [vmem:[%s1454_s11 + $0x80] sm:$0xff]  ;;  %344 = vst [vmem:[%s1459_s12 + $0x30] sm:$0xff] %v343_v6  ;;  %346 = vst [vmem:[%s1459_s12 + $0x38] sm:$0xff] %v345_v7  ;;  %v349_v9 = vld [vmem:[%s1454_s11 + $0x90] sm:$0xff] }
  0x1e   : > { %348 = vst [vmem:[%s1459_s12 + $0x40] sm:$0xff] %v347_v8  ;;  %v351_v10 = vld [vmem:[%s1454_s11 + $0xa0] sm:$0xff]  ;;  %v353_v11 = vld [vmem:[%s1454_s11 + $0xb0] sm:$0xff]  ;;  %350 = vst [vmem:[%s1459_s12 + $0x48] sm:$0xff] %v349_v9 }
  0x1f   : > { %352 = vst [vmem:[%s1459_s12 + $0x50] sm:$0xff] %v351_v10  ;;  %354 = vst [vmem:[%s1459_s12 + $0x58] sm:$0xff] %v353_v11  ;;  %v355_v12 = vld [vmem:[%s1454_s11 + $0xc0] sm:$0xff]  ;;  %v357_v13 = vld [vmem:[%s1454_s11 + $0xd0] sm:$0xff] }
  0x20   : > { %v359_v14 = vld [vmem:[%s1454_s11 + $0xe0] sm:$0xff]  ;;  %356 = vst [vmem:[%s1459_s12 + $0x60] sm:$0xff] %v355_v12  ;;  %358 = vst [vmem:[%s1459_s12 + $0x68] sm:$0xff] %v357_v13  ;;  %v361_v15 = vld [vmem:[%s1454_s11 + $0xf0] sm:$0xff] }
  0x21   : > { %360 = vst [vmem:[%s1459_s12 + $0x70] sm:$0xff] %v359_v14  ;;  %v363_v16 = vld [vmem:[%s1454_s11 + $0x100] sm:$0xff]  ;;  %v365_v17 = vld [vmem:[%s1454_s11 + $0x110] sm:$0xff]  ;;  %362 = vst [vmem:[%s1459_s12 + $0x78] sm:$0xff] %v361_v15 }
  0x22   : > { %364 = vst [vmem:[%s1459_s12 + $0x80] sm:$0xff] %v363_v16  ;;  %366 = vst [vmem:[%s1459_s12 + $0x88] sm:$0xff] %v365_v17  ;;  %v367_v18 = vld [vmem:[%s1454_s11 + $0x120] sm:$0xff]  ;;  %v369_v19 = vld [vmem:[%s1454_s11 + $0x130] sm:$0xff] }
  0x23   : > { %v371_v20 = vld [vmem:[%s1454_s11 + $0x140] sm:$0xff]  ;;  %368 = vst [vmem:[%s1459_s12 + $0x90] sm:$0xff] %v367_v18  ;;  %370 = vst [vmem:[%s1459_s12 + $0x98] sm:$0xff] %v369_v19  ;;  %v373_v21 = vld [vmem:[%s1454_s11 + $0x150] sm:$0xff] }
  0x24   : > { %372 = vst [vmem:[%s1459_s12 + $0xa0] sm:$0xff] %v371_v20  ;;  %v375_v22 = vld [vmem:[%s1454_s11 + $0x160] sm:$0xff]  ;;  %v377_v23 = vld [vmem:[%s1454_s11 + $0x170] sm:$0xff]  ;;  %374 = vst [vmem:[%s1459_s12 + $0xa8] sm:$0xff] %v373_v21 }
  0x25   : > { %376 = vst [vmem:[%s1459_s12 + $0xb0] sm:$0xff] %v375_v22  ;;  %378 = vst [vmem:[%s1459_s12 + $0xb8] sm:$0xff] %v377_v23  ;;  %v379_v24 = vld [vmem:[%s1454_s11 + $0x180] sm:$0xff]  ;;  %v381_v25 = vld [vmem:[%s1454_s11 + $0x190] sm:$0xff] }
  0x26   : > { %v383_v26 = vld [vmem:[%s1454_s11 + $0x1a0] sm:$0xff]  ;;  %380 = vst [vmem:[%s1459_s12 + $0xc0] sm:$0xff] %v379_v24  ;;  %382 = vst [vmem:[%s1459_s12 + $0xc8] sm:$0xff] %v381_v25  ;;  %v385_v27 = vld [vmem:[%s1454_s11 + $0x1b0] sm:$0xff] }
  0x27   : > { %384 = vst [vmem:[%s1459_s12 + $0xd0] sm:$0xff] %v383_v26  ;;  %v387_v28 = vld [vmem:[%s1454_s11 + $0x1c0] sm:$0xff]  ;;  %v389_v29 = vld [vmem:[%s1454_s11 + $0x1d0] sm:$0xff]  ;;  %386 = vst [vmem:[%s1459_s12 + $0xd8] sm:$0xff] %v385_v27 }
  0x28   : > { %388 = vst [vmem:[%s1459_s12 + $0xe0] sm:$0xff] %v387_v28  ;;  %390 = vst [vmem:[%s1459_s12 + $0xe8] sm:$0xff] %v389_v29  ;;  %v391_v30 = vld [vmem:[%s1454_s11 + $0x1e0] sm:$0xff]  ;;  %v393_v31 = vld [vmem:[%s1454_s11 + $0x1f0] sm:$0xff] }
  0x29   : > { %v395_v32 = vld [vmem:[%s1454_s11 + $0x200] sm:$0xff]  ;;  %392 = vst [vmem:[%s1459_s12 + $0xf0] sm:$0xff] %v391_v30  ;;  %394 = vst [vmem:[%s1459_s12 + $0xf8] sm:$0xff] %v393_v31  ;;  %v397_v33 = vld [vmem:[%s1454_s11 + $0x210] sm:$0xff] }
  0x2a   : > { %396 = vst [vmem:[%s1459_s12 + $0x100] sm:$0xff] %v395_v32  ;;  %v399_v34 = vld [vmem:[%s1454_s11 + $0x220] sm:$0xff]  ;;  %v401_v35 = vld [vmem:[%s1454_s11 + $0x230] sm:$0xff]  ;;  %398 = vst [vmem:[%s1459_s12 + $0x108] sm:$0xff] %v397_v33 }
  0x2b   : > { %400 = vst [vmem:[%s1459_s12 + $0x110] sm:$0xff] %v399_v34  ;;  %402 = vst [vmem:[%s1459_s12 + $0x118] sm:$0xff] %v401_v35  ;;  %v403_v36 = vld [vmem:[%s1454_s11 + $0x240] sm:$0xff]  ;;  %v405_v37 = vld [vmem:[%s1454_s11 + $0x250] sm:$0xff] }
  0x2c   : > { %v407_v38 = vld [vmem:[%s1454_s11 + $0x260] sm:$0xff]  ;;  %404 = vst [vmem:[%s1459_s12 + $0x120] sm:$0xff] %v403_v36  ;;  %406 = vst [vmem:[%s1459_s12 + $0x128] sm:$0xff] %v405_v37  ;;  %v409_v39 = vld [vmem:[%s1454_s11 + $0x270] sm:$0xff] }
  0x2d   : > { %408 = vst [vmem:[%s1459_s12 + $0x130] sm:$0xff] %v407_v38  ;;  %v411_v40 = vld [vmem:[%s1454_s11 + $0x280] sm:$0xff]  ;;  %v413_v41 = vld [vmem:[%s1454_s11 + $0x290] sm:$0xff]  ;;  %410 = vst [vmem:[%s1459_s12 + $0x138] sm:$0xff] %v409_v39 }
  0x2e   : > { %412 = vst [vmem:[%s1459_s12 + $0x140] sm:$0xff] %v411_v40  ;;  %414 = vst [vmem:[%s1459_s12 + $0x148] sm:$0xff] %v413_v41  ;;  %v415_v42 = vld [vmem:[%s1454_s11 + $0x2a0] sm:$0xff]  ;;  %v417_v43 = vld [vmem:[%s1454_s11 + $0x2b0] sm:$0xff] }
  0x2f   : > { %v419_v44 = vld [vmem:[%s1454_s11 + $0x2c0] sm:$0xff]  ;;  %416 = vst [vmem:[%s1459_s12 + $0x150] sm:$0xff] %v415_v42  ;;  %418 = vst [vmem:[%s1459_s12 + $0x158] sm:$0xff] %v417_v43  ;;  %v421_v45 = vld [vmem:[%s1454_s11 + $0x2d0] sm:$0xff] }
  0x30   : > { %420 = vst [vmem:[%s1459_s12 + $0x160] sm:$0xff] %v419_v44  ;;  %v423_v46 = vld [vmem:[%s1454_s11 + $0x2e0] sm:$0xff]  ;;  %v425_v47 = vld [vmem:[%s1454_s11 + $0x2f0] sm:$0xff]  ;;  %422 = vst [vmem:[%s1459_s12 + $0x168] sm:$0xff] %v421_v45 }
  0x31   : > { %424 = vst [vmem:[%s1459_s12 + $0x170] sm:$0xff] %v423_v46  ;;  %426 = vst [vmem:[%s1459_s12 + $0x178] sm:$0xff] %v425_v47 }
  0x32 PF: > { %p1112_p7 = scmp.ge.s32.totalorder %s1365_s21, 1  ;;  %p447_p8 = scmp.lt.s32.totalorder %s1365_s21, 13 }
  0x34   : > { %p448_p9 = pnand %p1112_p7, %p447_p8 }
  0x35   : > { %s454_s13 = sand.u32 (!%p448_p9), 1, %s1341_s15   ;;  %s500_s14 = smul.u32 (!%p448_p9), 3, %s1349_s17 }
  0x36   : > { %451 = sbr.rel (%p448_p9) target bundleno = 370 (0x172), region = 70  ;;  %s1114_s25 = sshll.u32 (!%p448_p9), %s1353_s18, 1 }
  0x37   : > { %s1177_s24 = smul.u32 (!%p448_p9), 384, %s454_s13  ;;  %p503_p10 = scmp.lt.s32.totalorder (!%p448_p9), %s500_s14, 17 }
  0x38   : > { %p513_p11 = scmp.lt.s32.totalorder (!%p448_p9), %s1114_s25, 3  ;;  %p1118_p12 = scmp.ne.s32.totalorder (!%p448_p9), %s1349_s17, 0 }
  0x39   : > { %s1580_s13 = scalar_lea.vmem (!%p448_p9), [#allocation3], %s1177_s24 }
  0x3d   : > { %s1684_s14 = smov (!%p503_p10, %s500_s14), 17  ;;  %s1686_s25 = smov (!%p513_p11, %s1114_s25), 3 }
  0x3e   : > { %s1113_s26 = sshll.u32 %s1684_s14, 2  ;;  %s515_s15 = scalar_lea.vmem %s1668_s2, %s1686_s25  ;;  %v1367_v48 = vmov (!%p1118_p12), 0.0  }
  0x3f   : > { %s1564_s30 = scalar_lea.vmem %s1666_s0, %s1113_s26  ;;  %s520_s8 = scalar_lea.vmem %s1669_s3, %s1686_s25  ;;  %537 = vst [vmem:[#allocation2] sm:$0xff] (!%p1118_p12), %v1367_v48  ;;  %538 = vst [vmem:[#allocation2 + $0x8] sm:$0xff] (!%p1118_p12), %v1367_v48 }
  0x40   : > { %s1117_s9 = sshll.u32 %s1686_s25, 2  ;;  %536 = sbr.rel (%p1118_p12) target bundleno = 71 (0x47), region = 78 }
  0x41   : > { %s1578_s12 = scalar_lea.vmem %s1670_s4, %s1117_s9 }
  0x47 PF: > { %v1236_v49 = vld [vmem:[%s1580_s13 + $0x4] ss:$8 sps:$4 sm:$0xff]   ;;  %v1238_v50 = vld [vmem:[%s1580_s13] ss:$8 sps:$4 sm:$0xff]   ;;  %v1368_v51 = vmov 0   ;;  %v541_v18 = vld [vmem:[%s1564_s30] sm:$0xff] }
  0x48   : > { %915 = vmatprep.mubr.bf16.mxu1 %v1368_v51  ;;  %842 = vmatprep.subr.bf16.mxu0 %v1236_v49  ;;  %v1239_v52 = vld [vmem:[%s1580_s13 + $0x14] ss:$8 sps:$4 sm:$0xff]   ;;  %v1241_v53 = vld [vmem:[%s1580_s13 + $0x10] ss:$8 sps:$4 sm:$0xff]   ;;  %v1242_v54 = vld [vmem:[%s1580_s13 + $0x24] ss:$8 sps:$4 sm:$0xff]   ;;  %v1120_v19 = vcombine.high %v541_v18, %v541_v18  ;;  %v1119_v37 = vcombine.low %v541_v18, %v541_v18 }
  0x49   : > { %843 = vmatpush1.bf16.msra.mxu0 %v1238_v50  ;;  %v1244_v55 = vld [vmem:[%s1580_s13 + $0x20] ss:$8 sps:$4 sm:$0xff]   ;;  %v1245_v56 = vld [vmem:[%s1580_s13 + $0x34] ss:$8 sps:$4 sm:$0xff]   ;;  %v1247_v57 = vld [vmem:[%s1580_s13 + $0x30] ss:$8 sps:$4 sm:$0xff]  }
  0x4a   : > { %844 = vmatprep.subr.bf16.mxu0 %v1239_v52  ;;  %v1260_v58 = vld [vmem:[%s1580_s13 + $0x104] ss:$8 sps:$4 sm:$0xff]   ;;  %v1262_v59 = vld [vmem:[%s1580_s13 + $0x100] ss:$8 sps:$4 sm:$0xff]   ;;  %v1266_v61 = vld [vmem:[%s1580_s13 + $0x114] ss:$8 sps:$4 sm:$0xff]   ;;  %874 = vmatprep.mubr.bf16.mxu0 %v1120_v19 }
  0x4b   : > { %v1248_v60 = vld [vmem:[%s1580_s13 + $0x44] ss:$8 sps:$4 sm:$0xff]   ;;  %883 = vmatprep.subr.bf16.mxu1 %v1260_v58  ;;  %v1268_v62 = vld [vmem:[%s1580_s13 + $0x110] ss:$8 sps:$4 sm:$0xff]   ;;  %v1250_v63 = vld [vmem:[%s1580_s13 + $0x40] ss:$8 sps:$4 sm:$0xff]  }
  0x4c   : > { %884 = vmatpush1.bf16.msra.mxu1 %v1262_v59  ;;  %v1251_v0 = vld [vmem:[%s1580_s13 + $0x54] ss:$8 sps:$4 sm:$0xff]   ;;  %v1272_v1 = vld [vmem:[%s1580_s13 + $0x124] ss:$8 sps:$4 sm:$0xff]   ;;  %v1274_v2 = vld [vmem:[%s1580_s13 + $0x120] ss:$8 sps:$4 sm:$0xff]  }
  0x4d   : > { %845 = vmatpush1.bf16.msra.mxu0 %v1241_v53  ;;  %885 = vmatprep.subr.bf16.mxu1 %v1266_v61  ;;  %v1253_v3 = vld [vmem:[%s1580_s13 + $0x50] ss:$8 sps:$4 sm:$0xff]   ;;  %v1278_v4 = vld [vmem:[%s1580_s13 + $0x134] ss:$8 sps:$4 sm:$0xff]   ;;  %v1254_v5 = vld [vmem:[%s1580_s13 + $0x64] ss:$8 sps:$4 sm:$0xff]  }
  0x4e   : > { %846 = vmatprep.subr.bf16.mxu0 %v1242_v54  ;;  %v1280_v6 = vld [vmem:[%s1580_s13 + $0x130] ss:$8 sps:$4 sm:$0xff]   ;;  %v1256_v7 = vld [vmem:[%s1580_s13 + $0x60] ss:$8 sps:$4 sm:$0xff]   ;;  %v1284_v8 = vld [vmem:[%s1580_s13 + $0x144] ss:$8 sps:$4 sm:$0xff]  }
  0x4f   : > { %v1257_v9 = vld [vmem:[%s1580_s13 + $0x74] ss:$8 sps:$4 sm:$0xff]   ;;  %v1286_v10 = vld [vmem:[%s1580_s13 + $0x140] ss:$8 sps:$4 sm:$0xff]   ;;  %v1259_v11 = vld [vmem:[%s1580_s13 + $0x70] ss:$8 sps:$4 sm:$0xff]  }
  0x50   : > { %886 = vmatpush1.bf16.msra.mxu1 %v1268_v62  ;;  %v1290_v12 = vld [vmem:[%s1580_s13 + $0x154] ss:$8 sps:$4 sm:$0xff]   ;;  %v1263_v13 = vld [vmem:[%s1580_s13 + $0x84] ss:$8 sps:$4 sm:$0xff]   ;;  %v1292_v14 = vld [vmem:[%s1580_s13 + $0x150] ss:$8 sps:$4 sm:$0xff]  }
  0x51   : > { %847 = vmatpush1.bf16.msra.mxu0 %v1244_v55  ;;  %887 = vmatprep.subr.bf16.mxu1 %v1272_v1  ;;  %v1265_v15 = vld [vmem:[%s1580_s13 + $0x80] ss:$8 sps:$4 sm:$0xff]   ;;  %v1296_v16 = vld [vmem:[%s1580_s13 + $0x164] ss:$8 sps:$4 sm:$0xff]   ;;  %v1269_v17 = vld [vmem:[%s1580_s13 + $0x94] ss:$8 sps:$4 sm:$0xff]  }
  0x52   : > { %848 = vmatprep.subr.bf16.mxu0 %v1245_v56  ;;  %v1298_v20 = vld [vmem:[%s1580_s13 + $0x160] ss:$8 sps:$4 sm:$0xff]   ;;  %v1271_v21 = vld [vmem:[%s1580_s13 + $0x90] ss:$8 sps:$4 sm:$0xff]   ;;  %v1302_v22 = vld [vmem:[%s1580_s13 + $0x174] ss:$8 sps:$4 sm:$0xff]  }
  0x53   : > { %v1275_v23 = vld [vmem:[%s1580_s13 + $0xa4] ss:$8 sps:$4 sm:$0xff]   ;;  %v1304_v24 = vld [vmem:[%s1580_s13 + $0x170] ss:$8 sps:$4 sm:$0xff]   ;;  %v1277_v25 = vld [vmem:[%s1580_s13 + $0xa0] ss:$8 sps:$4 sm:$0xff]  }
  0x54   : > { %888 = vmatpush1.bf16.msra.mxu1 %v1274_v2  ;;  %v1281_v26 = vld [vmem:[%s1580_s13 + $0xb4] ss:$8 sps:$4 sm:$0xff]   ;;  %v1308_v27 = vld [vmem:[%s1564_s30 + $0x8] ss:$0 sps:$4 sm:$0xff]   ;;  %v1287_v29 = vld [vmem:[%s1580_s13 + $0xc4] ss:$8 sps:$4 sm:$0xff]  }
  0x55   : > { %849 = vmatpush1.bf16.msra.mxu0 %v1247_v57  ;;  %889 = vmatprep.subr.bf16.mxu1 %v1278_v4  ;;  %v1283_v28 = vld [vmem:[%s1580_s13 + $0xb0] ss:$8 sps:$4 sm:$0xff]   ;;  %v1289_v30 = vld [vmem:[%s1580_s13 + $0xc0] ss:$8 sps:$4 sm:$0xff]   ;;  %v1293_v31 = vld [vmem:[%s1580_s13 + $0xd4] ss:$8 sps:$4 sm:$0xff]  }
  0x56   : > { %850 = vmatprep.subr.bf16.mxu0 %v1248_v60  ;;  %v1295_v32 = vld [vmem:[%s1580_s13 + $0xd0] ss:$8 sps:$4 sm:$0xff]   ;;  %v1299_v33 = vld [vmem:[%s1580_s13 + $0xe4] ss:$8 sps:$4 sm:$0xff]   ;;  %v1301_v34 = vld [vmem:[%s1580_s13 + $0xe0] ss:$8 sps:$4 sm:$0xff]  }
  0x57   : > { %v1305_v35 = vld [vmem:[%s1580_s13 + $0xf4] ss:$8 sps:$4 sm:$0xff]   ;;  %v1307_v36 = vld [vmem:[%s1580_s13 + $0xf0] ss:$8 sps:$4 sm:$0xff]   ;;  %p1170_p13 = scmp.ne.s32.totalorder %s1349_s17, 5 }
  0x58   : > { %890 = vmatpush1.bf16.msra.mxu1 %v1280_v6  ;;  %v539_v42 = vld [vmem:[#allocation2] sm:$0xff]  ;;  %v540_v45 = vld [vmem:[#allocation2 + $0x8] sm:$0xff]  ;;  %v936_v52 = vlaneseq (!%p1170_p13) }
  0x59   : > { %851 = vmatpush1.bf16.msra.mxu0 %v1250_v63  ;;  %891 = vmatprep.subr.bf16.mxu1 %v1284_v8  ;;  %v934_v54 = vld [vmem:[%s515_s15] sm:$0x3] (!%p1170_p13) }
  0x5a   : > { %852 = vmatprep.subr.bf16.mxu0 %v1251_v0  ;;  %v937_v53 = vshrl.u32 (!%p1170_p13), %v936_v52, 7  ;;  %v948_v55 = vld [vmem:[%s520_s8] sm:$0x3] (!%p1170_p13) }
  0x5c   : > { %892 = vmatpush1.bf16.msra.mxu1 %v1286_v10  ;;  %v938_v56 = vsub.s32 (!%p1170_p13), 0, %v937_v53  ;;  %v942_v57 = vsub.s32 (!%p1170_p13), 1, %v937_v53 }
  0x5d   : > { %853 = vmatpush1.bf16.msra.mxu0 %v1253_v3  ;;  %893 = vmatprep.subr.bf16.mxu1 %v1290_v12 }
  0x5e   : > { %854 = vmatprep.subr.bf16.mxu0 %v1254_v5  ;;  %v939_v60 = vrot.slane (!%p1170_p13), %v934_v54, %v938_v56  ;;  %v943_v61 = vrot.slane (!%p1170_p13), %v934_v54, %v942_v57  ;;  %v953_v62 = vrot.slane (!%p1170_p13), %v948_v55, %v938_v56  ;;  %v957_v63 = vrot.slane (!%p1170_p13), %v948_v55, %v942_v57 }
  0x60   : > { %894 = vmatpush1.bf16.msra.mxu1 %v1292_v14 }
  0x61   : > { %855 = vmatpush1.bf16.msra.mxu0 %v1256_v7  ;;  %895 = vmatprep.subr.bf16.mxu1 %v1296_v16 }
  0x62   : > { %856 = vmatprep.subr.bf16.mxu0 %v1257_v9 }
  0x64   : > { %896 = vmatpush1.bf16.msra.mxu1 %v1298_v20 }
  0x65   : > { %857 = vmatpush1.bf16.msra.mxu0 %v1259_v11  ;;  %897 = vmatprep.subr.bf16.mxu1 %v1302_v22 }
  0x66   : > { %858 = vmatprep.subr.bf16.mxu0 %v1263_v13 }
  0x68   : > { %898 = vmatpush1.bf16.msra.mxu1 %v1304_v24 }
  0x69   : > { %859 = vmatpush1.bf16.msra.mxu0 %v1265_v15 }
  0x6a   : > { %860 = vmatprep.subr.bf16.mxu0 %v1269_v17 }
  0x6b   : > { %916 = vmatmul.mubr.bf16.vlgmr.msra.gmra.mrb[0].mxu1 %v1308_v27 }
  0x6d   : > { %861 = vmatpush1.bf16.msra.mxu0 %v1271_v21 }
  0x6e   : > { %862 = vmatprep.subr.bf16.mxu0 %v1275_v23 }
  0x71   : > { %863 = vmatpush1.bf16.msra.mxu0 %v1277_v25 }
  0x72   : > { %864 = vmatprep.subr.bf16.mxu0 %v1281_v26 }
  0x75   : > { %865 = vmatpush1.bf16.msra.mxu0 %v1283_v28 }
  0x76   : > { %866 = vmatprep.subr.bf16.mxu0 %v1287_v29 }
  0x79   : > { %867 = vmatpush1.bf16.msra.mxu0 %v1289_v30 }
  0x7a   : > { %868 = vmatprep.subr.bf16.mxu0 %v1293_v31 }
  0x7d   : > { %869 = vmatpush1.bf16.msra.mxu0 %v1295_v32 }
  0x7e   : > { %870 = vmatprep.subr.bf16.mxu0 %v1299_v33 }
  0x81   : > { %871 = vmatpush1.bf16.msra.mxu0 %v1301_v34 }
  0x82   : > { %872 = vmatprep.subr.bf16.mxu0 %v1305_v35 }
  0x85   : > { %873 = vmatpush1.bf16.msra.mxu0 %v1307_v36 }
  0x88   : > { %875 = vmatmul.mubr.bf16.vlgmr.msra.gmra.mrb[0].mxu0 %v1119_v37 }
 0x13e   : > { %v917_v38 = vpop.f32.mrb[0].mxu1 }
 0x13f   : > { %v919_v39 = vpop.f32.mrb[1].mxu1 }
 0x140   : > { %v921_v40 = vpop.f32.mrb[2].mxu1 }
 0x141   : > { %v922_v41 = vpop.f32.mrb[3].mxu1 }
 0x15b   : > { %v876_v43 = vpop.f32.mrb[0].mxu0  ;;  %931 = sbr.rel (%p1170_p13) target bundleno = 370 (0x172), region = 82 }
 0x15c   : > { %v918_v44 = vadd.f32 %v917_v38, %v876_v43  ;;  %v878_v46 = vpop.f32.mrb[1].mxu0 }
 0x15d   : > { %v920_v47 = vadd.f32 %v919_v39, %v878_v46  ;;  %v880_v48 = vpop.f32.mrb[2].mxu0 }
 0x15e   : > { %v924_v49 = vadd.f32 %v918_v44, %v539_v42  ;;  %v881_v50 = vpop.f32.mrb[3].mxu0 }
 0x15f   : > { %v925_v51 = vadd.f32 %v920_v47, %v540_v45 }
 0x160   : > { %926 = vst [vmem:[#allocation2] sm:$0xff] %v924_v49 }
 0x161   : > { %927 = vst [vmem:[#allocation2 + $0x8] sm:$0xff] %v925_v51 }
 0x167   : > { %v932_v58 = vld [vmem:[#allocation2] sm:$0xff] }
 0x168   : > { %v933_v59 = vld [vmem:[#allocation2 + $0x8] sm:$0xff]  ;;  %v946_v0 = vmul.f32 %v939_v60, %v932_v58 }
 0x169   : > { %v947_v1 = vmul.f32 %v943_v61, %v933_v59 }
 0x16a   : > { %v960_v2 = vadd.f32 %v953_v62, %v946_v0 }
 0x16b   : > { %v961_v3 = vadd.f32 %v957_v63, %v947_v1 }
 0x16c   : > { %v962_v4 = vmax.f32 %v960_v2, 0.0 }
 0x16d   : > { %v963_v5 = vmax.f32 %v961_v3, 0.0 }
 0x16f   : > { %v1175_v6 = vpack.c.bf16 %v963_v5, %v962_v4 }
 0x171   : > { %972 = vst [vmem:[%s1578_s12] sm:$0xff] %v1175_v6 }
 0x172 PF: > { %s14_s21 = sadd.s32 1, %s1365_s21   ;;  %s1671_s15 = smov %s1345_s16 }
 0x173   : > { %p11_p0 = scmp.ge.s32.totalorder %s14_s21, 14   ;;  %s1672_s16 = smov %s1445_s28 }
 0x174   : > { %s1673_s17 = smov %s1357_s19  ;;  %s1674_s18 = smov %s1361_s20 }
 0x175   : > { %s1675_s19 = smov %s1678_s22  ;;  %s1676_s20 = smov %s1682_s23 }
 0x176   :  { %13 = sbr.rel (!%p11_p0) target bundleno = 4 (0x4), region = 126 }

// kernel: _lambda_.22
= control target key start
LH: loop header
LB: loop body
LE: loop exit
PB: predicated region body
PF: predicated region fallthrough
CT: control target
= control target key end

     0   :  { %s1103_s15 = smov 0   ;;  %s1105_s16 = smov 0   ;;  %s1285_s0 = inlined_call_operand.vmem [shape: bf16[8,256], index: 0, kind: input, shape index: {}]   ;;  %s1286_s1 = inlined_call_operand.vmem [shape: bf16[256,512], index: 1, kind: input, shape index: {}]   ;;  %s1287_s2 = inlined_call_operand.vmem [shape: f32[1,512], index: 2, kind: input, shape index: {}]   ;;  %s1288_s3 = inlined_call_operand.vmem [shape: f32[1,512], index: 3, kind: input, shape index: {}]   ;;  %s1289_s4 = inlined_call_operand.vmem [shape: bf16[8,512], index: 4, kind: output, shape index: {}]  }
   0x1   :  { %s1107_s17 = smov 0   ;;  %s1109_s18 = smov 0  }
   0x2   :  { %s1111_s19 = smov 0  }
   0x3 LB: > { %s29_s20 = sadd.s32 1, %s1072_s18  ;;  %p77_p1 = scmp.ne.s32.totalorder %s1064_s16, %s1060_s15  ;;  %s1076_s19 = sphi %s1111_s19, %s14_s19   ;;  %s1072_s18 = sphi %s1109_s18, %s1293_s18   ;;  %s1068_s17 = sphi %s1107_s17, %s1292_s17   ;;  %s1064_s16 = sphi %s1105_s16, %s1291_s16   ;;  %s1060_s15 = sphi %s1103_s15, %s1290_s15  }
   0x4   : > { %p31_p0 = scmp.ge.s32.totalorder %s29_s20, 2  ;;  %p78_p2 = scmp.eq.s32.totalorder %s1076_s19, 0 }
   0x5   : > { %s70_s22 = sadd.s32 1, %s1064_s16  ;;  %p899_p5 = scmp.ge.s32.totalorder %s1076_s19, 2 }
   0x6   : > { %s1295_s20 = smov (%p31_p0, %s29_s20), 0  ;;  %p79_p3 = por %p78_p2, %p77_p1 }
   0x7   : > { %s66_s21 = ssub.s32 %s1072_s18, %s1295_s20  ;;  %196 = sbr.rel (%p899_p5) target bundleno = 34 (0x22), region = 20 }
   0x8   : > { %p68_p4 = scmp.eq.s32.totalorder %s66_s21, 0 }
   0xa   : > { %s1138_s23 = scalar_select %p68_p4, %s1064_s16, %s70_s22  }
   0xe   : > { %199 = sbr.rel (!%p79_p3) target bundleno = 34 (0x22), region = 24  ;;  %s201_s24 = sand.u32 (%p79_p3), 1, %s1064_s16  }
   0xf   : > { %s946_s25 = sshll.u32 (%p79_p3), %s1072_s18, 3  ;;  %s900_s26 = sshll.u32 (%p79_p3), %s201_s24, 8 }
  0x10   : > { %s1146_s29 = scalar_lea.vmem (%p79_p3), %s1286_s1, %s946_s25  ;;  %s1151_s30 = scalar_lea.vmem (%p79_p3), [#allocation3], %s900_s26 }
  0x11   : > { %v299_v0 = vld [vmem:[%s1146_s29] sm:$0xff] (%p79_p3)  ;;  %v301_v1 = vld [vmem:[%s1146_s29 + $0x10] sm:$0xff] (%p79_p3) }
  0x12   : > { %v303_v2 = vld [vmem:[%s1146_s29 + $0x20] sm:$0xff] (%p79_p3)  ;;  %300 = vst [vmem:[%s1151_s30] sm:$0xff] (%p79_p3), %v299_v0  ;;  %302 = vst [vmem:[%s1151_s30 + $0x8] sm:$0xff] (%p79_p3), %v301_v1  ;;  %v305_v3 = vld [vmem:[%s1146_s29 + $0x30] sm:$0xff] (%p79_p3) }
  0x13   : > { %304 = vst [vmem:[%s1151_s30 + $0x10] sm:$0xff] (%p79_p3), %v303_v2  ;;  %v307_v4 = vld [vmem:[%s1146_s29 + $0x40] sm:$0xff] (%p79_p3)  ;;  %v309_v5 = vld [vmem:[%s1146_s29 + $0x50] sm:$0xff] (%p79_p3)  ;;  %306 = vst [vmem:[%s1151_s30 + $0x18] sm:$0xff] (%p79_p3), %v305_v3 }
  0x14   : > { %308 = vst [vmem:[%s1151_s30 + $0x20] sm:$0xff] (%p79_p3), %v307_v4  ;;  %310 = vst [vmem:[%s1151_s30 + $0x28] sm:$0xff] (%p79_p3), %v309_v5  ;;  %v311_v6 = vld [vmem:[%s1146_s29 + $0x60] sm:$0xff] (%p79_p3)  ;;  %v313_v7 = vld [vmem:[%s1146_s29 + $0x70] sm:$0xff] (%p79_p3) }
  0x15   : > { %v315_v8 = vld [vmem:[%s1146_s29 + $0x80] sm:$0xff]  ;;  %312 = vst [vmem:[%s1151_s30 + $0x30] sm:$0xff] %v311_v6  ;;  %314 = vst [vmem:[%s1151_s30 + $0x38] sm:$0xff] %v313_v7  ;;  %v317_v9 = vld [vmem:[%s1146_s29 + $0x90] sm:$0xff] }
  0x16   : > { %316 = vst [vmem:[%s1151_s30 + $0x40] sm:$0xff] %v315_v8  ;;  %v319_v10 = vld [vmem:[%s1146_s29 + $0xa0] sm:$0xff]  ;;  %v321_v11 = vld [vmem:[%s1146_s29 + $0xb0] sm:$0xff]  ;;  %318 = vst [vmem:[%s1151_s30 + $0x48] sm:$0xff] %v317_v9 }
  0x17   : > { %320 = vst [vmem:[%s1151_s30 + $0x50] sm:$0xff] %v319_v10  ;;  %322 = vst [vmem:[%s1151_s30 + $0x58] sm:$0xff] %v321_v11  ;;  %v323_v12 = vld [vmem:[%s1146_s29 + $0xc0] sm:$0xff]  ;;  %v325_v13 = vld [vmem:[%s1146_s29 + $0xd0] sm:$0xff] }
  0x18   : > { %v327_v14 = vld [vmem:[%s1146_s29 + $0xe0] sm:$0xff]  ;;  %324 = vst [vmem:[%s1151_s30 + $0x60] sm:$0xff] %v323_v12  ;;  %326 = vst [vmem:[%s1151_s30 + $0x68] sm:$0xff] %v325_v13  ;;  %v329_v15 = vld [vmem:[%s1146_s29 + $0xf0] sm:$0xff] }
  0x19   : > { %328 = vst [vmem:[%s1151_s30 + $0x70] sm:$0xff] %v327_v14  ;;  %v331_v16 = vld [vmem:[%s1146_s29 + $0x100] sm:$0xff]  ;;  %v333_v17 = vld [vmem:[%s1146_s29 + $0x110] sm:$0xff]  ;;  %330 = vst [vmem:[%s1151_s30 + $0x78] sm:$0xff] %v329_v15 }
  0x1a   : > { %332 = vst [vmem:[%s1151_s30 + $0x80] sm:$0xff] %v331_v16  ;;  %334 = vst [vmem:[%s1151_s30 + $0x88] sm:$0xff] %v333_v17  ;;  %v335_v18 = vld [vmem:[%s1146_s29 + $0x120] sm:$0xff]  ;;  %v337_v19 = vld [vmem:[%s1146_s29 + $0x130] sm:$0xff] }
  0x1b   : > { %v339_v20 = vld [vmem:[%s1146_s29 + $0x140] sm:$0xff]  ;;  %336 = vst [vmem:[%s1151_s30 + $0x90] sm:$0xff] %v335_v18  ;;  %338 = vst [vmem:[%s1151_s30 + $0x98] sm:$0xff] %v337_v19  ;;  %v341_v21 = vld [vmem:[%s1146_s29 + $0x150] sm:$0xff] }
  0x1c   : > { %340 = vst [vmem:[%s1151_s30 + $0xa0] sm:$0xff] %v339_v20  ;;  %v343_v22 = vld [vmem:[%s1146_s29 + $0x160] sm:$0xff]  ;;  %v345_v23 = vld [vmem:[%s1146_s29 + $0x170] sm:$0xff]  ;;  %342 = vst [vmem:[%s1151_s30 + $0xa8] sm:$0xff] %v341_v21 }
  0x1d   : > { %344 = vst [vmem:[%s1151_s30 + $0xb0] sm:$0xff] %v343_v22  ;;  %346 = vst [vmem:[%s1151_s30 + $0xb8] sm:$0xff] %v345_v23  ;;  %v347_v24 = vld [vmem:[%s1146_s29 + $0x180] sm:$0xff]  ;;  %v349_v25 = vld [vmem:[%s1146_s29 + $0x190] sm:$0xff] }
  0x1e   : > { %v351_v26 = vld [vmem:[%s1146_s29 + $0x1a0] sm:$0xff]  ;;  %348 = vst [vmem:[%s1151_s30 + $0xc0] sm:$0xff] %v347_v24  ;;  %350 = vst [vmem:[%s1151_s30 + $0xc8] sm:$0xff] %v349_v25  ;;  %v353_v27 = vld [vmem:[%s1146_s29 + $0x1b0] sm:$0xff] }
  0x1f   : > { %352 = vst [vmem:[%s1151_s30 + $0xd0] sm:$0xff] %v351_v26  ;;  %v355_v28 = vld [vmem:[%s1146_s29 + $0x1c0] sm:$0xff]  ;;  %v357_v29 = vld [vmem:[%s1146_s29 + $0x1d0] sm:$0xff]  ;;  %354 = vst [vmem:[%s1151_s30 + $0xd8] sm:$0xff] %v353_v27 }
  0x20   : > { %356 = vst [vmem:[%s1151_s30 + $0xe0] sm:$0xff] %v355_v28  ;;  %358 = vst [vmem:[%s1151_s30 + $0xe8] sm:$0xff] %v357_v29  ;;  %v359_v30 = vld [vmem:[%s1146_s29 + $0x1e0] sm:$0xff]  ;;  %v361_v31 = vld [vmem:[%s1146_s29 + $0x1f0] sm:$0xff] }
  0x21   : > { %360 = vst [vmem:[%s1151_s30 + $0xf0] sm:$0xff] %v359_v30  ;;  %362 = vst [vmem:[%s1151_s30 + $0xf8] sm:$0xff] %v361_v31 }
  0x22 PF: > { %p903_p6 = scmp.ge.s32.totalorder %s1076_s19, 1  ;;  %p383_p7 = scmp.lt.s32.totalorder %s1076_s19, 3 }
  0x24   : > { %p384_p8 = pnand %p903_p6, %p383_p7 }
  0x25   : > { %s390_s5 = sand.u32 (!%p384_p8), 1, %s1060_s15   ;;  %v1220_v32 = vld [vmem:[%s1285_s0] sm:$0xff] (!%p384_p8)  ;;  %s905_s10 = sshll.u32 (!%p384_p8), %s1068_s17, 1  ;;  %v728_v3 = vlaneseq (!%p384_p8) }
  0x26   : > { %387 = sbr.rel (%p384_p8) target bundleno = 325 (0x145), region = 70  ;;  %s904_s8 = sshll.u32 (!%p384_p8), %s390_s5, 8  ;;  %v910_v33 = vcombine.high (!%p384_p8), %v1220_v32, %v1220_v32  ;;  %v909_v2 = vcombine.low (!%p384_p8), %v1220_v32, %v1220_v32 }
  0x27   : > { %s1224_s9 = scalar_lea.vmem (!%p384_p8), [#allocation3], %s904_s8  ;;  %p449_p9 = scmp.lt.s32.totalorder (!%p384_p8), %s905_s10, 3  ;;  %v729_v4 = vshrl.u32 (!%p384_p8), %v728_v3, 7 }
  0x28   : > { %v988_v34 = vld [vmem:[%s1224_s9 + $0x4] ss:$8 sps:$4 sm:$0xff] (!%p384_p8)   ;;  %708 = vmatprep.mubr.bf16.mxu0 (!%p384_p8), %v910_v33  ;;  %v990_v35 = vld [vmem:[%s1224_s9] ss:$8 sps:$4 sm:$0xff] (!%p384_p8)   ;;  %v991_v36 = vld [vmem:[%s1224_s9 + $0x14] ss:$8 sps:$4 sm:$0xff] (!%p384_p8)  }
  0x29   : > { %676 = vmatprep.subr.bf16.mxu0 (!%p384_p8), %v988_v34  ;;  %v993_v37 = vld [vmem:[%s1224_s9 + $0x10] ss:$8 sps:$4 sm:$0xff] (!%p384_p8)   ;;  %v994_v38 = vld [vmem:[%s1224_s9 + $0x24] ss:$8 sps:$4 sm:$0xff] (!%p384_p8)   ;;  %v996_v39 = vld [vmem:[%s1224_s9 + $0x20] ss:$8 sps:$4 sm:$0xff] (!%p384_p8)  }
  0x2a   : > { %677 = vmatpush1.bf16.msra.mxu0 (!%p384_p8), %v990_v35  ;;  %v997_v40 = vld [vmem:[%s1224_s9 + $0x34] ss:$8 sps:$4 sm:$0xff] (!%p384_p8)   ;;  %v999_v41 = vld [vmem:[%s1224_s9 + $0x30] ss:$8 sps:$4 sm:$0xff] (!%p384_p8)   ;;  %v1000_v42 = vld [vmem:[%s1224_s9 + $0x44] ss:$8 sps:$4 sm:$0xff] (!%p384_p8)  }
  0x2b   : > { %678 = vmatprep.subr.bf16.mxu0 (!%p384_p8), %v991_v36  ;;  %v1002_v43 = vld [vmem:[%s1224_s9 + $0x40] ss:$8 sps:$4 sm:$0xff] (!%p384_p8)   ;;  %v1003_v44 = vld [vmem:[%s1224_s9 + $0x54] ss:$8 sps:$4 sm:$0xff] (!%p384_p8)   ;;  %v1005_v45 = vld [vmem:[%s1224_s9 + $0x50] ss:$8 sps:$4 sm:$0xff] (!%p384_p8)  }
  0x2c   : > { %v1006_v46 = vld [vmem:[%s1224_s9 + $0x64] ss:$8 sps:$4 sm:$0xff] (!%p384_p8)   ;;  %v1008_v47 = vld [vmem:[%s1224_s9 + $0x60] ss:$8 sps:$4 sm:$0xff] (!%p384_p8)   ;;  %v1009_v48 = vld [vmem:[%s1224_s9 + $0x74] ss:$8 sps:$4 sm:$0xff] (!%p384_p8)  }
  0x2d   : > { %v1011_v49 = vld [vmem:[%s1224_s9 + $0x70] ss:$8 sps:$4 sm:$0xff]   ;;  %v1012_v50 = vld [vmem:[%s1224_s9 + $0x84] ss:$8 sps:$4 sm:$0xff]   ;;  %v1014_v51 = vld [vmem:[%s1224_s9 + $0x80] ss:$8 sps:$4 sm:$0xff]  }
  0x2e   : > { %679 = vmatpush1.bf16.msra.mxu0 %v993_v37  ;;  %v1015_v52 = vld [vmem:[%s1224_s9 + $0x94] ss:$8 sps:$4 sm:$0xff]   ;;  %v1017_v53 = vld [vmem:[%s1224_s9 + $0x90] ss:$8 sps:$4 sm:$0xff]   ;;  %v1018_v54 = vld [vmem:[%s1224_s9 + $0xa4] ss:$8 sps:$4 sm:$0xff]  }
  0x2f   : > { %680 = vmatprep.subr.bf16.mxu0 %v994_v38  ;;  %v1020_v55 = vld [vmem:[%s1224_s9 + $0xa0] ss:$8 sps:$4 sm:$0xff]   ;;  %v1021_v56 = vld [vmem:[%s1224_s9 + $0xb4] ss:$8 sps:$4 sm:$0xff]   ;;  %v1023_v57 = vld [vmem:[%s1224_s9 + $0xb0] ss:$8 sps:$4 sm:$0xff]  }
  0x30   : > { %v1024_v58 = vld [vmem:[%s1224_s9 + $0xc4] ss:$8 sps:$4 sm:$0xff]   ;;  %v1026_v59 = vld [vmem:[%s1224_s9 + $0xc0] ss:$8 sps:$4 sm:$0xff]   ;;  %v1027_v60 = vld [vmem:[%s1224_s9 + $0xd4] ss:$8 sps:$4 sm:$0xff]  }
  0x31   : > { %v1029_v61 = vld [vmem:[%s1224_s9 + $0xd0] ss:$8 sps:$4 sm:$0xff]   ;;  %v1030_v62 = vld [vmem:[%s1224_s9 + $0xe4] ss:$8 sps:$4 sm:$0xff]   ;;  %v1032_v63 = vld [vmem:[%s1224_s9 + $0xe0] ss:$8 sps:$4 sm:$0xff]  }
  0x32   : > { %681 = vmatpush1.bf16.msra.mxu0 %v996_v39  ;;  %v1033_v0 = vld [vmem:[%s1224_s9 + $0xf4] ss:$8 sps:$4 sm:$0xff]   ;;  %v1035_v1 = vld [vmem:[%s1224_s9 + $0xf0] ss:$8 sps:$4 sm:$0xff]   ;;  %s1297_s10 = smov (!%p449_p9, %s905_s10), 3  ;;  %v730_v5 = vsub.s32 0, %v729_v4 }
  0x33   : > { %682 = vmatprep.subr.bf16.mxu0 %v997_v40  ;;  %s451_s13 = scalar_lea.vmem %s1287_s2, %s1297_s10  ;;  %s456_s21 = scalar_lea.vmem %s1288_s3, %s1297_s10  ;;  %v734_v7 = vsub.s32 1, %v729_v4 }
  0x34   : > { %v726_v6 = vld [vmem:[%s451_s13] sm:$0x3]  ;;  %s908_s17 = sshll.u32 %s1297_s10, 2 }
  0x35   : > { %v740_v8 = vld [vmem:[%s456_s21] sm:$0x3]  ;;  %v731_v9 = vrot.slane %v726_v6, %v730_v5  ;;  %v735_v10 = vrot.slane %v726_v6, %v734_v7  ;;  %s466_s25 = scalar_lea.vmem %s1289_s4, %s908_s17 }
  0x36   : > { %683 = vmatpush1.bf16.msra.mxu0 %v999_v41  ;;  %v745_v11 = vrot.slane %v740_v8, %v730_v5  ;;  %v749_v13 = vrot.slane %v740_v8, %v734_v7 }
  0x37   : > { %684 = vmatprep.subr.bf16.mxu0 %v1000_v42 }
  0x3a   : > { %685 = vmatpush1.bf16.msra.mxu0 %v1002_v43 }
  0x3b   : > { %686 = vmatprep.subr.bf16.mxu0 %v1003_v44 }
  0x3e   : > { %687 = vmatpush1.bf16.msra.mxu0 %v1005_v45 }
  0x3f   : > { %688 = vmatprep.subr.bf16.mxu0 %v1006_v46 }
  0x42   : > { %689 = vmatpush1.bf16.msra.mxu0 %v1008_v47 }
  0x43   : > { %690 = vmatprep.subr.bf16.mxu0 %v1009_v48 }
  0x46   : > { %691 = vmatpush1.bf16.msra.mxu0 %v1011_v49 }
  0x47   : > { %692 = vmatprep.subr.bf16.mxu0 %v1012_v50 }
  0x4a   : > { %693 = vmatpush1.bf16.msra.mxu0 %v1014_v51 }
  0x4b   : > { %694 = vmatprep.subr.bf16.mxu0 %v1015_v52 }
  0x4e   : > { %695 = vmatpush1.bf16.msra.mxu0 %v1017_v53 }
  0x4f   : > { %696 = vmatprep.subr.bf16.mxu0 %v1018_v54 }
  0x52   : > { %697 = vmatpush1.bf16.msra.mxu0 %v1020_v55 }
  0x53   : > { %698 = vmatprep.subr.bf16.mxu0 %v1021_v56 }
  0x56   : > { %699 = vmatpush1.bf16.msra.mxu0 %v1023_v57 }
  0x57   : > { %700 = vmatprep.subr.bf16.mxu0 %v1024_v58 }
  0x5a   : > { %701 = vmatpush1.bf16.msra.mxu0 %v1026_v59 }
  0x5b   : > { %702 = vmatprep.subr.bf16.mxu0 %v1027_v60 }
  0x5e   : > { %703 = vmatpush1.bf16.msra.mxu0 %v1029_v61 }
  0x5f   : > { %704 = vmatprep.subr.bf16.mxu0 %v1030_v62 }
  0x62   : > { %705 = vmatpush1.bf16.msra.mxu0 %v1032_v63 }
  0x63   : > { %706 = vmatprep.subr.bf16.mxu0 %v1033_v0 }
  0x66   : > { %707 = vmatpush1.bf16.msra.mxu0 %v1035_v1 }
  0x69   : > { %709 = vmatmul.mubr.bf16.vlgmr.msra.gmra.mrb[0].mxu0 %v909_v2 }
 0x13c   : > { %v710_v12 = vpop.f32.mrb[0].mxu0 }
 0x13d   : > { %v738_v14 = vmul.f32 %v731_v9, %v710_v12  ;;  %v712_v15 = vpop.f32.mrb[1].mxu0 }
 0x13e   : > { %v739_v16 = vmul.f32 %v735_v10, %v712_v15  ;;  %v714_v17 = vpop.f32.mrb[2].mxu0 }
 0x13f   : > { %v752_v18 = vadd.f32 %v745_v11, %v738_v14  ;;  %v715_v19 = vpop.f32.mrb[3].mxu0 }
 0x140   : > { %v753_v20 = vadd.f32 %v749_v13, %v739_v16 }
 0x142   : > { %v947_v21 = vpack.c.bf16 %v753_v20, %v752_v18 }
 0x144   : > { %762 = vst [vmem:[%s466_s25] sm:$0xff] %v947_v21 }
 0x145 PF: > { %s14_s19 = sadd.s32 1, %s1076_s19   ;;  %s1290_s15 = smov %s1064_s16 }
 0x146   : > { %p11_p10 = scmp.ge.s32.totalorder %s14_s19, 4   ;;  %s1291_s16 = smov %s1138_s23 }
 0x147   : > { %s1292_s17 = smov %s1072_s18  ;;  %s1293_s18 = smov %s1295_s20 }
 0x148   :  { %13 = sbr.rel (!%p11_p10) target bundleno = 3 (0x3), region = 126 }

// kernel: _lambda_.24
= control target key start
LH: loop header
LB: loop body
LE: loop exit
PB: predicated region body
PF: predicated region fallthrough
CT: control target
= control target key end

     0   :  { %s1691_s18 = smov 0   ;;  %s1693_s19 = smov 0   ;;  %s2017_s0 = inlined_call_operand.vmem [shape: bf16[8,4608], index: 0, kind: input, shape index: {}]   ;;  %s2018_s1 = inlined_call_operand.vmem [shape: bf16[4608,512], index: 1, kind: input, shape index: {}]   ;;  %s2019_s2 = inlined_call_operand.vmem [shape: f32[1,512], index: 2, kind: input, shape index: {}]   ;;  %s2020_s3 = inlined_call_operand.vmem [shape: f32[1,512], index: 3, kind: input, shape index: {}]   ;;  %s2021_s4 = inlined_call_operand.vmem [shape: bf16[8,512], index: 4, kind: input, shape index: {}]   ;;  %s2022_s5 = inlined_call_operand.vmem [shape: bf16[8,512], index: 5, kind: output, shape index: {}]  }
   0x1   :  { %s1695_s20 = smov 0   ;;  %s1697_s21 = smov 0  }
   0x2   :  { %s1699_s22 = smov 0   ;;  %s1701_s23 = smov 0  }
   0x3   :  { %s1703_s24 = smov 0  }
   0x4 LB: > { %s27_s25 = sadd.s32 1, %s1650_s22  ;;  %s30_s26 = sadd.s32 1, %s1654_s23  ;;  %s1658_s24 = sphi %s1703_s24, %s15_s24   ;;  %s1654_s23 = sphi %s1701_s23, %s2028_s23   ;;  %s1650_s22 = sphi %s1699_s22, %s2027_s22   ;;  %s1646_s21 = sphi %s1697_s21, %s2026_s21   ;;  %s1642_s20 = sphi %s1695_s20, %s2025_s20   ;;  %s1638_s19 = sphi %s1693_s19, %s2024_s19   ;;  %s1634_s18 = sphi %s1691_s18, %s2023_s18  }
   0x5   : > { %p28_p0 = scmp.ge.s32.totalorder %s27_s25, 9  ;;  %p78_p1 = scmp.ne.s32.totalorder %s1638_s19, %s1634_s18 }
   0x6   : > { %p79_p2 = scmp.eq.s32.totalorder %s1658_s24, 0  ;;  %s71_s30 = sadd.s32 1, %s1638_s19 }
   0x7   : > { %s2030_s25 = smov (%p28_p0, %s27_s25), 0  ;;  %s2032_s26 = smov (!%p28_p0, %s30_s26), %s1654_s23 }
   0x8   : > { %p80_p3 = por %p79_p2, %p78_p1  ;;  %p32_p4 = scmp.ge.s32.totalorder %s2032_s26, 2 }
   0x9   : > { %s66_s27 = ssub.s32 %s1650_s22, %s2030_s25  ;;  %p1356_p6 = scmp.ge.s32.totalorder %s1658_s24, 18 }
   0xa   : > { %s2034_s26 = smov (%p32_p4, %s2032_s26), 0 }
   0xb   : > { %s67_s28 = ssub.s32 %s1654_s23, %s2034_s26  ;;  %212 = sbr.rel (%p1356_p6) target bundleno = 57 (0x39), region = 16 }
   0xc   : > { %s68_s29 = sor.u32 %s67_s28, %s66_s27 }
   0xd   : > { %p69_p5 = scmp.eq.s32.totalorder %s68_s29, 0 }
   0xf   : > { %s1742_s6 = scalar_select %p69_p5, %s1638_s19, %s71_s30  }
  0x12   : > { %228 = sbr.rel (!%p80_p3) target bundleno = 57 (0x39), region = 24  ;;  %s230_s7 = sand.u32 (%p80_p3), 1, %s1638_s19  }
  0x13   : > { %s1359_s8 = sshll.u32 (%p80_p3), %s1654_s23, 1  ;;  %s1357_s9 = sshll.u32 (%p80_p3), %s230_s7, 9 }
  0x14   : > { %s1445_s10 = sshll.u32 (%p80_p3), %s1650_s22, 8  ;;  %s1756_s16 = scalar_lea.vmem (%p80_p3), [#allocation3], %s1357_s9 }
  0x15   : > { %s236_s11 = sadd.s32 (%p80_p3), %s1445_s10, %s1359_s8 }
  0x16   : > { %s1361_s12 = sshll.u32 (%p80_p3), %s236_s11, 2 }
  0x17   : > { %s1751_s15 = scalar_lea.vmem (%p80_p3), %s2018_s1, %s1361_s12 }
  0x18   : > { %v392_v0 = vld [vmem:[%s1751_s15] sm:$0xff] (%p80_p3)  ;;  %v394_v1 = vld [vmem:[%s1751_s15 + $0x10] sm:$0xff] (%p80_p3) }
  0x19   : > { %v396_v2 = vld [vmem:[%s1751_s15 + $0x20] sm:$0xff]  ;;  %393 = vst [vmem:[%s1756_s16] sm:$0xff] %v392_v0  ;;  %395 = vst [vmem:[%s1756_s16 + $0x8] sm:$0xff] %v394_v1  ;;  %v398_v3 = vld [vmem:[%s1751_s15 + $0x30] sm:$0xff] }
  0x1a   : > { %397 = vst [vmem:[%s1756_s16 + $0x10] sm:$0xff] %v396_v2  ;;  %v400_v4 = vld [vmem:[%s1751_s15 + $0x40] sm:$0xff]  ;;  %v402_v5 = vld [vmem:[%s1751_s15 + $0x50] sm:$0xff]  ;;  %399 = vst [vmem:[%s1756_s16 + $0x18] sm:$0xff] %v398_v3 }
  0x1b   : > { %401 = vst [vmem:[%s1756_s16 + $0x20] sm:$0xff] %v400_v4  ;;  %403 = vst [vmem:[%s1756_s16 + $0x28] sm:$0xff] %v402_v5  ;;  %v404_v6 = vld [vmem:[%s1751_s15 + $0x60] sm:$0xff]  ;;  %v406_v7 = vld [vmem:[%s1751_s15 + $0x70] sm:$0xff] }
  0x1c   : > { %v408_v8 = vld [vmem:[%s1751_s15 + $0x80] sm:$0xff]  ;;  %405 = vst [vmem:[%s1756_s16 + $0x30] sm:$0xff] %v404_v6  ;;  %407 = vst [vmem:[%s1756_s16 + $0x38] sm:$0xff] %v406_v7  ;;  %v410_v9 = vld [vmem:[%s1751_s15 + $0x90] sm:$0xff] }
  0x1d   : > { %409 = vst [vmem:[%s1756_s16 + $0x40] sm:$0xff] %v408_v8  ;;  %v412_v10 = vld [vmem:[%s1751_s15 + $0xa0] sm:$0xff]  ;;  %v414_v11 = vld [vmem:[%s1751_s15 + $0xb0] sm:$0xff]  ;;  %411 = vst [vmem:[%s1756_s16 + $0x48] sm:$0xff] %v410_v9 }
  0x1e   : > { %413 = vst [vmem:[%s1756_s16 + $0x50] sm:$0xff] %v412_v10  ;;  %415 = vst [vmem:[%s1756_s16 + $0x58] sm:$0xff] %v414_v11  ;;  %v416_v12 = vld [vmem:[%s1751_s15 + $0xc0] sm:$0xff]  ;;  %v418_v13 = vld [vmem:[%s1751_s15 + $0xd0] sm:$0xff] }
  0x1f   : > { %v420_v14 = vld [vmem:[%s1751_s15 + $0xe0] sm:$0xff]  ;;  %417 = vst [vmem:[%s1756_s16 + $0x60] sm:$0xff] %v416_v12  ;;  %419 = vst [vmem:[%s1756_s16 + $0x68] sm:$0xff] %v418_v13  ;;  %v422_v15 = vld [vmem:[%s1751_s15 + $0xf0] sm:$0xff] }
  0x20   : > { %421 = vst [vmem:[%s1756_s16 + $0x70] sm:$0xff] %v420_v14  ;;  %v424_v16 = vld [vmem:[%s1751_s15 + $0x100] sm:$0xff]  ;;  %v426_v17 = vld [vmem:[%s1751_s15 + $0x110] sm:$0xff]  ;;  %423 = vst [vmem:[%s1756_s16 + $0x78] sm:$0xff] %v422_v15 }
  0x21   : > { %425 = vst [vmem:[%s1756_s16 + $0x80] sm:$0xff] %v424_v16  ;;  %427 = vst [vmem:[%s1756_s16 + $0x88] sm:$0xff] %v426_v17  ;;  %v428_v18 = vld [vmem:[%s1751_s15 + $0x120] sm:$0xff]  ;;  %v430_v19 = vld [vmem:[%s1751_s15 + $0x130] sm:$0xff] }
  0x22   : > { %v432_v20 = vld [vmem:[%s1751_s15 + $0x140] sm:$0xff]  ;;  %429 = vst [vmem:[%s1756_s16 + $0x90] sm:$0xff] %v428_v18  ;;  %431 = vst [vmem:[%s1756_s16 + $0x98] sm:$0xff] %v430_v19  ;;  %v434_v21 = vld [vmem:[%s1751_s15 + $0x150] sm:$0xff] }
  0x23   : > { %433 = vst [vmem:[%s1756_s16 + $0xa0] sm:$0xff] %v432_v20  ;;  %v436_v22 = vld [vmem:[%s1751_s15 + $0x160] sm:$0xff]  ;;  %v438_v23 = vld [vmem:[%s1751_s15 + $0x170] sm:$0xff]  ;;  %435 = vst [vmem:[%s1756_s16 + $0xa8] sm:$0xff] %v434_v21 }
  0x24   : > { %437 = vst [vmem:[%s1756_s16 + $0xb0] sm:$0xff] %v436_v22  ;;  %439 = vst [vmem:[%s1756_s16 + $0xb8] sm:$0xff] %v438_v23  ;;  %v440_v24 = vld [vmem:[%s1751_s15 + $0x180] sm:$0xff]  ;;  %v442_v25 = vld [vmem:[%s1751_s15 + $0x190] sm:$0xff] }
  0x25   : > { %v444_v26 = vld [vmem:[%s1751_s15 + $0x1a0] sm:$0xff]  ;;  %441 = vst [vmem:[%s1756_s16 + $0xc0] sm:$0xff] %v440_v24  ;;  %443 = vst [vmem:[%s1756_s16 + $0xc8] sm:$0xff] %v442_v25  ;;  %v446_v27 = vld [vmem:[%s1751_s15 + $0x1b0] sm:$0xff] }
  0x26   : > { %445 = vst [vmem:[%s1756_s16 + $0xd0] sm:$0xff] %v444_v26  ;;  %v448_v28 = vld [vmem:[%s1751_s15 + $0x1c0] sm:$0xff]  ;;  %v450_v29 = vld [vmem:[%s1751_s15 + $0x1d0] sm:$0xff]  ;;  %447 = vst [vmem:[%s1756_s16 + $0xd8] sm:$0xff] %v446_v27 }
  0x27   : > { %449 = vst [vmem:[%s1756_s16 + $0xe0] sm:$0xff] %v448_v28  ;;  %451 = vst [vmem:[%s1756_s16 + $0xe8] sm:$0xff] %v450_v29  ;;  %v452_v30 = vld [vmem:[%s1751_s15 + $0x1e0] sm:$0xff]  ;;  %v454_v31 = vld [vmem:[%s1751_s15 + $0x1f0] sm:$0xff] }
  0x28   : > { %v456_v32 = vld [vmem:[%s1751_s15 + $0x200] sm:$0xff]  ;;  %453 = vst [vmem:[%s1756_s16 + $0xf0] sm:$0xff] %v452_v30  ;;  %455 = vst [vmem:[%s1756_s16 + $0xf8] sm:$0xff] %v454_v31  ;;  %v458_v33 = vld [vmem:[%s1751_s15 + $0x210] sm:$0xff] }
  0x29   : > { %457 = vst [vmem:[%s1756_s16 + $0x100] sm:$0xff] %v456_v32  ;;  %v460_v34 = vld [vmem:[%s1751_s15 + $0x220] sm:$0xff]  ;;  %v462_v35 = vld [vmem:[%s1751_s15 + $0x230] sm:$0xff]  ;;  %459 = vst [vmem:[%s1756_s16 + $0x108] sm:$0xff] %v458_v33 }
  0x2a   : > { %461 = vst [vmem:[%s1756_s16 + $0x110] sm:$0xff] %v460_v34  ;;  %463 = vst [vmem:[%s1756_s16 + $0x118] sm:$0xff] %v462_v35  ;;  %v464_v36 = vld [vmem:[%s1751_s15 + $0x240] sm:$0xff]  ;;  %v466_v37 = vld [vmem:[%s1751_s15 + $0x250] sm:$0xff] }
  0x2b   : > { %v468_v38 = vld [vmem:[%s1751_s15 + $0x260] sm:$0xff]  ;;  %465 = vst [vmem:[%s1756_s16 + $0x120] sm:$0xff] %v464_v36  ;;  %467 = vst [vmem:[%s1756_s16 + $0x128] sm:$0xff] %v466_v37  ;;  %v470_v39 = vld [vmem:[%s1751_s15 + $0x270] sm:$0xff] }
  0x2c   : > { %469 = vst [vmem:[%s1756_s16 + $0x130] sm:$0xff] %v468_v38  ;;  %v472_v40 = vld [vmem:[%s1751_s15 + $0x280] sm:$0xff]  ;;  %v474_v41 = vld [vmem:[%s1751_s15 + $0x290] sm:$0xff]  ;;  %471 = vst [vmem:[%s1756_s16 + $0x138] sm:$0xff] %v470_v39 }
  0x2d   : > { %473 = vst [vmem:[%s1756_s16 + $0x140] sm:$0xff] %v472_v40  ;;  %475 = vst [vmem:[%s1756_s16 + $0x148] sm:$0xff] %v474_v41  ;;  %v476_v42 = vld [vmem:[%s1751_s15 + $0x2a0] sm:$0xff]  ;;  %v478_v43 = vld [vmem:[%s1751_s15 + $0x2b0] sm:$0xff] }
  0x2e   : > { %v480_v44 = vld [vmem:[%s1751_s15 + $0x2c0] sm:$0xff]  ;;  %477 = vst [vmem:[%s1756_s16 + $0x150] sm:$0xff] %v476_v42  ;;  %479 = vst [vmem:[%s1756_s16 + $0x158] sm:$0xff] %v478_v43  ;;  %v482_v45 = vld [vmem:[%s1751_s15 + $0x2d0] sm:$0xff] }
  0x2f   : > { %481 = vst [vmem:[%s1756_s16 + $0x160] sm:$0xff] %v480_v44  ;;  %v484_v46 = vld [vmem:[%s1751_s15 + $0x2e0] sm:$0xff]  ;;  %v486_v47 = vld [vmem:[%s1751_s15 + $0x2f0] sm:$0xff]  ;;  %483 = vst [vmem:[%s1756_s16 + $0x168] sm:$0xff] %v482_v45 }
  0x30   : > { %485 = vst [vmem:[%s1756_s16 + $0x170] sm:$0xff] %v484_v46  ;;  %487 = vst [vmem:[%s1756_s16 + $0x178] sm:$0xff] %v486_v47  ;;  %v488_v48 = vld [vmem:[%s1751_s15 + $0x300] sm:$0xff]  ;;  %v490_v49 = vld [vmem:[%s1751_s15 + $0x310] sm:$0xff] }
  0x31   : > { %v492_v50 = vld [vmem:[%s1751_s15 + $0x320] sm:$0xff]  ;;  %489 = vst [vmem:[%s1756_s16 + $0x180] sm:$0xff] %v488_v48  ;;  %491 = vst [vmem:[%s1756_s16 + $0x188] sm:$0xff] %v490_v49  ;;  %v494_v51 = vld [vmem:[%s1751_s15 + $0x330] sm:$0xff] }
  0x32   : > { %493 = vst [vmem:[%s1756_s16 + $0x190] sm:$0xff] %v492_v50  ;;  %v496_v52 = vld [vmem:[%s1751_s15 + $0x340] sm:$0xff]  ;;  %v498_v53 = vld [vmem:[%s1751_s15 + $0x350] sm:$0xff]  ;;  %495 = vst [vmem:[%s1756_s16 + $0x198] sm:$0xff] %v494_v51 }
  0x33   : > { %497 = vst [vmem:[%s1756_s16 + $0x1a0] sm:$0xff] %v496_v52  ;;  %499 = vst [vmem:[%s1756_s16 + $0x1a8] sm:$0xff] %v498_v53  ;;  %v500_v54 = vld [vmem:[%s1751_s15 + $0x360] sm:$0xff]  ;;  %v502_v55 = vld [vmem:[%s1751_s15 + $0x370] sm:$0xff] }
  0x34   : > { %v504_v56 = vld [vmem:[%s1751_s15 + $0x380] sm:$0xff]  ;;  %501 = vst [vmem:[%s1756_s16 + $0x1b0] sm:$0xff] %v500_v54  ;;  %503 = vst [vmem:[%s1756_s16 + $0x1b8] sm:$0xff] %v502_v55  ;;  %v506_v57 = vld [vmem:[%s1751_s15 + $0x390] sm:$0xff] }
  0x35   : > { %505 = vst [vmem:[%s1756_s16 + $0x1c0] sm:$0xff] %v504_v56  ;;  %v508_v58 = vld [vmem:[%s1751_s15 + $0x3a0] sm:$0xff]  ;;  %v510_v59 = vld [vmem:[%s1751_s15 + $0x3b0] sm:$0xff]  ;;  %507 = vst [vmem:[%s1756_s16 + $0x1c8] sm:$0xff] %v506_v57 }
  0x36   : > { %509 = vst [vmem:[%s1756_s16 + $0x1d0] sm:$0xff] %v508_v58  ;;  %511 = vst [vmem:[%s1756_s16 + $0x1d8] sm:$0xff] %v510_v59  ;;  %v512_v60 = vld [vmem:[%s1751_s15 + $0x3c0] sm:$0xff]  ;;  %v514_v61 = vld [vmem:[%s1751_s15 + $0x3d0] sm:$0xff] }
  0x37   : > { %v516_v62 = vld [vmem:[%s1751_s15 + $0x3e0] sm:$0xff]  ;;  %513 = vst [vmem:[%s1756_s16 + $0x1e0] sm:$0xff] %v512_v60  ;;  %515 = vst [vmem:[%s1756_s16 + $0x1e8] sm:$0xff] %v514_v61  ;;  %v518_v63 = vld [vmem:[%s1751_s15 + $0x3f0] sm:$0xff] }
  0x38   : > { %517 = vst [vmem:[%s1756_s16 + $0x1f0] sm:$0xff] %v516_v62  ;;  %519 = vst [vmem:[%s1756_s16 + $0x1f8] sm:$0xff] %v518_v63 }
  0x39 PF: > { %p1362_p7 = scmp.ge.s32.totalorder %s1658_s24, 1  ;;  %p553_p8 = scmp.lt.s32.totalorder %s1658_s24, 19 }
  0x3b   : > { %p554_p9 = pnand %p1362_p7, %p553_p8 }
  0x3c   : > { %s560_s17 = sand.u32 (!%p554_p9), 1, %s1634_s18   ;;  %s1364_s27 = sshll.u32 (!%p554_p9), %s1642_s20, 2 }
  0x3d   : > { %557 = sbr.rel (%p554_p9) target bundleno = 380 (0x17c), region = 74  ;;  %s1363_s28 = sshll.u32 (!%p554_p9), %s560_s17, 9 }
  0x3e   : > { %p620_p10 = scmp.lt.s32.totalorder (!%p554_p9), %s1364_s27, 35  ;;  %s1366_s29 = sshll.u32 (!%p554_p9), %s1646_s21, 1 }
  0x3f   : > { %p630_p11 = scmp.lt.s32.totalorder (!%p554_p9), %s1366_s29, 3  ;;  %s1914_s8 = scalar_lea.vmem (!%p554_p9), [#allocation3], %s1363_s28 }
  0x40   : > { %p1372_p12 = scmp.ne.s32.totalorder (!%p554_p9), %s1642_s20, 0 }
  0x44   : > { %s2036_s27 = smov (!%p620_p10, %s1364_s27), 35  ;;  %s2038_s29 = smov (!%p630_p11, %s1366_s29), 3 }
  0x45   : > { %s1365_s30 = sshll.u32 %s2036_s27, 2  ;;  %s632_s18 = scalar_lea.vmem %s2019_s2, %s2038_s29  ;;  %v1660_v0 = vmov (!%p1372_p12), 0.0  }
  0x46   : > { %s1891_s9 = scalar_lea.vmem %s2017_s0, %s1365_s30  ;;  %s637_s21 = scalar_lea.vmem %s2020_s3, %s2038_s29  ;;  %663 = vst [vmem:[#allocation2] sm:$0xff] (!%p1372_p12), %v1660_v0  ;;  %664 = vst [vmem:[#allocation2 + $0x8] sm:$0xff] (!%p1372_p12), %v1660_v0 }
  0x47   : > { %s1369_s14 = sshll.u32 %s2038_s29, 2  ;;  %662 = sbr.rel (%p1372_p12) target bundleno = 78 (0x4e), region = 82 }
  0x48   : > { %s1907_s17 = scalar_lea.vmem %s2021_s4, %s1369_s14  ;;  %s1912_s7 = scalar_lea.vmem %s2022_s5, %s1369_s14 }
  0x4e PF: > { %v1504_v1 = vld [vmem:[%s1914_s8 + $0x4] ss:$8 sps:$4 sm:$0xff]   ;;  %v1508_v3 = vld [vmem:[%s1914_s8] ss:$8 sps:$4 sm:$0xff]   ;;  %v1510_v5 = vld [vmem:[%s1914_s8 + $0x14] ss:$8 sps:$4 sm:$0xff]  }
  0x4f   : > { %v1506_v2 = vld [vmem:[%s1914_s8 + $0x104] ss:$8 sps:$4 sm:$0xff]   ;;  %1067 = vmatprep.subr.bf16.mxu0 %v1504_v1  ;;  %v1509_v4 = vld [vmem:[%s1914_s8 + $0x100] ss:$8 sps:$4 sm:$0xff]   ;;  %v1512_v6 = vld [vmem:[%s1914_s8 + $0x114] ss:$8 sps:$4 sm:$0xff]  }
  0x50   : > { %1108 = vmatprep.subr.bf16.mxu1 %v1506_v2  ;;  %1068 = vmatpush1.bf16.msra.mxu0 %v1508_v3  ;;  %v1514_v7 = vld [vmem:[%s1914_s8 + $0x10] ss:$8 sps:$4 sm:$0xff]   ;;  %v1516_v9 = vld [vmem:[%s1914_s8 + $0x24] ss:$8 sps:$4 sm:$0xff]   ;;  %v1520_v11 = vld [vmem:[%s1914_s8 + $0x20] ss:$8 sps:$4 sm:$0xff]  }
  0x51   : > { %1109 = vmatpush1.bf16.msra.mxu1 %v1509_v4  ;;  %1069 = vmatprep.subr.bf16.mxu0 %v1510_v5  ;;  %v1515_v8 = vld [vmem:[%s1914_s8 + $0x110] ss:$8 sps:$4 sm:$0xff]   ;;  %v1518_v10 = vld [vmem:[%s1914_s8 + $0x124] ss:$8 sps:$4 sm:$0xff]   ;;  %v1521_v12 = vld [vmem:[%s1914_s8 + $0x120] ss:$8 sps:$4 sm:$0xff]  }
  0x52   : > { %1110 = vmatprep.subr.bf16.mxu1 %v1512_v6  ;;  %v1522_v13 = vld [vmem:[%s1914_s8 + $0x34] ss:$8 sps:$4 sm:$0xff]   ;;  %v1526_v15 = vld [vmem:[%s1914_s8 + $0x30] ss:$8 sps:$4 sm:$0xff]   ;;  %v1528_v17 = vld [vmem:[%s1914_s8 + $0x44] ss:$8 sps:$4 sm:$0xff]  }
  0x53   : > { %v1524_v14 = vld [vmem:[%s1914_s8 + $0x134] ss:$8 sps:$4 sm:$0xff]   ;;  %v1527_v16 = vld [vmem:[%s1914_s8 + $0x130] ss:$8 sps:$4 sm:$0xff]   ;;  %v1530_v18 = vld [vmem:[%s1914_s8 + $0x144] ss:$8 sps:$4 sm:$0xff]  }
  0x54   : > { %1070 = vmatpush1.bf16.msra.mxu0 %v1514_v7  ;;  %v1532_v19 = vld [vmem:[%s1914_s8 + $0x40] ss:$8 sps:$4 sm:$0xff]   ;;  %v1534_v21 = vld [vmem:[%s1914_s8 + $0x54] ss:$8 sps:$4 sm:$0xff]   ;;  %v1538_v23 = vld [vmem:[%s1914_s8 + $0x50] ss:$8 sps:$4 sm:$0xff]  }
  0x55   : > { %1111 = vmatpush1.bf16.msra.mxu1 %v1515_v8  ;;  %1071 = vmatprep.subr.bf16.mxu0 %v1516_v9  ;;  %v1533_v20 = vld [vmem:[%s1914_s8 + $0x140] ss:$8 sps:$4 sm:$0xff]   ;;  %v1536_v22 = vld [vmem:[%s1914_s8 + $0x154] ss:$8 sps:$4 sm:$0xff]   ;;  %v1539_v24 = vld [vmem:[%s1914_s8 + $0x150] ss:$8 sps:$4 sm:$0xff]  }
  0x56   : > { %1112 = vmatprep.subr.bf16.mxu1 %v1518_v10  ;;  %v1540_v25 = vld [vmem:[%s1914_s8 + $0x64] ss:$8 sps:$4 sm:$0xff]   ;;  %v1544_v27 = vld [vmem:[%s1914_s8 + $0x60] ss:$8 sps:$4 sm:$0xff]   ;;  %v1546_v29 = vld [vmem:[%s1914_s8 + $0x74] ss:$8 sps:$4 sm:$0xff]  }
  0x57   : > { %v1542_v26 = vld [vmem:[%s1914_s8 + $0x164] ss:$8 sps:$4 sm:$0xff]   ;;  %v1545_v28 = vld [vmem:[%s1914_s8 + $0x160] ss:$8 sps:$4 sm:$0xff]   ;;  %v1548_v30 = vld [vmem:[%s1914_s8 + $0x174] ss:$8 sps:$4 sm:$0xff]  }
  0x58   : > { %1072 = vmatpush1.bf16.msra.mxu0 %v1520_v11  ;;  %v1550_v31 = vld [vmem:[%s1914_s8 + $0x70] ss:$8 sps:$4 sm:$0xff]   ;;  %v1552_v33 = vld [vmem:[%s1914_s8 + $0x84] ss:$8 sps:$4 sm:$0xff]   ;;  %v1556_v35 = vld [vmem:[%s1914_s8 + $0x80] ss:$8 sps:$4 sm:$0xff]  }
  0x59   : > { %1113 = vmatpush1.bf16.msra.mxu1 %v1521_v12  ;;  %1073 = vmatprep.subr.bf16.mxu0 %v1522_v13  ;;  %v1551_v32 = vld [vmem:[%s1914_s8 + $0x170] ss:$8 sps:$4 sm:$0xff]   ;;  %v1554_v34 = vld [vmem:[%s1914_s8 + $0x184] ss:$8 sps:$4 sm:$0xff]   ;;  %v1557_v36 = vld [vmem:[%s1914_s8 + $0x180] ss:$8 sps:$4 sm:$0xff]  }
  0x5a   : > { %1114 = vmatprep.subr.bf16.mxu1 %v1524_v14  ;;  %v1558_v37 = vld [vmem:[%s1914_s8 + $0x94] ss:$8 sps:$4 sm:$0xff]   ;;  %v1562_v39 = vld [vmem:[%s1914_s8 + $0x90] ss:$8 sps:$4 sm:$0xff]   ;;  %v1564_v41 = vld [vmem:[%s1914_s8 + $0xa4] ss:$8 sps:$4 sm:$0xff]  }
  0x5b   : > { %v1560_v38 = vld [vmem:[%s1914_s8 + $0x194] ss:$8 sps:$4 sm:$0xff]   ;;  %v1563_v40 = vld [vmem:[%s1914_s8 + $0x190] ss:$8 sps:$4 sm:$0xff]   ;;  %v1566_v42 = vld [vmem:[%s1914_s8 + $0x1a4] ss:$8 sps:$4 sm:$0xff]  }
  0x5c   : > { %1074 = vmatpush1.bf16.msra.mxu0 %v1526_v15  ;;  %v1568_v43 = vld [vmem:[%s1914_s8 + $0xa0] ss:$8 sps:$4 sm:$0xff]   ;;  %v1570_v45 = vld [vmem:[%s1914_s8 + $0xb4] ss:$8 sps:$4 sm:$0xff]   ;;  %v1574_v50 = vld [vmem:[%s1914_s8 + $0xb0] ss:$8 sps:$4 sm:$0xff]  }
  0x5d   : > { %1115 = vmatpush1.bf16.msra.mxu1 %v1527_v16  ;;  %1075 = vmatprep.subr.bf16.mxu0 %v1528_v17  ;;  %v1569_v44 = vld [vmem:[%s1914_s8 + $0x1a0] ss:$8 sps:$4 sm:$0xff]   ;;  %v1572_v46 = vld [vmem:[%s1914_s8 + $0x1b4] ss:$8 sps:$4 sm:$0xff]   ;;  %v1575_v51 = vld [vmem:[%s1914_s8 + $0x1b0] ss:$8 sps:$4 sm:$0xff]  }
  0x5e   : > { %1116 = vmatprep.subr.bf16.mxu1 %v1530_v18  ;;  %v667_v47 = vld [vmem:[%s1891_s9] sm:$0xff]  ;;  %v668_v49 = vld [vmem:[%s1891_s9 + $0x8] sm:$0xff]  ;;  %v1576_v53 = vld [vmem:[%s1914_s8 + $0xc4] ss:$8 sps:$4 sm:$0xff]   ;;  %p1441_p13 = scmp.ne.s32.totalorder %s1642_s20, 8 }
  0x5f   : > { %v1374_v48 = vcombine.high %v667_v47, %v667_v47  ;;  %v1376_v52 = vcombine.high %v668_v49, %v668_v49  ;;  %v1578_v54 = vld [vmem:[%s1914_s8 + $0x1c4] ss:$8 sps:$4 sm:$0xff]   ;;  %v1580_v55 = vld [vmem:[%s1914_s8 + $0xc0] ss:$8 sps:$4 sm:$0xff]   ;;  %v1582_v57 = vld [vmem:[%s1914_s8 + $0xd4] ss:$8 sps:$4 sm:$0xff]   ;;  %v1373_v5 = vcombine.low %v667_v47, %v667_v47  ;;  %v1375_v6 = vcombine.low %v668_v49, %v668_v49 }
  0x60   : > { %1076 = vmatpush1.bf16.msra.mxu0 %v1532_v19  ;;  %v1581_v56 = vld [vmem:[%s1914_s8 + $0x1c0] ss:$8 sps:$4 sm:$0xff]   ;;  %v1584_v58 = vld [vmem:[%s1914_s8 + $0x1d4] ss:$8 sps:$4 sm:$0xff]   ;;  %v1586_v59 = vld [vmem:[%s1914_s8 + $0xd0] ss:$8 sps:$4 sm:$0xff]  }
  0x61   : > { %1117 = vmatpush1.bf16.msra.mxu1 %v1533_v20  ;;  %1077 = vmatprep.subr.bf16.mxu0 %v1534_v21  ;;  %v1587_v60 = vld [vmem:[%s1914_s8 + $0x1d0] ss:$8 sps:$4 sm:$0xff]   ;;  %v1588_v61 = vld [vmem:[%s1914_s8 + $0xe4] ss:$8 sps:$4 sm:$0xff]   ;;  %v1592_v63 = vld [vmem:[%s1914_s8 + $0xe0] ss:$8 sps:$4 sm:$0xff]   ;;  %v1161_v21 = vlaneseq (!%p1441_p13) }
  0x62   : > { %1118 = vmatprep.subr.bf16.mxu1 %v1536_v22  ;;  %1099 = vmatprep.mubr.bf16.mxu0 %v1374_v48  ;;  %v1590_v62 = vld [vmem:[%s1914_s8 + $0x1e4] ss:$8 sps:$4 sm:$0xff]   ;;  %v1593_v0 = vld [vmem:[%s1914_s8 + $0x1e0] ss:$8 sps:$4 sm:$0xff]   ;;  %v1594_v1 = vld [vmem:[%s1914_s8 + $0xf4] ss:$8 sps:$4 sm:$0xff]  }
  0x63   : > { %1140 = vmatprep.mubr.bf16.mxu1 %v1376_v52  ;;  %v1596_v2 = vld [vmem:[%s1914_s8 + $0x1f4] ss:$8 sps:$4 sm:$0xff]   ;;  %v1598_v3 = vld [vmem:[%s1914_s8 + $0xf0] ss:$8 sps:$4 sm:$0xff]   ;;  %v1162_v22 = vshrl.u32 (!%p1441_p13), %v1161_v21, 7 }
  0x64   : > { %1078 = vmatpush1.bf16.msra.mxu0 %v1538_v23  ;;  %v1599_v4 = vld [vmem:[%s1914_s8 + $0x1f0] ss:$8 sps:$4 sm:$0xff]  }
  0x65   : > { %1119 = vmatpush1.bf16.msra.mxu1 %v1539_v24  ;;  %1079 = vmatprep.subr.bf16.mxu0 %v1540_v25  ;;  %v665_v8 = vld [vmem:[#allocation2] sm:$0xff]  ;;  %v666_v12 = vld [vmem:[#allocation2 + $0x8] sm:$0xff]  ;;  %v1163_v25 = vsub.s32 (!%p1441_p13), 0, %v1162_v22 }
  0x66   : > { %1120 = vmatprep.subr.bf16.mxu1 %v1542_v26  ;;  %v1159_v23 = vld [vmem:[%s632_s18] sm:$0x3] (!%p1441_p13)  ;;  %v1167_v26 = vsub.s32 (!%p1441_p13), 1, %v1162_v22 }
  0x67   : > { %v1173_v24 = vld [vmem:[%s637_s21] sm:$0x3] (!%p1441_p13) }
  0x68   : > { %1080 = vmatpush1.bf16.msra.mxu0 %v1544_v27 }
  0x69   : > { %1121 = vmatpush1.bf16.msra.mxu1 %v1545_v28  ;;  %1081 = vmatprep.subr.bf16.mxu0 %v1546_v29  ;;  %v1187_v29 = vld [vmem:[%s1907_s17] sm:$0xff] (!%p1441_p13) }
  0x6a   : > { %1122 = vmatprep.subr.bf16.mxu1 %v1548_v30  ;;  %v1164_v30 = vrot.slane (!%p1441_p13), %v1159_v23, %v1163_v25 }
  0x6c   : > { %1082 = vmatpush1.bf16.msra.mxu0 %v1550_v31  ;;  %v1168_v31 = vrot.slane (!%p1441_p13), %v1159_v23, %v1167_v26 }
  0x6d   : > { %1123 = vmatpush1.bf16.msra.mxu1 %v1551_v32  ;;  %1083 = vmatprep.subr.bf16.mxu0 %v1552_v33  ;;  %v1178_v32 = vrot.slane (!%p1441_p13), %v1173_v24, %v1163_v25  ;;  %v1182_v33 = vrot.slane (!%p1441_p13), %v1173_v24, %v1167_v26 }
  0x6e   : > { %1124 = vmatprep.subr.bf16.mxu1 %v1554_v34 }
  0x70   : > { %1084 = vmatpush1.bf16.msra.mxu0 %v1556_v35 }
  0x71   : > { %1125 = vmatpush1.bf16.msra.mxu1 %v1557_v36  ;;  %1085 = vmatprep.subr.bf16.mxu0 %v1558_v37  ;;  %v1188_v36 = vunpack.c.l.bf16 (!%p1441_p13), %v1187_v29  ;;  %v1189_v37 = vunpack.c.h.bf16 (!%p1441_p13), %v1187_v29 }
  0x72   : > { %1126 = vmatprep.subr.bf16.mxu1 %v1560_v38 }
  0x74   : > { %1086 = vmatpush1.bf16.msra.mxu0 %v1562_v39 }
  0x75   : > { %1127 = vmatpush1.bf16.msra.mxu1 %v1563_v40  ;;  %1087 = vmatprep.subr.bf16.mxu0 %v1564_v41 }
  0x76   : > { %1128 = vmatprep.subr.bf16.mxu1 %v1566_v42 }
  0x78   : > { %1088 = vmatpush1.bf16.msra.mxu0 %v1568_v43 }
  0x79   : > { %1129 = vmatpush1.bf16.msra.mxu1 %v1569_v44  ;;  %1089 = vmatprep.subr.bf16.mxu0 %v1570_v45 }
  0x7a   : > { %1130 = vmatprep.subr.bf16.mxu1 %v1572_v46 }
  0x7c   : > { %1090 = vmatpush1.bf16.msra.mxu0 %v1574_v50 }
  0x7d   : > { %1131 = vmatpush1.bf16.msra.mxu1 %v1575_v51  ;;  %1091 = vmatprep.subr.bf16.mxu0 %v1576_v53 }
  0x7e   : > { %1132 = vmatprep.subr.bf16.mxu1 %v1578_v54 }
  0x80   : > { %1092 = vmatpush1.bf16.msra.mxu0 %v1580_v55 }
  0x81   : > { %1133 = vmatpush1.bf16.msra.mxu1 %v1581_v56  ;;  %1093 = vmatprep.subr.bf16.mxu0 %v1582_v57 }
  0x82   : > { %1134 = vmatprep.subr.bf16.mxu1 %v1584_v58 }
  0x84   : > { %1094 = vmatpush1.bf16.msra.mxu0 %v1586_v59 }
  0x85   : > { %1135 = vmatpush1.bf16.msra.mxu1 %v1587_v60  ;;  %1095 = vmatprep.subr.bf16.mxu0 %v1588_v61 }
  0x86   : > { %1136 = vmatprep.subr.bf16.mxu1 %v1590_v62 }
  0x88   : > { %1096 = vmatpush1.bf16.msra.mxu0 %v1592_v63 }
  0x89   : > { %1137 = vmatpush1.bf16.msra.mxu1 %v1593_v0  ;;  %1097 = vmatprep.subr.bf16.mxu0 %v1594_v1 }
  0x8a   : > { %1138 = vmatprep.subr.bf16.mxu1 %v1596_v2 }
  0x8c   : > { %1098 = vmatpush1.bf16.msra.mxu0 %v1598_v3 }
  0x8d   : > { %1139 = vmatpush1.bf16.msra.mxu1 %v1599_v4 }
  0x8f   : > { %1100 = vmatmul.mubr.bf16.vlgmr.msra.gmra.mrb[0].mxu0 %v1373_v5 }
  0x90   : > { %1141 = vmatmul.mubr.bf16.vlgmr.msra.gmra.mrb[0].mxu1 %v1375_v6 }
 0x162   : > { %v1101_v7 = vpop.f32.mrb[0].mxu0 }
 0x163   : > { %v1142_v9 = vpop.f32.mrb[0].mxu1  ;;  %v1103_v11 = vpop.f32.mrb[1].mxu0  ;;  %1156 = sbr.rel (%p1441_p13) target bundleno = 380 (0x17c), region = 86 }
 0x164   : > { %v1143_v10 = vadd.f32 %v1142_v9, %v1101_v7  ;;  %v1144_v13 = vpop.f32.mrb[1].mxu1  ;;  %v1105_v15 = vpop.f32.mrb[2].mxu0 }
 0x165   : > { %v1145_v14 = vadd.f32 %v1144_v13, %v1103_v11  ;;  %v1146_v16 = vpop.f32.mrb[2].mxu1  ;;  %v1106_v18 = vpop.f32.mrb[3].mxu0 }
 0x166   : > { %v1149_v17 = vadd.f32 %v1143_v10, %v665_v8  ;;  %v1147_v19 = vpop.f32.mrb[3].mxu1 }
 0x167   : > { %v1150_v20 = vadd.f32 %v1145_v14, %v666_v12 }
 0x168   : > { %1151 = vst [vmem:[#allocation2] sm:$0xff] %v1149_v17 }
 0x169   : > { %1152 = vst [vmem:[#allocation2 + $0x8] sm:$0xff] %v1150_v20 }
 0x16f   : > { %v1157_v27 = vld [vmem:[#allocation2] sm:$0xff] }
 0x170   : > { %v1158_v28 = vld [vmem:[#allocation2 + $0x8] sm:$0xff]  ;;  %v1171_v34 = vmul.f32 %v1164_v30, %v1157_v27 }
 0x171   : > { %v1172_v35 = vmul.f32 %v1168_v31, %v1158_v28 }
 0x172   : > { %v1185_v38 = vadd.f32 %v1178_v32, %v1171_v34 }
 0x173   : > { %v1186_v39 = vadd.f32 %v1182_v33, %v1172_v35 }
 0x174   : > { %v1190_v40 = vadd.f32 %v1188_v36, %v1185_v38 }
 0x175   : > { %v1191_v41 = vadd.f32 %v1189_v37, %v1186_v39 }
 0x176   : > { %v1192_v42 = vmax.f32 %v1190_v40, 0.0 }
 0x177   : > { %v1193_v43 = vmax.f32 %v1191_v41, 0.0 }
 0x179   : > { %v1446_v44 = vpack.c.bf16 %v1193_v43, %v1192_v42 }
 0x17b   : > { %1202 = vst [vmem:[%s1912_s7] sm:$0xff] %v1446_v44 }
 0x17c PF: > { %s15_s24 = sadd.s32 1, %s1658_s24   ;;  %s2023_s18 = smov %s1638_s19 }
 0x17d   : > { %p12_p0 = scmp.ge.s32.totalorder %s15_s24, 20   ;;  %s2024_s19 = smov %s1742_s6 }
 0x17e   : > { %s2025_s20 = smov %s1650_s22  ;;  %s2026_s21 = smov %s1654_s23 }
 0x17f   : > { %s2027_s22 = smov %s2030_s25  ;;  %s2028_s23 = smov %s2034_s26 }
 0x180   :  { %14 = sbr.rel (!%p12_p0) target bundleno = 4 (0x4), region = 133 }

// kernel: _lambda_.25
= control target key start
LH: loop header
LB: loop body
LE: loop exit
PB: predicated region body
PF: predicated region fallthrough
CT: control target
= control target key end

     0   :  { %vm87_vm0 = vcmask 1043456   ;;  %vm512_vm1 = vcmask 1041409   ;;  %vm514_vm2 = vcmask 1042434   ;;  %vm516_vm3 = vcmask 1043459   ;;  %s1251_s1 = inlined_call_operand.vmem [shape: bf16[512,128], index: 1, kind: input, shape index: {}]   ;;  %s1252_s0 = inlined_call_operand.vmem [shape: bf16[8,4,512], index: 0, kind: input, shape index: {}]   ;;  %s1253_s2 = inlined_call_operand.vmem [shape: f32[1,128], index: 2, kind: input, shape index: {}]   ;;  %s1254_s3 = inlined_call_operand.vmem [shape: f32[8,128], index: 3, kind: output, shape index: {}]  }
   0x1   :  { %v909_v0 = vld [vmem:[%s1251_s1 + $0x40] sm:$0xff]   ;;  %v913_v4 = vld [vmem:[%s1251_s1 + $0x48] sm:$0xff]   ;;  %v917_v8 = vld [vmem:[%s1251_s1 + $0x50] sm:$0xff]   ;;  %vm518_vm4 = vcmask 1044484   ;;  %vm520_vm5 = vcmask 1045509   ;;  %vm522_vm6 = vcmask 1046534  }
   0x2   :  { %v910_v1 = vld [vmem:[%s1251_s1 + $0xc0] sm:$0xff]   ;;  %865 = vmatprep.subr.bf16.mxu0 %v909_v0  ;;  %v914_v5 = vld [vmem:[%s1251_s1 + $0xc8] sm:$0xff]   ;;  %v918_v9 = vld [vmem:[%s1251_s1 + $0xd0] sm:$0xff]   ;;  %vm524_vm7 = vcmask 1047559  }
   0x3   :  { %v911_v2 = vld [vmem:[%s1251_s1] sm:$0xff]   ;;  %887 = vmatprep.subr.bf16.mxu1 %v910_v1  ;;  %v915_v6 = vld [vmem:[%s1251_s1 + $0x8] sm:$0xff]   ;;  %v919_v10 = vld [vmem:[%s1251_s1 + $0x10] sm:$0xff]  }
   0x4   :  { %v912_v3 = vld [vmem:[%s1251_s1 + $0x80] sm:$0xff]   ;;  %866 = vmatpush3.bf16.msra.mxu0 %v911_v2  ;;  %v916_v7 = vld [vmem:[%s1251_s1 + $0x88] sm:$0xff]   ;;  %v920_v11 = vld [vmem:[%s1251_s1 + $0x90] sm:$0xff]  }
   0x5   :  { %888 = vmatpush3.bf16.msra.mxu1 %v912_v3  ;;  %867 = vmatprep.subr.bf16.mxu0 %v913_v4  ;;  %v921_v12 = vld [vmem:[%s1251_s1 + $0x58] sm:$0xff]   ;;  %v925_v16 = vld [vmem:[%s1251_s1 + $0x60] sm:$0xff]   ;;  %v929_v20 = vld [vmem:[%s1251_s1 + $0x68] sm:$0xff]  }
   0x6   :  { %889 = vmatprep.subr.bf16.mxu1 %v914_v5  ;;  %v922_v13 = vld [vmem:[%s1251_s1 + $0xd8] sm:$0xff]   ;;  %v926_v17 = vld [vmem:[%s1251_s1 + $0xe0] sm:$0xff]   ;;  %v930_v21 = vld [vmem:[%s1251_s1 + $0xe8] sm:$0xff]  }
   0x7   :  { %v923_v14 = vld [vmem:[%s1251_s1 + $0x18] sm:$0xff]   ;;  %v927_v18 = vld [vmem:[%s1251_s1 + $0x20] sm:$0xff]   ;;  %v931_v22 = vld [vmem:[%s1251_s1 + $0x28] sm:$0xff]  }
   0x8   :  { %868 = vmatpush3.bf16.msra.mxu0 %v915_v6  ;;  %v924_v15 = vld [vmem:[%s1251_s1 + $0x98] sm:$0xff]   ;;  %v928_v19 = vld [vmem:[%s1251_s1 + $0xa0] sm:$0xff]   ;;  %v932_v23 = vld [vmem:[%s1251_s1 + $0xa8] sm:$0xff]  }
   0x9   :  { %890 = vmatpush3.bf16.msra.mxu1 %v916_v7  ;;  %869 = vmatprep.subr.bf16.mxu0 %v917_v8  ;;  %v933_v24 = vld [vmem:[%s1251_s1 + $0x70] sm:$0xff]   ;;  %v937_v28 = vld [vmem:[%s1251_s1 + $0x78] sm:$0xff]   ;;  %v15_v32 = vld [vmem:[%s1252_s0] sm:$0xff] }
   0xa   :  { %891 = vmatprep.subr.bf16.mxu1 %v918_v9  ;;  %v934_v25 = vld [vmem:[%s1251_s1 + $0xf0] sm:$0xff]   ;;  %v938_v29 = vld [vmem:[%s1251_s1 + $0xf8] sm:$0xff]   ;;  %v16_v33 = vld [vmem:[%s1252_s0 + $0x8] sm:$0xff]  ;;  %v1083_v38 = vunpack.c.l.bf16 %v15_v32  ;;  %v1090_v41 = vunpack.c.h.bf16 %v15_v32 }
   0xb   :  { %v935_v26 = vld [vmem:[%s1251_s1 + $0x30] sm:$0xff]   ;;  %v939_v30 = vld [vmem:[%s1251_s1 + $0x38] sm:$0xff]   ;;  %v1076_v36 = vld [vmem:[%s1252_s0 + $0x20] sm:$0xff]  ;;  %v1085_v39 = vunpack.c.l.bf16 %v16_v33  ;;  %v1111_v47 = vunpack.c.h.bf16 %v16_v33 }
   0xc   :  { %870 = vmatpush3.bf16.msra.mxu0 %v919_v10  ;;  %v936_v27 = vld [vmem:[%s1251_s1 + $0xb0] sm:$0xff]   ;;  %v940_v31 = vld [vmem:[%s1251_s1 + $0xb8] sm:$0xff]   ;;  %v1081_v37 = vld [vmem:[%s1252_s0 + $0x28] sm:$0xff]  ;;  %v1106_v45 = vunpack.c.l.bf16 %v1076_v36  ;;  %v55_v50 = vcombine.high %v1083_v38, %v1083_v38 }
   0xd   :  { %892 = vmatpush3.bf16.msra.mxu1 %v920_v11  ;;  %871 = vmatprep.subr.bf16.mxu0 %v921_v12  ;;  %v1066_v34 = vld [vmem:[%s1252_s0 + $0x10] sm:$0xff]  ;;  %v1071_v35 = vld [vmem:[%s1252_s0 + $0x18] sm:$0xff]  ;;  %v1109_v46 = vunpack.c.l.bf16 %v1081_v37  ;;  %v57_v51 = vcombine.high %v1085_v39, %v1085_v39 }
   0xe   :  { %893 = vmatprep.subr.bf16.mxu1 %v922_v13  ;;  %v1088_v40 = vunpack.c.l.bf16 %v1066_v34  ;;  %v1095_v42 = vld [vmem:[%s1252_s0 + $0x30] sm:$0xff]  ;;  %v1100_v43 = vld [vmem:[%s1252_s0 + $0x38] sm:$0xff]  ;;  %v1103_v44 = vunpack.c.l.bf16 %v1071_v35  ;;  %v63_v54 = vcombine.high %v1106_v45, %v1106_v45  ;;  %v95_v58 = vsel %vm87_vm0, %v55_v50, 0.0 }
   0xf   :  { %v1114_v48 = vunpack.c.l.bf16 %v1095_v42  ;;  %v1117_v49 = vunpack.c.l.bf16 %v1100_v43  ;;  %v65_v55 = vcombine.high %v1109_v46, %v1109_v46  ;;  %v123_v59 = vsel %vm87_vm0, %v57_v51, 0.0 }
  0x10   :  { %872 = vmatpush3.bf16.msra.mxu0 %v923_v14  ;;  %v59_v52 = vcombine.high %v1088_v40, %v1088_v40  ;;  %v61_v53 = vcombine.high %v1103_v44, %v1103_v44  ;;  %v96_v60 = vrot.slane %v95_v58, 4  ;;  %v124_v61 = vrot.slane %v123_v59, 4 }
  0x11   :  { %894 = vmatpush3.bf16.msra.mxu1 %v924_v15  ;;  %873 = vmatprep.subr.bf16.mxu0 %v925_v16  ;;  %v67_v56 = vcombine.high %v1114_v48, %v1114_v48  ;;  %v69_v57 = vcombine.high %v1117_v49, %v1117_v49  ;;  %v207_v2 = vsel %vm87_vm0, %v63_v54, 0.0  ;;  %v235_v3 = vsel %vm87_vm0, %v65_v55, 0.0 }
  0x12   :  { %895 = vmatprep.subr.bf16.mxu1 %v926_v17  ;;  %v151_v62 = vsel %vm87_vm0, %v59_v52, 0.0  ;;  %v179_v63 = vsel %vm87_vm0, %v61_v53, 0.0  ;;  %v97_v4 = vadd.f32 %v96_v60, %v95_v58  ;;  %v125_v5 = vadd.f32 %v124_v61, %v123_v59 }
  0x13   :  { %v152_v0 = vrot.slane %v151_v62, 4  ;;  %v180_v1 = vrot.slane %v179_v63, 4  ;;  %v208_v6 = vrot.slane %v207_v2, 4  ;;  %v236_v7 = vrot.slane %v235_v3, 4 }
  0x14   :  { %874 = vmatpush3.bf16.msra.mxu0 %v927_v18  ;;  %v263_v10 = vsel %vm87_vm0, %v67_v56, 0.0  ;;  %v291_v11 = vsel %vm87_vm0, %v69_v57, 0.0  ;;  %v98_v12 = vrot.slane %v97_v4, 2  ;;  %v126_v13 = vrot.slane %v125_v5, 2 }
  0x15   :  { %896 = vmatpush3.bf16.msra.mxu1 %v928_v19  ;;  %875 = vmatprep.subr.bf16.mxu0 %v929_v20  ;;  %v153_v8 = vadd.f32 %v152_v0, %v151_v62  ;;  %v181_v9 = vadd.f32 %v180_v1, %v179_v63  ;;  %v209_v14 = vadd.f32 %v208_v6, %v207_v2  ;;  %v264_v18 = vrot.slane %v263_v10, 4 }
  0x16   :  { %897 = vmatprep.subr.bf16.mxu1 %v930_v21  ;;  %v237_v15 = vadd.f32 %v236_v7, %v235_v3  ;;  %v292_v19 = vrot.slane %v291_v11, 4  ;;  %v99_v20 = vadd.f32 %v98_v12, %v97_v4  ;;  %v127_v21 = vadd.f32 %v126_v13, %v125_v5 }
  0x17   :  { %v154_v16 = vrot.slane %v153_v8, 2  ;;  %v182_v17 = vrot.slane %v181_v9, 2 }
  0x18   :  { %876 = vmatpush3.bf16.msra.mxu0 %v931_v22  ;;  %v210_v22 = vrot.slane %v209_v14, 2 }
  0x19   :  { %898 = vmatpush3.bf16.msra.mxu1 %v932_v23  ;;  %877 = vmatprep.subr.bf16.mxu0 %v933_v24  ;;  %v238_v23 = vrot.slane %v237_v15, 2  ;;  %v155_v24 = vadd.f32 %v154_v16, %v153_v8 }
  0x1a   :  { %899 = vmatprep.subr.bf16.mxu1 %v934_v25  ;;  %v183_v25 = vadd.f32 %v182_v17, %v181_v9 }
  0x1b   :  { %v156_v32 = vrot.slane %v155_v24, 1 }
  0x1c   :  { %878 = vmatpush3.bf16.msra.mxu0 %v935_v26  ;;  %v265_v26 = vadd.f32 %v264_v18, %v263_v10  ;;  %v184_v33 = vrot.slane %v183_v25, 1 }
  0x1d   :  { %900 = vmatpush3.bf16.msra.mxu1 %v936_v27  ;;  %879 = vmatprep.subr.bf16.mxu0 %v937_v28  ;;  %v293_v27 = vadd.f32 %v292_v19, %v291_v11  ;;  %v100_v28 = vrot.slane %v99_v20, 1  ;;  %v157_v56 = vadd.f32 %v156_v32, %v155_v24 }
  0x1e   :  { %901 = vmatprep.subr.bf16.mxu1 %v938_v29  ;;  %v128_v29 = vrot.slane %v127_v21, 1  ;;  %v266_v50 = vrot.slane %v265_v26, 2  ;;  %v185_v57 = vadd.f32 %v184_v33, %v183_v25 }
  0x1f   :  { %v294_v51 = vrot.slane %v293_v27, 2  ;;  %v101_v52 = vadd.f32 %v100_v28, %v99_v20  ;;  %v322_v2 = vmul.f32 0.25, %v157_v56 }
  0x20   :  { %880 = vmatpush3.bf16.msra.mxu0 %v939_v30  ;;  %v211_v30 = vadd.f32 %v210_v22, %v209_v14  ;;  %v129_v53 = vadd.f32 %v128_v29, %v127_v21  ;;  %v267_v58 = vadd.f32 %v266_v50, %v265_v26  ;;  %v326_v3 = vmul.f32 0.25, %v185_v57 }
  0x21   :  { %902 = vmatpush3.bf16.msra.mxu1 %v940_v31  ;;  %v239_v31 = vadd.f32 %v238_v23, %v237_v15  ;;  %v295_v59 = vadd.f32 %v294_v51, %v293_v27  ;;  %v314_v62 = vmul.f32 0.25, %v101_v52  ;;  %v354_v10 = vpack.c.bf16 %v322_v2, %v322_v2 }
  0x22   :  { %v212_v54 = vrot.slane %v211_v30, 1  ;;  %v318_v63 = vmul.f32 0.25, %v129_v53  ;;  %v268_v0 = vrot.slane %v267_v58, 1  ;;  %v358_v11 = vpack.c.bf16 %v326_v3, %v326_v3 }
  0x23   :  { %v240_v55 = vrot.slane %v239_v31, 1  ;;  %v296_v1 = vrot.slane %v295_v59, 1  ;;  %v346_v6 = vpack.c.bf16 %v314_v62, %v314_v62  ;;  %v489_v18 = vunpack.c.l.b16 %v354_v10 }
  0x24   :  { %v213_v60 = vadd.f32 %v212_v54, %v211_v30  ;;  %v350_v7 = vpack.c.bf16 %v318_v63, %v318_v63  ;;  %v269_v8 = vadd.f32 %v268_v0, %v267_v58  ;;  %v493_v19 = vunpack.c.l.b16 %v358_v11 }
  0x25   :  { %v241_v61 = vadd.f32 %v240_v55, %v239_v31  ;;  %v297_v9 = vadd.f32 %v296_v1, %v295_v59  ;;  %v481_v14 = vunpack.c.l.b16 %v346_v6  ;;  %v1145_v23 = vunpack.c.h.bf16 %v1066_v34 }
  0x26   :  { %v330_v4 = vmul.f32 0.25, %v213_v60  ;;  %v485_v15 = vunpack.c.l.b16 %v350_v7  ;;  %v338_v16 = vmul.f32 0.25, %v269_v8  ;;  %v1149_v27 = vunpack.c.h.bf16 %v1071_v35 }
  0x27   :  { %v334_v5 = vmul.f32 0.25, %v241_v61  ;;  %v342_v17 = vmul.f32 0.25, %v297_v9  ;;  %v1153_v29 = vunpack.c.h.bf16 %v1076_v36  ;;  %v1156_v30 = vunpack.c.h.bf16 %v1081_v37 }
  0x28   :  { %v362_v12 = vpack.c.bf16 %v330_v4, %v330_v4  ;;  %v526_v22 = vsel %vm512_vm1, %v485_v15, %v481_v14  ;;  %v370_v24 = vpack.c.bf16 %v338_v16, %v338_v16  ;;  %v1159_v31 = vunpack.c.h.bf16 %v1095_v42 }
  0x29   :  { %v366_v13 = vpack.c.bf16 %v334_v5, %v334_v5  ;;  %v374_v25 = vpack.c.bf16 %v342_v17, %v342_v17  ;;  %v527_v26 = vsel %vm514_vm2, %v489_v18, %v526_v22  ;;  %v1163_v50 = vunpack.c.h.bf16 %v1100_v43 }
  0x2a   :  { %v497_v20 = vunpack.c.l.b16 %v362_v12  ;;  %v528_v28 = vsel %vm516_vm3, %v493_v19, %v527_v26  ;;  %v505_v34 = vunpack.c.l.b16 %v370_v24  ;;  %v56_v51 = vcombine.high %v1090_v41, %v1090_v41 }
  0x2b   :  { %v501_v21 = vunpack.c.l.b16 %v366_v13  ;;  %v509_v32 = vunpack.c.l.b16 %v374_v25  ;;  %v58_v36 = vcombine.high %v1111_v47, %v1111_v47  ;;  %v60_v37 = vcombine.high %v1145_v23, %v1145_v23 }
  0x2c   :  { %v529_v33 = vsel %vm518_vm4, %v497_v20, %v528_v28  ;;  %v62_v52 = vcombine.high %v1149_v27, %v1149_v27  ;;  %v64_v43 = vcombine.high %v1153_v29, %v1153_v29  ;;  %v66_v53 = vcombine.high %v1156_v30, %v1156_v30 }
  0x2d   :  { %v530_v35 = vsel %vm520_vm5, %v501_v21, %v529_v33  ;;  %v68_v55 = vcombine.high %v1159_v31, %v1159_v31  ;;  %v70_v56 = vcombine.high %v1163_v50, %v1163_v50  ;;  %v109_v57 = vsel %vm87_vm0, %v56_v51, 0.0 }
  0x2e   :  { %v531_v42 = vsel %vm522_vm6, %v505_v34, %v530_v35  ;;  %v110_v59 = vrot.slane %v109_v57, 4  ;;  %v137_v60 = vsel %vm87_vm0, %v58_v36, 0.0  ;;  %v165_v61 = vsel %vm87_vm0, %v60_v37, 0.0 }
  0x2f   :  { %v532_v54 = vsel %vm524_vm7, %v509_v32, %v531_v42  ;;  %v138_v62 = vrot.slane %v137_v60, 4  ;;  %v166_v63 = vrot.slane %v165_v61, 4  ;;  %v193_v0 = vsel %vm87_vm0, %v62_v52, 0.0 }
  0x30   :  { %v548_v58 = vpack.c.b16 %v532_v54, %v532_v54  ;;  %v221_v1 = vsel %vm87_vm0, %v64_v43, 0.0  ;;  %v111_v2 = vadd.f32 %v110_v59, %v109_v57  ;;  %v194_v3 = vrot.slane %v193_v0, 4 }
  0x31   :  { %v222_v4 = vrot.slane %v221_v1, 4  ;;  %v249_v5 = vsel %vm87_vm0, %v66_v53, 0.0  ;;  %v139_v6 = vadd.f32 %v138_v62, %v137_v60  ;;  %v167_v7 = vadd.f32 %v166_v63, %v165_v61 }
  0x32   :  { %779 = vmatprep.mubr.bf16.mxu0 %v548_v58  ;;  %v250_v8 = vrot.slane %v249_v5, 4  ;;  %v277_v9 = vsel %vm87_vm0, %v68_v55, 0.0  ;;  %v112_v10 = vrot.slane %v111_v2, 2  ;;  %v195_v11 = vadd.f32 %v194_v3, %v193_v0 }
  0x33   :  { %v223_v12 = vadd.f32 %v222_v4, %v221_v1  ;;  %v278_v13 = vrot.slane %v277_v9, 4  ;;  %v140_v14 = vrot.slane %v139_v6, 2  ;;  %v168_v15 = vrot.slane %v167_v7, 2 }
  0x34   :  { %v251_v16 = vadd.f32 %v250_v8, %v249_v5  ;;  %v305_v17 = vsel %vm87_vm0, %v70_v56, 0.0  ;;  %v113_v18 = vadd.f32 %v112_v10, %v111_v2  ;;  %v196_v19 = vrot.slane %v195_v11, 2 }
  0x35   :  { %v224_v20 = vrot.slane %v223_v12, 2  ;;  %v279_v21 = vadd.f32 %v278_v13, %v277_v9  ;;  %v141_v22 = vadd.f32 %v140_v14, %v139_v6  ;;  %v169_v24 = vadd.f32 %v168_v15, %v167_v7 }
  0x36   :  { %v252_v25 = vrot.slane %v251_v16, 2  ;;  %v306_v26 = vrot.slane %v305_v17, 4  ;;  %v114_v28 = vrot.slane %v113_v18, 1  ;;  %v197_v34 = vadd.f32 %v196_v19, %v195_v11 }
  0x37   :  { %v225_v32 = vadd.f32 %v224_v20, %v223_v12  ;;  %v280_v33 = vrot.slane %v279_v21, 2  ;;  %v142_v35 = vrot.slane %v141_v22, 1  ;;  %v170_v51 = vrot.slane %v169_v24, 1 }
  0x38   :  { %v253_v36 = vadd.f32 %v252_v25, %v251_v16  ;;  %v307_v37 = vadd.f32 %v306_v26, %v305_v17  ;;  %v115_v42 = vadd.f32 %v114_v28, %v113_v18  ;;  %v198_v52 = vrot.slane %v197_v34, 1 }
  0x39   :  { %v226_v43 = vrot.slane %v225_v32, 1  ;;  %v281_v53 = vadd.f32 %v280_v33, %v279_v21  ;;  %v143_v54 = vadd.f32 %v142_v35, %v141_v22  ;;  %v171_v55 = vadd.f32 %v170_v51, %v169_v24 }
  0x3a   :  { %v254_v56 = vrot.slane %v253_v36, 1  ;;  %v308_v57 = vrot.slane %v307_v37, 2  ;;  %v199_v58 = vadd.f32 %v198_v52, %v197_v34  ;;  %v316_v61 = vmul.f32 0.25, %v115_v42 }
  0x3b   :  { %v227_v59 = vadd.f32 %v226_v43, %v225_v32  ;;  %v282_v60 = vrot.slane %v281_v53, 1  ;;  %v320_v0 = vmul.f32 0.25, %v143_v54  ;;  %v324_v1 = vmul.f32 0.25, %v171_v55 }
  0x3c   :  { %v255_v62 = vadd.f32 %v254_v56, %v253_v36  ;;  %v309_v63 = vadd.f32 %v308_v57, %v307_v37  ;;  %v328_v3 = vmul.f32 0.25, %v199_v58  ;;  %v348_v5 = vpack.c.bf16 %v316_v61, %v316_v61 }
  0x3d   :  { %v283_v2 = vadd.f32 %v282_v60, %v281_v53  ;;  %v332_v4 = vmul.f32 0.25, %v227_v59  ;;  %v352_v8 = vpack.c.bf16 %v320_v0, %v320_v0  ;;  %v356_v9 = vpack.c.bf16 %v324_v1, %v324_v1 }
  0x3e   :  { %v310_v6 = vrot.slane %v309_v63, 1  ;;  %v336_v7 = vmul.f32 0.25, %v255_v62  ;;  %v360_v11 = vpack.c.bf16 %v328_v3, %v328_v3  ;;  %v483_v13 = vunpack.c.l.b16 %v348_v5 }
  0x3f   :  { %v340_v10 = vmul.f32 0.25, %v283_v2  ;;  %v364_v12 = vpack.c.bf16 %v332_v4, %v332_v4  ;;  %v487_v16 = vunpack.c.l.b16 %v352_v8  ;;  %v491_v17 = vunpack.c.l.b16 %v356_v9 }
  0x40   :  { %v311_v14 = vadd.f32 %v310_v6, %v309_v63  ;;  %v368_v15 = vpack.c.bf16 %v336_v7, %v336_v7  ;;  %v495_v19 = vunpack.c.l.b16 %v360_v11  ;;  %v88_v21 = vsel %vm87_vm0, %v1083_v38, 0.0 }
  0x41   :  { %v372_v18 = vpack.c.bf16 %v340_v10, %v340_v10  ;;  %v499_v20 = vunpack.c.l.b16 %v364_v12  ;;  %v540_v25 = vsel %vm512_vm1, %v487_v16, %v483_v13  ;;  %v89_v26 = vrot.slane %v88_v21, 4 }
  0x42   :  { %v344_v22 = vmul.f32 0.25, %v311_v14  ;;  %v503_v24 = vunpack.c.l.b16 %v368_v15  ;;  %v541_v34 = vsel %vm514_vm2, %v491_v17, %v540_v25  ;;  %v116_v32 = vsel %vm87_vm0, %v1085_v39, 0.0 }
  0x43   :  { %v507_v28 = vunpack.c.l.b16 %v372_v18  ;;  %v144_v33 = vsel %vm87_vm0, %v1088_v40, 0.0  ;;  %v542_v51 = vsel %vm516_vm3, %v495_v19, %v541_v34  ;;  %v90_v36 = vadd.f32 %v89_v26, %v88_v21 }
  0x44   :  { %v376_v35 = vpack.c.bf16 %v344_v22, %v344_v22  ;;  %v117_v37 = vrot.slane %v116_v32, 4  ;;  %v543_v38 = vsel %vm518_vm4, %v499_v20, %v542_v51  ;;  %v145_v42 = vrot.slane %v144_v33, 4 }
  0x45   :  { %v172_v52 = vsel %vm87_vm0, %v1103_v44, 0.0  ;;  %v200_v43 = vsel %vm87_vm0, %v1106_v45, 0.0  ;;  %v544_v39 = vsel %vm520_vm5, %v503_v24, %v543_v38  ;;  %v91_v54 = vrot.slane %v90_v36, 2 }
  0x46   :  { %v511_v53 = vunpack.c.l.b16 %v376_v35  ;;  %v118_v55 = vadd.f32 %v117_v37, %v116_v32  ;;  %v545_v40 = vsel %vm522_vm6, %v507_v28, %v544_v39  ;;  %v146_v56 = vadd.f32 %v145_v42, %v144_v33 }
  0x47   :  { %v173_v57 = vrot.slane %v172_v52, 4  ;;  %v201_v58 = vrot.slane %v200_v43, 4  ;;  %v92_v60 = vadd.f32 %v91_v54, %v90_v36  ;;  %v228_v44 = vsel %vm87_vm0, %v1109_v46, 0.0 }
  0x48   :  { %v546_v59 = vsel %vm524_vm7, %v511_v53, %v545_v40  ;;  %v119_v61 = vrot.slane %v118_v55, 2  ;;  %v147_v63 = vrot.slane %v146_v56, 2  ;;  %v229_v3 = vrot.slane %v228_v44, 4 }
  0x49   :  { %v550_v62 = vpack.c.b16 %v546_v59, %v546_v59  ;;  %v174_v45 = vadd.f32 %v173_v57, %v172_v52  ;;  %v202_v0 = vadd.f32 %v201_v58, %v200_v43  ;;  %v93_v1 = vrot.slane %v92_v60, 1 }
  0x4a   :  { %v120_v2 = vadd.f32 %v119_v61, %v118_v55  ;;  %v256_v4 = vsel %vm87_vm0, %v1114_v48, 0.0  ;;  %v148_v5 = vadd.f32 %v147_v63, %v146_v56  ;;  %v230_v11 = vadd.f32 %v229_v3, %v228_v44 }
  0x4b   :  { %819 = vmatprep.mubr.bf16.mxu1 %v550_v62  ;;  %v175_v6 = vrot.slane %v174_v45, 2  ;;  %v203_v7 = vrot.slane %v202_v0, 2  ;;  %v257_v8 = vrot.slane %v256_v4, 4  ;;  %v94_v9 = vadd.f32 %v93_v1, %v92_v60 }
  0x4c   :  { %v121_v10 = vrot.slane %v120_v2, 1  ;;  %v284_v46 = vsel %vm87_vm0, %v1117_v49, 0.0  ;;  %v149_v12 = vrot.slane %v148_v5, 1  ;;  %v231_v17 = vrot.slane %v230_v11, 2 }
  0x4d   :  { %v176_v13 = vadd.f32 %v175_v6, %v174_v45  ;;  %v204_v14 = vadd.f32 %v203_v7, %v202_v0  ;;  %v258_v15 = vadd.f32 %v257_v8, %v256_v4  ;;  %v285_v18 = vrot.slane %v284_v46, 4 }
  0x4e   :  { %v122_v16 = vadd.f32 %v121_v10, %v120_v2  ;;  %v313_v19 = vmul.f32 0.25, %v94_v9  ;;  %v150_v48 = vadd.f32 %v149_v12, %v148_v5  ;;  %v232_v24 = vadd.f32 %v231_v17, %v230_v11 }
  0x4f   :  { %v177_v20 = vrot.slane %v176_v13, 1  ;;  %v205_v21 = vrot.slane %v204_v14, 1  ;;  %v259_v22 = vrot.slane %v258_v15, 2  ;;  %v286_v25 = vadd.f32 %v285_v18, %v284_v46 }
  0x50   :  { %v317_v26 = vmul.f32 0.25, %v122_v16  ;;  %v345_v28 = vpack.c.bf16 %v313_v19, %v313_v19  ;;  %v321_v49 = vmul.f32 0.25, %v150_v48  ;;  %v233_v35 = vrot.slane %v232_v24, 1 }
  0x51   :  { %v178_v34 = vadd.f32 %v177_v20, %v176_v13  ;;  %v206_v32 = vadd.f32 %v205_v21, %v204_v14  ;;  %v260_v33 = vadd.f32 %v259_v22, %v258_v15  ;;  %v287_v51 = vrot.slane %v286_v25, 2 }
  0x52   :  { %v349_v36 = vpack.c.bf16 %v317_v26, %v317_v26  ;;  %v480_v37 = vunpack.c.l.b16 %v345_v28  ;;  %v353_v43 = vpack.c.bf16 %v321_v49, %v321_v49  ;;  %v234_v53 = vadd.f32 %v233_v35, %v232_v24 }
  0x53   :  { %v261_v38 = vrot.slane %v260_v33, 1  ;;  %v325_v42 = vmul.f32 0.25, %v178_v34  ;;  %v329_v52 = vmul.f32 0.25, %v206_v32  ;;  %v288_v39 = vadd.f32 %v287_v51, %v286_v25 }
  0x54   :  { %v484_v54 = vunpack.c.l.b16 %v349_v36  ;;  %v102_v55 = vsel %vm87_vm0, %v1090_v41, 0.0  ;;  %v488_v58 = vunpack.c.l.b16 %v353_v43  ;;  %v333_v60 = vmul.f32 0.25, %v234_v53 }
  0x55   :  { %v262_v40 = vadd.f32 %v261_v38, %v260_v33  ;;  %v357_v56 = vpack.c.bf16 %v325_v42, %v325_v42  ;;  %v361_v57 = vpack.c.bf16 %v329_v52, %v329_v52  ;;  %v289_v59 = vrot.slane %v288_v39, 1 }
  0x56   :  { %v513_v61 = vsel %vm512_vm1, %v484_v54, %v480_v37  ;;  %v103_v44 = vrot.slane %v102_v55, 4  ;;  %v365_v2 = vpack.c.bf16 %v333_v60, %v333_v60  ;;  %v130_v41 = vsel %vm87_vm0, %v1111_v47, 0.0 }
  0x57   :  { %v337_v62 = vmul.f32 0.25, %v262_v40  ;;  %v492_v63 = vunpack.c.l.b16 %v357_v56  ;;  %v496_v45 = vunpack.c.l.b16 %v361_v57  ;;  %v515_v0 = vsel %vm514_vm2, %v488_v58, %v513_v61 }
  0x58   :  { %v290_v1 = vadd.f32 %v289_v59, %v288_v39  ;;  %v104_v3 = vadd.f32 %v103_v44, %v102_v55  ;;  %v131_v6 = vrot.slane %v130_v41, 4  ;;  %v158_v7 = vsel %vm87_vm0, %v1145_v23, 0.0 }
  0x59   :  { %v369_v4 = vpack.c.bf16 %v337_v62, %v337_v62  ;;  %v517_v5 = vsel %vm516_vm3, %v492_v63, %v515_v0  ;;  %v500_v9 = vunpack.c.l.b16 %v365_v2  ;;  %v159_v13 = vrot.slane %v158_v7, 4 }
  0x5a   :  { %v341_v8 = vmul.f32 0.25, %v290_v1  ;;  %v519_v10 = vsel %vm518_vm4, %v496_v45, %v517_v5  ;;  %v105_v11 = vrot.slane %v104_v3, 2  ;;  %v132_v12 = vadd.f32 %v131_v6, %v130_v41 }
  0x5b   :  { %v504_v46 = vunpack.c.l.b16 %v369_v4  ;;  %v186_v14 = vsel %vm87_vm0, %v1149_v27, 0.0  ;;  %v521_v47 = vsel %vm520_vm5, %v500_v9, %v519_v10  ;;  %v160_v23 = vadd.f32 %v159_v13, %v158_v7 }
  0x5c   :  { %v373_v15 = vpack.c.bf16 %v341_v8, %v341_v8  ;;  %v106_v16 = vadd.f32 %v105_v11, %v104_v3  ;;  %v187_v17 = vrot.slane %v186_v14, 4  ;;  %v133_v19 = vrot.slane %v132_v12, 2 }
  0x5d   :  { %v523_v18 = vsel %vm522_vm6, %v504_v46, %v521_v47  ;;  %v214_v48 = vsel %vm87_vm0, %v1153_v29, 0.0  ;;  %v161_v26 = vrot.slane %v160_v23, 2  ;;  %v242_v27 = vsel %vm87_vm0, %v1156_v30, 0.0 }
  0x5e   :  { %v508_v20 = vunpack.c.l.b16 %v373_v15  ;;  %v107_v21 = vrot.slane %v106_v16, 1  ;;  %v188_v22 = vadd.f32 %v187_v17, %v186_v14  ;;  %v215_v24 = vrot.slane %v214_v48, 4 }
  0x5f   :  { %v134_v25 = vadd.f32 %v133_v19, %v132_v12  ;;  %v270_v28 = vsel %vm87_vm0, %v1159_v31, 0.0  ;;  %v162_v29 = vadd.f32 %v161_v26, %v160_v23  ;;  %v243_v36 = vrot.slane %v242_v27, 4 }
  0x60   :  { %v525_v34 = vsel %vm524_vm7, %v508_v20, %v523_v18  ;;  %v108_v32 = vadd.f32 %v107_v21, %v106_v16  ;;  %v189_v33 = vrot.slane %v188_v22, 2  ;;  %v216_v49 = vadd.f32 %v215_v24, %v214_v48 }
  0x61   :  { %v547_v35 = vpack.c.b16 %v525_v34, %v525_v34  ;;  %v135_v51 = vrot.slane %v134_v25, 1  ;;  %v271_v42 = vrot.slane %v270_v28, 4  ;;  %v298_v52 = vsel %vm87_vm0, %v1163_v50, 0.0 }
  0x62   :  { %v190_v37 = vadd.f32 %v189_v33, %v188_v22  ;;  %v217_v38 = vrot.slane %v216_v49, 2  ;;  %v163_v43 = vrot.slane %v162_v29, 1  ;;  %v244_v53 = vadd.f32 %v243_v36, %v242_v27 }
  0x63   :  { %780 = vmatmul.mubr.bf16.vlgmr.msra.gmra.mrb[0].mxu0 %v547_v35  ;;  %v136_v30 = vadd.f32 %v135_v51, %v134_v25  ;;  %v299_v31 = vrot.slane %v298_v52, 4  ;;  %v272_v55 = vadd.f32 %v271_v42, %v270_v28  ;;  %v315_v40 = vmul.f32 0.25, %v108_v32 }
  0x64   :  { %v191_v39 = vrot.slane %v190_v37, 1  ;;  %v218_v54 = vadd.f32 %v217_v38, %v216_v49  ;;  %v164_v56 = vadd.f32 %v163_v43, %v162_v29  ;;  %v245_v57 = vrot.slane %v244_v53, 2  ;;  %v832_v38 = vld [vmem:[%s1253_s2] ss:$0 sm:$0xff] }
  0x65   :  { %v300_v58 = vadd.f32 %v299_v31, %v298_v52  ;;  %v319_v59 = vmul.f32 0.25, %v136_v30  ;;  %v273_v44 = vrot.slane %v272_v55, 2  ;;  %v347_v62 = vpack.c.bf16 %v315_v40, %v315_v40 }
  0x66   :  { %v192_v60 = vadd.f32 %v191_v39, %v190_v37  ;;  %v219_v61 = vrot.slane %v218_v54, 1  ;;  %v246_v63 = vadd.f32 %v245_v57, %v244_v53  ;;  %v323_v50 = vmul.f32 0.25, %v164_v56 }
  0x67   :  { %v301_v45 = vrot.slane %v300_v58, 2  ;;  %v351_v0 = vpack.c.bf16 %v319_v59, %v319_v59  ;;  %v274_v2 = vadd.f32 %v273_v44, %v272_v55  ;;  %v482_v41 = vunpack.c.l.b16 %v347_v62 }
  0x68   :  { %v220_v1 = vadd.f32 %v219_v61, %v218_v54  ;;  %v327_v3 = vmul.f32 0.25, %v192_v60  ;;  %v247_v4 = vrot.slane %v246_v63, 1  ;;  %v355_v6 = vpack.c.bf16 %v323_v50, %v323_v50 }
  0x69   :  { %v302_v5 = vadd.f32 %v301_v45, %v300_v58  ;;  %v486_v7 = vunpack.c.l.b16 %v351_v0  ;;  %v275_v8 = vrot.slane %v274_v2, 1 }
  0x6a   :  { %v331_v9 = vmul.f32 0.25, %v220_v1  ;;  %v359_v10 = vpack.c.bf16 %v327_v3, %v327_v3  ;;  %v248_v11 = vadd.f32 %v247_v4, %v246_v63  ;;  %v490_v12 = vunpack.c.l.b16 %v355_v6 }
  0x6b   :  { %v303_v46 = vrot.slane %v302_v5, 1  ;;  %v533_v13 = vsel %vm512_vm1, %v486_v7, %v482_v41  ;;  %v276_v14 = vadd.f32 %v275_v8, %v274_v2 }
  0x6c   :  { %v363_v15 = vpack.c.bf16 %v331_v9, %v331_v9  ;;  %v494_v47 = vunpack.c.l.b16 %v359_v10  ;;  %v335_v17 = vmul.f32 0.25, %v248_v11  ;;  %v534_v18 = vsel %vm514_vm2, %v490_v12, %v533_v13 }
  0x6d   :  { %v304_v16 = vadd.f32 %v303_v46, %v302_v5  ;;  %v339_v19 = vmul.f32 0.25, %v276_v14 }
  0x6e   :  { %v498_v23 = vunpack.c.l.b16 %v363_v15  ;;  %v535_v48 = vsel %vm516_vm3, %v494_v47, %v534_v18  ;;  %v367_v21 = vpack.c.bf16 %v335_v17, %v335_v17 }
  0x6f   :  { %v343_v20 = vmul.f32 0.25, %v304_v16  ;;  %v371_v22 = vpack.c.bf16 %v339_v19, %v339_v19 }
  0x70   :  { %v536_v24 = vsel %vm518_vm4, %v498_v23, %v535_v48  ;;  %v502_v26 = vunpack.c.l.b16 %v367_v21 }
  0x71   :  { %v375_v25 = vpack.c.bf16 %v343_v20, %v343_v20  ;;  %v506_v27 = vunpack.c.l.b16 %v371_v22 }
  0x72   :  { %v537_v34 = vsel %vm520_vm5, %v502_v26, %v536_v24 }
  0x73   :  { %v510_v28 = vunpack.c.l.b16 %v375_v25  ;;  %v538_v32 = vsel %vm522_vm6, %v506_v27, %v537_v34 }
  0x75   :  { %v539_v33 = vsel %vm524_vm7, %v510_v28, %v538_v32 }
  0x76   :  { %v549_v49 = vpack.c.b16 %v539_v33, %v539_v33 }
  0x78   :  { %820 = vmatmul.mubr.bf16.vlgmr.msra.gmra.mrb[0].mxu1 %v549_v49 }
 0x136   :  { %v881_v35 = vpop.f32.mrb[0].mxu0 }
 0x137   :  { %v882_v51 = vpop.f32.mrb[1].mxu0 }
 0x138   :  { %v883_v29 = vadd.f32 %v882_v51, %v881_v35  ;;  %v884_v36 = vpop.f32.mrb[2].mxu0 }
 0x139   :  { %v885_v37 = vpop.f32.mrb[3].mxu0 }
 0x13a   :  { %v782_v52 = vadd.f32 %v883_v29, %v832_v38 }
 0x14b   :  { %v903_v42 = vpop.f32.mrb[0].mxu1 }
 0x14c   :  { %v904_v30 = vpop.f32.mrb[1].mxu1 }
 0x14d   :  { %v905_v43 = vadd.f32 %v904_v30, %v903_v42  ;;  %v906_v53 = vpop.f32.mrb[2].mxu1 }
 0x14e   :  { %v907_v31 = vpop.f32.mrb[3].mxu1 }
 0x14f   :  { %v822_v39 = vadd.f32 %v905_v43, %v782_v52 }
 0x151   :  { %827 = vst [vmem:[%s1254_s3] sm:$0xff] %v822_v39 }

</bundles_post_ra>
